<compile_context>
chip_gen: v5e
topology: v5e:2x2
jax: 0.10.0
libtpu: 0.0.40
codegen_flags: <defaults>
</compile_context>

<pallas_src>
import functools
import math

import numpy as np
import jax
import jax.numpy as jnp
from jax import lax
from jax.experimental import pallas as pl
from jax.experimental.pallas import tpu as pltpu


# -------------------------- Pallas kernel --------------------------

def _nonlocal_kernel(x_ref, mask_ref, keep_ref, w_ref, b_ref, out_ref, attn_ref, *,
                     odim, nheads, block_b):
    """Fused NonLocalBlock forward for a block of `block_b` batch elements.

    x_ref:    (block_b, nseg, idim)              input features (f32)
    mask_ref: (block_b, 1, nseg)                 key mask (1.0 = keep, 0.0 = drop)
    keep_ref: (nseg, nseg)                       local-window "keep" bias (+1e30 keep / -1e9 drop)
    w_ref:    (idim, 3*odim)  bf16               [ Wv | Wq*scale | Wvv ] fused projection weight
    b_ref:    (1, 3*odim)     f32                fused projection bias (scale folded into q slice)
    out_ref:  (block_b, nseg, idim)              updated features (residual added)
    attn_ref: (block_b, nheads, nseg, nseg)      per-head attention weights (bf16)
    """
    bB, nseg, idim = x_ref.shape
    dh = odim // nheads

    x = x_ref[...]                                            # (bB, nseg, idim) f32
    xb = x.reshape(bB * nseg, idim).astype(jnp.bfloat16)

    # One lane-dense bf16 MXU matmul for all three projections of all batch rows in the block.
    proj = jnp.dot(xb, w_ref[...], preferred_element_type=jnp.float32)
    proj = proj + b_ref[...]                                  # (bB*nseg, 3*odim) f32
    projb = proj.astype(jnp.bfloat16)                         # MXU operands for scores / PV

    local_keep = keep_ref[...]                                # (nseg, nseg) f32

    for bi in range(block_b):                                 # static unroll over batch-in-block
        # Hoisted combined mask: exact masked_fill(-1e9) semantics via a single minimum.
        col_keep = jnp.where(mask_ref[bi] >= 0.5,
                             jnp.float32(1e30), jnp.float32(-1e9))   # (1, nseg)
        keep = jnp.minimum(local_keep, col_keep)              # (nseg, nseg)

        pb = projb[bi * nseg:(bi + 1) * nseg]                 # (nseg, 3*odim) bf16
        x_b = x[bi]                                           # (nseg, idim) f32

        r_parts = []
        for h in range(nheads):                               # static unroll over heads
            k_h = pb[:, h * dh:(h + 1) * dh]
            q_h = pb[:, odim + h * dh:odim + (h + 1) * dh]    # scale already folded in
            v_h = pb[:, 2 * odim + h * dh:2 * odim + (h + 1) * dh]

            # k @ q^T without materializing a transpose (contract last dims on the MXU).
            s = lax.dot_general(k_h, q_h,
                                dimension_numbers=(((1,), (1,)), ((), ())),
                                preferred_element_type=jnp.float32)   # (nseg, nseg)
            s = jnp.minimum(s, keep)                          # masked -> exactly -1e9

            # numerically stable softmax over keys (f32), denom via EUP reciprocal
            s_max = jnp.max(s, axis=-1, keepdims=True)
            p = jnp.exp(s - s_max)
            inv = pl.reciprocal(jnp.sum(p, axis=-1, keepdims=True), approx=True)
            w_h = p * inv

            attn_ref[bi, h] = w_h.astype(attn_ref.dtype)      # bf16 writeback
            r_parts.append(jnp.dot(w_h.astype(jnp.bfloat16), v_h,
                                   preferred_element_type=jnp.float32))

        r = jnp.concatenate(r_parts, axis=-1)                 # (nseg, odim) f32
        out_ref[bi] = (x_b + r).astype(out_ref.dtype)


# -------------------------- pallas_call wrapper --------------------------

def _make_local_keep(nseg, use_local_mask, ksize, dilation):
    """Additive-free 'keep' matrix: +1e30 where the local window allows attention, -1e9 where not."""
    if not use_local_mask:
        return jnp.full((nseg, nseg), 1e30, jnp.float32)
    lm = np.eye(nseg)
    half = ksize // 2
    for i in range(1, half + 1):
        lm += np.eye(nseg, k=dilation * i)
        lm += np.eye(nseg, k=-dilation * i)
    keep = np.where(lm == 0, -1e9, 1e30).astype(np.float32)
    return jnp.asarray(keep)


def non_local_block(m_feats, mask, params, *, odim, nheads,
                    use_local_mask=False, ksize=15, dilation=1,
                    block_b=None, attn_dtype=jnp.bfloat16):
    """m_feats: [B, nseg, idim], mask: [B, nseg], params from prepare_params().
    Returns (updated [B,nseg,idim], attention weights [B, nheads, nseg, nseg])."""
    B, nseg, idim = m_feats.shape
    assert idim == odim, "residual add requires idim == odim (as in the PyTorch module)"
    assert odim % nheads == 0

    if block_b is None:
        block_b = 1
        for cand in (8, 4, 2):
            if B % cand == 0:
                block_b = cand
                break
    assert B % block_b == 0

    w_all = params["w_all"]                               # (idim, 3*odim) bf16, scale folded
    b_all = params["b_all"]                               # (1, 3*odim)    f32, scale folded
    mask3 = mask.astype(jnp.float32).reshape(B, 1, nseg)
    local_keep = _make_local_keep(nseg, use_local_mask, ksize, dilation)

    kernel = functools.partial(_nonlocal_kernel, odim=odim, nheads=nheads, block_b=block_b)

    out_shape = (
        jax.ShapeDtypeStruct((B, nseg, idim), m_feats.dtype),
        jax.ShapeDtypeStruct((B, nheads, nseg, nseg), attn_dtype),
    )

    # VMEM budget: in/out blocks are double-buffered; the attn block grows as nheads*nseg^2
    # (quadratic in nseg) which is the binding term on v7x's 64 MiB VMEM at large nseg.
    attn_bytes = block_b * nheads * nseg * nseg * jnp.dtype(attn_dtype).itemsize
    blk_bytes = (2 * block_b * nseg * idim * 4            # x + out blocks
                 + attn_bytes
                 + block_b * 8 * max(nseg, 128) * 4)      # padded mask block
    resident = (idim * 3 * odim * 2                        # bf16 weights
                + nseg * nseg * 4                          # local keep matrix
                + 8 * 3 * odim * 4)                        # padded bias
    vmem_limit = int(min(64 * 1024 * 1024, max(16 * 1024 * 1024, 3 * blk_bytes + resident)))

    grid = (B // block_b,)
    updated, attn = pl.pallas_call(
        kernel,
        out_shape=out_shape,
        grid_spec=pl.GridSpec(
            grid=grid,
            in_specs=[
                pl.BlockSpec((block_b, nseg, idim), lambda b: (b, 0, 0)),
                pl.BlockSpec((block_b, 1, nseg), lambda b: (b, 0, 0)),
                pl.BlockSpec((nseg, nseg), lambda b: (0, 0)),          # resident local mask
                pl.BlockSpec((idim, 3 * odim), lambda b: (0, 0)),      # resident weights
                pl.BlockSpec((1, 3 * odim), lambda b: (0, 0)),         # resident bias
            ],
            out_specs=(
                pl.BlockSpec((block_b, nseg, idim), lambda b: (b, 0, 0)),
                pl.BlockSpec((block_b, nheads, nseg, nseg), lambda b: (b, 0, 0, 0)),
            ),
        ),
        compiler_params=pltpu.CompilerParams(
            dimension_semantics=("parallel",),
            vmem_limit_bytes=vmem_limit,
        ),
    )(m_feats, mask3, local_keep, w_all, b_all)
    return updated, attn


# -------------------------- deterministic params --------------------------

def init_params(key, idim, odim):
    """Raw fused projection (f32, unscaled): columns [0:odim)=v_lin, [odim:2*odim)=q half of
    c_lin, [2*odim:3*odim)=v half of c_lin. Stored input-major [idim, 3*odim]."""
    kw, kb = jax.random.split(key)
    w_all = 0.05 * jax.random.normal(kw, (idim, 3 * odim), jnp.float32)
    b_all = 0.05 * jax.random.normal(kb, (3 * odim,), jnp.float32)
    return dict(w_all=w_all, b_all=b_all)


def prepare_params(raw, *, odim, nheads):
    """One-time parameter transform for the kernel: fold 1/sqrt(dh) into the q columns and
    store the fused weight in bf16 for the MXU (bias stays f32, added to the f32 accumulator)."""
    dh = odim // nheads
    scale = 1.0 / math.sqrt(dh)
    w = raw["w_all"].astype(jnp.float32)
    b = raw["b_all"].astype(jnp.float32).reshape(-1)
    w = w.at[:, odim:2 * odim].multiply(scale)
    b = b.at[odim:2 * odim].multiply(scale)
    return dict(w_all=w.astype(jnp.bfloat16), b_all=b.reshape(1, -1))


# -------------------------- pure-JAX reference --------------------------

def non_local_block_ref(m_feats, mask, raw, *, odim, nheads,
                        use_local_mask=False, ksize=15, dilation=1):
    B, nseg, idim = m_feats.shape
    dh = odim // nheads
    hp = jax.lax.Precision.HIGHEST

    proj = jnp.einsum("bsi,io->bso", m_feats, raw["w_all"], precision=hp) + raw["b_all"]
    m_k = proj[..., :odim]
    m_q = proj[..., odim:2 * odim]
    m_v = proj[..., 2 * odim:]

    maskf = mask.astype(jnp.float32)
    if use_local_mask:
        lm = np.eye(nseg)
        half = ksize // 2
        for i in range(1, half + 1):
            lm += np.eye(nseg, k=dilation * i)
            lm += np.eye(nseg, k=-dilation * i)
        lm = jnp.asarray(lm, jnp.float32)

    w_list, r_list = [], []
    for h in range(nheads):
        k_h = m_k[..., h * dh:(h + 1) * dh]
        q_h = m_q[..., h * dh:(h + 1) * dh]
        v_h = m_v[..., h * dh:(h + 1) * dh]
        m2m = jnp.einsum("bkd,bqd->bkq", k_h, q_h, precision=hp) / math.sqrt(dh)
        if use_local_mask:
            m2m = jnp.where(lm[None] == 0, -1e9, m2m)
        m2m = jnp.where(maskf[:, None, :] == 0, -1e9, m2m)
        w = jax.nn.softmax(m2m, axis=-1)
        w_list.append(w)
        r_list.append(jnp.einsum("bkq,bqd->bkd", w, v_h, precision=hp))
    r = jnp.concatenate(r_list, axis=-1)
    return m_feats + r, jnp.stack(w_list, axis=1)


# -------------------------- main --------------------------

if __name__ == "__main__":
    B, nseg, idim, odim, nheads = 2, 128, 128, 128, 4
    use_local_mask, ksize, dilation = True, 15, 1

    key = jax.random.PRNGKey(0)
    kx, kp = jax.random.split(key)
    m_feats = jax.random.normal(kx, (B, nseg, idim), jnp.float32)
    raw_params = init_params(kp, idim, odim)
    params = prepare_params(raw_params, odim=odim, nheads=nheads)

    # batch 0 fully valid; batch 1 masks out the last 5 segments
    seg_idx = jnp.arange(nseg)
    mask = jnp.stack([jnp.ones((nseg,), jnp.float32),
                      (seg_idx < nseg - 5).astype(jnp.float32)], axis=0)

    updated, attn = non_local_block(
        m_feats, mask, params, odim=odim, nheads=nheads,
        use_local_mask=use_local_mask, ksize=ksize, dilation=dilation,
        block_b=2)
    updated = jax.block_until_ready(updated)
    attn = jax.block_until_ready(attn)

    ref_u, ref_w = non_local_block_ref(
        m_feats, mask, raw_params, odim=odim, nheads=nheads,
        use_local_mask=use_local_mask, ksize=ksize, dilation=dilation)

    assert updated.shape == (B, nseg, idim), updated.shape
    assert attn.shape == (B, nheads, nseg, nseg), attn.shape
    # Tolerances account for bf16 MXU operands + bf16 attention output (f32 accumulation/softmax).
    assert jnp.allclose(updated, ref_u, atol=2e-2, rtol=2e-2), "updated_m mismatch vs JAX reference"
    assert jnp.allclose(attn.astype(jnp.float32), ref_w, atol=2e-2, rtol=2e-2), \
        "attention-weight mismatch vs JAX reference"

    print("KERNEL_OK")
</pallas_src>

<mosaic_0001>
module attributes {stable_mosaic.version = 11 : i64} {
  func.func @_nonlocal_kernel(%arg0: i32, %arg1: memref<2x128x128xf32, #tpu.memory_space<vmem>>, %arg2: memref<2x1x128xf32, #tpu.memory_space<vmem>>, %arg3: memref<128x128xf32, #tpu.memory_space<vmem>>, %arg4: memref<128x384xbf16, #tpu.memory_space<vmem>>, %arg5: memref<1x384xf32, #tpu.memory_space<vmem>>, %arg6: memref<2x128x128xf32, #tpu.memory_space<vmem>>, %arg7: memref<2x4x128x128xbf16, #tpu.memory_space<vmem>>) attributes {dimension_semantics = [#tpu.dimension_semantics<parallel>], iteration_bounds = array<i64: 1>, scalar_prefetch = 0 : i64, scratch_operands = 0 : i64, tpu.core_type = #tpu.core_type<tc>, window_params = [{transform_indices = @transform_0, window_bounds = array<i64: 2, 128, 128>}, {transform_indices = @transform_1, window_bounds = array<i64: 2, 1, 128>}, {pipeline_mode = #tpu.pipeline_mode<synchronous>, transform_indices = @transform_2, window_bounds = array<i64: 128, 128>}, {pipeline_mode = #tpu.pipeline_mode<synchronous>, transform_indices = @transform_3, window_bounds = array<i64: 128, 384>}, {pipeline_mode = #tpu.pipeline_mode<synchronous>, transform_indices = @transform_4, window_bounds = array<i64: 1, 384>}, {transform_indices = @transform_5, window_bounds = array<i64: 2, 128, 128>}, {transform_indices = @transform_6, window_bounds = array<i64: 2, 4, 128, 128>}]} {
    %c0 = arith.constant 0 : index
    %c0_0 = arith.constant 0 : index
    %c0_1 = arith.constant 0 : index
    %0 = vector.load %arg1[%c0, %c0_0, %c0_1] : memref<2x128x128xf32, #tpu.memory_space<vmem>>, vector<2x128x128xf32>
    %1 = vector.shape_cast %0 : vector<2x128x128xf32> to vector<256x128xf32>
    %2 = arith.truncf %1 : vector<256x128xf32> to vector<256x128xbf16>
    %c0_2 = arith.constant 0 : index
    %c0_3 = arith.constant 0 : index
    %3 = vector.load %arg4[%c0_2, %c0_3] : memref<128x384xbf16, #tpu.memory_space<vmem>>, vector<128x384xbf16>
    %cst = arith.constant dense<0.000000e+00> : vector<256x384xf32>
    %4 = tpu.matmul %2, %3, %cst {dimension_numbers = #tpu.dot_dimension_numbers<[1], [0], [0], [1], [0, 0, 1, 1], [], []>} : vector<256x128xbf16>, vector<128x384xbf16>, vector<256x384xf32> -> vector<256x384xf32>
    %c0_4 = arith.constant 0 : index
    %c0_5 = arith.constant 0 : index
    %5 = vector.load %arg5[%c0_4, %c0_5] : memref<1x384xf32, #tpu.memory_space<vmem>>, vector<1x384xf32>
    %6 = vector.broadcast %5 : vector<1x384xf32> to vector<256x384xf32>
    %7 = arith.addf %4, %6 : vector<256x384xf32>
    %8 = arith.truncf %7 : vector<256x384xf32> to vector<256x384xbf16>
    %c0_6 = arith.constant 0 : index
    %c0_7 = arith.constant 0 : index
    %9 = vector.load %arg3[%c0_6, %c0_7] : memref<128x128xf32, #tpu.memory_space<vmem>>, vector<128x128xf32>
    %c0_8 = arith.constant 0 : index
    %c0_9 = arith.constant 0 : index
    %c0_10 = arith.constant 0 : index
    %10 = vector.load %arg2[%c0_8, %c0_9, %c0_10] : memref<2x1x128xf32, #tpu.memory_space<vmem>>, vector<1x1x128xf32>
    %11 = vector.shape_cast %10 : vector<1x1x128xf32> to vector<1x128xf32>
    %cst_11 = arith.constant 5.000000e-01 : f32
    %12 = vector.broadcast %cst_11 : f32 to vector<1x128xf32>
    %13 = arith.cmpf oge, %11, %12 : vector<1x128xf32>
    %cst_12 = arith.constant 1.000000e+30 : f32
    %cst_13 = arith.constant -1.000000e+09 : f32
    %14 = vector.broadcast %cst_12 : f32 to vector<1x128xf32>
    %15 = vector.broadcast %cst_13 : f32 to vector<1x128xf32>
    %16 = arith.select %13, %14, %15 : vector<1x128xi1>, vector<1x128xf32>
    %17 = vector.broadcast %16 : vector<1x128xf32> to vector<128x128xf32>
    %18 = arith.minimumf %9, %17 : vector<128x128xf32>
    %19 = vector.extract_strided_slice %8 {offsets = [0, 0], sizes = [128, 384], strides = [1, 1]} : vector<256x384xbf16> to vector<128x384xbf16>
    %20 = vector.extract_strided_slice %0 {offsets = [0, 0, 0], sizes = [1, 128, 128], strides = [1, 1, 1]} : vector<2x128x128xf32> to vector<1x128x128xf32>
    %21 = vector.shape_cast %20 : vector<1x128x128xf32> to vector<128x128xf32>
    %22 = vector.extract_strided_slice %19 {offsets = [0, 0], sizes = [128, 32], strides = [1, 1]} : vector<128x384xbf16> to vector<128x32xbf16>
    %23 = vector.extract_strided_slice %19 {offsets = [0, 128], sizes = [128, 32], strides = [1, 1]} : vector<128x384xbf16> to vector<128x32xbf16>
    %24 = vector.extract_strided_slice %19 {offsets = [0, 256], sizes = [128, 32], strides = [1, 1]} : vector<128x384xbf16> to vector<128x32xbf16>
    %cst_14 = arith.constant dense<0.000000e+00> : vector<128x128xf32>
    %25 = tpu.matmul %22, %23, %cst_14 {dimension_numbers = #tpu.dot_dimension_numbers<[1], [1], [0], [0], [0, 0, 1, 0], [], []>} : vector<128x32xbf16>, vector<128x32xbf16>, vector<128x128xf32> -> vector<128x128xf32>
    %26 = arith.minimumf %25, %18 : vector<128x128xf32>
    %cst_15 = arith.constant dense<0xFF800000> : vector<128xf32>
    %27 = vector.multi_reduction <maximumf>, %26, %cst_15 [1] : vector<128x128xf32> to vector<128xf32>
    %28 = vector.shape_cast %27 : vector<128xf32> to vector<128x1xf32>
    %29 = vector.broadcast %28 : vector<128x1xf32> to vector<128x128xf32>
    %30 = arith.subf %26, %29 : vector<128x128xf32>
    %31 = math.exp %30 : vector<128x128xf32>
    %cst_16 = arith.constant dense<0.000000e+00> : vector<128xf32>
    %32 = vector.multi_reduction <add>, %31, %cst_16 [1] : vector<128x128xf32> to vector<128xf32>
    %33 = vector.shape_cast %32 : vector<128xf32> to vector<128x1xf32>
    %34 = tpu.reciprocal %33 {approx = true} : vector<128x1xf32> -> vector<128x1xf32>
    %35 = vector.broadcast %34 : vector<128x1xf32> to vector<128x128xf32>
    %36 = arith.mulf %31, %35 : vector<128x128xf32>
    %37 = arith.truncf %36 : vector<128x128xf32> to vector<128x128xbf16>
    %c0_17 = arith.constant 0 : index
    %c0_18 = arith.constant 0 : index
    %c0_19 = arith.constant 0 : index
    %c0_20 = arith.constant 0 : index
    %38 = vector.load %arg7[%c0_17, %c0_18, %c0_19, %c0_20] : memref<2x4x128x128xbf16, #tpu.memory_space<vmem>>, vector<1x1x128x128xbf16>
    %39 = vector.shape_cast %38 : vector<1x1x128x128xbf16> to vector<128x128xbf16>
    %40 = vector.shape_cast %37 : vector<128x128xbf16> to vector<1x1x128x128xbf16>
    tpu.vector_store %arg7[%c0_17, %c0_18, %c0_19, %c0_20], %40 {strides = array<i32>} : memref<2x4x128x128xbf16, #tpu.memory_space<vmem>>, vector<1x1x128x128xbf16>,
    %41 = arith.truncf %36 : vector<128x128xf32> to vector<128x128xbf16>
    %cst_21 = arith.constant dense<0.000000e+00> : vector<128x32xf32>
    %42 = tpu.matmul %41, %24, %cst_21 {dimension_numbers = #tpu.dot_dimension_numbers<[1], [0], [0], [1], [0, 0, 1, 1], [], []>} : vector<128x128xbf16>, vector<128x32xbf16>, vector<128x32xf32> -> vector<128x32xf32>
    %43 = vector.extract_strided_slice %19 {offsets = [0, 32], sizes = [128, 32], strides = [1, 1]} : vector<128x384xbf16> to vector<128x32xbf16>
    %44 = vector.extract_strided_slice %19 {offsets = [0, 160], sizes = [128, 32], strides = [1, 1]} : vector<128x384xbf16> to vector<128x32xbf16>
    %45 = vector.extract_strided_slice %19 {offsets = [0, 288], sizes = [128, 32], strides = [1, 1]} : vector<128x384xbf16> to vector<128x32xbf16>
    %cst_22 = arith.constant dense<0.000000e+00> : vector<128x128xf32>
    %46 = tpu.matmul %43, %44, %cst_22 {dimension_numbers = #tpu.dot_dimension_numbers<[1], [1], [0], [0], [0, 0, 1, 0], [], []>} : vector<128x32xbf16>, vector<128x32xbf16>, vector<128x128xf32> -> vector<128x128xf32>
    %47 = arith.minimumf %46, %18 : vector<128x128xf32>
    %cst_23 = arith.constant dense<0xFF800000> : vector<128xf32>
    %48 = vector.multi_reduction <maximumf>, %47, %cst_23 [1] : vector<128x128xf32> to vector<128xf32>
    %49 = vector.shape_cast %48 : vector<128xf32> to vector<128x1xf32>
    %50 = vector.broadcast %49 : vector<128x1xf32> to vector<128x128xf32>
    %51 = arith.subf %47, %50 : vector<128x128xf32>
    %52 = math.exp %51 : vector<128x128xf32>
    %cst_24 = arith.constant dense<0.000000e+00> : vector<128xf32>
    %53 = vector.multi_reduction <add>, %52, %cst_24 [1] : vector<128x128xf32> to vector<128xf32>
    %54 = vector.shape_cast %53 : vector<128xf32> to vector<128x1xf32>
    %55 = tpu.reciprocal %54 {approx = true} : vector<128x1xf32> -> vector<128x1xf32>
    %56 = vector.broadcast %55 : vector<128x1xf32> to vector<128x128xf32>
    %57 = arith.mulf %52, %56 : vector<128x128xf32>
    %58 = arith.truncf %57 : vector<128x128xf32> to vector<128x128xbf16>
    %c0_25 = arith.constant 0 : index
    %c1 = arith.constant 1 : index
    %c0_26 = arith.constant 0 : index
    %c0_27 = arith.constant 0 : index
    %59 = vector.load %arg7[%c0_25, %c1, %c0_26, %c0_27] : memref<2x4x128x128xbf16, #tpu.memory_space<vmem>>, vector<1x1x128x128xbf16>
    %60 = vector.shape_cast %59 : vector<1x1x128x128xbf16> to vector<128x128xbf16>
    %61 = vector.shape_cast %58 : vector<128x128xbf16> to vector<1x1x128x128xbf16>
    tpu.vector_store %arg7[%c0_25, %c1, %c0_26, %c0_27], %61 {strides = array<i32>} : memref<2x4x128x128xbf16, #tpu.memory_space<vmem>>, vector<1x1x128x128xbf16>,
    %62 = arith.truncf %57 : vector<128x128xf32> to vector<128x128xbf16>
    %cst_28 = arith.constant dense<0.000000e+00> : vector<128x32xf32>
    %63 = tpu.matmul %62, %45, %cst_28 {dimension_numbers = #tpu.dot_dimension_numbers<[1], [0], [0], [1], [0, 0, 1, 1], [], []>} : vector<128x128xbf16>, vector<128x32xbf16>, vector<128x32xf32> -> vector<128x32xf32>
    %64 = vector.extract_strided_slice %19 {offsets = [0, 64], sizes = [128, 32], strides = [1, 1]} : vector<128x384xbf16> to vector<128x32xbf16>
    %65 = vector.extract_strided_slice %19 {offsets = [0, 192], sizes = [128, 32], strides = [1, 1]} : vector<128x384xbf16> to vector<128x32xbf16>
    %66 = vector.extract_strided_slice %19 {offsets = [0, 320], sizes = [128, 32], strides = [1, 1]} : vector<128x384xbf16> to vector<128x32xbf16>
    %cst_29 = arith.constant dense<0.000000e+00> : vector<128x128xf32>
    %67 = tpu.matmul %64, %65, %cst_29 {dimension_numbers = #tpu.dot_dimension_numbers<[1], [1], [0], [0], [0, 0, 1, 0], [], []>} : vector<128x32xbf16>, vector<128x32xbf16>, vector<128x128xf32> -> vector<128x128xf32>
    %68 = arith.minimumf %67, %18 : vector<128x128xf32>
    %cst_30 = arith.constant dense<0xFF800000> : vector<128xf32>
    %69 = vector.multi_reduction <maximumf>, %68, %cst_30 [1] : vector<128x128xf32> to vector<128xf32>
    %70 = vector.shape_cast %69 : vector<128xf32> to vector<128x1xf32>
    %71 = vector.broadcast %70 : vector<128x1xf32> to vector<128x128xf32>
    %72 = arith.subf %68, %71 : vector<128x128xf32>
    %73 = math.exp %72 : vector<128x128xf32>
    %cst_31 = arith.constant dense<0.000000e+00> : vector<128xf32>
    %74 = vector.multi_reduction <add>, %73, %cst_31 [1] : vector<128x128xf32> to vector<128xf32>
    %75 = vector.shape_cast %74 : vector<128xf32> to vector<128x1xf32>
    %76 = tpu.reciprocal %75 {approx = true} : vector<128x1xf32> -> vector<128x1xf32>
    %77 = vector.broadcast %76 : vector<128x1xf32> to vector<128x128xf32>
    %78 = arith.mulf %73, %77 : vector<128x128xf32>
    %79 = arith.truncf %78 : vector<128x128xf32> to vector<128x128xbf16>
    %c0_32 = arith.constant 0 : index
    %c2 = arith.constant 2 : index
    %c0_33 = arith.constant 0 : index
    %c0_34 = arith.constant 0 : index
    %80 = vector.load %arg7[%c0_32, %c2, %c0_33, %c0_34] : memref<2x4x128x128xbf16, #tpu.memory_space<vmem>>, vector<1x1x128x128xbf16>
    %81 = vector.shape_cast %80 : vector<1x1x128x128xbf16> to vector<128x128xbf16>
    %82 = vector.shape_cast %79 : vector<128x128xbf16> to vector<1x1x128x128xbf16>
    tpu.vector_store %arg7[%c0_32, %c2, %c0_33, %c0_34], %82 {strides = array<i32>} : memref<2x4x128x128xbf16, #tpu.memory_space<vmem>>, vector<1x1x128x128xbf16>,
    %83 = arith.truncf %78 : vector<128x128xf32> to vector<128x128xbf16>
    %cst_35 = arith.constant dense<0.000000e+00> : vector<128x32xf32>
    %84 = tpu.matmul %83, %66, %cst_35 {dimension_numbers = #tpu.dot_dimension_numbers<[1], [0], [0], [1], [0, 0, 1, 1], [], []>} : vector<128x128xbf16>, vector<128x32xbf16>, vector<128x32xf32> -> vector<128x32xf32>
    %85 = vector.extract_strided_slice %19 {offsets = [0, 96], sizes = [128, 32], strides = [1, 1]} : vector<128x384xbf16> to vector<128x32xbf16>
    %86 = vector.extract_strided_slice %19 {offsets = [0, 224], sizes = [128, 32], strides = [1, 1]} : vector<128x384xbf16> to vector<128x32xbf16>
    %87 = vector.extract_strided_slice %19 {offsets = [0, 352], sizes = [128, 32], strides = [1, 1]} : vector<128x384xbf16> to vector<128x32xbf16>
    %cst_36 = arith.constant dense<0.000000e+00> : vector<128x128xf32>
    %88 = tpu.matmul %85, %86, %cst_36 {dimension_numbers = #tpu.dot_dimension_numbers<[1], [1], [0], [0], [0, 0, 1, 0], [], []>} : vector<128x32xbf16>, vector<128x32xbf16>, vector<128x128xf32> -> vector<128x128xf32>
    %89 = arith.minimumf %88, %18 : vector<128x128xf32>
    %cst_37 = arith.constant dense<0xFF800000> : vector<128xf32>
    %90 = vector.multi_reduction <maximumf>, %89, %cst_37 [1] : vector<128x128xf32> to vector<128xf32>
    %91 = vector.shape_cast %90 : vector<128xf32> to vector<128x1xf32>
    %92 = vector.broadcast %91 : vector<128x1xf32> to vector<128x128xf32>
    %93 = arith.subf %89, %92 : vector<128x128xf32>
    %94 = math.exp %93 : vector<128x128xf32>
    %cst_38 = arith.constant dense<0.000000e+00> : vector<128xf32>
    %95 = vector.multi_reduction <add>, %94, %cst_38 [1] : vector<128x128xf32> to vector<128xf32>
    %96 = vector.shape_cast %95 : vector<128xf32> to vector<128x1xf32>
    %97 = tpu.reciprocal %96 {approx = true} : vector<128x1xf32> -> vector<128x1xf32>
    %98 = vector.broadcast %97 : vector<128x1xf32> to vector<128x128xf32>
    %99 = arith.mulf %94, %98 : vector<128x128xf32>
    %100 = arith.truncf %99 : vector<128x128xf32> to vector<128x128xbf16>
    %c0_39 = arith.constant 0 : index
    %c3 = arith.constant 3 : index
    %c0_40 = arith.constant 0 : index
    %c0_41 = arith.constant 0 : index
    %101 = vector.load %arg7[%c0_39, %c3, %c0_40, %c0_41] : memref<2x4x128x128xbf16, #tpu.memory_space<vmem>>, vector<1x1x128x128xbf16>
    %102 = vector.shape_cast %101 : vector<1x1x128x128xbf16> to vector<128x128xbf16>
    %103 = vector.shape_cast %100 : vector<128x128xbf16> to vector<1x1x128x128xbf16>
    tpu.vector_store %arg7[%c0_39, %c3, %c0_40, %c0_41], %103 {strides = array<i32>} : memref<2x4x128x128xbf16, #tpu.memory_space<vmem>>, vector<1x1x128x128xbf16>,
    %104 = arith.truncf %99 : vector<128x128xf32> to vector<128x128xbf16>
    %cst_42 = arith.constant dense<0.000000e+00> : vector<128x32xf32>
    %105 = tpu.matmul %104, %87, %cst_42 {dimension_numbers = #tpu.dot_dimension_numbers<[1], [0], [0], [1], [0, 0, 1, 1], [], []>} : vector<128x128xbf16>, vector<128x32xbf16>, vector<128x32xf32> -> vector<128x32xf32>
    %106 = tpu.concatenate %42, %63, %84, %105 in 1 : vector<128x32xf32>, vector<128x32xf32>, vector<128x32xf32>, vector<128x32xf32> -> vector<128x128xf32>
    %107 = arith.addf %21, %106 : vector<128x128xf32>
    %c0_43 = arith.constant 0 : index
    %c0_44 = arith.constant 0 : index
    %c0_45 = arith.constant 0 : index
    %108 = vector.load %arg6[%c0_43, %c0_44, %c0_45] : memref<2x128x128xf32, #tpu.memory_space<vmem>>, vector<1x128x128xf32>
    %109 = vector.shape_cast %108 : vector<1x128x128xf32> to vector<128x128xf32>
    %110 = vector.shape_cast %107 : vector<128x128xf32> to vector<1x128x128xf32>
    tpu.vector_store %arg6[%c0_43, %c0_44, %c0_45], %110 {strides = array<i32>} : memref<2x128x128xf32, #tpu.memory_space<vmem>>, vector<1x128x128xf32>,
    %c1_46 = arith.constant 1 : index
    %c0_47 = arith.constant 0 : index
    %c0_48 = arith.constant 0 : index
    %111 = vector.load %arg2[%c1_46, %c0_47, %c0_48] : memref<2x1x128xf32, #tpu.memory_space<vmem>>, vector<1x1x128xf32>
    %112 = vector.shape_cast %111 : vector<1x1x128xf32> to vector<1x128xf32>
    %cst_49 = arith.constant 5.000000e-01 : f32
    %113 = vector.broadcast %cst_49 : f32 to vector<1x128xf32>
    %114 = arith.cmpf oge, %112, %113 : vector<1x128xf32>
    %cst_50 = arith.constant 1.000000e+30 : f32
    %cst_51 = arith.constant -1.000000e+09 : f32
    %115 = vector.broadcast %cst_50 : f32 to vector<1x128xf32>
    %116 = vector.broadcast %cst_51 : f32 to vector<1x128xf32>
    %117 = arith.select %114, %115, %116 : vector<1x128xi1>, vector<1x128xf32>
    %118 = vector.broadcast %117 : vector<1x128xf32> to vector<128x128xf32>
    %119 = arith.minimumf %9, %118 : vector<128x128xf32>
    %120 = vector.extract_strided_slice %8 {offsets = [128, 0], sizes = [128, 384], strides = [1, 1]} : vector<256x384xbf16> to vector<128x384xbf16>
    %121 = vector.extract_strided_slice %0 {offsets = [1, 0, 0], sizes = [1, 128, 128], strides = [1, 1, 1]} : vector<2x128x128xf32> to vector<1x128x128xf32>
    %122 = vector.shape_cast %121 : vector<1x128x128xf32> to vector<128x128xf32>
    %123 = vector.extract_strided_slice %120 {offsets = [0, 0], sizes = [128, 32], strides = [1, 1]} : vector<128x384xbf16> to vector<128x32xbf16>
    %124 = vector.extract_strided_slice %120 {offsets = [0, 128], sizes = [128, 32], strides = [1, 1]} : vector<128x384xbf16> to vector<128x32xbf16>
    %125 = vector.extract_strided_slice %120 {offsets = [0, 256], sizes = [128, 32], strides = [1, 1]} : vector<128x384xbf16> to vector<128x32xbf16>
    %cst_52 = arith.constant dense<0.000000e+00> : vector<128x128xf32>
    %126 = tpu.matmul %123, %124, %cst_52 {dimension_numbers = #tpu.dot_dimension_numbers<[1], [1], [0], [0], [0, 0, 1, 0], [], []>} : vector<128x32xbf16>, vector<128x32xbf16>, vector<128x128xf32> -> vector<128x128xf32>
    %127 = arith.minimumf %126, %119 : vector<128x128xf32>
    %cst_53 = arith.constant dense<0xFF800000> : vector<128xf32>
    %128 = vector.multi_reduction <maximumf>, %127, %cst_53 [1] : vector<128x128xf32> to vector<128xf32>
    %129 = vector.shape_cast %128 : vector<128xf32> to vector<128x1xf32>
    %130 = vector.broadcast %129 : vector<128x1xf32> to vector<128x128xf32>
    %131 = arith.subf %127, %130 : vector<128x128xf32>
    %132 = math.exp %131 : vector<128x128xf32>
    %cst_54 = arith.constant dense<0.000000e+00> : vector<128xf32>
    %133 = vector.multi_reduction <add>, %132, %cst_54 [1] : vector<128x128xf32> to vector<128xf32>
    %134 = vector.shape_cast %133 : vector<128xf32> to vector<128x1xf32>
    %135 = tpu.reciprocal %134 {approx = true} : vector<128x1xf32> -> vector<128x1xf32>
    %136 = vector.broadcast %135 : vector<128x1xf32> to vector<128x128xf32>
    %137 = arith.mulf %132, %136 : vector<128x128xf32>
    %138 = arith.truncf %137 : vector<128x128xf32> to vector<128x128xbf16>
    %c1_55 = arith.constant 1 : index
    %c0_56 = arith.constant 0 : index
    %c0_57 = arith.constant 0 : index
    %c0_58 = arith.constant 0 : index
    %139 = vector.load %arg7[%c1_55, %c0_56, %c0_57, %c0_58] : memref<2x4x128x128xbf16, #tpu.memory_space<vmem>>, vector<1x1x128x128xbf16>
    %140 = vector.shape_cast %139 : vector<1x1x128x128xbf16> to vector<128x128xbf16>
    %141 = vector.shape_cast %138 : vector<128x128xbf16> to vector<1x1x128x128xbf16>
    tpu.vector_store %arg7[%c1_55, %c0_56, %c0_57, %c0_58], %141 {strides = array<i32>} : memref<2x4x128x128xbf16, #tpu.memory_space<vmem>>, vector<1x1x128x128xbf16>,
    %142 = arith.truncf %137 : vector<128x128xf32> to vector<128x128xbf16>
    %cst_59 = arith.constant dense<0.000000e+00> : vector<128x32xf32>
    %143 = tpu.matmul %142, %125, %cst_59 {dimension_numbers = #tpu.dot_dimension_numbers<[1], [0], [0], [1], [0, 0, 1, 1], [], []>} : vector<128x128xbf16>, vector<128x32xbf16>, vector<128x32xf32> -> vector<128x32xf32>
    %144 = vector.extract_strided_slice %120 {offsets = [0, 32], sizes = [128, 32], strides = [1, 1]} : vector<128x384xbf16> to vector<128x32xbf16>
    %145 = vector.extract_strided_slice %120 {offsets = [0, 160], sizes = [128, 32], strides = [1, 1]} : vector<128x384xbf16> to vector<128x32xbf16>
    %146 = vector.extract_strided_slice %120 {offsets = [0, 288], sizes = [128, 32], strides = [1, 1]} : vector<128x384xbf16> to vector<128x32xbf16>
    %cst_60 = arith.constant dense<0.000000e+00> : vector<128x128xf32>
    %147 = tpu.matmul %144, %145, %cst_60 {dimension_numbers = #tpu.dot_dimension_numbers<[1], [1], [0], [0], [0, 0, 1, 0], [], []>} : vector<128x32xbf16>, vector<128x32xbf16>, vector<128x128xf32> -> vector<128x128xf32>
    %148 = arith.minimumf %147, %119 : vector<128x128xf32>
    %cst_61 = arith.constant dense<0xFF800000> : vector<128xf32>
    %149 = vector.multi_reduction <maximumf>, %148, %cst_61 [1] : vector<128x128xf32> to vector<128xf32>
    %150 = vector.shape_cast %149 : vector<128xf32> to vector<128x1xf32>
    %151 = vector.broadcast %150 : vector<128x1xf32> to vector<128x128xf32>
    %152 = arith.subf %148, %151 : vector<128x128xf32>
    %153 = math.exp %152 : vector<128x128xf32>
    %cst_62 = arith.constant dense<0.000000e+00> : vector<128xf32>
    %154 = vector.multi_reduction <add>, %153, %cst_62 [1] : vector<128x128xf32> to vector<128xf32>
    %155 = vector.shape_cast %154 : vector<128xf32> to vector<128x1xf32>
    %156 = tpu.reciprocal %155 {approx = true} : vector<128x1xf32> -> vector<128x1xf32>
    %157 = vector.broadcast %156 : vector<128x1xf32> to vector<128x128xf32>
    %158 = arith.mulf %153, %157 : vector<128x128xf32>
    %159 = arith.truncf %158 : vector<128x128xf32> to vector<128x128xbf16>
    %c1_63 = arith.constant 1 : index
    %c1_64 = arith.constant 1 : index
    %c0_65 = arith.constant 0 : index
    %c0_66 = arith.constant 0 : index
    %160 = vector.load %arg7[%c1_63, %c1_64, %c0_65, %c0_66] : memref<2x4x128x128xbf16, #tpu.memory_space<vmem>>, vector<1x1x128x128xbf16>
    %161 = vector.shape_cast %160 : vector<1x1x128x128xbf16> to vector<128x128xbf16>
    %162 = vector.shape_cast %159 : vector<128x128xbf16> to vector<1x1x128x128xbf16>
    tpu.vector_store %arg7[%c1_63, %c1_64, %c0_65, %c0_66], %162 {strides = array<i32>} : memref<2x4x128x128xbf16, #tpu.memory_space<vmem>>, vector<1x1x128x128xbf16>,
    %163 = arith.truncf %158 : vector<128x128xf32> to vector<128x128xbf16>
    %cst_67 = arith.constant dense<0.000000e+00> : vector<128x32xf32>
    %164 = tpu.matmul %163, %146, %cst_67 {dimension_numbers = #tpu.dot_dimension_numbers<[1], [0], [0], [1], [0, 0, 1, 1], [], []>} : vector<128x128xbf16>, vector<128x32xbf16>, vector<128x32xf32> -> vector<128x32xf32>
    %165 = vector.extract_strided_slice %120 {offsets = [0, 64], sizes = [128, 32], strides = [1, 1]} : vector<128x384xbf16> to vector<128x32xbf16>
    %166 = vector.extract_strided_slice %120 {offsets = [0, 192], sizes = [128, 32], strides = [1, 1]} : vector<128x384xbf16> to vector<128x32xbf16>
    %167 = vector.extract_strided_slice %120 {offsets = [0, 320], sizes = [128, 32], strides = [1, 1]} : vector<128x384xbf16> to vector<128x32xbf16>
    %cst_68 = arith.constant dense<0.000000e+00> : vector<128x128xf32>
    %168 = tpu.matmul %165, %166, %cst_68 {dimension_numbers = #tpu.dot_dimension_numbers<[1], [1], [0], [0], [0, 0, 1, 0], [], []>} : vector<128x32xbf16>, vector<128x32xbf16>, vector<128x128xf32> -> vector<128x128xf32>
    %169 = arith.minimumf %168, %119 : vector<128x128xf32>
    %cst_69 = arith.constant dense<0xFF800000> : vector<128xf32>
    %170 = vector.multi_reduction <maximumf>, %169, %cst_69 [1] : vector<128x128xf32> to vector<128xf32>
    %171 = vector.shape_cast %170 : vector<128xf32> to vector<128x1xf32>
    %172 = vector.broadcast %171 : vector<128x1xf32> to vector<128x128xf32>
    %173 = arith.subf %169, %172 : vector<128x128xf32>
    %174 = math.exp %173 : vector<128x128xf32>
    %cst_70 = arith.constant dense<0.000000e+00> : vector<128xf32>
    %175 = vector.multi_reduction <add>, %174, %cst_70 [1] : vector<128x128xf32> to vector<128xf32>
    %176 = vector.shape_cast %175 : vector<128xf32> to vector<128x1xf32>
    %177 = tpu.reciprocal %176 {approx = true} : vector<128x1xf32> -> vector<128x1xf32>
    %178 = vector.broadcast %177 : vector<128x1xf32> to vector<128x128xf32>
    %179 = arith.mulf %174, %178 : vector<128x128xf32>
    %180 = arith.truncf %179 : vector<128x128xf32> to vector<128x128xbf16>
    %c1_71 = arith.constant 1 : index
    %c2_72 = arith.constant 2 : index
    %c0_73 = arith.constant 0 : index
    %c0_74 = arith.constant 0 : index
    %181 = vector.load %arg7[%c1_71, %c2_72, %c0_73, %c0_74] : memref<2x4x128x128xbf16, #tpu.memory_space<vmem>>, vector<1x1x128x128xbf16>
    %182 = vector.shape_cast %181 : vector<1x1x128x128xbf16> to vector<128x128xbf16>
    %183 = vector.shape_cast %180 : vector<128x128xbf16> to vector<1x1x128x128xbf16>
    tpu.vector_store %arg7[%c1_71, %c2_72, %c0_73, %c0_74], %183 {strides = array<i32>} : memref<2x4x128x128xbf16, #tpu.memory_space<vmem>>, vector<1x1x128x128xbf16>,
    %184 = arith.truncf %179 : vector<128x128xf32> to vector<128x128xbf16>
    %cst_75 = arith.constant dense<0.000000e+00> : vector<128x32xf32>
    %185 = tpu.matmul %184, %167, %cst_75 {dimension_numbers = #tpu.dot_dimension_numbers<[1], [0], [0], [1], [0, 0, 1, 1], [], []>} : vector<128x128xbf16>, vector<128x32xbf16>, vector<128x32xf32> -> vector<128x32xf32>
    %186 = vector.extract_strided_slice %120 {offsets = [0, 96], sizes = [128, 32], strides = [1, 1]} : vector<128x384xbf16> to vector<128x32xbf16>
    %187 = vector.extract_strided_slice %120 {offsets = [0, 224], sizes = [128, 32], strides = [1, 1]} : vector<128x384xbf16> to vector<128x32xbf16>
    %188 = vector.extract_strided_slice %120 {offsets = [0, 352], sizes = [128, 32], strides = [1, 1]} : vector<128x384xbf16> to vector<128x32xbf16>
    %cst_76 = arith.constant dense<0.000000e+00> : vector<128x128xf32>
    %189 = tpu.matmul %186, %187, %cst_76 {dimension_numbers = #tpu.dot_dimension_numbers<[1], [1], [0], [0], [0, 0, 1, 0], [], []>} : vector<128x32xbf16>, vector<128x32xbf16>, vector<128x128xf32> -> vector<128x128xf32>
    %190 = arith.minimumf %189, %119 : vector<128x128xf32>
    %cst_77 = arith.constant dense<0xFF800000> : vector<128xf32>
    %191 = vector.multi_reduction <maximumf>, %190, %cst_77 [1] : vector<128x128xf32> to vector<128xf32>
    %192 = vector.shape_cast %191 : vector<128xf32> to vector<128x1xf32>
    %193 = vector.broadcast %192 : vector<128x1xf32> to vector<128x128xf32>
    %194 = arith.subf %190, %193 : vector<128x128xf32>
    %195 = math.exp %194 : vector<128x128xf32>
    %cst_78 = arith.constant dense<0.000000e+00> : vector<128xf32>
    %196 = vector.multi_reduction <add>, %195, %cst_78 [1] : vector<128x128xf32> to vector<128xf32>
    %197 = vector.shape_cast %196 : vector<128xf32> to vector<128x1xf32>
    %198 = tpu.reciprocal %197 {approx = true} : vector<128x1xf32> -> vector<128x1xf32>
    %199 = vector.broadcast %198 : vector<128x1xf32> to vector<128x128xf32>
    %200 = arith.mulf %195, %199 : vector<128x128xf32>
    %201 = arith.truncf %200 : vector<128x128xf32> to vector<128x128xbf16>
    %c1_79 = arith.constant 1 : index
    %c3_80 = arith.constant 3 : index
    %c0_81 = arith.constant 0 : index
    %c0_82 = arith.constant 0 : index
    %202 = vector.load %arg7[%c1_79, %c3_80, %c0_81, %c0_82] : memref<2x4x128x128xbf16, #tpu.memory_space<vmem>>, vector<1x1x128x128xbf16>
    %203 = vector.shape_cast %202 : vector<1x1x128x128xbf16> to vector<128x128xbf16>
    %204 = vector.shape_cast %201 : vector<128x128xbf16> to vector<1x1x128x128xbf16>
    tpu.vector_store %arg7[%c1_79, %c3_80, %c0_81, %c0_82], %204 {strides = array<i32>} : memref<2x4x128x128xbf16, #tpu.memory_space<vmem>>, vector<1x1x128x128xbf16>,
    %205 = arith.truncf %200 : vector<128x128xf32> to vector<128x128xbf16>
    %cst_83 = arith.constant dense<0.000000e+00> : vector<128x32xf32>
    %206 = tpu.matmul %205, %188, %cst_83 {dimension_numbers = #tpu.dot_dimension_numbers<[1], [0], [0], [1], [0, 0, 1, 1], [], []>} : vector<128x128xbf16>, vector<128x32xbf16>, vector<128x32xf32> -> vector<128x32xf32>
    %207 = tpu.concatenate %143, %164, %185, %206 in 1 : vector<128x32xf32>, vector<128x32xf32>, vector<128x32xf32>, vector<128x32xf32> -> vector<128x128xf32>
    %208 = arith.addf %122, %207 : vector<128x128xf32>
    %c1_84 = arith.constant 1 : index
    %c0_85 = arith.constant 0 : index
    %c0_86 = arith.constant 0 : index
    %209 = vector.load %arg6[%c1_84, %c0_85, %c0_86] : memref<2x128x128xf32, #tpu.memory_space<vmem>>, vector<1x128x128xf32>
    %210 = vector.shape_cast %209 : vector<1x128x128xf32> to vector<128x128xf32>
    %211 = vector.shape_cast %208 : vector<128x128xf32> to vector<1x128x128xf32>
    tpu.vector_store %arg6[%c1_84, %c0_85, %c0_86], %211 {strides = array<i32>} : memref<2x128x128xf32, #tpu.memory_space<vmem>>, vector<1x128x128xf32>,
    return
  }
  func.func @transform_0(%arg0: i32) -> (i32, i32, i32) {
    %c0_i32 = arith.constant 0 : i32
    %c0_i32_0 = arith.constant 0 : i32
    %c0_i32_1 = arith.constant 0 : i32
    return %arg0, %c0_i32, %c0_i32_0 : i32, i32, i32
  }
  func.func @transform_1(%arg0: i32) -> (i32, i32, i32) {
    %c0_i32 = arith.constant 0 : i32
    %c0_i32_0 = arith.constant 0 : i32
    %c0_i32_1 = arith.constant 0 : i32
    return %arg0, %c0_i32, %c0_i32_0 : i32, i32, i32
  }
  func.func @transform_2(%arg0: i32) -> (i32, i32) {
    %c0_i32 = arith.constant 0 : i32
    %c0_i32_0 = arith.constant 0 : i32
    %c0_i32_1 = arith.constant 0 : i32
    return %c0_i32, %c0_i32_0 : i32, i32
  }
  func.func @transform_3(%arg0: i32) -> (i32, i32) {
    %c0_i32 = arith.constant 0 : i32
    %c0_i32_0 = arith.constant 0 : i32
    %c0_i32_1 = arith.constant 0 : i32
    return %c0_i32, %c0_i32_0 : i32, i32
  }
  func.func @transform_4(%arg0: i32) -> (i32, i32) {
    %c0_i32 = arith.constant 0 : i32
    %c0_i32_0 = arith.constant 0 : i32
    %c0_i32_1 = arith.constant 0 : i32
    return %c0_i32, %c0_i32_0 : i32, i32
  }
  func.func @transform_5(%arg0: i32) -> (i32, i32, i32) {
    %c0_i32 = arith.constant 0 : i32
    %c0_i32_0 = arith.constant 0 : i32
    %c0_i32_1 = arith.constant 0 : i32
    return %arg0, %c0_i32, %c0_i32_0 : i32, i32, i32
  }
  func.func @transform_6(%arg0: i32) -> (i32, i32, i32, i32) {
    %c0_i32 = arith.constant 0 : i32
    %c0_i32_0 = arith.constant 0 : i32
    %c0_i32_1 = arith.constant 0 : i32
    %c0_i32_2 = arith.constant 0 : i32
    return %arg0, %c0_i32, %c0_i32_0, %c0_i32_1 : i32, i32, i32, i32
  }
}

</mosaic_0001>

<bundles_post_ra>
// kernel: tpu_custom_call.1
= control target key start
LH: loop header
LB: loop body
LE: loop exit
PB: predicated region body
PF: predicated region fallthrough
CT: control target
= control target key end

     0   :  { %12 = vsyncpa [#allocation3], 0  ;;  %s9421_s0 = inlined_call_operand.hbm [shape: f32[2,128,128], index: 0, kind: input, shape index: {}]   ;;  %s9422_s1 = inlined_call_operand.hbm [shape: f32[2,1,128], index: 1, kind: input, shape index: {}]   ;;  %s9423_s2 = inlined_call_operand.hbm [shape: f32[128,128], index: 2, kind: input, shape index: {}]   ;;  %s9424_s3 = inlined_call_operand.hbm [shape: bf16[128,384], index: 3, kind: input, shape index: {}]   ;;  %s9425_s4 = inlined_call_operand.vmem [shape: f32[1,384], index: 4, kind: input, shape index: {}]   ;;  %s9426_s5 = inlined_call_operand.hbm [shape: f32[2,128,128], index: 5, kind: output, shape index: {0}]   ;;  %s9427_s6 = inlined_call_operand.hbm [shape: bf16[2,4,128,128], index: 6, kind: output, shape index: {1}]  }
   0x1   :  { %13 = vsyncpa [#allocation6], 0 }
   0x2   :  { %14 = vsyncpa [#allocation9], 0 }
   0x3   :  { %15 = vsyncpa [#allocation4], 0  ;;  %s34_s23 = sshll.u32 %s9422_s1, 4  ;;  %s35_s23 = int_to_ptr.hbm [resolvable:$true] %s34_s23 }
   0x4   :  { %16 = vsyncpa [#allocation12], 0  ;;  %s6244_s24 = smov [#allocation5]   ;;  %s21_s28 = sshll.u32 %s9421_s0, 4  ;;  %s22_s28 = int_to_ptr.hbm [resolvable:$true] %s21_s28 }
   0x5   :  { %s36_s25 = sshll.u32 %s6244_s24, 4  ;;  %s6245_s29 = smov 16   ;;  %s37_s25 = int_to_ptr.vmem [resolvable:$true] %s36_s25 }
   0x6   :  { %s6246_s30 = smov 1   ;;  %s6247_s7 = smov [#allocation2]  }
   0x7   :  { %42 = dma.hbm_to_vmem [thread:$0]  %s35_s23, 32, %s37_s25, [#allocation6], %s6245_s29, %s6245_s29, %s6246_s30  }
   0x8   :  { %s23_s8 = sshll.u32 %s6247_s7, 4  ;;  %s6248_s9 = smov 128   ;;  %s24_s8 = int_to_ptr.vmem [resolvable:$true] %s23_s8 }
   0x9   :  { %s6249_s10 = smov 8   ;;  %s47_s12 = sshll.u32 %s9423_s2, 4  ;;  %s48_s12 = int_to_ptr.hbm [resolvable:$true] %s47_s12 }
   0xa   :  { %29 = dma.hbm_to_vmem [thread:$0]  %s22_s28, 4096, %s24_s8, [#allocation3], %s6248_s9, %s6248_s9, %s6249_s10  }
   0xb   :  { %s6250_s13 = smov [#allocation7]   ;;  %s60_s16 = sshll.u32 %s9424_s3, 4  ;;  %s61_s16 = int_to_ptr.hbm [resolvable:$true] %s60_s16 }
   0xc   :  { %s49_s0 = sshll.u32 %s6250_s13, 4  ;;  %s6251_s17 = smov [#allocation8]   ;;  %s50_s0 = int_to_ptr.vmem [resolvable:$true] %s49_s0 }
   0xd   :  { %55 = dma.hbm_to_vmem [thread:$0]  %s48_s12, 2048, %s50_s0, [#allocation6], %s6248_s9, %s6248_s9, %s6249_s10  }
   0xe   :  { %s62_s18 = sshll.u32 %s6251_s17, 4  ;;  %s6252_s19 = smov 192   ;;  %s63_s18 = int_to_ptr.vmem [resolvable:$true] %s62_s18 }
   0xf   :  { %s6253_s20 = smov 12  }
  0x10   :  { %68 = dma.hbm_to_vmem [thread:$0]  %s61_s16, 3072, %s63_s18, [#allocation9], %s6252_s19, %s6252_s19, %s6253_s20  }
  0x11   :  { %6234 = dma.done.wait [#allocation3], 4096  }
  0x12   :  { %6235 = vsyncadd [#allocation3], 4294963200 }
  0x13   :  { %6236 = dma.done.wait [#allocation6], 2080  }
  0x14   :  { %6237 = vsyncadd [#allocation6], 4294965216 }
  0x15   :  { %6238 = dma.done.wait [#allocation9], 3072  }
  0x16   :  { %6239 = vsyncadd [#allocation9], 4294964224  ;;  %v5023_v0 = vld [vmem:[#allocation8 + $0xa8] sm:$0xf]  ;;  %v5119_v1 = vld [vmem:[#allocation8 + $0xb0] sm:$0xf0] }
  0x17   :  { %v5118_v2 = vld [vmem:[#allocation8 + $0xac] sm:$0xf]  ;;  %v5024_v3 = vor.u32 %v5119_v1, %v5023_v0  ;;  %v5025_v4 = vld [vmem:[#allocation8 + $0xb4] sm:$0xf0]  ;;  %v5031_v5 = vld [vmem:[#allocation8 + $0xb0] sm:$0xf] }
  0x18   :  { %v5120_v6 = vld [vmem:[#allocation8 + $0xb8] sm:$0xf0]  ;;  %v5028_v7 = vor.u32 %v5118_v2, %v5025_v4  ;;  %v5011_v9 = vld [vmem:[#allocation8 + $0x90] sm:$0xf]  ;;  %v5115_v11 = vld [vmem:[#allocation8 + $0x94] sm:$0xf] }
  0x19   :  { %v5032_v8 = vor.u32 %v5120_v6, %v5031_v5  ;;  %v5116_v10 = vld [vmem:[#allocation8 + $0x98] sm:$0xf0]  ;;  %303 = vmatpush.bf16.msra.mxu0 %v5024_v3  ;;  %v5013_v13 = vld [vmem:[#allocation8 + $0x9c] sm:$0xf0]  ;;  %v5019_v14 = vld [vmem:[#allocation8 + $0x98] sm:$0xf] }
  0x1a   :  { %v5012_v12 = vor.u32 %v5116_v10, %v5011_v9  ;;  %v5117_v15 = vld [vmem:[#allocation8 + $0xa0] sm:$0xf0]  ;;  %392 = vmatpush.bf16.msra.mxu1 %v5028_v7  ;;  %v5016_v16 = vor.u32 %v5115_v11, %v5013_v13  ;;  %v4999_v18 = vld [vmem:[#allocation8 + $0x78] sm:$0xf]  ;;  %v5112_v20 = vld [vmem:[#allocation8 + $0x7c] sm:$0xf]  ;;  %5497 = vmatpush.bf16.msra.mxu3 %v5028_v7 }
  0x1b   :  { %481 = vmatpush.bf16.msra.mxu2 %v5032_v8  ;;  %v5020_v17 = vor.u32 %v5117_v15, %v5019_v14  ;;  %v5113_v19 = vld [vmem:[#allocation8 + $0x80] sm:$0xf0]  ;;  %v5001_v21 = vld [vmem:[#allocation8 + $0x84] sm:$0xf0]  ;;  %v5007_v22 = vld [vmem:[#allocation8 + $0x80] sm:$0xf] }
  0x1c   :  { %v5114_v23 = vld [vmem:[#allocation8 + $0x88] sm:$0xf0]  ;;  %v5000_v24 = vor.u32 %v5113_v19, %v4999_v18  ;;  %v5004_v25 = vor.u32 %v5112_v20, %v5001_v21  ;;  %v4987_v27 = vld [vmem:[#allocation8 + $0x60] sm:$0xf]  ;;  %v5109_v29 = vld [vmem:[#allocation8 + $0x64] sm:$0xf] }
  0x1d   :  { %304 = vmatpush.bf16.msra.mxu0 %v5012_v12  ;;  %v5008_v26 = vor.u32 %v5114_v23, %v5007_v22  ;;  %v5110_v28 = vld [vmem:[#allocation8 + $0x68] sm:$0xf0]  ;;  %v4989_v30 = vld [vmem:[#allocation8 + $0x6c] sm:$0xf0]  ;;  %v4995_v31 = vld [vmem:[#allocation8 + $0x68] sm:$0xf] }
  0x1e   :  { %393 = vmatpush.bf16.msra.mxu1 %v5016_v16  ;;  %v5111_v32 = vld [vmem:[#allocation8 + $0x70] sm:$0xf0]  ;;  %5498 = vmatpush.bf16.msra.mxu3 %v5016_v16  ;;  %v4988_v33 = vor.u32 %v5110_v28, %v4987_v27  ;;  %v4992_v34 = vor.u32 %v5109_v29, %v4989_v30  ;;  %v4975_v36 = vld [vmem:[#allocation8 + $0x48] sm:$0xf]  ;;  %v5106_v38 = vld [vmem:[#allocation8 + $0x4c] sm:$0xf] }
  0x1f   :  { %482 = vmatpush.bf16.msra.mxu2 %v5020_v17  ;;  %v4996_v35 = vor.u32 %v5111_v32, %v4995_v31  ;;  %v5107_v37 = vld [vmem:[#allocation8 + $0x50] sm:$0xf0]  ;;  %v4977_v39 = vld [vmem:[#allocation8 + $0x54] sm:$0xf0]  ;;  %v4983_v40 = vld [vmem:[#allocation8 + $0x50] sm:$0xf] }
  0x20   :  { %v5108_v41 = vld [vmem:[#allocation8 + $0x58] sm:$0xf0]  ;;  %v4976_v42 = vor.u32 %v5107_v37, %v4975_v36  ;;  %v4980_v43 = vor.u32 %v5106_v38, %v4977_v39  ;;  %v4963_v45 = vld [vmem:[#allocation8 + $0x30] sm:$0xf]  ;;  %v5103_v47 = vld [vmem:[#allocation8 + $0x34] sm:$0xf] }
  0x21   :  { %305 = vmatpush.bf16.msra.mxu0 %v5000_v24  ;;  %v4984_v44 = vor.u32 %v5108_v41, %v4983_v40  ;;  %v5104_v46 = vld [vmem:[#allocation8 + $0x38] sm:$0xf0]  ;;  %v4965_v48 = vld [vmem:[#allocation8 + $0x3c] sm:$0xf0]  ;;  %v4971_v49 = vld [vmem:[#allocation8 + $0x38] sm:$0xf] }
  0x22   :  { %394 = vmatpush.bf16.msra.mxu1 %v5004_v25  ;;  %5499 = vmatpush.bf16.msra.mxu3 %v5004_v25  ;;  %v5105_v50 = vld [vmem:[#allocation8 + $0x40] sm:$0xf0]  ;;  %v4964_v51 = vor.u32 %v5104_v46, %v4963_v45  ;;  %v4968_v52 = vor.u32 %v5103_v47, %v4965_v48  ;;  %v4951_v54 = vld [vmem:[#allocation8 + $0x18] sm:$0xf]  ;;  %v5100_v56 = vld [vmem:[#allocation8 + $0x1c] sm:$0xf] }
  0x23   :  { %483 = vmatpush.bf16.msra.mxu2 %v5008_v26  ;;  %v4972_v53 = vor.u32 %v5105_v50, %v4971_v49  ;;  %v5101_v55 = vld [vmem:[#allocation8 + $0x20] sm:$0xf0]  ;;  %v4953_v57 = vld [vmem:[#allocation8 + $0x24] sm:$0xf0]  ;;  %v4959_v58 = vld [vmem:[#allocation8 + $0x20] sm:$0xf] }
  0x24   :  { %v5102_v59 = vld [vmem:[#allocation8 + $0x28] sm:$0xf0]  ;;  %v4952_v60 = vor.u32 %v5101_v55, %v4951_v54  ;;  %v4956_v61 = vor.u32 %v5100_v56, %v4953_v57  ;;  %v4939_v63 = vld [vmem:[#allocation8] sm:$0xf]  ;;  %v5097_v1 = vld [vmem:[#allocation8 + $0x4] sm:$0xf] }
  0x25   :  { %306 = vmatpush.bf16.msra.mxu0 %v4988_v33  ;;  %v4960_v62 = vor.u32 %v5102_v59, %v4959_v58  ;;  %v5098_v0 = vld [vmem:[#allocation8 + $0x8] sm:$0xf0]  ;;  %v4941_v2 = vld [vmem:[#allocation8 + $0xc] sm:$0xf0]  ;;  %v4947_v3 = vld [vmem:[#allocation8 + $0x8] sm:$0xf] }
  0x26   :  { %395 = vmatpush.bf16.msra.mxu1 %v4992_v34  ;;  %5500 = vmatpush.bf16.msra.mxu3 %v4992_v34  ;;  %v5099_v4 = vld [vmem:[#allocation8 + $0x10] sm:$0xf0]  ;;  %v4940_v5 = vor.u32 %v5098_v0, %v4939_v63  ;;  %v87_v6 = vld [vmem:[#allocation2] sm:$0xff]  ;;  %v88_v7 = vld [vmem:[#allocation2 + $0x8] sm:$0xff]  ;;  %v4944_v8 = vor.u32 %v5097_v1, %v4941_v2  ;;  %s6255_s21 = smov 96   ;;  %s6256_s22 = smov 32  }
  0x27   :  { %484 = vmatpush.bf16.msra.mxu2 %v4996_v35  ;;  %v4948_v9 = vor.u32 %v5099_v4, %v4947_v3  ;;  %v119_v10 = vpack.c.bf16 %v88_v7, %v87_v6  ;;  %v89_v11 = vld [vmem:[#allocation2 + $0x10] sm:$0xff]  ;;  %v90_v12 = vld [vmem:[#allocation2 + $0x18] sm:$0xff]  ;;  %v91_v14 = vld [vmem:[#allocation2 + $0x20] sm:$0xff]  ;;  %vm736_vm0 = vcmask 261120   ;;  %vm2708_vm3 = vcmask 523264   ;;  %s6258_s23 = smov [#allocation11]  }
  0x28   :  { %v120_v13 = vpack.c.bf16 %v90_v12, %v89_v11  ;;  %v92_v15 = vld [vmem:[#allocation2 + $0x28] sm:$0xff]  ;;  %v93_v17 = vld [vmem:[#allocation2 + $0x30] sm:$0xff]  ;;  %v94_v18 = vld [vmem:[#allocation2 + $0x38] sm:$0xff]  ;;  %vm2725_vm4 = vcmask 785408   ;;  %s4915_s24 = sshll.u32 %s6258_s23, 4  ;;  %s4917_s27 = sshll.u32 %s9427_s6, 4  ;;  %s4916_s24 = int_to_ptr.vmem [resolvable:$true] %s4915_s24  ;;  %s4918_s27 = int_to_ptr.hbm [resolvable:$true] %s4917_s27 }
  0x29   :  { %307 = vmatpush.bf16.msra.mxu0 %v4976_v42  ;;  %v121_v16 = vpack.c.bf16 %v92_v15, %v91_v14  ;;  %v122_v19 = vpack.c.bf16 %v94_v18, %v93_v17  ;;  %v95_v20 = vld [vmem:[#allocation2 + $0x40] sm:$0xff]  ;;  %v96_v21 = vld [vmem:[#allocation2 + $0x48] sm:$0xff]  ;;  %v97_v23 = vld [vmem:[#allocation2 + $0x50] sm:$0xff]  ;;  %s6259_s28 = smov 4   ;;  %s6260_s6 = smov [#allocation10]  }
  0x2a   :  { %396 = vmatpush.bf16.msra.mxu1 %v4980_v43  ;;  %5501 = vmatpush.bf16.msra.mxu3 %v4980_v43  ;;  %v123_v22 = vpack.c.bf16 %v96_v21, %v95_v20  ;;  %v98_v24 = vld [vmem:[#allocation2 + $0x58] sm:$0xff]  ;;  %v99_v26 = vld [vmem:[#allocation2 + $0x60] sm:$0xff]  ;;  %v100_v27 = vld [vmem:[#allocation2 + $0x68] sm:$0xff]  ;;  %s4902_s29 = sshll.u32 %s6260_s6, 4  ;;  %s4904_s8 = sshll.u32 %s9426_s5, 4  ;;  %s4903_s29 = int_to_ptr.vmem [resolvable:$true] %s4902_s29  ;;  %s4905_s8 = int_to_ptr.hbm [resolvable:$true] %s4904_s8 }
  0x2b   :  { %485 = vmatpush.bf16.msra.mxu2 %v4984_v44  ;;  %v124_v25 = vpack.c.bf16 %v98_v24, %v97_v23  ;;  %v125_v28 = vpack.c.bf16 %v100_v27, %v99_v26  ;;  %v101_v29 = vld [vmem:[#allocation2 + $0x70] sm:$0xff]  ;;  %v102_v30 = vld [vmem:[#allocation2 + $0x78] sm:$0xff]  ;;  %v167_v32 = vld [vmem:[%s9425_s4] sm:$0x7]  ;;  %s6254_s4 = smov 64  }
  0x2c   :  { %v126_v31 = vpack.c.bf16 %v102_v30, %v101_v29  ;;  %v6317_v35 = vperm.slane %v167_v32, 0  ;;  %v6319_v36 = vperm.slane %v167_v32, 1  ;;  %v103_v37 = vld [vmem:[#allocation2 + $0x80] sm:$0xff]  ;;  %v104_v38 = vld [vmem:[#allocation2 + $0x88] sm:$0xff]  ;;  %v105_v63 = vld [vmem:[#allocation2 + $0x90] sm:$0xff] }
  0x2d   :  { %308 = vmatpush.bf16.msra.mxu0 %v4964_v51  ;;  %v127_v39 = vpack.c.bf16 %v104_v38, %v103_v37  ;;  %v106_v0 = vld [vmem:[#allocation2 + $0x98] sm:$0xff]  ;;  %v107_v20 = vld [vmem:[#allocation2 + $0xa0] sm:$0xff]  ;;  %v108_v21 = vld [vmem:[#allocation2 + $0xa8] sm:$0xff] }
  0x2e   :  { %397 = vmatpush.bf16.msra.mxu1 %v4968_v52  ;;  %5502 = vmatpush.bf16.msra.mxu3 %v4968_v52  ;;  %v128_v1 = vpack.c.bf16 %v106_v0, %v105_v63 }
  0x2f   :  { %486 = vmatpush.bf16.msra.mxu2 %v4972_v53  ;;  %v6325_v53 = vperm.slane %v167_v32, 2 }
  0x31   :  { %309 = vmatpush.bf16.msra.mxu0 %v4952_v60  ;;  %9545 = vst [vmem:[#allocation18_spill] sm:$0xff] %v6325_v53 }
  0x32   :  { %398 = vmatpush.bf16.msra.mxu1 %v4956_v61  ;;  %5503 = vmatpush.bf16.msra.mxu3 %v4956_v61 }
  0x33   :  { %487 = vmatpush.bf16.msra.mxu2 %v4960_v62 }
  0x35   :  { %310 = vmatpush.bf16.msra.mxu0 %v4940_v5 }
  0x36   :  { %399 = vmatpush.bf16.msra.mxu1 %v4944_v8  ;;  %5504 = vmatpush.bf16.msra.mxu3 %v4944_v8 }
  0x37   :  { %488 = vmatpush.bf16.msra.mxu2 %v4948_v9 }
  0x38   :  { %311 = vmatmul.bf16.vlgmr.msra.gmra.mxu0 %v119_v10 }
  0x39   :  { %400 = vmatmul.bf16.vlgmr.msra.gmra.mxu1 %v119_v10 }
  0x3a   :  { %489 = vmatmul.bf16.vlgmr.msra.gmra.mxu2 %v119_v10 }
  0x48   :  { %316 = vmatmul.bf16.gmra.mxu0 %v120_v13 }
  0x49   :  { %405 = vmatmul.bf16.gmra.mxu1 %v120_v13 }
  0x4a   :  { %494 = vmatmul.bf16.gmra.mxu2 %v120_v13 }
  0x58   :  { %321 = vmatmul.bf16.gmra.mxu0 %v121_v16 }
  0x59   :  { %410 = vmatmul.bf16.gmra.mxu1 %v121_v16 }
  0x5a   :  { %499 = vmatmul.bf16.gmra.mxu2 %v121_v16 }
  0x68   :  { %326 = vmatmul.bf16.gmra.mxu0 %v122_v19 }
  0x69   :  { %415 = vmatmul.bf16.gmra.mxu1 %v122_v19 }
  0x6a   :  { %504 = vmatmul.bf16.gmra.mxu2 %v122_v19 }
  0x78   :  { %331 = vmatmul.bf16.gmra.mxu0 %v123_v22 }
  0x79   :  { %420 = vmatmul.bf16.gmra.mxu1 %v123_v22 }
  0x7a   :  { %509 = vmatmul.bf16.gmra.mxu2 %v123_v22  ;;  %v129_v22 = vpack.c.bf16 %v108_v21, %v107_v20 }
  0x88   :  { %336 = vmatmul.bf16.gmra.mxu0 %v124_v25 }
  0x89   :  { %425 = vmatmul.bf16.gmra.mxu1 %v124_v25 }
  0x8a   :  { %514 = vmatmul.bf16.gmra.mxu2 %v124_v25 }
  0x98   :  { %341 = vmatmul.bf16.gmra.mxu0 %v125_v28 }
  0x99   :  { %430 = vmatmul.bf16.gmra.mxu1 %v125_v28 }
  0x9a   :  { %519 = vmatmul.bf16.gmra.mxu2 %v125_v28 }
  0xa8   :  { %346 = vmatmul.bf16.gmra.mxu0 %v126_v31 }
  0xa9   :  { %435 = vmatmul.bf16.gmra.mxu1 %v126_v31 }
  0xaa   :  { %524 = vmatmul.bf16.gmra.mxu2 %v126_v31 }
  0xb5   :  { %v312_v33 = vpop.f32.mrf.mxu0 }
  0xb6   :  { %v401_v34 = vpop.f32.mrf.mxu1  ;;  %v313_v40 = vadd.f32 %v312_v33, %v6317_v35 }
  0xb7   :  { %v402_v41 = vadd.f32 %v401_v34, %v6319_v36 }
  0xb8   :  { %351 = vmatmul.bf16.gmra.mxu0 %v127_v39 }
  0xb9   :  { %440 = vmatmul.bf16.gmra.mxu1 %v127_v39  ;;  %v570_v46 = vpack.c.bf16 %v402_v41, %v313_v40 }
  0xba   :  { %529 = vmatmul.bf16.gmra.mxu2 %v127_v39 }
  0xbb   :  { %v688_v49 = vunpack.c.l.b16 %v570_v46  ;;  %v712_v50 = vunpack.c.h.b16 %v570_v46 }
  0xbd   :  { %v490_v42 = vpop.f32.mrf.mxu2  ;;  %v314_v43 = vpop.f32.mrf.mxu0 }
  0xbe   :  { %v315_v44 = vadd.f32 %v314_v43, %v6317_v35  ;;  %v403_v45 = vpop.f32.mrf.mxu1  ;;  %v491_v59 = vadd.f32 %v490_v42, %v6325_v53  ;;  %v109_v43 = vld [vmem:[#allocation2 + $0xb0] sm:$0xff] }
  0xbf   :  { %v404_v47 = vadd.f32 %v403_v45, %v6319_v36 }
  0xc0   :  { %v571_v2 = vpack.c.bf16 %v491_v59, %v491_v59  ;;  %v111_v59 = vld [vmem:[#allocation2 + $0xc0] sm:$0xff] }
  0xc1   :  { %v572_v48 = vpack.c.bf16 %v404_v47, %v315_v44  ;;  %v110_v44 = vld [vmem:[#allocation2 + $0xb8] sm:$0xff] }
  0xc2   :  { %v1090_v10 = vunpack.c.l.b16 %v571_v2  ;;  %v130_v45 = vpack.c.bf16 %v110_v44, %v109_v43  ;;  %v115_v44 = vld [vmem:[#allocation2 + $0xe0] sm:$0xff] }
  0xc3   :  { %v689_v51 = vunpack.c.l.b16 %v572_v48  ;;  %v713_v52 = vunpack.c.h.b16 %v572_v48 }
  0xc5   :  { %v317_v54 = vpop.f32.mrf.mxu0  ;;  %v6327_v55 = vpack.c.b16 %v713_v52, %v712_v50  ;;  %v6329_v56 = vpack.c.b16 %v689_v51, %v688_v49  ;;  %v492_v58 = vpop.f32.mrf.mxu2 }
  0xc6   :  { %v406_v57 = vpop.f32.mrf.mxu1  ;;  %v318_v60 = vadd.f32 %v317_v54, %v6317_v35  ;;  %v493_v62 = vadd.f32 %v492_v58, %v6325_v53 }
  0xc7   :  { %1630 = vrot.lane.b32.xlu1 %v6327_v55, %s6254_s4  ;;  %1171 = vrot.lane.b32.xlu2 %v6329_v56, %s6255_s21  ;;  %v407_v61 = vadd.f32 %v406_v57, %v6319_v36 }
  0xc8   :  { %356 = vmatmul.bf16.gmra.mxu0 %v128_v1  ;;  %v573_v4 = vpack.c.bf16 %v493_v62, %v493_v62 }
  0xc9   :  { %445 = vmatmul.bf16.gmra.mxu1 %v128_v1  ;;  %v574_v3 = vpack.c.bf16 %v407_v61, %v318_v60  ;;  %v112_v60 = vld [vmem:[#allocation2 + $0xc8] sm:$0xff] }
  0xca   :  { %534 = vmatmul.bf16.gmra.mxu2 %v128_v1  ;;  %v1091_v12 = vunpack.c.l.b16 %v573_v4  ;;  %v131_v63 = vpack.c.bf16 %v112_v60, %v111_v59 }
  0xcb   :  { %v690_v11 = vunpack.c.l.b16 %v574_v3  ;;  %v714_v27 = vunpack.c.h.b16 %v574_v3 }
  0xcc   :  { %v6345_v15 = vpack.c.b16 %v1091_v12, %v1090_v10  ;;  %460 = vmatmul.bf16.vlgmr.msra.gmra.mxu3 %v131_v63 }
  0xcd   :  { %v319_v5 = vpop.f32.mrf.mxu0  ;;  %v495_v9 = vpop.f32.mrf.mxu2 }
  0xce   :  { %v320_v6 = vadd.f32 %v319_v5, %v6317_v35  ;;  %v408_v7 = vpop.f32.mrf.mxu1  ;;  %v496_v25 = vadd.f32 %v495_v9, %v6325_v53 }
  0xcf   :  { %v409_v8 = vadd.f32 %v408_v7, %v6319_v36  ;;  %2057 = vrot.lane.b32.xlu1 %v6329_v56, %s6256_s22  ;;  %1187 = vrot.lane.b32.xlu2 %v6327_v55, %s6255_s21 }
  0xd0   :  { %v575_v29 = vpack.c.bf16 %v496_v25, %v496_v25 }
  0xd1   :  { %v576_v13 = vpack.c.bf16 %v409_v8, %v320_v6 }
  0xd2   :  { %v1092_v37 = vunpack.c.l.b16 %v575_v29 }
  0xd3   :  { %v691_v14 = vunpack.c.l.b16 %v576_v13  ;;  %v715_v28 = vunpack.c.h.b16 %v576_v13 }
  0xd5   :  { %v322_v16 = vpop.f32.mrf.mxu0  ;;  %v6347_v17 = vpack.c.b16 %v691_v14, %v690_v11  ;;  %v497_v19 = vpop.f32.mrf.mxu2  ;;  %v6363_v33 = vpack.c.b16 %v715_v28, %v714_v27 }
  0xd6   :  { %v411_v18 = vpop.f32.mrf.mxu1  ;;  %v498_v26 = vadd.f32 %v497_v19, %v6325_v53  ;;  %v323_v39 = vadd.f32 %v322_v16, %v6317_v35  ;;  %v113_v16 = vld [vmem:[#allocation2 + $0xd0] sm:$0xff] }
  0xd7   :  { %1173 = vrot.lane.b32.xlu0 %v6347_v17, %s6255_s21  ;;  %1541 = vrot.lane.b32.xlu1 %v6345_v15, %s6255_s21  ;;  %v412_v40 = vadd.f32 %v411_v18, %v6319_v36  ;;  %v114_v18 = vld [vmem:[#allocation2 + $0xd8] sm:$0xff] }
  0xd8   :  { %1614 = vrot.lane.b32.xlu2 %v6329_v56, %s6254_s4  ;;  %361 = vmatmul.bf16.gmra.mxu0 %v129_v22  ;;  %v577_v30 = vpack.c.bf16 %v498_v26, %v498_v26  ;;  %v132_v19 = vpack.c.bf16 %v114_v18, %v113_v16 }
  0xd9   :  { %450 = vmatmul.bf16.gmra.mxu1 %v129_v22  ;;  %v578_v47 = vpack.c.bf16 %v412_v40, %v323_v39 }
  0xda   :  { %539 = vmatmul.bf16.gmra.mxu2 %v129_v22  ;;  %v1093_v38 = vunpack.c.l.b16 %v577_v30 }
  0xdb   :  { %v692_v57 = vunpack.c.l.b16 %v578_v47  ;;  %v716_v9 = vunpack.c.h.b16 %v578_v47 }
  0xdc   :  { %v6375_v46 = vpack.c.b16 %v1093_v38, %v1092_v37  ;;  %465 = vmatmul.bf16.gmra.mxu3 %v132_v19 }
  0xdd   :  { %v324_v23 = vpop.f32.mrf.mxu0  ;;  %v500_v31 = vpop.f32.mrf.mxu2 }
  0xde   :  { %v413_v24 = vpop.f32.mrf.mxu1  ;;  %v325_v41 = vadd.f32 %v324_v23, %v6317_v35  ;;  %v501_v52 = vadd.f32 %v500_v31, %v6325_v53 }
  0xdf   :  { %1616 = vrot.lane.b32.xlu0 %v6347_v17, %s6254_s4  ;;  %2427 = vrot.lane.b32.xlu1 %v6345_v15, %s6256_s22  ;;  %v414_v42 = vadd.f32 %v413_v24, %v6319_v36 }
  0xe0   :  { %2073 = vrot.lane.b32.xlu2 %v6327_v55, %s6256_s22  ;;  %v579_v61 = vpack.c.bf16 %v501_v52, %v501_v52 }
  0xe1   :  { %v580_v48 = vpack.c.bf16 %v414_v42, %v325_v41 }
  0xe2   :  { %v1094_v3 = vunpack.c.l.b16 %v579_v61 }
  0xe3   :  { %v693_v58 = vunpack.c.l.b16 %v580_v48  ;;  %v717_v10 = vunpack.c.h.b16 %v580_v48 }
  0xe5   :  { %v327_v32 = vpop.f32.mrf.mxu0  ;;  %v502_v50 = vpop.f32.mrf.mxu2  ;;  %v6385_v1 = vpack.c.b16 %v693_v58, %v692_v57  ;;  %v6407_v23 = vpack.c.b16 %v717_v10, %v716_v9 }
  0xe6   :  { %v416_v34 = vpop.f32.mrf.mxu1  ;;  %v503_v54 = vadd.f32 %v502_v50, %v6325_v53  ;;  %v328_v11 = vadd.f32 %v327_v32, %v6317_v35 }
  0xe7   :  { %2059 = vrot.lane.b32.xlu0 %v6347_v17, %s6256_s22  ;;  %1189 = vrot.lane.b32.xlu1 %v6363_v33, %s6255_s21  ;;  %v417_v12 = vadd.f32 %v416_v34, %v6319_v36 }
  0xe8   :  { %1984 = vrot.lane.b32.xlu2 %v6345_v15, %s6254_s4  ;;  %366 = vmatmul.bf16.gmra.mxu0 %v130_v45  ;;  %v581_v62 = vpack.c.bf16 %v503_v54, %v503_v54 }
  0xe9   :  { %455 = vmatmul.bf16.gmra.mxu1 %v130_v45  ;;  %v582_v20 = vpack.c.bf16 %v417_v12, %v328_v11 }
  0xea   :  { %544 = vmatmul.bf16.gmra.mxu2 %v130_v45  ;;  %v1095_v4 = vunpack.c.l.b16 %v581_v62  ;;  %v116_v45 = vld [vmem:[#allocation2 + $0xe8] sm:$0xff] }
  0xeb   :  { %v718_v25 = vunpack.c.h.b16 %v582_v20  ;;  %v694_v28 = vunpack.c.l.b16 %v582_v20  ;;  %v133_v47 = vpack.c.bf16 %v116_v45, %v115_v44 }
  0xec   :  { %v6393_v5 = vpack.c.b16 %v1095_v4, %v1094_v3 }
  0xed   :  { %v329_v49 = vpop.f32.mrf.mxu0  ;;  %v505_v8 = vpop.f32.mrf.mxu2  ;;  %470 = vmatmul.bf16.gmra.mxu3 %v133_v47 }
  0xee   :  { %v418_v51 = vpop.f32.mrf.mxu1  ;;  %v330_v13 = vadd.f32 %v329_v49, %v6317_v35  ;;  %v506_v37 = vadd.f32 %v505_v8, %v6325_v53  ;;  %v118_v8 = vld [vmem:[#allocation2 + $0xf8] sm:$0xff] }
  0xef   :  { %1543 = vrot.lane.b32.xlu0 %v6375_v46, %s6255_s21  ;;  %2075 = vrot.lane.b32.xlu1 %v6363_v33, %s6256_s22  ;;  %v419_v14 = vadd.f32 %v418_v51, %v6319_v36 }
  0xf0   :  { %1632 = vrot.lane.b32.xlu2 %v6363_v33, %s6254_s4  ;;  %v583_v50 = vpack.c.bf16 %v506_v37, %v506_v37 }
  0xf1   :  { %v584_v21 = vpack.c.bf16 %v419_v14, %v330_v13 }
  0xf2   :  { %v1096_v59 = vunpack.c.l.b16 %v583_v50 }
  0xf3   :  { %v719_v26 = vunpack.c.h.b16 %v584_v21  ;;  %v695_v29 = vunpack.c.l.b16 %v584_v21 }
  0xf5   :  { %v332_v0 = vpop.f32.mrf.mxu0  ;;  %v507_v27 = vpop.f32.mrf.mxu2  ;;  %v6419_v31 = vpack.c.b16 %v719_v26, %v718_v25  ;;  %v6423_v34 = vpack.c.b16 %v695_v29, %v694_v28 }
  0xf6   :  { %v421_v2 = vpop.f32.mrf.mxu1  ;;  %v508_v38 = vadd.f32 %v507_v27, %v6325_v53  ;;  %v333_v39 = vadd.f32 %v332_v0, %v6317_v35 }
  0xf7   :  { %1986 = vrot.lane.b32.xlu0 %v6375_v46, %s6254_s4  ;;  %1175 = vrot.lane.b32.xlu1 %v6385_v1, %s6255_s21  ;;  %v422_v40 = vadd.f32 %v421_v2, %v6319_v36 }
  0xf8   :  { %2061 = vrot.lane.b32.xlu2 %v6385_v1, %s6256_s22  ;;  %371 = vmatmul.bf16.gmra.mxu0 %v131_v63  ;;  %v585_v51 = vpack.c.bf16 %v508_v38, %v508_v38 }
  0xf9   :  { %v6437_v48 = vpack.c.bf16 %v422_v40, %v333_v39 }
  0xfa   :  { %549 = vmatmul.bf16.gmra.mxu2 %v131_v63  ;;  %v1097_v60 = vunpack.c.l.b16 %v585_v51 }
  0xfb   :  { %v720_v57 = vunpack.c.h.b16 %v6437_v48 }
  0xfc   :  { %v6449_v61 = vpack.c.b16 %v1097_v60, %v1096_v59 }
  0xfd   :  { %v334_v6 = vpop.f32.mrf.mxu0  ;;  %v510_v43 = vpop.f32.mrf.mxu2 }
  0xfe   :  { %v423_v7 = vpop.f32.mrf.mxu1  ;;  %v335_v41 = vadd.f32 %v334_v6, %v6317_v35  ;;  %v511_v3 = vadd.f32 %v510_v43, %v6325_v53 }
  0xff   :  { %2429 = vrot.lane.b32.xlu0 %v6375_v46, %s6256_s22  ;;  %1618 = vrot.lane.b32.xlu1 %v6385_v1, %s6254_s4  ;;  %v424_v42 = vadd.f32 %v423_v7, %v6319_v36  ;;  %v117_v7 = vld [vmem:[#allocation2 + $0xf0] sm:$0xff] }
 0x100   :  { %1545 = vrot.lane.b32.xlu2 %v6393_v5, %s6255_s21  ;;  %v587_v9 = vpack.c.bf16 %v511_v3, %v511_v3  ;;  %v134_v11 = vpack.c.bf16 %v118_v8, %v117_v7 }
 0x101   :  { %v6439_v49 = vpack.c.bf16 %v424_v42, %v335_v41  ;;  %v696_v41 = vunpack.c.l.b16 %v6437_v48 }
 0x102   :  { %475 = vmatmul.bf16.gmra.mxu3 %v134_v11  ;;  %v1098_v14 = vunpack.c.l.b16 %v587_v9 }
 0x103   :  { %v721_v58 = vunpack.c.h.b16 %v6439_v49  ;;  %v697_v42 = vunpack.c.l.b16 %v6439_v49 }
 0x105   :  { %v6405_v22 = vpop.f32.mrf.mxu0  ;;  %v512_v63 = vpop.f32.mrf.mxu2  ;;  %v6451_v0 = vpack.c.b16 %v721_v58, %v720_v57  ;;  %v6499_v58 = vpack.c.b16 %v697_v42, %v696_v41 }
 0x106   :  { %v6409_v24 = vpop.f32.mrf.mxu1  ;;  %v513_v4 = vadd.f32 %v512_v63, %v6325_v53  ;;  %v338_v44 = vadd.f32 %v6405_v22, %v6317_v35 }
 0x107   :  { %1191 = vrot.lane.b32.xlu0 %v6407_v23, %s6255_s21  ;;  %1988 = vrot.lane.b32.xlu1 %v6393_v5, %s6254_s4  ;;  %v427_v45 = vadd.f32 %v6409_v24, %v6319_v36 }
 0x108   :  { %2431 = vrot.lane.b32.xlu2 %v6393_v5, %s6256_s22  ;;  %376 = vmatmul.bf16.gmra.mxu0 %v132_v19  ;;  %v589_v10 = vpack.c.bf16 %v513_v4, %v513_v4 }
 0x109   :  { %v590_v22 = vpack.c.bf16 %v427_v45, %v338_v44 }
 0x10a   :  { %554 = vmatmul.bf16.gmra.mxu2 %v132_v19  ;;  %v1099_v16 = vunpack.c.l.b16 %v589_v10 }
 0x10b   :  { %v698_v63 = vunpack.c.l.b16 %v590_v22 }
 0x10c   :  { %v6474_v25 = vpack.c.b16 %v1099_v16, %v1098_v14 }
 0x10d   :  { %v6417_v30 = vpop.f32.mrf.mxu0  ;;  %v515_v26 = vpop.f32.mrf.mxu2 }
 0x10e   :  { %v6421_v32 = vpop.f32.mrf.mxu1  ;;  %v516_v4 = vadd.f32 %v515_v26, %v6325_v53  ;;  %v722_v26 = vunpack.c.h.b16 %v590_v22 }
 0x10f   :  { %1634 = vrot.lane.b32.xlu0 %v6407_v23, %s6254_s4  ;;  %1636 = vrot.lane.b32.xlu1 %v6419_v31, %s6254_s4  ;;  %v429_v48 = vadd.f32 %v6421_v32, %v6319_v36 }
 0x110   :  { %1177 = vrot.lane.b32.xlu2 %v6423_v34, %s6255_s21 }
 0x115   :  { %v342_v52 = vpop.f32.mrf.mxu0 }
 0x116   :  { %v431_v54 = vpop.f32.mrf.mxu1  ;;  %v343_v21 = vadd.f32 %v342_v52, %v6317_v35 }
 0x117   :  { %2077 = vrot.lane.b32.xlu0 %v6407_v23, %s6256_s22  ;;  %2063 = vrot.lane.b32.xlu1 %v6423_v34, %s6256_s22  ;;  %v432_v27 = vadd.f32 %v431_v54, %v6319_v36 }
 0x118   :  { %1193 = vrot.lane.b32.xlu2 %v6419_v31, %s6255_s21  ;;  %381 = vmatmul.bf16.gmra.mxu0 %v133_v47 }
 0x119   :  { %v594_v49 = vpack.c.bf16 %v432_v27, %v343_v21 }
 0x11a   :  { %559 = vmatmul.bf16.gmra.mxu2 %v133_v47  ;;  %v340_v47 = vadd.f32 %v6417_v30, %v6317_v35 }
 0x11b   :  { %v724_v59 = vunpack.c.h.b16 %v594_v49  ;;  %v700_v45 = vunpack.c.l.b16 %v594_v49 }
 0x11c   :  { %v592_v24 = vpack.c.bf16 %v429_v48, %v340_v47 }
 0x11d   :  { %v344_v62 = vpop.f32.mrf.mxu0 }
 0x11e   :  { %v433_v2 = vpop.f32.mrf.mxu1  ;;  %v345_v28 = vadd.f32 %v344_v62, %v6317_v35  ;;  %v517_v62 = vpop.f32.mrf.mxu2  ;;  %v723_v27 = vunpack.c.h.b16 %v592_v24 }
 0x11f   :  { %1547 = vrot.lane.b32.xlu0 %v6449_v61, %s6255_s21  ;;  %1195 = vrot.lane.b32.xlu1 %v6451_v0, %s6255_s21  ;;  %v434_v29 = vadd.f32 %v433_v2, %v6319_v36  ;;  %v699_v2 = vunpack.c.l.b16 %v592_v24  ;;  %v518_v7 = vadd.f32 %v517_v62, %v6325_v53  ;;  %v774_v24 = vsel %vm736_vm0, %v6451_v0, 0 }
 0x120   :  { %1620 = vrot.lane.b32.xlu2 %v6423_v34, %s6254_s4 }
 0x121   :  { %v6461_v6 = vpop.permute.xlu2 %1171  ;;  %v596_v50 = vpack.c.bf16 %v434_v29, %v345_v28  ;;  %v593_v14 = vpack.c.bf16 %v518_v7, %v518_v7  ;;  %v6521_v16 = vpack.c.b16 %v699_v2, %v698_v63  ;;  %v771_v2 = vsel %vm736_vm0, %v6419_v31, 0 }
 0x123   :  { %v725_v60 = vunpack.c.h.b16 %v596_v50  ;;  %v1101_v29 = vunpack.c.l.b16 %v593_v14  ;;  %v701_v47 = vunpack.c.l.b16 %v596_v50 }
 0x125   :  { %v347_v12 = vpop.f32.mrf.mxu0  ;;  %v6511_v3 = vpack.c.b16 %v725_v60, %v724_v59  ;;  %v6558_v22 = vpack.c.b16 %v701_v47, %v700_v45 }
 0x126   :  { %v436_v13 = vpop.f32.mrf.mxu1  ;;  %v348_v18 = vadd.f32 %v347_v12, %v6317_v35 }
 0x127   :  { %1990 = vrot.lane.b32.xlu0 %v6449_v61, %s6254_s4  ;;  %2081 = vrot.lane.b32.xlu1 %v6451_v0, %s6256_s22  ;;  %v437_v19 = vadd.f32 %v436_v13, %v6319_v36  ;;  %v591_v13 = vpack.c.bf16 %v516_v4, %v516_v4 }
 0x128   :  { %2079 = vrot.lane.b32.xlu2 %v6419_v31, %s6256_s22  ;;  %386 = vmatmul.bf16.gmra.mxu0 %v134_v11  ;;  %v768_v31 = vsel %vm736_vm0, %v6407_v23, 0  ;;  %v765_v23 = vsel %vm736_vm0, %v6363_v33, 0  ;;  %v762_v33 = vsel %vm736_vm0, %v6327_v55, 0 }
 0x129   :  { %v6471_v20 = vpop.permute.xlu2 %1187  ;;  %v598_v37 = vpack.c.bf16 %v437_v19, %v348_v18  ;;  %v780_v18 = vsel %vm736_vm0, %v6511_v3, 0  ;;  %v520_v19 = vpop.f32.mrf.mxu2  ;;  %v1100_v28 = vunpack.c.l.b16 %v591_v13 }
 0x12a   :  { %564 = vmatmul.bf16.gmra.mxu2 %v134_v11  ;;  %v521_v63 = vadd.f32 %v520_v19, %v6325_v53 }
 0x12b   :  { %v726_v51 = vunpack.c.h.b16 %v598_v37  ;;  %v702_v10 = vunpack.c.l.b16 %v598_v37  ;;  %v6539_v41 = vpack.c.b16 %v1101_v29, %v1100_v28 }
 0x12c   :  { %v595_v13 = vpack.c.bf16 %v521_v63, %v521_v63 }
 0x12d   :  { %v349_v38 = vpop.f32.mrf.mxu0 }
 0x12e   :  { %v350_v39 = vadd.f32 %v349_v38, %v6317_v35  ;;  %v438_v40 = vpop.f32.mrf.mxu1 }
 0x12f   :  { %v439_v43 = vadd.f32 %v438_v40, %v6319_v36  ;;  %2433 = vrot.lane.b32.xlu0 %v6449_v61, %s6256_s22  ;;  %1549 = vrot.lane.b32.xlu1 %v6474_v25, %s6255_s21  ;;  %v733_v40 = vpack.c.b16 %v723_v27, %v722_v26  ;;  %v1102_v26 = vunpack.c.l.b16 %v595_v13 }
 0x130   :  { %1638 = vrot.lane.b32.xlu2 %v6451_v0, %s6254_s4 }
 0x131   :  { %v600_v52 = vpack.c.bf16 %v439_v43, %v350_v39  ;;  %v777_v42 = vsel %vm736_vm0, %v733_v40, 0  ;;  %v522_v43 = vpop.f32.mrf.mxu2 }
 0x132   :  { %v6497_v54 = vpop.permute.xlu2 %1614  ;;  %v523_v0 = vadd.f32 %v522_v43, %v6325_v53 }
 0x133   :  { %9546 = vst [vmem:[#allocation19_spill] sm:$0xff] %v6497_v54  ;;  %v727_v57 = vunpack.c.h.b16 %v600_v52  ;;  %v703_v11 = vunpack.c.l.b16 %v600_v52 }
 0x134   :  { %v597_v14 = vpack.c.bf16 %v523_v0, %v523_v0 }
 0x135   :  { %v6501_v30 = vpack.c.b16 %v727_v57, %v726_v51  ;;  %v6517_v9 = vpop.f32.mrf.mxu0  ;;  %v6525_v21 = vpack.c.b16 %v703_v11, %v702_v10 }
 0x136   :  { %v6548_v44 = vpop.f32.mrf.mxu1  ;;  %v1103_v27 = vunpack.c.l.b16 %v597_v14 }
 0x137   :  { %1179 = vrot.lane.b32.xlu0 %v6499_v58, %s6255_s21  ;;  %2435 = vrot.lane.b32.xlu1 %v6474_v25, %s6256_s22  ;;  %v783_v32 = vsel %vm736_vm0, %v6501_v30, 0  ;;  %v442_v55 = vadd.f32 %v6548_v44, %v6319_v36 }
 0x138   :  { %1992 = vrot.lane.b32.xlu2 %v6474_v25, %s6254_s4  ;;  %785 = vmatpush.bf16.xpose.msrb.mxu3 %v783_v32  ;;  %v1112_v47 = vpack.c.b16 %v1103_v27, %v1102_v26 }
 0x139   :  { %v6515_v8 = vpop.permute.xlu1 %1630  ;;  %v525_v62 = vpop.f32.mrf.mxu2 }
 0x13a   :  { %9547 = vst [vmem:[#allocation20_spill] sm:$0xff] %v6515_v8  ;;  %v6519_v12 = vpop.permute.xlu2 %2073  ;;  %v526_v28 = vadd.f32 %v525_v62, %v6325_v53 }
 0x13b   :  { %9548 = vst [vmem:[#allocation21_spill] sm:$0xff] %v6519_v12 }
 0x13d   :  { %v6535_v38 = vpop.f32.mrf.mxu0 }
 0x13e   :  { %v443_v32 = vpop.f32.mrf.mxu1 }
 0x13f   :  { %1622 = vrot.lane.b32.xlu0 %v6499_v58, %s6254_s4  ;;  %1624 = vrot.lane.b32.xlu1 %v6521_v16, %s6254_s4 }
 0x140   :  { %1181 = vrot.lane.b32.xlu2 %v6521_v16, %s6255_s21  ;;  %786 = vmatpush.bf16.xpose.msrb.mxu3 %v780_v18 }
 0x141   :  { %v6533_v37 = vpop.permute.xlu1 %2057  ;;  %v527_v18 = vpop.f32.mrf.mxu2 }
 0x142   :  { %9549 = vst [vmem:[#allocation22_spill] sm:$0xff] %v6533_v37  ;;  %v6537_v39 = vpop.permute.xlu2 %1984  ;;  %v528_v43 = vadd.f32 %v527_v18, %v6325_v53 }
 0x144   :  { %v601_v63 = vpack.c.bf16 %v528_v43, %v528_v43 }
 0x145   :  { %v6556_v57 = vpop.f32.mrf.mxu0 }
 0x146   :  { %v6592_v19 = vpop.f32.mrf.mxu1 }
 0x147   :  { %2065 = vrot.lane.b32.xlu0 %v6499_v58, %s6256_s22  ;;  %1994 = vrot.lane.b32.xlu1 %v6539_v41, %s6254_s4 }
 0x148   :  { %2067 = vrot.lane.b32.xlu2 %v6521_v16, %s6256_s22  ;;  %787 = vmatpush.bf16.xpose.msrb.mxu3 %v777_v42 }
 0x149   :  { %v6550_v48 = vpop.permute.xlu0 %1173  ;;  %v6552_v51 = vpop.permute.xlu1 %1541 }
 0x14a   :  { %v6554_v52 = vpop.permute.xlu2 %1632 }
 0x14d   :  { %v6573_v60 = vpop.f32.mrf.mxu0 }
 0x14e   :  { %v448_v62 = vpop.f32.mrf.mxu1 }
 0x14f   :  { %1197 = vrot.lane.b32.xlu0 %v733_v40, %s6255_s21  ;;  %1183 = vrot.lane.b32.xlu1 %v6558_v22, %s6255_s21 }
 0x150   :  { %1551 = vrot.lane.b32.xlu2 %v6539_v41, %s6255_s21  ;;  %788 = vmatpush.bf16.xpose.msrb.mxu3 %v774_v24  ;;  %v599_v24 = vpack.c.bf16 %v526_v28, %v526_v28 }
 0x151   :  { %v6567_v49 = vpop.permute.xlu0 %1616  ;;  %v6569_v50 = vpop.permute.xlu1 %2427 }
 0x152   :  { %9550 = vst [vmem:[#allocation23_spill] sm:$0xff] %v6567_v49  ;;  %v6571_v59 = vpop.permute.xlu2 %2061  ;;  %v1104_v0 = vunpack.c.l.b16 %v599_v24 }
 0x153   :  { %9551 = vst [vmem:[#allocation24_spill] sm:$0xff] %v6571_v59 }
 0x155   :  { %v6590_v11 = vpop.f32.mrf.mxu0 }
 0x157   :  { %1640 = vrot.lane.b32.xlu0 %v733_v40, %s6254_s4  ;;  %1642 = vrot.lane.b32.xlu1 %v6511_v3, %s6254_s4 }
 0x158   :  { %2437 = vrot.lane.b32.xlu2 %v6539_v41, %s6256_s22  ;;  %789 = vmatpush.bf16.xpose.msrb.mxu3 %v771_v2  ;;  %v1105_v2 = vunpack.c.l.b16 %v601_v63  ;;  %v451_v63 = vpop.f32.mrf.mxu1 }
 0x159   :  { %v6584_v4 = vpop.permute.xlu0 %2059  ;;  %v6586_v7 = vpop.permute.xlu1 %1189 }
 0x15a   :  { %9552 = vst [vmem:[#allocation25_spill] sm:$0xff] %v6584_v4  ;;  %v6588_v10 = vpop.permute.xlu2 %1545  ;;  %v1113_v27 = vpack.c.b16 %v1105_v2, %v1104_v0  ;;  %v444_v0 = vadd.f32 %v443_v32, %v6319_v36 }
 0x15f   :  { %2083 = vrot.lane.b32.xlu0 %v733_v40, %s6256_s22  ;;  %2069 = vrot.lane.b32.xlu1 %v6558_v22, %s6256_s22  ;;  %v6609_v40 = vpop.f32.mrf.mxu0 }
 0x160   :  { %1199 = vrot.lane.b32.xlu2 %v6511_v3, %s6255_s21  ;;  %790 = vmatpush.bf16.xpose.msrb.mxu3 %v768_v31  ;;  %v453_v53 = vpop.f32.mrf.mxu1 }
 0x161   :  { %v6602_v29 = vpop.permute.xlu0 %1543  ;;  %v6604_v42 = vpop.permute.xlu1 %2075 }
 0x162   :  { %9553 = vst [vmem:[#allocation26_spill] sm:$0xff] %v6604_v42  ;;  %v6607_v45 = vpop.permute.xlu2 %2431 }
 0x167   :  { %1553 = vrot.lane.b32.xlu0 %v1112_v47, %s6255_s21  ;;  %1201 = vrot.lane.b32.xlu1 %v6501_v30, %s6255_s21  ;;  %v6624_v26 = vpop.f32.mrf.mxu0 }
 0x168   :  { %1626 = vrot.lane.b32.xlu2 %v6558_v22, %s6254_s4  ;;  %791 = vmatpush.bf16.xpose.msrb.mxu3 %v765_v23  ;;  %v353_v23 = vadd.f32 %v6517_v9, %v6317_v35 }
 0x169   :  { %v6618_v13 = vpop.permute.xlu0 %1986  ;;  %v6620_v14 = vpop.permute.xlu1 %1175 }
 0x16a   :  { %v6622_v18 = vpop.permute.xlu2 %1177  ;;  %v602_v44 = vpack.c.bf16 %v442_v55, %v353_v23  ;;  %v447_v23 = vadd.f32 %v6592_v19, %v6319_v36  ;;  %v449_v55 = vadd.f32 %v448_v62, %v6319_v36 }
 0x16b   :  { %9554 = vst [vmem:[#allocation27_spill] sm:$0xff] %v6622_v18 }
 0x16f   :  { %1996 = vrot.lane.b32.xlu0 %v1112_v47, %s6254_s4  ;;  %2087 = vrot.lane.b32.xlu1 %v6501_v30, %s6256_s22  ;;  %v6639_v24 = vpop.f32.mrf.mxu0 }
 0x170   :  { %2085 = vrot.lane.b32.xlu2 %v6511_v3, %s6256_s22  ;;  %792 = vmatpush.bf16.xpose.msrb.mxu3 %v762_v33  ;;  %v355_v3 = vadd.f32 %v6535_v38, %v6317_v35  ;;  %v6663_v33 = vpop.f32.mrf.mxu3  ;;  %v370_v37 = vadd.f32 %v6639_v24, %v6317_v35 }
 0x171   :  { %v6633_v31 = vpop.permute.xlu0 %2429  ;;  %v6635_v28 = vpop.permute.xlu1 %1618 }
 0x172   :  { %9555 = vst [vmem:[#allocation28_spill] sm:$0xff] %v6635_v28  ;;  %v6637_v43 = vpop.permute.xlu2 %1193 }
 0x177   :  { %2439 = vrot.lane.b32.xlu0 %v1112_v47, %s6256_s22  ;;  %1555 = vrot.lane.b32.xlu1 %v1113_v27, %s6255_s21  ;;  %v6661_v32 = vpop.f32.mrf.mxu0 }
 0x178   :  { %1122 = vmatpush.bf16.msra.mxu3 %v1113_v27  ;;  %1644 = vrot.lane.b32.xlu2 %v6501_v30, %s6254_s4  ;;  %v2813_v30 = vunpack.c.l.b16 %v602_v44  ;;  %v463_v4 = vpop.f32.mrf.mxu3 }
 0x179   :  { %5033 = vmatmul.msk.bf16.vlgmr.msrb.gmra.mxu3 %vm736_vm0, %v6329_v56  ;;  %v6654_v2 = vpop.permute.xlu0 %1191  ;;  %v6657_v9 = vpop.permute.xlu1 %1988  ;;  %v358_v56 = vadd.f32 %v6556_v57, %v6317_v35 }
 0x17a   :  { %v6659_v38 = vpop.permute.xlu2 %1620 }
 0x17b   :  { %9556 = vst [vmem:[#allocation29_spill] sm:$0xff] %v6659_v38  ;;  %v606_v62 = vpack.c.bf16 %v447_v23, %v358_v56  ;;  %v452_v56 = vadd.f32 %v451_v63, %v6319_v36 }
 0x17c   :  { %1123 = vmatpush.bf16.msra.mxu3 %v1112_v47  ;;  %v604_v47 = vpack.c.bf16 %v444_v0, %v355_v3 }
 0x17e   :  { %v2814_v59 = vunpack.c.l.b16 %v604_v47  ;;  %v2838_v3 = vunpack.c.h.b16 %v604_v47  ;;  %v363_v47 = vadd.f32 %v6590_v11, %v6317_v35 }
 0x17f   :  { %1185 = vrot.lane.b32.xlu0 %v6525_v21, %s6255_s21  ;;  %2441 = vrot.lane.b32.xlu1 %v1113_v27, %s6256_s22  ;;  %v6684_v19 = vpop.f32.mrf.mxu0 }
 0x180   :  { %1124 = vmatpush.bf16.msra.mxu3 %v6539_v41  ;;  %v360_v41 = vadd.f32 %v6573_v60, %v6317_v35  ;;  %1998 = vrot.lane.b32.xlu2 %v1113_v27, %s6254_s4  ;;  %v6686_v28 = vpack.c.b16 %v2814_v59, %v2813_v30  ;;  %v2839_v27 = vunpack.c.h.b16 %v606_v62  ;;  %v365_v30 = vadd.f32 %v6609_v40, %v6317_v35 }
 0x181   :  { %v6677_v57 = vpop.permute.xlu0 %1634  ;;  %v6680_v0 = vpop.permute.xlu1 %1636 }
 0x182   :  { %v6682_v60 = vpop.permute.xlu2 %2079  ;;  %v608_v38 = vpack.c.bf16 %v449_v55, %v360_v41  ;;  %9557 = vst [vmem:[#allocation30_spill] sm:$0xff] %v6686_v28 }
 0x184   :  { %1125 = vmatpush.bf16.msra.mxu3 %v6474_v25  ;;  %v2837_v25 = vunpack.c.h.b16 %v602_v44  ;;  %v2840_v44 = vunpack.c.h.b16 %v608_v38 }
 0x186   :  { %v6688_v49 = vpack.c.b16 %v2838_v3, %v2837_v25  ;;  %v6712_v55 = vpack.c.b16 %v2840_v44, %v2839_v27  ;;  %v466_v25 = vpop.f32.mrf.mxu3 }
 0x187   :  { %1628 = vrot.lane.b32.xlu0 %v6525_v21, %s6254_s4  ;;  %3296 = vrot.lane.b32.xlu1 %v6686_v28, %s6255_s21  ;;  %v377_v23 = vpop.f32.mrf.mxu0  ;;  %v2815_v28 = vunpack.c.l.b16 %v606_v62 }
 0x188   :  { %1126 = vmatpush.bf16.msra.mxu3 %v6449_v61  ;;  %9558 = vst [vmem:[#allocation31_spill] sm:$0xff] %v6688_v49  ;;  %v456_v61 = vpop.f32.mrf.mxu1  ;;  %3312 = vrot.lane.b32.xlu2 %v6688_v49, %s6255_s21 }
 0x189   :  { %5034 = vmatmul.msk.bf16.gmra.mxu3 %vm736_vm0, %v6347_v17  ;;  %v6699_v59 = vpop.permute.xlu0 %2077  ;;  %v454_v17 = vadd.f32 %v453_v53, %v6319_v36  ;;  %9560 = vst [vmem:[#allocation33_spill] sm:$0xff] %v6712_v55  ;;  %v457_v54 = vadd.f32 %v456_v61, %v6319_v36 }
 0x18a   :  { %v6709_v41 = vpop.permute.xlu2 %1638 }
 0x18b   :  { %v612_v3 = vpack.c.bf16 %v454_v17, %v365_v30 }
 0x18c   :  { %1127 = vmatpush.bf16.msra.mxu3 %v6393_v5  ;;  %v6702_v5 = vpop.permute.xlu1 %2063 }
 0x18d   :  { %9559 = vst [vmem:[#allocation32_spill] sm:$0xff] %v6702_v5  ;;  %v2816_v5 = vunpack.c.l.b16 %v608_v38  ;;  %v2842_v40 = vunpack.c.h.b16 %v612_v3  ;;  %v2818_v17 = vunpack.c.l.b16 %v612_v3 }
 0x18e   :  { %v468_v38 = vpop.f32.mrf.mxu3 }
 0x18f   :  { %2071 = vrot.lane.b32.xlu0 %v6525_v21, %s6256_s22  ;;  %3314 = vrot.lane.b32.xlu1 %v6712_v55, %s6255_s21  ;;  %v379_v27 = vpop.f32.mrf.mxu0  ;;  %v6727_v62 = vpack.c.b16 %v2816_v5, %v2815_v28 }
 0x190   :  { %1128 = vmatpush.bf16.msra.mxu3 %v6375_v46  ;;  %v610_v46 = vpack.c.bf16 %v452_v56, %v363_v47  ;;  %3757 = vrot.lane.b32.xlu2 %v6712_v55, %s6254_s4  ;;  %v458_v44 = vpop.f32.mrf.mxu1  ;;  %v368_v56 = vadd.f32 %v6624_v26, %v6317_v35 }
 0x191   :  { %v6721_v53 = vpop.permute.xlu0 %1547  ;;  %9561 = vst [vmem:[#allocation34_spill] sm:$0xff] %v6727_v62  ;;  %v459_v28 = vadd.f32 %v458_v44, %v6319_v36  ;;  %v373_v44 = vadd.f32 %v6661_v32, %v6317_v35 }
 0x192   :  { %v2841_v11 = vunpack.c.h.b16 %v610_v46  ;;  %v2817_v30 = vunpack.c.l.b16 %v610_v46  ;;  %v614_v46 = vpack.c.bf16 %v457_v54, %v368_v56  ;;  %v469_v56 = vadd.f32 %v468_v38, %v6319_v36 }
 0x193   :  { %v616_v3 = vpack.c.bf16 %v459_v28, %v370_v37 }
 0x194   :  { %1129 = vmatpush.bf16.msra.mxu3 %v6345_v15  ;;  %v6723_v63 = vpop.permute.xlu1 %1195  ;;  %v6725_v15 = vpop.permute.xlu2 %1992  ;;  %v6729_v47 = vpack.c.b16 %v2842_v40, %v2841_v11  ;;  %v6751_v11 = vpack.c.b16 %v2818_v17, %v2817_v30  ;;  %v2819_v12 = vunpack.c.l.b16 %v614_v46  ;;  %v380_v30 = vadd.f32 %v379_v27, %v6317_v35 }
 0x195   :  { %v2820_v8 = vunpack.c.l.b16 %v616_v3 }
 0x196   :  { %9562 = vst [vmem:[#allocation35_spill] sm:$0xff] %v6729_v47  ;;  %v471_v40 = vpop.f32.mrf.mxu3 }
 0x197   :  { %3755 = vrot.lane.b32.xlu0 %v6688_v49, %s6254_s4  ;;  %3298 = vrot.lane.b32.xlu1 %v6727_v62, %s6255_s21  ;;  %v382_v61 = vpop.f32.mrf.mxu0  ;;  %9563 = vst [vmem:[#allocation36_spill] sm:$0xff] %v6751_v11  ;;  %v375_v62 = vadd.f32 %v6684_v19, %v6317_v35  ;;  %v464_v49 = vadd.f32 %v463_v4, %v6319_v36 }
 0x198   :  { %3316 = vrot.lane.b32.xlu2 %v6729_v47, %s6255_s21  ;;  %v378_v19 = vadd.f32 %v377_v23, %v6317_v35  ;;  %v467_v4 = vadd.f32 %v466_v25, %v6319_v36  ;;  %v2843_v23 = vunpack.c.h.b16 %v614_v46  ;;  %v2844_v25 = vunpack.c.h.b16 %v616_v3 }
 0x199   :  { %5035 = vmatmul.msk.bf16.gmra.mxu3 %vm736_vm0, %v6385_v1  ;;  %v6745_v26 = vpop.permute.xlu0 %1990  ;;  %v462_v1 = vadd.f32 %v6663_v33, %v6319_v36  ;;  %v620_v37 = vpack.c.bf16 %v464_v49, %v375_v62  ;;  %v6776_v49 = vpack.c.b16 %v2820_v8, %v2819_v12  ;;  %v383_v3 = vadd.f32 %v382_v61, %v6317_v35 }
 0x19b   :  { %v618_v54 = vpack.c.bf16 %v462_v1, %v373_v44  ;;  %v2846_v44 = vunpack.c.h.b16 %v620_v37  ;;  %9565 = vst [vmem:[#allocation38_spill] sm:$0xff] %v6776_v49  ;;  %v2822_v42 = vunpack.c.l.b16 %v620_v37 }
 0x19c   :  { %v6747_v5 = vpop.permute.xlu1 %2081  ;;  %v6749_v24 = vpop.permute.xlu2 %1181 }
 0x19d   :  { %v2845_v17 = vunpack.c.h.b16 %v618_v54 }
 0x19e   :  { %v473_v1 = vpop.f32.mrf.mxu3 }
 0x19f   :  { %3300 = vrot.lane.b32.xlu0 %v6751_v11, %s6255_s21  ;;  %4200 = vrot.lane.b32.xlu1 %v6712_v55, %s6256_s22  ;;  %v384_v62 = vpop.f32.mrf.mxu0  ;;  %v6778_v11 = vpack.c.bf16 %v467_v4, %v378_v19  ;;  %v6780_v55 = vpack.c.bf16 %v469_v56, %v380_v30  ;;  %v6782_v18 = vpack.c.b16 %v2846_v44, %v2845_v17 }
 0x1a0   :  { %3759 = vrot.lane.b32.xlu2 %v6729_v47, %s6254_s4  ;;  %v472_v19 = vadd.f32 %v471_v40, %v6319_v36  ;;  %v385_v4 = vadd.f32 %v384_v62, %v6317_v35  ;;  %v6804_v30 = vpack.c.b16 %v2844_v25, %v2843_v23 }
 0x1a1   :  { %v6766_v32 = vpop.permute.xlu0 %2433  ;;  %v2847_v27 = vunpack.c.h.b16 %v6778_v11  ;;  %v2848_v38 = vunpack.c.h.b16 %v6780_v55 }
 0x1a2   :  { %v626_v44 = vpack.c.bf16 %v472_v19, %v383_v3 }
 0x1a4   :  { %v6768_v33 = vpop.permute.xlu1 %1549  ;;  %v6774_v28 = vpop.permute.xlu2 %2067 }
 0x1a5   :  { %9564 = vst [vmem:[#allocation37_spill] sm:$0xff] %v6774_v28  ;;  %v6806_v28 = vpack.c.b16 %v2848_v38, %v2847_v27 }
 0x1a6   :  { %v476_v17 = vpop.f32.mrf.mxu3 }
 0x1a7   :  { %3302 = vrot.lane.b32.xlu0 %v6776_v49, %s6255_s21  ;;  %4202 = vrot.lane.b32.xlu1 %v6729_v47, %s6256_s22  ;;  %v387_v56 = vpop.f32.mrf.mxu0  ;;  %v2821_v47 = vunpack.c.l.b16 %v618_v54  ;;  %v477_v19 = vadd.f32 %v476_v17, %v6319_v36 }
 0x1a8   :  { %3320 = vrot.lane.b32.xlu2 %v6782_v18, %s6255_s21  ;;  %v388_v3 = vadd.f32 %v387_v56, %v6317_v35 }
 0x1a9   :  { %5036 = vmatmul.msk.bf16.gmra.mxu3 %vm736_vm0, %v6423_v34  ;;  %v6792_v8 = vpop.permute.xlu0 %1179  ;;  %v474_v34 = vadd.f32 %v473_v1, %v6319_v36  ;;  %v2849_v1 = vunpack.c.h.b16 %v626_v44  ;;  %v6820_v25 = vpack.c.b16 %v2822_v42, %v2821_v47 }
 0x1ab   :  { %v628_v49 = vpack.c.bf16 %v474_v34, %v385_v4  ;;  %9567 = vst [vmem:[#allocation40_spill] sm:$0xff] %v6820_v25 }
 0x1ac   :  { %v6794_v12 = vpop.permute.xlu1 %2435  ;;  %v6798_v46 = vpop.permute.xlu2 %1551 }
 0x1ad   :  { %v2850_v23 = vunpack.c.h.b16 %v628_v49 }
 0x1ae   :  { %v478_v27 = vpop.f32.mrf.mxu3 }
 0x1af   :  { %4204 = vrot.lane.b32.xlu0 %v6804_v30, %s6256_s22  ;;  %3318 = vrot.lane.b32.xlu1 %v6804_v30, %s6255_s21  ;;  %v6822_v54 = vpack.c.b16 %v2850_v23, %v2849_v1  ;;  %v389_v37 = vpop.f32.mrf.mxu0  ;;  %v479_v34 = vadd.f32 %v478_v27, %v6319_v36  ;;  %v630_v1 = vpack.c.bf16 %v477_v19, %v388_v3  ;;  %v2825_v36 = vunpack.c.l.b16 %v626_v44 }
 0x1b0   :  { %4208 = vrot.lane.b32.xlu2 %v6806_v28, %s6256_s22  ;;  %v390_v4 = vadd.f32 %v389_v37, %v6317_v35  ;;  %v2826_v27 = vunpack.c.l.b16 %v628_v49  ;;  %v2823_v49 = vunpack.c.l.b16 %v6778_v11 }
 0x1b1   :  { %v6814_v61 = vpop.permute.xlu0 %1622  ;;  %v2851_v17 = vunpack.c.h.b16 %v630_v1 }
 0x1b2   :  { %v632_v23 = vpack.c.bf16 %v479_v34, %v390_v4  ;;  %v6864_v44 = vpack.c.b16 %v2826_v27, %v2825_v36  ;;  %v2824_v34 = vunpack.c.l.b16 %v6780_v55 }
 0x1b4   :  { %v6816_v40 = vpop.permute.xlu1 %1624  ;;  %v6818_v62 = vpop.permute.xlu2 %2437  ;;  %v2852_v35 = vunpack.c.h.b16 %v632_v23  ;;  %9569 = vst [vmem:[#allocation42_spill] sm:$0xff] %v6864_v44  ;;  %v6878_v36 = vpack.c.b16 %v2824_v34, %v2823_v49 }
 0x1b5   :  { %9566 = vst [vmem:[#allocation39_spill] sm:$0xff] %v6816_v40 }
 0x1b6   :  { %v6848_v37 = vpack.c.b16 %v2852_v35, %v2851_v17  ;;  %v2827_v17 = vunpack.c.l.b16 %v630_v1  ;;  %9570 = vst [vmem:[#allocation43_spill] sm:$0xff] %v6878_v36 }
 0x1b7   :  { %3304 = vrot.lane.b32.xlu0 %v6820_v25, %s6255_s21  ;;  %3761 = vrot.lane.b32.xlu1 %v6804_v30, %s6254_s4 }
 0x1b8   :  { %3324 = vrot.lane.b32.xlu2 %v6822_v54, %s6255_s21 }
 0x1b9   :  { %5037 = vmatmul.msk.bf16.gmra.mxu3 %vm736_vm0, %v6499_v58  ;;  %v6832_v38 = vpop.permute.xlu0 %2065 }
 0x1bc   :  { %v1995_v42 = vpop.permute.xlu1 %1994  ;;  %v1200_v47 = vpop.permute.xlu2 %1199 }
 0x1bf   :  { %4206 = vrot.lane.b32.xlu0 %v6782_v18, %s6256_s22  ;;  %3763 = vrot.lane.b32.xlu1 %v6782_v18, %s6254_s4 }
 0x1c0   :  { %4210 = vrot.lane.b32.xlu2 %v6822_v54, %s6256_s22 }
 0x1c1   :  { %v1198_v58 = vpop.permute.xlu0 %1197 }
 0x1c4   :  { %v6844_v25 = vpop.permute.xlu1 %1183  ;;  %v6846_v56 = vpop.permute.xlu2 %1626 }
 0x1c5   :  { %9568 = vst [vmem:[#allocation41_spill] sm:$0xff] %v6846_v56 }
 0x1c7   :  { %3322 = vrot.lane.b32.xlu0 %v6806_v28, %s6255_s21  ;;  %3767 = vrot.lane.b32.xlu1 %v6822_v54, %s6254_s4 }
 0x1c8   :  { %3769 = vrot.lane.b32.xlu2 %v6848_v37, %s6254_s4 }
 0x1c9   :  { %5038 = vmatmul.msk.bf16.gmra.mxu3 %vm736_vm0, %v6521_v16  ;;  %v6858_v3 = vpop.permute.xlu0 %1640  ;;  %v2828_v16 = vunpack.c.l.b16 %v632_v23 }
 0x1cb   :  { %v6880_v27 = vpack.c.b16 %v2828_v16, %v2827_v17  ;;  %v1246_v17 = vsel %vm736_vm0, %v1200_v47, 0  ;;  %v1243_v16 = vsel %vm736_vm0, %v1198_v58, 0  ;;  %v634_v58 = vld [vmem:[#allocation7] sm:$0xff] }
 0x1cc   :  { %v6860_v19 = vpop.permute.xlu1 %1642  ;;  %v6862_v4 = vpop.permute.xlu2 %2085 }
 0x1cd   :  { %9571 = vst [vmem:[#allocation44_spill] sm:$0xff] %v6880_v27 }
 0x1cf   :  { %3765 = vrot.lane.b32.xlu0 %v6806_v28, %s6254_s4  ;;  %3308 = vrot.lane.b32.xlu1 %v6864_v44, %s6255_s21 }
 0x1d0   :  { %3310 = vrot.lane.b32.xlu2 %v6880_v27, %s6255_s21 }
 0x1d1   :  { %v6872_v35 = vpop.permute.xlu0 %2083 }
 0x1d4   :  { %v6874_v56 = vpop.permute.xlu1 %2069  ;;  %v6876_v40 = vpop.permute.xlu2 %1644 }
 0x1d7   :  { %3306 = vrot.lane.b32.xlu0 %v6878_v36, %s6255_s21  ;;  %3326 = vrot.lane.b32.xlu1 %v6848_v37, %s6255_s21 }
 0x1d9   :  { %5039 = vmatmul.msk.bf16.gmra.mxu3 %vm736_vm0, %v6558_v22  ;;  %v1554_v55 = vpop.permute.xlu0 %1553 }
 0x1dc   :  { %v1202_v11 = vpop.permute.xlu1 %1201  ;;  %v1999_v23 = vpop.permute.xlu2 %1998 }
 0x1dd   :  { %v1249_v1 = vsel %vm736_vm0, %v1202_v11, 0  ;;  %2008 = vmatpush.bf16.msrb.mxu3 %v1999_v23 }
 0x1de   :  { %1251 = vmatpush.bf16.xpose.msrb.mxu0 %v1249_v1  ;;  %5505 = vmatpush.bf16.xpose.msrb.mxu2 %v1249_v1 }
 0x1df   :  { %4212 = vrot.lane.b32.xlu0 %v6848_v37, %s6256_s22 }
 0x1e1   :  { %v1997_v49 = vpop.permute.xlu0 %1996 }
 0x1e2   :  { %2009 = vmatpush.bf16.msrb.mxu3 %v1997_v49  ;;  %v635_v49 = vld [vmem:[#allocation7 + $0x8] sm:$0xff] }
 0x1e4   :  { %v6893_v34 = vpop.permute.xlu1 %2087 }
 0x1e6   :  { %1252 = vmatpush.bf16.xpose.msrb.mxu0 %v1246_v17  ;;  %5506 = vmatpush.bf16.xpose.msrb.mxu2 %v1246_v17 }
 0x1e7   :  { %2010 = vmatpush.bf16.msrb.mxu3 %v1995_v42  ;;  %v1240_v42 = vsel %vm736_vm0, %v6723_v63, 0  ;;  %v9444_v63 = vmov -1e+09  }
 0x1e9   :  { %5040 = vmatmul.msk.bf16.gmra.mxu3 %vm736_vm0, %v6525_v21  ;;  %v650_v21 = vld [vmem:[#allocation5] sm:$0x1]  ;;  %v2440_v47 = vpop.permute.xlu0 %2439 }
 0x1ea   :  { %vm651_vm1 = vcmp.ge.f32.partialorder %v650_v21, 0.5 }
 0x1eb   :  { %2011 = vmatpush.bf16.msrb.mxu3 %v6725_v15 }
 0x1ec   :  { %v1556_v22 = vpop.permute.xlu1 %1555 }
 0x1ed   :  { %1565 = vmatpush.bf16.msrb.mxu1 %v1556_v22  ;;  %v1231_v22 = vsel %vm736_vm0, %v6586_v7, 0 }
 0x1ee   :  { %1253 = vmatpush.bf16.xpose.msrb.mxu0 %v1243_v16  ;;  %5507 = vmatpush.bf16.xpose.msrb.mxu2 %v1243_v16 }
 0x1ef   :  { %2012 = vmatpush.bf16.msrb.mxu3 %v6745_v26 }
 0x1f1   :  { %1566 = vmatpush.bf16.msrb.mxu1 %v1554_v55  ;;  %v6927_v1 = vpop.permute.xlu0 %1185 }
 0x1f3   :  { %2013 = vmatpush.bf16.msrb.mxu3 %v6657_v9  ;;  %v1237_v9 = vsel %vm736_vm0, %v6637_v43, 0 }
 0x1f4   :  { %v2442_v11 = vpop.permute.xlu1 %2441 }
 0x1f5   :  { %1567 = vmatpush.bf16.msrb.mxu1 %v6798_v46  ;;  %v6917_v46 = vpop.f32.mrf.mxu2 }
 0x1f6   :  { %1254 = vmatpush.bf16.xpose.msrb.mxu0 %v1240_v42  ;;  %5508 = vmatpush.bf16.xpose.msrb.mxu2 %v1240_v42  ;;  %9572 = vst [vmem:[#allocation45_spill] sm:$0xff] %v6917_v46  ;;  %v637_v42 = vld [vmem:[#allocation7 + $0x18] sm:$0xff] }
 0x1f7   :  { %2014 = vmatpush.bf16.msrb.mxu3 %v6618_v13 }
 0x1f9   :  { %1568 = vmatpush.bf16.msrb.mxu1 %v6768_v33  ;;  %v652_v33 = vsel %vm651_vm1, 1e+30, %v9444_v63  ;;  %v6949_v21 = vpop.permute.xlu0 %1628 }
 0x1fa   :  { %v6915_v13 = vperm.slane %v652_v33, 0  ;;  %v1692_v33 = vsel %vm736_vm0, %v6876_v40, 0 }
 0x1fb   :  { %2015 = vmatpush.bf16.msrb.mxu3 %v6537_v39  ;;  %v1234_v39 = vsel %vm736_vm0, %v6654_v2, 0 }
 0x1fc   :  { %v6907_v15 = vpop.permute.xlu1 %3296  ;;  %v794_v26 = vpop.f32.mrf.mxu3  ;;  %v6925_v43 = vmin.f32 %v634_v58, %v6915_v13  ;;  %v6957_v7 = vmin.f32 %v637_v42, %v6915_v13 }
 0x1fd   :  { %1569 = vmatpush.bf16.msrb.mxu1 %v6721_v53  ;;  %v6937_v2 = vpop.f32.mrf.mxu2 }
 0x1fe   :  { %1255 = vmatpush.bf16.xpose.msrb.mxu0 %v1237_v9  ;;  %5509 = vmatpush.bf16.xpose.msrb.mxu2 %v1237_v9  ;;  %v6931_v23 = vmin.f32 %v794_v26, %v6925_v43  ;;  %9573 = vst [vmem:[#allocation46_spill] sm:$0xff] %v6937_v2 }
 0x201   :  { %1570 = vmatpush.bf16.msrb.mxu1 %v6588_v10  ;;  %v636_v10 = vld [vmem:[#allocation7 + $0x10] sm:$0xff] }
 0x204   :  { %v6919_v55 = vpop.permute.xlu1 %3314  ;;  %v796_v53 = vpop.f32.mrf.mxu3 }
 0x205   :  { %1571 = vmatpush.bf16.msrb.mxu1 %v6602_v29  ;;  %v6934_v29 = vmin.f32 %v636_v10, %v6915_v13  ;;  %v638_v10 = vld [vmem:[#allocation7 + $0x20] sm:$0xff] }
 0x206   :  { %1256 = vmatpush.bf16.xpose.msrb.mxu0 %v1234_v39  ;;  %5510 = vmatpush.bf16.xpose.msrb.mxu2 %v1234_v39  ;;  %v6966_v39 = vpop.f32.mrf.mxu2  ;;  %v6979_v40 = vmin.f32 %v638_v10, %v6915_v13 }
 0x207   :  { %9574 = vst [vmem:[#allocation47_spill] sm:$0xff] %v6966_v39 }
 0x209   :  { %1572 = vmatpush.bf16.msrb.mxu1 %v6552_v51  ;;  %850 = vmax.xlane.f32.xlu0 %v6931_v23  ;;  %v6944_v51 = vmin.f32 %v635_v49, %v6915_v13 }
 0x20b   :  { %v6953_v9 = vmin.f32 %v796_v53, %v6944_v51 }
 0x20c   :  { %v6939_v17 = vpop.permute.xlu1 %3298  ;;  %v799_v16 = vpop.f32.mrf.mxu3 }
 0x20d   :  { %2451 = vmatpush.bf16.msra.mxu1 %v2442_v11  ;;  %v6947_v11 = vmin.f32 %v799_v16, %v6934_v29  ;;  %v639_v16 = vld [vmem:[#allocation7 + $0x28] sm:$0xff] }
 0x20e   :  { %1257 = vmatpush.bf16.xpose.msrb.mxu0 %v1231_v22  ;;  %5511 = vmatpush.bf16.xpose.msrb.mxu2 %v1231_v22  ;;  %v6995_v42 = vpop.f32.mrf.mxu2 }
 0x20f   :  { %854 = vmax.xlane.f32.xlu1 %v6947_v11  ;;  %9575 = vst [vmem:[#allocation48_spill] sm:$0xff] %v6995_v42  ;;  %v644_v42 = vld [vmem:[#allocation7 + $0x50] sm:$0xff] }
 0x211   :  { %2452 = vmatpush.bf16.msra.mxu1 %v2440_v47  ;;  %852 = vmax.xlane.f32.xlu0 %v6953_v9  ;;  %v1228_v47 = vsel %vm736_vm0, %v6471_v20, 0  ;;  %v6975_v20 = vpop.permute.xlu0 %2071 }
 0x214   :  { %v6960_v26 = vpop.permute.xlu1 %4200  ;;  %v801_v58 = vpop.f32.mrf.mxu3 }
 0x215   :  { %2453 = vmatpush.bf16.msra.mxu1 %v6818_v62  ;;  %v2135_v62 = vsel %vm736_vm0, %v6893_v34, 0  ;;  %v6972_v53 = vmin.f32 %v801_v58, %v6957_v7  ;;  %v1689_v34 = vsel %vm736_vm0, %v6860_v19, 0 }
 0x216   :  { %1258 = vmatpush.bf16.xpose.msrb.mxu0 %v1228_v47  ;;  %5512 = vmatpush.bf16.xpose.msrb.mxu2 %v1228_v47  ;;  %v7019_v10 = vpop.f32.mrf.mxu2 }
 0x217   :  { %856 = vmax.xlane.f32.xlu1 %v6972_v53  ;;  %9576 = vst [vmem:[#allocation49_spill] sm:$0xff] %v7019_v10 }
 0x219   :  { %2454 = vmatpush.bf16.msra.mxu1 %v6794_v12 }
 0x21c   :  { %v6981_v49 = vpop.permute.xlu1 %4202  ;;  %v804_v12 = vpop.f32.mrf.mxu3 }
 0x21d   :  { %2455 = vmatpush.bf16.msra.mxu1 %v6766_v32  ;;  %5041 = vmatmul.msk.bf16.vlgmr.msrb.gmra.mxu0 %vm736_vm0, %v6461_v6  ;;  %v6990_v22 = vmin.f32 %v804_v12, %v6979_v40  ;;  %v2132_v32 = vsel %vm736_vm0, %v6862_v4, 0  ;;  %v6998_v6 = vpop.permute.xlu2 %3312  ;;  %v1686_v4 = vsel %vm736_vm0, %v6858_v3, 0 }
 0x21e   :  { %1694 = vmatpush.bf16.xpose.msra.mxu2 %v1692_v33  ;;  %2137 = vmatpush.bf16.xpose.msra.mxu0 %v2135_v62  ;;  %v2129_v33 = vsel %vm736_vm0, %v6872_v35, 0 }
 0x21f   :  { %5045 = vmatmul.msk.bf16.vlgmr.msrb.gmra.mxu2 %vm736_vm0, %v6792_v8  ;;  %858 = vmax.xlane.f32.xlu2 %v6990_v22  ;;  %v7002_v8 = vmin.f32 %v639_v16, %v6915_v13  ;;  %v2126_v16 = vsel %vm736_vm0, %v6747_v5, 0  ;;  %v2123_v5 = vsel %vm736_vm0, %v6682_v60, 0 }
 0x221   :  { %2456 = vmatpush.bf16.msra.mxu1 %v6607_v45  ;;  %v7006_v45 = vpop.permute.xlu0 %3755 }
 0x224   :  { %v7004_v19 = vpop.permute.xlu1 %3318  ;;  %v806_v47 = vpop.f32.mrf.mxu3 }
 0x225   :  { %2457 = vmatpush.bf16.msra.mxu1 %v6633_v31  ;;  %v7014_v58 = vmin.f32 %v806_v47, %v7002_v8  ;;  %v640_v31 = vld [vmem:[#allocation7 + $0x30] sm:$0xff]  ;;  %v7017_v62 = vpop.permute.xlu2 %3757  ;;  %v641_v47 = vld [vmem:[#allocation7 + $0x38] sm:$0xff] }
 0x226   :  { %1695 = vmatpush.bf16.xpose.msra.mxu2 %v1689_v34  ;;  %2138 = vmatpush.bf16.xpose.msra.mxu0 %v2132_v32  ;;  %v7022_v12 = vmin.f32 %v640_v31, %v6915_v13  ;;  %v1683_v34 = vsel %vm736_vm0, %v6709_v41, 0  ;;  %v1680_v31 = vsel %vm736_vm0, %v6680_v0, 0 }
 0x227   :  { %860 = vmax.xlane.f32.xlu2 %v7014_v58 }
 0x229   :  { %2458 = vmatpush.bf16.msra.mxu1 %v6569_v50  ;;  %v7030_v50 = vpop.permute.xlu0 %3300 }
 0x22c   :  { %v7024_v3 = vpop.permute.xlu1 %3761  ;;  %v809_v35 = vpop.f32.mrf.mxu3 }
 0x22d   :  { %5042 = vmatmul.msk.bf16.gmra.mxu0 %vm736_vm0, %v6550_v48  ;;  %v7035_v32 = vmin.f32 %v809_v35, %v7022_v12  ;;  %v7041_v48 = vmin.f32 %v641_v47, %v6915_v13 }
 0x22e   :  { %1696 = vmatpush.bf16.xpose.msra.mxu2 %v1686_v4  ;;  %2139 = vmatpush.bf16.xpose.msra.mxu0 %v2129_v33  ;;  %v7045_v4 = vpop.f32.mrf.mxu2 }
 0x22f   :  { %5046 = vmatmul.msk.bf16.gmra.mxu2 %vm736_vm0, %v6749_v24  ;;  %862 = vmax.xlane.f32.xlu0 %v7035_v32  ;;  %v7043_v24 = vpop.permute.xlu2 %3316  ;;  %9577 = vst [vmem:[#allocation50_spill] sm:$0xff] %v7045_v4 }
 0x234   :  { %v7047_v33 = vpop.permute.xlu1 %3763  ;;  %v811_v41 = vpop.f32.mrf.mxu3 }
 0x235   :  { %v7054_v35 = vmin.f32 %v811_v41, %v7041_v48  ;;  %v1677_v41 = vsel %vm736_vm0, %v6677_v57, 0 }
 0x236   :  { %1697 = vmatpush.bf16.xpose.msra.mxu2 %v1683_v34  ;;  %2140 = vmatpush.bf16.xpose.msra.mxu0 %v2126_v16  ;;  %v7056_v34 = vpop.permute.xlu0 %3302  ;;  %v642_v16 = vld [vmem:[#allocation7 + $0x40] sm:$0xff] }
 0x237   :  { %864 = vmax.xlane.f32.xlu1 %v7054_v35  ;;  %v7060_v47 = vmin.f32 %v642_v16, %v6915_v13  ;;  %v7068_v0 = vpop.permute.xlu2 %3759  ;;  %v2120_v16 = vsel %vm736_vm0, %v6699_v59, 0 }
 0x23c   :  { %v7062_v63 = vpop.permute.xlu1 %3767  ;;  %v814_v60 = vpop.f32.mrf.mxu3 }
 0x23d   :  { %5043 = vmatmul.msk.bf16.gmra.mxu0 %vm736_vm0, %v6620_v14  ;;  %v643_v14 = vld [vmem:[#allocation7 + $0x48] sm:$0xff] }
 0x23e   :  { %1698 = vmatpush.bf16.xpose.msra.mxu2 %v1680_v31  ;;  %2141 = vmatpush.bf16.xpose.msra.mxu0 %v2123_v5  ;;  %v7072_v31 = vpop.f32.mrf.mxu2  ;;  %v7075_v5 = vmin.f32 %v814_v60, %v7060_v47  ;;  %v7083_v27 = vmin.f32 %v643_v14, %v6915_v13  ;;  %v1674_v60 = vsel %vm736_vm0, %v6554_v52, 0  ;;  %v7098_v14 = vmin.f32 %v644_v42, %v6915_v13  ;;  %v9583_v52 = vld [vmem:[#allocation27_spill] sm:$0xff] }
 0x23f   :  { %5047 = vmatmul.msk.bf16.gmra.mxu2 %vm736_vm0, %v6844_v25  ;;  %9578 = vst [vmem:[#allocation51_spill] sm:$0xff] %v7072_v31  ;;  %v7080_v25 = vpop.permute.xlu0 %4204  ;;  %v3321_v57 = vpop.permute.xlu2 %3320  ;;  %v9585_v31 = vld [vmem:[#allocation21_spill] sm:$0xff] }
 0x240   :  { %866 = vmax.xlane.f32.xlu2 %v7075_v5 }
 0x244   :  { %v7085_v2 = vpop.permute.xlu1 %3308  ;;  %v816_v46 = vpop.f32.mrf.mxu3 }
 0x245   :  { %9579 = vst [vmem:[#allocation52_spill] sm:$0xff] %v7085_v2  ;;  %v2114_v2 = vsel %vm736_vm0, %v9585_v31, 0  ;;  %v2904_v31 = vsel %vm736_vm0, %v6822_v54, 0  ;;  %v9589_v54 = vld [vmem:[#allocation22_spill] sm:$0xff] }
 0x246   :  { %1699 = vmatpush.bf16.xpose.msra.mxu2 %v1677_v41  ;;  %2142 = vmatpush.bf16.xpose.msra.mxu0 %v2120_v16  ;;  %v9580_v41 = vld [vmem:[#allocation26_spill] sm:$0xff]  ;;  %v7092_v16 = vmin.f32 %v816_v46, %v7083_v27  ;;  %v7094_v39 = vpop.f32.mrf.mxu2 }
 0x247   :  { %v2117_v59 = vsel %vm736_vm0, %v9580_v41, 0  ;;  %9581 = vst [vmem:[#allocation26_spill] sm:$0xff] %v7094_v39  ;;  %v7100_v4 = vpop.permute.xlu0 %3304  ;;  %v7106_v46 = vpop.permute.xlu2 %4208  ;;  %v9584_v41 = vld [vmem:[#allocation20_spill] sm:$0xff] }
 0x248   :  { %868 = vmax.xlane.f32.xlu0 %v7092_v16  ;;  %9582 = vst [vmem:[#allocation53_spill] sm:$0xff] %v7100_v4 }
 0x24c   :  { %v3327_v10 = vpop.permute.xlu1 %3326 }
 0x24d   :  { %5044 = vmatmul.msk.bf16.gmra.mxu0 %vm736_vm0, %v9583_v52  ;;  %v3374_v39 = vsel %vm736_vm0, %v3327_v10, 0  ;;  %v2907_v52 = vsel %vm736_vm0, %v6848_v37, 0 }
 0x24e   :  { %1700 = vmatpush.bf16.xpose.msra.mxu2 %v1674_v60  ;;  %2143 = vmatpush.bf16.xpose.msra.mxu0 %v2117_v59  ;;  %v819_v60 = vpop.f32.mrf.mxu3  ;;  %v1671_v59 = vsel %vm736_vm0, %v9584_v41, 0  ;;  %v7119_v44 = vpop.f32.mrf.mxu2 }
 0x24f   :  { %5048 = vmatmul.msk.bf16.gmra.mxu2 %vm736_vm0, %v6927_v1  ;;  %v7112_v42 = vmin.f32 %v819_v60, %v7098_v14  ;;  %v645_v1 = vld [vmem:[#allocation7 + $0x58] sm:$0xff]  ;;  %9586 = vst [vmem:[#allocation27_spill] sm:$0xff] %v7119_v44  ;;  %v7124_v60 = vpop.permute.xlu0 %4206  ;;  %v3325_v37 = vpop.permute.xlu2 %3324  ;;  %v9588_v44 = vld [vmem:[#allocation19_spill] sm:$0xff] }
 0x250   :  { %v7122_v10 = vmin.f32 %v645_v1, %v6915_v13 }
 0x251   :  { %870 = vmax.xlane.f32.xlu1 %v7112_v42 }
 0x256   :  { %1701 = vmatpush.bf16.xpose.msra.mxu2 %v1671_v59  ;;  %2144 = vmatpush.bf16.xpose.msra.mxu0 %v2114_v2  ;;  %v821_v41 = vpop.f32.mrf.mxu3  ;;  %v646_v2 = vld [vmem:[#allocation7 + $0x60] sm:$0xff]  ;;  %v7136_v1 = vpop.f32.mrf.mxu2 }
 0x257   :  { %v7129_v59 = vmin.f32 %v821_v41, %v7122_v10  ;;  %9587 = vst [vmem:[#allocation20_spill] sm:$0xff] %v7136_v1  ;;  %v3323_v36 = vpop.permute.xlu0 %3322 }
 0x259   :  { %872 = vmax.xlane.f32.xlu2 %v7129_v59 }
 0x25d   :  { %5057 = vmatmul.msk.bf16.vlgmr.msra.gmra.mxu0 %vm736_vm0, %v9589_v54 }
 0x25e   :  { %2909 = vmatpush.bf16.xpose.msrb.mxu2 %v2907_v52  ;;  %3376 = vmatpush.bf16.xpose.msrb.mxu0 %v3374_v39  ;;  %v3371_v52 = vsel %vm736_vm0, %v3325_v37, 0  ;;  %v7134_v39 = vmin.f32 %v646_v2, %v6915_v13  ;;  %v824_v41 = vpop.f32.mrf.mxu3  ;;  %v2901_v37 = vsel %vm736_vm0, %v6806_v28, 0  ;;  %v3368_v2 = vsel %vm736_vm0, %v3323_v36, 0  ;;  %v7152_v54 = vpop.f32.mrf.mxu2  ;;  %v648_v28 = vld [vmem:[#allocation7 + $0x70] sm:$0xff] }
 0x25f   :  { %5049 = vmatmul.msk.bf16.vlgmr.msra.gmra.mxu2 %vm736_vm0, %v9588_v44  ;;  %9590 = vst [vmem:[#allocation21_spill] sm:$0xff] %v7152_v54  ;;  %v7162_v36 = vmin.f32 %v648_v28, %v6915_v13  ;;  %v3362_v28 = vsel %vm736_vm0, %v7004_v19, 0 }
 0x261   :  { %9592 = vst [vmem:[#allocation22_spill] sm:$0xff] %v7162_v36 }
 0x266   :  { %2910 = vmatpush.bf16.xpose.msrb.mxu2 %v2904_v31  ;;  %3377 = vmatpush.bf16.xpose.msrb.mxu0 %v3371_v52  ;;  %v7143_v31 = vmin.f32 %v824_v41, %v7134_v39  ;;  %v647_v52 = vld [vmem:[#allocation7 + $0x68] sm:$0xff]  ;;  %v826_v1 = vpop.f32.mrf.mxu3  ;;  %v2898_v41 = vsel %vm736_vm0, %v6782_v18, 0 }
 0x267   :  { %v7150_v44 = vmin.f32 %v647_v52, %v6915_v13  ;;  %v9593_v52 = vld [vmem:[#allocation23_spill] sm:$0xff] }
 0x268   :  { %874 = vmax.xlane.f32.xlu0 %v7143_v31 }
 0x269   :  { %v7157_v4 = vmin.f32 %v826_v1, %v7150_v44 }
 0x26b   :  { %9591 = vst [vmem:[#allocation19_spill] sm:$0xff] %v7157_v4  ;;  %876 = vmax.xlane.f32.xlu1 %v7157_v4 }
 0x26e   :  { %2911 = vmatpush.bf16.xpose.msrb.mxu2 %v2901_v37  ;;  %3378 = vmatpush.bf16.xpose.msrb.mxu0 %v3368_v2  ;;  %v3365_v37 = vsel %vm736_vm0, %v3321_v57, 0  ;;  %v9594_v2 = vld [vmem:[#allocation25_spill] sm:$0xff]  ;;  %v829_v18 = vpop.f32.mrf.mxu3  ;;  %v7173_v57 = vpop.f32.mrf.mxu2 }
 0x26f   :  { %5050 = vmatmul.msk.bf16.gmra.mxu2 %vm736_vm0, %v9593_v52  ;;  %5058 = vmatmul.msk.bf16.gmra.mxu0 %vm736_vm0, %v9594_v2  ;;  %v7169_v1 = vmin.f32 %v829_v18, %v7162_v36  ;;  %9596 = vst [vmem:[#allocation25_spill] sm:$0xff] %v7173_v57  ;;  %v9597_v52 = vld [vmem:[#allocation35_spill] sm:$0xff]  ;;  %v3359_v18 = vsel %vm736_vm0, %v7043_v24, 0  ;;  %v9600_v57 = vld [vmem:[#allocation24_spill] sm:$0xff] }
 0x270   :  { %v2892_v2 = vsel %vm736_vm0, %v9597_v52, 0  ;;  %v3356_v52 = vsel %vm736_vm0, %v6919_v55, 0  ;;  %v9603_v55 = vld [vmem:[#allocation29_spill] sm:$0xff] }
 0x271   :  { %9595 = vst [vmem:[#allocation23_spill] sm:$0xff] %v7169_v1  ;;  %878 = vmax.xlane.f32.xlu2 %v7169_v1 }
 0x276   :  { %2912 = vmatpush.bf16.xpose.msrb.mxu2 %v2898_v41  ;;  %3379 = vmatpush.bf16.xpose.msrb.mxu0 %v3365_v37  ;;  %v2895_v41 = vsel %vm736_vm0, %v6804_v30, 0  ;;  %v3766_v37 = vpop.permute.xlu0 %3765  ;;  %v7182_v54 = vpop.f32.mrf.mxu2 }
 0x277   :  { %9598 = vst [vmem:[#allocation35_spill] sm:$0xff] %v7182_v54  ;;  %v4211_v30 = vpop.permute.xlu2 %4210  ;;  %v9602_v54 = vld [vmem:[#allocation31_spill] sm:$0xff] }
 0x27e   :  { %2913 = vmatpush.bf16.xpose.msrb.mxu2 %v2895_v41  ;;  %3380 = vmatpush.bf16.xpose.msrb.mxu0 %v3362_v28  ;;  %v9599_v41 = vld [vmem:[#allocation28_spill] sm:$0xff]  ;;  %v7188_v19 = vpop.permute.xlu0 %3306  ;;  %v9601_v28 = vld [vmem:[#allocation33_spill] sm:$0xff]  ;;  %v7194_v24 = vpop.f32.mrf.mxu2 }
 0x27f   :  { %5051 = vmatmul.msk.bf16.gmra.mxu2 %vm736_vm0, %v9599_v41  ;;  %5059 = vmatmul.msk.bf16.gmra.mxu0 %vm736_vm0, %v9600_v57  ;;  %v2889_v1 = vsel %vm736_vm0, %v9601_v28, 0  ;;  %v2886_v41 = vsel %vm736_vm0, %v9602_v54, 0  ;;  %v3353_v57 = vsel %vm736_vm0, %v6998_v6, 0 }
 0x286   :  { %2914 = vmatpush.bf16.xpose.msrb.mxu2 %v2892_v2  ;;  %3381 = vmatpush.bf16.xpose.msrb.mxu0 %v3359_v18  ;;  %v4213_v2 = vpop.permute.xlu0 %4212  ;;  %v3770_v18 = vpop.permute.xlu2 %3769 }
 0x287   :  { %v3817_v4 = vsel %vm736_vm0, %v3770_v18, 0  ;;  %v4260_v28 = vsel %vm736_vm0, %v4213_v2, 0  ;;  %v3814_v18 = vsel %vm736_vm0, %v7062_v63, 0  ;;  %v4254_v2 = vsel %vm736_vm0, %v7106_v46, 0  ;;  %v649_v63 = vld [vmem:[#allocation7 + $0x78] sm:$0xff] }
 0x288   :  { %v3808_v46 = vsel %vm736_vm0, %v7047_v33, 0 }
 0x28e   :  { %2915 = vmatpush.bf16.xpose.msrb.mxu2 %v2889_v1  ;;  %3382 = vmatpush.bf16.xpose.msrb.mxu0 %v3356_v52  ;;  %v9604_v1 = vld [vmem:[#allocation32_spill] sm:$0xff]  ;;  %v7206_v52 = vpop.f32.mrf.mxu2 }
 0x28f   :  { %5052 = vmatmul.msk.bf16.gmra.mxu2 %vm736_vm0, %v9603_v55  ;;  %5060 = vmatmul.msk.bf16.gmra.mxu0 %vm736_vm0, %v9604_v1  ;;  %v7225_v55 = vmin.f32 %v649_v63, %v6915_v13  ;;  %v831_v1 = vpop.f32.mrf.mxu3 }
 0x291   :  { %9605 = vst [vmem:[#allocation28_spill] sm:$0xff] %v7225_v55  ;;  %v7239_v13 = vmin.f32 %v831_v1, %v7225_v55  ;;  %v855_v1 = vpop.xlane.xlu1 %854 }
 0x296   :  { %2916 = vmatpush.bf16.xpose.msrb.mxu2 %v2886_v41  ;;  %3383 = vmatpush.bf16.xpose.msrb.mxu0 %v3353_v57  ;;  %v4257_v41 = vsel %vm736_vm0, %v4211_v30, 0  ;;  %v7211_v6 = vpop.f32.mrf.mxu2  ;;  %v851_v30 = vpop.xlane.xlu0 %850 }
 0x297   :  { %v882_v33 = vsub.f32 %v6931_v23, %v851_v30  ;;  %v9606_v30 = vld [vmem:[#allocation39_spill] sm:$0xff] }
 0x29a   :  { %v1260_v57 = vpop.f32.mrf.mxu0 }
 0x29e   :  { %3819 = vmatpush.bf16.xpose.msra.mxu2 %v3817_v4  ;;  %4262 = vmatpush.bf16.xpose.msra.mxu0 %v4260_v28  ;;  %v3811_v4 = vsel %vm736_vm0, %v3766_v37, 0  ;;  %v7217_v28 = vmin.f32 %v1260_v57, %v6925_v43  ;;  %v4248_v57 = vsel %vm736_vm0, %v7080_v25, 0  ;;  %v884_v25 = vsub.f32 %v6947_v11, %v855_v1 }
 0x29f   :  { %5053 = vmatmul.msk.bf16.gmra.mxu2 %vm736_vm0, %v6814_v61  ;;  %5061 = vmatmul.msk.bf16.gmra.mxu0 %vm736_vm0, %v6832_v38  ;;  %v4251_v61 = vsel %vm736_vm0, %v7124_v60, 0  ;;  %v3805_v60 = vsel %vm736_vm0, %v7024_v3, 0  ;;  %v9607_v3 = vld [vmem:[#allocation37_spill] sm:$0xff]  ;;  %v4242_v1 = vsel %vm736_vm0, %v6960_v26, 0 }
 0x2a0   :  { %1316 = vmax.xlane.f32.xlu0 %v7217_v28 }
 0x2a2   :  { %v1280_v37 = vpop.f32.mrf.mxu2  ;;  %v1262_v38 = vpop.f32.mrf.mxu0 }
 0x2a6   :  { %3820 = vmatpush.bf16.xpose.msra.mxu2 %v3814_v18  ;;  %4263 = vmatpush.bf16.xpose.msra.mxu0 %v4257_v41  ;;  %v7230_v18 = vmin.f32 %v1280_v37, %v7060_v47  ;;  %v7236_v41 = vmin.f32 %v1262_v38, %v6944_v51  ;;  %v898_v37 = vmul.f32 1.442695, %v882_v33 }
 0x2a8   :  { %1332 = vmax.xlane.f32.xlu1 %v7230_v18  ;;  %1318 = vmax.xlane.f32.xlu2 %v7236_v41  ;;  %5530 = vpow2.f32 %v898_v37 }
 0x2a9   :  { %880 = vmax.xlane.f32.xlu0 %v7239_v13 }
 0x2aa   :  { %v1265_v63 = vpop.f32.mrf.mxu0 }
 0x2ae   :  { %3821 = vmatpush.bf16.xpose.msra.mxu2 %v3811_v4  ;;  %4264 = vmatpush.bf16.xpose.msra.mxu0 %v4254_v2  ;;  %v1282_v4 = vpop.f32.mrf.mxu2  ;;  %v853_v2 = vpop.xlane.xlu0 %852 }
 0x2af   :  { %v7253_v23 = vmin.f32 %v1282_v4, %v7083_v27  ;;  %5054 = vmatmul.msk.bf16.gmra.mxu2 %vm736_vm0, %v9606_v30  ;;  %5062 = vmatmul.msk.bf16.gmra.mxu0 %vm736_vm0, %v9607_v3  ;;  %v7275_v37 = vpop.eup %5530 }
 0x2b1   :  { %1334 = vmax.xlane.f32.xlu0 %v7253_v23 }
 0x2b6   :  { %3822 = vmatpush.bf16.xpose.msra.mxu2 %v3808_v46  ;;  %4265 = vmatpush.bf16.xpose.msra.mxu0 %v4251_v61  ;;  %v7249_v46 = vmin.f32 %v1265_v63, %v6934_v29  ;;  %v883_v61 = vsub.f32 %v6953_v9, %v853_v2  ;;  %v1285_v33 = vpop.f32.mrf.mxu2  ;;  %v3802_v9 = vsel %vm736_vm0, %v7068_v0, 0  ;;  %v7269_v2 = vpop.permute.xlu2 %3310  ;;  %v902_v63 = vmul.f32 1.442695, %v884_v25 }
 0x2b7   :  { %v7265_v4 = vmin.f32 %v1285_v33, %v7098_v14  ;;  %v857_v25 = vpop.xlane.xlu1 %856 }
 0x2b8   :  { %1320 = vmax.xlane.f32.xlu1 %v7249_v46  ;;  %v900_v38 = vmul.f32 1.442695, %v883_v61  ;;  %v885_v26 = vsub.f32 %v6972_v53, %v857_v25 }
 0x2b9   :  { %1336 = vmax.xlane.f32.xlu2 %v7265_v4 }
 0x2ba   :  { %5532 = vpow2.f32 %v900_v38 }
 0x2bb   :  { %5534 = vpow2.f32 %v902_v63 }
 0x2be   :  { %3823 = vmatpush.bf16.xpose.msra.mxu2 %v3805_v60  ;;  %4266 = vmatpush.bf16.xpose.msra.mxu0 %v4248_v57  ;;  %v4245_v60 = vsel %vm736_vm0, %v6981_v49, 0  ;;  %v1267_v57 = vpop.f32.mrf.mxu0  ;;  %v1287_v0 = vpop.f32.mrf.mxu2  ;;  %v3799_v49 = vsel %vm736_vm0, %v7017_v62, 0 }
 0x2bf   :  { %v7273_v11 = vmin.f32 %v1267_v57, %v6957_v7  ;;  %v859_v30 = vpop.xlane.xlu2 %858  ;;  %v7287_v38 = vmin.f32 %v1287_v0, %v7122_v10  ;;  %5063 = vmatmul.msk.bf16.gmra.mxu0 %vm736_vm0, %v6874_v56  ;;  %v904_v0 = vmul.f32 1.442695, %v885_v26 }
 0x2c0   :  { %930 = vadd.xlane.f32.xlu1 %v7275_v37  ;;  %v7283_v61 = vpop.eup %5532 }
 0x2c1   :  { %1322 = vmax.xlane.f32.xlu0 %v7273_v11  ;;  %932 = vadd.xlane.f32.xlu2 %v7283_v61  ;;  %v7289_v33 = vpop.eup %5534  ;;  %5536 = vpow2.f32 %v904_v0 }
 0x2c6   :  { %3824 = vmatpush.bf16.xpose.msra.mxu2 %v3802_v9  ;;  %4267 = vmatpush.bf16.xpose.msra.mxu0 %v4245_v60  ;;  %v1270_v3 = vpop.f32.mrf.mxu0  ;;  %v9608_v9 = vld [vmem:[#allocation41_spill] sm:$0xff]  ;;  %v1290_v62 = vpop.f32.mrf.mxu2  ;;  %v3796_v60 = vsel %vm736_vm0, %v7006_v45, 0 }
 0x2c7   :  { %5055 = vmatmul.msk.bf16.gmra.mxu2 %vm736_vm0, %v9608_v9  ;;  %v7301_v57 = vmin.f32 %v1270_v3, %v6979_v40  ;;  %v7309_v53 = vmin.f32 %v1290_v62, %v7134_v39  ;;  %v7321_v62 = vpop.eup %5536 }
 0x2c8   :  { %1338 = vmax.xlane.f32.xlu1 %v7287_v38 }
 0x2c9   :  { %934 = vadd.xlane.f32.xlu0 %v7289_v33  ;;  %1324 = vmax.xlane.f32.xlu2 %v7301_v57 }
 0x2ce   :  { %3825 = vmatpush.bf16.xpose.msra.mxu2 %v3799_v49  ;;  %4268 = vmatpush.bf16.xpose.msra.mxu0 %v4242_v1  ;;  %v1272_v63 = vpop.f32.mrf.mxu0  ;;  %v886_v49 = vsub.f32 %v6990_v22, %v859_v30  ;;  %v861_v1 = vpop.xlane.xlu2 %860 }
 0x2cf   :  { %v7305_v56 = vmin.f32 %v1272_v63, %v7002_v8  ;;  %v887_v45 = vsub.f32 %v7014_v58, %v861_v1  ;;  %v1292_v25 = vpop.f32.mrf.mxu2  ;;  %v863_v30 = vpop.xlane.xlu0 %862  ;;  %5064 = vmatmul.msk.bf16.gmra.mxu0 %vm736_vm0, %v6975_v20 }
 0x2d0   :  { %v906_v3 = vmul.f32 1.442695, %v886_v49  ;;  %v7315_v9 = vmin.f32 %v1292_v25, %v7150_v44  ;;  %v888_v58 = vsub.f32 %v7035_v32, %v863_v30  ;;  %v865_v25 = vpop.xlane.xlu1 %864  ;;  %v9609_v30 = vld [vmem:[#allocation30_spill] sm:$0xff] }
 0x2d1   :  { %1326 = vmax.xlane.f32.xlu1 %v7305_v56  ;;  %1340 = vmax.xlane.f32.xlu0 %v7309_v53 }
 0x2d2   :  { %1342 = vmax.xlane.f32.xlu2 %v7315_v9  ;;  %5538 = vpow2.f32 %v906_v3  ;;  %v910_v1 = vmul.f32 1.442695, %v888_v58  ;;  %v889_v58 = vsub.f32 %v7054_v35, %v865_v25 }
 0x2d6   :  { %3826 = vmatpush.bf16.xpose.msra.mxu2 %v3796_v60  ;;  %v1275_v26 = vpop.f32.mrf.mxu0  ;;  %v908_v60 = vmul.f32 1.442695, %v887_v45  ;;  %v867_v54 = vpop.xlane.xlu2 %866 }
 0x2d7   :  { %v7318_v22 = vmin.f32 %v1275_v26, %v7022_v12  ;;  %5056 = vmatmul.msk.bf16.gmra.mxu2 %vm736_vm0, %v6949_v21  ;;  %v1295_v63 = vpop.f32.mrf.mxu2 }
 0x2d8   :  { %5540 = vpow2.f32 %v908_v60  ;;  %v7330_v0 = vpop.eup %5538  ;;  %v7334_v45 = vmin.f32 %v1295_v63, %v7162_v36  ;;  %v869_v36 = vpop.xlane.xlu0 %868 }
 0x2d9   :  { %936 = vadd.xlane.f32.xlu1 %v7321_v62  ;;  %1328 = vmax.xlane.f32.xlu0 %v7318_v22  ;;  %5542 = vpow2.f32 %v910_v1  ;;  %v912_v1 = vmul.f32 1.442695, %v889_v58 }
 0x2da   :  { %938 = vadd.xlane.f32.xlu2 %v7330_v0 }
 0x2db   :  { %5544 = vpow2.f32 %v912_v1 }
 0x2de   :  { %v1277_v49 = vpop.f32.mrf.mxu0  ;;  %v7336_v21 = vpop.eup %5540 }
 0x2df   :  { %v1297_v20 = vpop.f32.mrf.mxu2  ;;  %v7341_v32 = vmin.f32 %v1277_v49, %v7041_v48  ;;  %v7347_v60 = vpop.eup %5542  ;;  %5073 = vmatmul.msk.bf16.vlgmr.msrb.gmra.mxu0 %vm736_vm0, %v6907_v15  ;;  %v890_v15 = vsub.f32 %v7075_v5, %v867_v54 }
 0x2e0   :  { %v7345_v26 = vmin.f32 %v1297_v20, %v7225_v55  ;;  %v871_v54 = vpop.xlane.xlu1 %870 }
 0x2e1   :  { %1344 = vmax.xlane.f32.xlu1 %v7334_v45  ;;  %940 = vadd.xlane.f32.xlu0 %v7336_v21  ;;  %v914_v58 = vmul.f32 1.442695, %v890_v15 }
 0x2e2   :  { %1330 = vmax.xlane.f32.xlu2 %v7341_v32 }
 0x2e3   :  { %5546 = vpow2.f32 %v914_v58 }
 0x2e6   :  { %v2146_v3 = vpop.f32.mrf.mxu0 }
 0x2e7   :  { %5065 = vmatmul.msk.bf16.vlgmr.msrb.gmra.mxu2 %vm736_vm0, %v9609_v30  ;;  %v1703_v63 = vpop.f32.mrf.mxu2  ;;  %v7360_v55 = vmin.f32 %v2146_v3, %v6925_v43 }
 0x2e8   :  { %v7371_v3 = vmin.f32 %v1703_v63, %v6925_v43 }
 0x2e9   :  { %942 = vadd.xlane.f32.xlu1 %v7347_v60  ;;  %1346 = vmax.xlane.f32.xlu0 %v7345_v26  ;;  %9611 = vst [vmem:[#allocation33_spill] sm:$0xff] %v7360_v55 }
 0x2ee   :  { %v2148_v49 = vpop.f32.mrf.mxu0 }
 0x2ef   :  { %v7357_v20 = vmin.f32 %v2148_v49, %v6944_v51  ;;  %v1705_v30 = vpop.f32.mrf.mxu2  ;;  %v891_v49 = vsub.f32 %v7092_v16, %v869_v36  ;;  %5074 = vmatmul.msk.bf16.gmra.mxu0 %vm736_vm0, %v6939_v17  ;;  %v892_v17 = vsub.f32 %v7112_v42, %v871_v54  ;;  %v875_v54 = vpop.xlane.xlu0 %874 }
 0x2f0   :  { %v7366_v35 = vmin.f32 %v1705_v30, %v6944_v51 }
 0x2f1   :  { %9610 = vst [vmem:[#allocation24_spill] sm:$0xff] %v7357_v20  ;;  %2204 = vmax.xlane.f32.xlu2 %v7357_v20  ;;  %2202 = vmax.xlane.f32.xlu0 %v7360_v55  ;;  %v7373_v20 = vpop.eup %5544  ;;  %v9612_v55 = vld [vmem:[#allocation34_spill] sm:$0xff]  ;;  %v916_v51 = vmul.f32 1.442695, %v891_v49 }
 0x2f2   :  { %1761 = vmax.xlane.f32.xlu1 %v7366_v35  ;;  %v7388_v30 = vpop.eup %5546 }
 0x2f3   :  { %5548 = vpow2.f32 %v916_v51  ;;  %v9614_v51 = vld [vmem:[#allocation36_spill] sm:$0xff] }
 0x2f6   :  { %v2151_v25 = vpop.f32.mrf.mxu0 }
 0x2f7   :  { %5066 = vmatmul.msk.bf16.gmra.mxu2 %vm736_vm0, %v9612_v55  ;;  %v1708_v5 = vpop.f32.mrf.mxu2  ;;  %v7382_v16 = vmin.f32 %v2151_v25, %v6934_v29  ;;  %v918_v25 = vmul.f32 1.442695, %v892_v17 }
 0x2f8   :  { %v7386_v36 = vmin.f32 %v1708_v5, %v6934_v29  ;;  %v873_v29 = vpop.xlane.xlu2 %872 }
 0x2f9   :  { %944 = vadd.xlane.f32.xlu2 %v7373_v20  ;;  %1759 = vmax.xlane.f32.xlu0 %v7371_v3  ;;  %v7393_v1 = vpop.eup %5548  ;;  %5550 = vpow2.f32 %v918_v25  ;;  %v893_v42 = vsub.f32 %v7129_v59, %v873_v29 }
 0x2fa   :  { %2206 = vmax.xlane.f32.xlu1 %v7382_v16 }
 0x2fe   :  { %v2153_v43 = vpop.f32.mrf.mxu0 }
 0x2ff   :  { %v1710_v63 = vpop.f32.mrf.mxu2  ;;  %v7400_v49 = vmin.f32 %v2153_v43, %v6957_v7  ;;  %5075 = vmatmul.msk.bf16.gmra.mxu0 %vm736_vm0, %v7030_v50  ;;  %v7417_v55 = vpop.eup %5550 }
 0x300   :  { %v7415_v50 = vmin.f32 %v1710_v63, %v6957_v7 }
 0x301   :  { %1763 = vmax.xlane.f32.xlu2 %v7386_v36  ;;  %946 = vadd.xlane.f32.xlu0 %v7388_v30 }
 0x302   :  { %948 = vadd.xlane.f32.xlu1 %v7393_v1 }
 0x306   :  { %v2156_v15 = vpop.f32.mrf.mxu0 }
 0x307   :  { %v7396_v58 = vmin.f32 %v2156_v15, %v6979_v40  ;;  %5067 = vmatmul.msk.bf16.gmra.mxu2 %vm736_vm0, %v9614_v51  ;;  %v1713_v5 = vpop.f32.mrf.mxu2  ;;  %v920_v15 = vmul.f32 1.442695, %v893_v42  ;;  %v894_v51 = vsub.f32 %v7143_v31, %v875_v54  ;;  %v877_v31 = vpop.xlane.xlu1 %876  ;;  %v9619_v42 = vld [vmem:[#allocation38_spill] sm:$0xff] }
 0x308   :  { %v7410_v17 = vmin.f32 %v1713_v5, %v6979_v40 }
 0x309   :  { %9613 = vst [vmem:[#allocation29_spill] sm:$0xff] %v7396_v58  ;;  %2210 = vmax.xlane.f32.xlu2 %v7396_v58  ;;  %2208 = vmax.xlane.f32.xlu0 %v7400_v49  ;;  %5552 = vpow2.f32 %v920_v15  ;;  %v922_v59 = vmul.f32 1.442695, %v894_v51  ;;  %v9620_v51 = vld [vmem:[#allocation19_spill] sm:$0xff] }
 0x30a   :  { %9615 = vst [vmem:[#allocation32_spill] sm:$0xff] %v7410_v17  ;;  %1767 = vmax.xlane.f32.xlu1 %v7410_v17  ;;  %v895_v5 = vsub.f32 %v9620_v51, %v877_v31 }
 0x30b   :  { %5554 = vpow2.f32 %v922_v59 }
 0x30e   :  { %v2158_v43 = vpop.f32.mrf.mxu0 }
 0x30f   :  { %v1715_v25 = vpop.f32.mrf.mxu2  ;;  %v7422_v40 = vmin.f32 %v2158_v43, %v7002_v8  ;;  %v7428_v63 = vpop.eup %5552  ;;  %5076 = vmatmul.msk.bf16.gmra.mxu0 %vm736_vm0, %v7056_v34 }
 0x310   :  { %v7426_v7 = vmin.f32 %v1715_v25, %v7002_v8  ;;  %9618 = vst [vmem:[#allocation41_spill] sm:$0xff] %v7428_v63  ;;  %v879_v43 = vpop.xlane.xlu2 %878  ;;  %v924_v25 = vmul.f32 1.442695, %v895_v5 }
 0x311   :  { %950 = vadd.xlane.f32.xlu2 %v7417_v55  ;;  %1765 = vmax.xlane.f32.xlu0 %v7415_v50  ;;  %9616 = vst [vmem:[#allocation39_spill] sm:$0xff] %v7422_v40  ;;  %v7437_v59 = vpop.eup %5554 }
 0x312   :  { %2212 = vmax.xlane.f32.xlu1 %v7422_v40  ;;  %9617 = vst [vmem:[#allocation37_spill] sm:$0xff] %v7426_v7  ;;  %5556 = vpow2.f32 %v924_v25  ;;  %v9627_v25 = vld [vmem:[#allocation40_spill] sm:$0xff] }
 0x313   :  { %v1317_v15 = vpop.xlane.xlu0 %1316  ;;  %9621 = vst [vmem:[#allocation19_spill] sm:$0xff] %v7437_v59 }
 0x314   :  { %v1348_v31 = vsub.f32 %v7217_v28, %v1317_v15  ;;  %v9628_v28 = vld [vmem:[#allocation53_spill] sm:$0xff] }
 0x316   :  { %v2161_v29 = vpop.f32.mrf.mxu0 }
 0x317   :  { %5068 = vmatmul.msk.bf16.gmra.mxu2 %vm736_vm0, %v9619_v42  ;;  %v1718_v54 = vpop.f32.mrf.mxu2  ;;  %v7444_v34 = vmin.f32 %v2161_v29, %v7022_v12  ;;  %v9624_v42 = vld [vmem:[#allocation23_spill] sm:$0xff] }
 0x318   :  { %v7455_v29 = vmin.f32 %v1718_v54, %v7022_v12 }
 0x319   :  { %1769 = vmax.xlane.f32.xlu2 %v7426_v7  ;;  %952 = vadd.xlane.f32.xlu0 %v7428_v63  ;;  %9623 = vst [vmem:[#allocation55_spill] sm:$0xff] %v7444_v34  ;;  %v896_v7 = vsub.f32 %v9624_v42, %v879_v43  ;;  %v1364_v63 = vmul.f32 1.442695, %v1348_v31  ;;  %v7458_v43 = vpop.eup %5556 }
 0x31a   :  { %954 = vadd.xlane.f32.xlu1 %v7437_v59  ;;  %9626 = vst [vmem:[#allocation56_spill] sm:$0xff] %v7455_v29 }
 0x31b   :  { %v1333_v51 = vpop.xlane.xlu1 %1332  ;;  %v926_v59 = vmul.f32 1.442695, %v896_v7 }
 0x31c   :  { %v881_v58 = vpop.xlane.xlu0 %880  ;;  %v1356_v12 = vsub.f32 %v7230_v18, %v1333_v51 }
 0x31d   :  { %5558 = vpow2.f32 %v926_v59 }
 0x31e   :  { %v2163_v8 = vpop.f32.mrf.mxu0  ;;  %5560 = vpow2.f32 %v1364_v63  ;;  %v1380_v31 = vmul.f32 1.442695, %v1356_v12 }
 0x31f   :  { %v7440_v40 = vmin.f32 %v2163_v8, %v7041_v48  ;;  %v1720_v17 = vpop.f32.mrf.mxu2  ;;  %v1319_v8 = vpop.xlane.xlu2 %1318  ;;  %5077 = vmatmul.msk.bf16.gmra.mxu0 %vm736_vm0, %v9628_v28 }
 0x320   :  { %v7451_v5 = vmin.f32 %v1720_v17, %v7041_v48  ;;  %v1349_v42 = vsub.f32 %v7236_v41, %v1319_v8  ;;  %v897_v8 = vsub.f32 %v7239_v13, %v881_v58 }
 0x321   :  { %9622 = vst [vmem:[#allocation54_spill] sm:$0xff] %v7440_v40  ;;  %2216 = vmax.xlane.f32.xlu2 %v7440_v40  ;;  %2214 = vmax.xlane.f32.xlu0 %v7444_v34 }
 0x322   :  { %9625 = vst [vmem:[#allocation23_spill] sm:$0xff] %v7451_v5  ;;  %1773 = vmax.xlane.f32.xlu1 %v7451_v5  ;;  %v1366_v17 = vmul.f32 1.442695, %v1349_v42  ;;  %v928_v51 = vmul.f32 1.442695, %v897_v8 }
 0x323   :  { %v7473_v59 = vpop.eup %5558 }
 0x324   :  { %v1335_v15 = vpop.xlane.xlu0 %1334  ;;  %9630 = vst [vmem:[#allocation57_spill] sm:$0xff] %v7473_v59  ;;  %5562 = vpow2.f32 %v1366_v17  ;;  %v7476_v28 = vpop.eup %5560 }
 0x325   :  { %9631 = vst [vmem:[#allocation58_spill] sm:$0xff] %v7476_v28  ;;  %v1357_v18 = vsub.f32 %v7253_v23, %v1335_v15  ;;  %5564 = vpow2.f32 %v1380_v31  ;;  %v9635_v15 = vld [vmem:[#allocation43_spill] sm:$0xff] }
 0x326   :  { %v2166_v48 = vpop.f32.mrf.mxu0 }
 0x327   :  { %5069 = vmatmul.msk.bf16.gmra.mxu2 %vm736_vm0, %v9627_v25  ;;  %v1723_v7 = vpop.f32.mrf.mxu2  ;;  %v7468_v41 = vmin.f32 %v2166_v48, %v7060_v47  ;;  %v1382_v17 = vmul.f32 1.442695, %v1357_v18 }
 0x328   :  { %v7487_v13 = vmin.f32 %v1723_v7, %v7060_v47 }
 0x329   :  { %956 = vadd.xlane.f32.xlu2 %v7458_v43  ;;  %1771 = vmax.xlane.f32.xlu0 %v7455_v29  ;;  %9629 = vst [vmem:[#allocation53_spill] sm:$0xff] %v7468_v41 }
 0x32a   :  { %2218 = vmax.xlane.f32.xlu1 %v7468_v41  ;;  %v7483_v25 = vpop.eup %5562  ;;  %9633 = vst [vmem:[#allocation60_spill] sm:$0xff] %v7487_v13 }
 0x32b   :  { %v7470_v54 = vpop.xlane.xlu1 %1320  ;;  %9632 = vst [vmem:[#allocation59_spill] sm:$0xff] %v7483_v25  ;;  %v7490_v58 = vpop.eup %5564 }
 0x32c   :  { %v1337_v63 = vpop.xlane.xlu2 %1336  ;;  %9634 = vst [vmem:[#allocation61_spill] sm:$0xff] %v7490_v58 }
 0x32d   :  { %v1358_v23 = vsub.f32 %v7265_v4, %v1337_v63  ;;  %v9636_v4 = vld [vmem:[#allocation18_spill] sm:$0xff] }
 0x32e   :  { %v2168_v31 = vpop.f32.mrf.mxu0  ;;  %v566_v63 = vadd.f32 %v7206_v52, %v9636_v4  ;;  %v9640_v52 = vld [vmem:[#allocation35_spill] sm:$0xff] }
 0x32f   :  { %v7481_v42 = vpop.f32.mrf.mxu2  ;;  %5078 = vmatmul.msk.bf16.gmra.mxu0 %vm736_vm0, %v7188_v19  ;;  %v1384_v7 = vmul.f32 1.442695, %v1358_v23  ;;  %v7513_v23 = vmin.f32 %v2168_v31, %v7083_v27  ;;  %v561_v41 = vadd.f32 %v9640_v52, %v9636_v4  ;;  %v9641_v52 = vld [vmem:[#allocation21_spill] sm:$0xff] }
 0x330   :  { %v631_v5 = vpack.c.bf16 %v566_v63, %v566_v63 }
 0x331   :  { %1396 = vadd.xlane.f32.xlu2 %v7476_v28  ;;  %958 = vadd.xlane.f32.xlu0 %v7473_v59  ;;  %9639 = vst [vmem:[#allocation63_spill] sm:$0xff] %v7513_v23  ;;  %v556_v59 = vadd.f32 %v9641_v52, %v9636_v4 }
 0x332   :  { %1398 = vadd.xlane.f32.xlu1 %v7483_v25 }
 0x333   :  { %v931_v48 = vpop.xlane.xlu1 %930 }
 0x334   :  { %v1323_v12 = vpop.xlane.xlu0 %1322  ;;  %5566 = vrcp.f32 %v931_v48  ;;  %v933_v8 = vpop.xlane.xlu2 %932 }
 0x335   :  { %5568 = vpow2.f32 %v928_v51  ;;  %v568_v51 = vadd.f32 %v7211_v6, %v9636_v4  ;;  %v563_v6 = vadd.f32 %v7194_v24, %v9636_v4 }
 0x336   :  { %5570 = vpow2.f32 %v1382_v17  ;;  %v2171_v24 = vpop.f32.mrf.mxu0 }
 0x337   :  { %5070 = vmatmul.msk.bf16.gmra.mxu2 %vm736_vm0, %v9635_v15  ;;  %5572 = vrcp.f32 %v933_v8  ;;  %v7498_v18 = vpop.f32.mrf.mxu2 }
 0x338   :  { %5574 = vpow2.f32 %v1384_v7  ;;  %v1351_v7 = vsub.f32 %v7273_v11, %v1323_v12 }
 0x339   :  { %1775 = vmax.xlane.f32.xlu2 %v7487_v13  ;;  %1412 = vadd.xlane.f32.xlu0 %v7490_v58  ;;  %v633_v58 = vpack.c.bf16 %v568_v51, %v568_v51 }
 0x33a   :  { %v5567_v47 = vpop.eup %5566  ;;  %v1370_v29 = vmul.f32 1.442695, %v1351_v7  ;;  %v9646_v7 = vld [vmem:[#allocation52_spill] sm:$0xff] }
 0x33b   :  { %v7504_v48 = vpop.xlane.xlu1 %1338  ;;  %v7506_v17 = vpop.eup %5568  ;;  %v978_v15 = vmul.f32 %v5567_v47, %v7275_v37  ;;  %v1350_v37 = vsub.f32 %v7249_v46, %v7470_v54  ;;  %v9642_v46 = vld [vmem:[#allocation25_spill] sm:$0xff]  ;;  %v3230_v11 = vunpack.c.l.b16 %v633_v58  ;;  %v9644_v58 = vld [vmem:[#allocation20_spill] sm:$0xff] }
 0x33c   :  { %v935_v19 = vpop.xlane.xlu0 %934  ;;  %9637 = vst [vmem:[#allocation18_spill] sm:$0xff] %v7506_v17  ;;  %960 = vadd.xlane.f32.xlu1 %v7506_v17  ;;  %v7510_v8 = vpop.eup %5570  ;;  %v558_v54 = vadd.f32 %v9642_v46, %v9636_v4 }
 0x33d   :  { %9638 = vst [vmem:[#allocation62_spill] sm:$0xff] %v7510_v8  ;;  %v5573_v13 = vpop.eup %5572  ;;  %v994_v47 = vpack.c.bf16 %v978_v15, %v978_v15  ;;  %v7524_v31 = vpop.xlane.xlu2 %1324  ;;  %v1368_v12 = vmul.f32 1.442695, %v1350_v37  ;;  %5576 = vrcp.f32 %v935_v19  ;;  %v553_v37 = vadd.f32 %v9644_v58, %v9636_v4 }
 0x33e   :  { %v979_v17 = vmul.f32 %v5573_v13, %v7283_v61  ;;  %v627_v61 = vpack.c.bf16 %v561_v41, %v561_v41  ;;  %v629_v13 = vpack.c.bf16 %v563_v6, %v563_v6  ;;  %v7537_v28 = vpop.eup %5574  ;;  %v7547_v41 = vmin.f32 %v2171_v24, %v7098_v14 }
 0x33f   :  { %v7529_v25 = vpop.f32.mrf.mxu2  ;;  %v1042_v52 = vunpack.c.l.b16 %v994_v47  ;;  %v623_v47 = vpack.c.bf16 %v556_v59, %v556_v59  ;;  %5079 = vmatmul.msk.bf16.gmra.mxu0 %vm736_vm0, %v9646_v7  ;;  %5578 = vpow2.f32 %v1368_v12  ;;  %v1359_v59 = vsub.f32 %v7287_v38, %v7504_v48 }
 0x340   :  { %v995_v63 = vpack.c.bf16 %v979_v17, %v979_v17  ;;  %v5124_v51 = vpack.c.bf16 %v979_v17, %v978_v15  ;;  %v9643_v15 = vld [vmem:[#allocation27_spill] sm:$0xff]  ;;  %v3227_v46 = vunpack.c.l.b16 %v627_v61  ;;  %5580 = vpow2.f32 %v1370_v29 }
 0x341   :  { %2220 = vmax.xlane.f32.xlu0 %v7513_v23  ;;  %1414 = vadd.xlane.f32.xlu2 %v7510_v8  ;;  %v3229_v23 = vunpack.c.l.b16 %v631_v5  ;;  %v551_v17 = vadd.f32 %v9643_v15, %v9636_v4  ;;  %v7544_v5 = vmin.f32 %v7481_v42, %v7083_v27  ;;  %v3228_v15 = vunpack.c.l.b16 %v629_v13  ;;  %v9648_v42 = vld [vmem:[#allocation51_spill] sm:$0xff] }
 0x342   :  { %5125 = vst [vmem:[#allocation11] sm:$0xff] %v5124_v51   ;;  %v1043_v34 = vunpack.c.l.b16 %v995_v63  ;;  %v625_v63 = vpack.c.bf16 %v558_v54, %v558_v54  ;;  %v9645_v51 = vld [vmem:[#allocation42_spill] sm:$0xff]  ;;  %v546_v19 = vadd.f32 %v9648_v42, %v9636_v4  ;;  %v621_v13 = vpack.c.bf16 %v553_v37, %v553_v37 }
 0x343   :  { %v7555_v27 = vpack.c.b16 %v3230_v11, %v3229_v23  ;;  %v9649_v23 = vld [vmem:[#allocation26_spill] sm:$0xff]  ;;  %v619_v61 = vpack.c.bf16 %v551_v17, %v551_v17  ;;  %v7572_v11 = vmin.f32 %v7498_v18, %v7098_v14  ;;  %v5577_v38 = vpop.eup %5576  ;;  %v3225_v48 = vunpack.c.l.b16 %v623_v47  ;;  %v9651_v17 = vld [vmem:[#allocation49_spill] sm:$0xff] }
 0x344   :  { %v7533_v40 = vpop.xlane.xlu1 %1326  ;;  %v7535_v8 = vpop.xlane.xlu0 %1340  ;;  %1416 = vadd.xlane.f32.xlu1 %v7537_v28  ;;  %v1058_v6 = vpack.c.b16 %v1043_v34, %v1042_v52  ;;  %v548_v54 = vadd.f32 %v9649_v23, %v9636_v4  ;;  %v3226_v52 = vunpack.c.l.b16 %v625_v63  ;;  %v1386_v58 = vmul.f32 1.442695, %v1359_v59  ;;  %v9652_v47 = vld [vmem:[#allocation50_spill] sm:$0xff] }
 0x345   :  { %9647 = vst [vmem:[#allocation35_spill] sm:$0xff] %v7555_v27  ;;  %v7559_v34 = vpop.xlane.xlu2 %1342  ;;  %v7579_v7 = vpop.eup %5578  ;;  %v541_v37 = vadd.f32 %v9651_v17, %v9636_v4  ;;  %v1352_v14 = vsub.f32 %v7301_v57, %v7524_v31  ;;  %v543_v63 = vadd.f32 %v9652_v47, %v9636_v4  ;;  %v980_v59 = vmul.f32 %v5577_v38, %v7289_v33  ;;  %v9654_v31 = vld [vmem:[#allocation47_spill] sm:$0xff]  ;;  %v9655_v33 = vld [vmem:[#allocation48_spill] sm:$0xff] }
 0x346   :  { %1130 = vmatmul.bf16.vlgmr.msra.gmra.mxu3 %v1058_v6  ;;  %v7576_v6 = vpack.c.b16 %v3228_v15, %v3227_v46  ;;  %v7586_v18 = vpop.eup %5580  ;;  %v615_v46 = vpack.c.bf16 %v546_v19, %v546_v19  ;;  %v2173_v15 = vpop.f32.mrf.mxu0  ;;  %v617_v42 = vpack.c.bf16 %v548_v54, %v548_v54  ;;  %v3223_v23 = vunpack.c.l.b16 %v619_v61 }
 0x347   :  { %5071 = vmatmul.msk.bf16.gmra.mxu2 %vm736_vm0, %v9645_v51  ;;  %3247 = vmatpush.bf16.msra.mxu3 %v7555_v27  ;;  %v7591_v51 = vpack.c.b16 %v3226_v52, %v3225_v48  ;;  %v536_v17 = vadd.f32 %v9654_v31, %v9636_v4  ;;  %v1360_v19 = vsub.f32 %v7309_v53, %v7535_v8 }
 0x348   :  { %9650 = vst [vmem:[#allocation21_spill] sm:$0xff] %v7576_v6  ;;  %v538_v54 = vadd.f32 %v9655_v33, %v9636_v4  ;;  %v611_v61 = vpack.c.bf16 %v541_v37, %v541_v37  ;;  %v613_v48 = vpack.c.bf16 %v543_v63, %v543_v63  ;;  %v7605_v52 = vmin.f32 %v2173_v15, %v7122_v10  ;;  %v9657_v33 = vld [vmem:[#allocation45_spill] sm:$0xff] }
 0x349   :  { %1777 = vmax.xlane.f32.xlu0 %v7544_v5  ;;  %2222 = vmax.xlane.f32.xlu2 %v7547_v41  ;;  %9653 = vst [vmem:[#allocation25_spill] sm:$0xff] %v7591_v51  ;;  %v3221_v53 = vunpack.c.l.b16 %v615_v46  ;;  %v3222_v8 = vunpack.c.l.b16 %v617_v42  ;;  %v1388_v37 = vmul.f32 1.442695, %v1360_v19  ;;  %v531_v63 = vadd.f32 %v9657_v33, %v9636_v4  ;;  %v9659_v19 = vld [vmem:[#allocation44_spill] sm:$0xff] }
 0x34a   :  { %v7566_v24 = vpop.f32.mrf.mxu2  ;;  %v7615_v15 = vmin.f32 %v7529_v25, %v7122_v10 }
 0x34b   :  { %3248 = vmatpush.bf16.msra.mxu3 %v7576_v6  ;;  %v996_v6 = vpack.c.bf16 %v980_v59, %v980_v59 }
 0x34c   :  { %v937_v29 = vpop.xlane.xlu1 %936  ;;  %v7574_v12 = vpop.xlane.xlu0 %1328  ;;  %1779 = vmax.xlane.f32.xlu1 %v7572_v11 }
 0x34d   :  { %5582 = vrcp.f32 %v937_v29  ;;  %v3224_v29 = vunpack.c.l.b16 %v621_v13  ;;  %v939_v57 = vpop.xlane.xlu2 %938  ;;  %v1372_v13 = vmul.f32 1.442695, %v1352_v14  ;;  %v1044_v10 = vunpack.c.l.b16 %v996_v6 }
 0x34e   :  { %5584 = vpow2.f32 %v1386_v58 }
 0x34f   :  { %3249 = vmatpush.bf16.msra.mxu3 %v7591_v51  ;;  %5586 = vrcp.f32 %v939_v57  ;;  %v7608_v27 = vpack.c.b16 %v3224_v29, %v3223_v23  ;;  %v9658_v23 = vld [vmem:[#allocation46_spill] sm:$0xff]  ;;  %v607_v29 = vpack.c.bf16 %v536_v17, %v536_v17  ;;  %5080 = vmatmul.msk.bf16.gmra.mxu0 %vm736_vm0, %v7269_v2 }
 0x351   :  { %1400 = vadd.xlane.f32.xlu0 %v7579_v7  ;;  %1402 = vadd.xlane.f32.xlu2 %v7586_v18  ;;  %9656 = vst [vmem:[#allocation27_spill] sm:$0xff] %v7608_v27 }
 0x352   :  { %v7602_v38 = vpop.f32.mrf.mxu2 }
 0x353   :  { %v5583_v47 = vpop.eup %5582  ;;  %3250 = vmatpush.bf16.msra.mxu3 %v7608_v27 }
 0x354   :  { %v941_v31 = vpop.xlane.xlu0 %940  ;;  %v981_v58 = vmul.f32 %v5583_v47, %v7321_v62  ;;  %2224 = vmax.xlane.f32.xlu1 %v7605_v52  ;;  %v1361_v62 = vsub.f32 %v7315_v9, %v7559_v34  ;;  %v7619_v46 = vpop.xlane.xlu1 %1344  ;;  %v609_v34 = vpack.c.bf16 %v538_v54, %v538_v54  ;;  %v3219_v47 = vunpack.c.l.b16 %v611_v61 }
 0x355   :  { %5588 = vrcp.f32 %v941_v31  ;;  %v7622_v42 = vpop.eup %5584  ;;  %v7630_v31 = vpack.c.b16 %v3222_v8, %v3221_v53  ;;  %v7635_v2 = vpop.xlane.xlu2 %1330  ;;  %v603_v54 = vpack.c.bf16 %v531_v63, %v531_v63 }
 0x356   :  { %v997_v14 = vpack.c.bf16 %v981_v58, %v981_v58  ;;  %v5129_v57 = vpack.c.bf16 %v981_v58, %v980_v59  ;;  %5590 = vpow2.f32 %v1372_v13  ;;  %v533_v59 = vadd.f32 %v9658_v23, %v9636_v4  ;;  %v5587_v9 = vpop.eup %5586  ;;  %v2176_v4 = vpop.f32.mrf.mxu0 }
 0x357   :  { %5072 = vmatmul.msk.bf16.gmra.mxu2 %vm736_vm0, %v9659_v19  ;;  %v3220_v13 = vunpack.c.l.b16 %v613_v48  ;;  %9660 = vst [vmem:[#allocation20_spill] sm:$0xff] %v7630_v31  ;;  %5592 = vpow2.f32 %v1388_v37  ;;  %v1390_v33 = vmul.f32 1.442695, %v1361_v62  ;;  %3251 = vmatpush.bf16.msra.mxu3 %v7630_v31  ;;  %v982_v48 = vmul.f32 %v5587_v9, %v7330_v0 }
 0x358   :  { %5441 = vst [vmem:[#allocation11 + $0x8] sm:$0xff] %v5129_v57   ;;  %v1045_v25 = vunpack.c.l.b16 %v997_v14  ;;  %v605_v37 = vpack.c.bf16 %v533_v59, %v533_v59  ;;  %v3217_v14 = vunpack.c.l.b16 %v607_v29  ;;  %v3218_v57 = vunpack.c.l.b16 %v609_v34 }
 0x359   :  { %1418 = vadd.xlane.f32.xlu0 %v7622_v42  ;;  %1781 = vmax.xlane.f32.xlu2 %v7615_v15  ;;  %v7645_v62 = vpack.c.b16 %v3220_v13, %v3219_v47  ;;  %5594 = vpow2.f32 %v1390_v33  ;;  %v3215_v0 = vunpack.c.l.b16 %v603_v54  ;;  %v1353_v59 = vsub.f32 %v7305_v56, %v7533_v40 }
 0x35a   :  { %v1059_v17 = vpack.c.b16 %v1045_v25, %v1044_v10  ;;  %v7637_v6 = vpop.f32.mrf.mxu2  ;;  %v7649_v10 = vmin.f32 %v2176_v4, %v7134_v39  ;;  %v7654_v25 = vpack.c.b16 %v3218_v57, %v3217_v14  ;;  %v1354_v9 = vsub.f32 %v7318_v22, %v7574_v12 }
 0x35b   :  { %v5589_v58 = vpop.eup %5588  ;;  %9661 = vst [vmem:[#allocation52_spill] sm:$0xff] %v7645_v62  ;;  %3252 = vmatpush.bf16.msra.mxu3 %v7645_v62  ;;  %v1374_v33 = vmul.f32 1.442695, %v1353_v59  ;;  %v7676_v12 = vmin.f32 %v7566_v24, %v7134_v39  ;;  %v1362_v14 = vsub.f32 %v7334_v45, %v7619_v46  ;;  %v7692_v57 = vmin.f32 %v7602_v38, %v7150_v44 }
 0x35c   :  { %1135 = vmatmul.bf16.gmra.mxu3 %v1059_v17  ;;  %v7639_v61 = vpop.xlane.xlu0 %1346  ;;  %v983_v53 = vmul.f32 %v5589_v58, %v7336_v21  ;;  %v7643_v8 = vpop.eup %5590  ;;  %v3216_v21 = vunpack.c.l.b16 %v605_v37  ;;  %9662 = vst [vmem:[#allocation51_spill] sm:$0xff] %v7654_v25  ;;  %v998_v58 = vpack.c.bf16 %v982_v48, %v982_v48  ;;  %v1376_v54 = vmul.f32 1.442695, %v1354_v9 }
 0x35d   :  { %1404 = vadd.xlane.f32.xlu1 %v7643_v8  ;;  %v7652_v63 = vpop.eup %5592  ;;  %v943_v29 = vpop.xlane.xlu1 %942  ;;  %v1392_v59 = vmul.f32 1.442695, %v1362_v14 }
 0x35e   :  { %v5134_v23 = vpack.c.bf16 %v983_v53, %v982_v48  ;;  %v999_v34 = vpack.c.bf16 %v983_v53, %v983_v53  ;;  %v2178_v4 = vpop.f32.mrf.mxu0  ;;  %v7671_v40 = vpack.c.b16 %v3216_v21, %v3215_v0  ;;  %5596 = vrcp.f32 %v943_v29 }
 0x35f   :  { %3253 = vmatpush.bf16.msra.mxu3 %v7654_v25  ;;  %v7669_v56 = vpop.eup %5594  ;;  %v7679_v53 = vmin.f32 %v2178_v4, %v7150_v44  ;;  %v1046_v48 = vunpack.c.l.b16 %v998_v58  ;;  %5598 = vpow2.f32 %v1374_v33  ;;  %v1355_v29 = vsub.f32 %v7341_v32, %v7635_v2  ;;  %v9664_v58 = vld [vmem:[#allocation22_spill] sm:$0xff] }
 0x360   :  { %5442 = vst [vmem:[#allocation11 + $0x10] sm:$0xff] %v5134_v23   ;;  %v1047_v22 = vunpack.c.l.b16 %v999_v34  ;;  %5600 = vpow2.f32 %v1376_v54  ;;  %v1363_v44 = vsub.f32 %v7345_v26, %v7639_v61 }
 0x361   :  { %2226 = vmax.xlane.f32.xlu0 %v7649_v10  ;;  %1420 = vadd.xlane.f32.xlu2 %v7652_v63  ;;  %9663 = vst [vmem:[#allocation26_spill] sm:$0xff] %v7671_v40  ;;  %v1378_v32 = vmul.f32 1.442695, %v1355_v29 }
 0x362   :  { %v7663_v47 = vpop.f32.mrf.mxu2  ;;  %v1060_v39 = vpack.c.b16 %v1047_v22, %v1046_v48  ;;  %v1394_v61 = vmul.f32 1.442695, %v1363_v44 }
 0x363   :  { %3254 = vmatpush.bf16.msra.mxu3 %v7671_v40 }
 0x364   :  { %v7665_v13 = vpop.xlane.xlu2 %2204  ;;  %v7667_v17 = vpop.xlane.xlu0 %2202 }
 0x365   :  { %1422 = vadd.xlane.f32.xlu1 %v7669_v56  ;;  %v7684_v37 = vpop.xlane.xlu1 %1761  ;;  %v5597_v21 = vpop.eup %5596 }
 0x366   :  { %v7697_v9 = vpop.eup %5598  ;;  %v984_v46 = vmul.f32 %v5597_v21, %v7347_v60  ;;  %v2181_v34 = vpop.f32.mrf.mxu0 }
 0x367   :  { %v7699_v45 = vpop.eup %5600  ;;  %v7711_v33 = vmin.f32 %v2181_v34, %v9664_v58 }
 0x368   :  { %v1000_v26 = vpack.c.bf16 %v984_v46, %v984_v46 }
 0x369   :  { %1783 = vmax.xlane.f32.xlu0 %v7676_v12  ;;  %2228 = vmax.xlane.f32.xlu2 %v7679_v53 }
 0x36a   :  { %v7688_v24 = vpop.f32.mrf.mxu2 }
 0x36c   :  { %v945_v23 = vpop.xlane.xlu2 %944  ;;  %1140 = vmatmul.bf16.gmra.mxu3 %v1060_v39  ;;  %v1760_v0 = vpop.xlane.xlu0 %1759  ;;  %v7719_v39 = vmin.f32 %v7637_v6, %v9664_v58 }
 0x36d   :  { %5602 = vrcp.f32 %v945_v23  ;;  %1785 = vmax.xlane.f32.xlu1 %v7692_v57  ;;  %v7706_v38 = vpop.xlane.xlu1 %2206  ;;  %v1791_v23 = vsub.f32 %v7371_v3, %v1760_v0 }
 0x36e   :  { %5604 = vpow2.f32 %v1392_v59  ;;  %v1048_v59 = vunpack.c.l.b16 %v1000_v26  ;;  %v2183_v44 = vpop.f32.mrf.mxu0 }
 0x36f   :  { %5606 = vpow2.f32 %v1378_v32  ;;  %v1807_v32 = vmul.f32 1.442695, %v1791_v23 }
 0x371   :  { %1406 = vadd.xlane.f32.xlu0 %v7697_v9  ;;  %1408 = vadd.xlane.f32.xlu2 %v7699_v45 }
 0x372   :  { %v7708_v4 = vpop.f32.mrf.mxu2 }
 0x373   :  { %v5603_v2 = vpop.eup %5602 }
 0x374   :  { %v7713_v54 = vpop.xlane.xlu2 %1763  ;;  %v947_v60 = vpop.xlane.xlu0 %946  ;;  %v985_v22 = vmul.f32 %v5603_v2, %v7373_v20 }
 0x375   :  { %2230 = vmax.xlane.f32.xlu1 %v7711_v33  ;;  %5608 = vrcp.f32 %v947_v60  ;;  %v7722_v21 = vpop.eup %5604  ;;  %v949_v20 = vpop.xlane.xlu1 %948 }
 0x376   :  { %v1001_v48 = vpack.c.bf16 %v985_v22, %v985_v22  ;;  %v5139_v14 = vpack.c.bf16 %v985_v22, %v984_v46  ;;  %5610 = vpow2.f32 %v1394_v61  ;;  %v9665_v46 = vld [vmem:[#allocation33_spill] sm:$0xff]  ;;  %v7730_v0 = vpop.eup %5606  ;;  %v9666_v22 = vld [vmem:[#allocation24_spill] sm:$0xff] }
 0x377   :  { %v2234_v34 = vsub.f32 %v9665_v46, %v7667_v17  ;;  %5612 = vrcp.f32 %v949_v20  ;;  %v2235_v26 = vsub.f32 %v9666_v22, %v7665_v13 }
 0x378   :  { %5443 = vst [vmem:[#allocation11 + $0x18] sm:$0xff] %v5139_v14   ;;  %v1049_v29 = vunpack.c.l.b16 %v1001_v48  ;;  %v9667_v48 = vld [vmem:[#allocation28_spill] sm:$0xff]  ;;  %5614 = vpow2.f32 %v1807_v32 }
 0x379   :  { %1424 = vadd.xlane.f32.xlu0 %v7722_v21  ;;  %1787 = vmax.xlane.f32.xlu2 %v7719_v39  ;;  %v2250_v61 = vmul.f32 1.442695, %v2234_v34  ;;  %v7742_v14 = vmin.f32 %v2183_v44, %v9667_v48  ;;  %v2252_v46 = vmul.f32 1.442695, %v2235_v26 }
 0x37a   :  { %v1061_v6 = vpack.c.b16 %v1049_v29, %v1048_v59  ;;  %v7728_v3 = vpop.f32.mrf.mxu2  ;;  %v2775_v59 = vld [vmem:[#allocation5 + $0x1] sm:$0x1] }
 0x37b   :  { %v5609_v60 = vpop.eup %5608  ;;  %5616 = vpow2.f32 %v2250_v61  ;;  %vm2776_vm2 = vcmp.ge.f32.partialorder %v2775_v59, 0.5  ;;  %v1792_v59 = vsub.f32 %v7366_v35, %v7684_v37 }
 0x37c   :  { %v7732_v2 = vpop.xlane.xlu2 %2210  ;;  %1145 = vmatmul.bf16.gmra.mxu3 %v1061_v6  ;;  %v7734_v58 = vpop.xlane.xlu0 %2208  ;;  %v986_v29 = vmul.f32 %v5609_v60, %v7388_v30  ;;  %5618 = vpow2.f32 %v2252_v46  ;;  %v9668_v30 = vmov -1e+09  }
 0x37d   :  { %1410 = vadd.xlane.f32.xlu1 %v7730_v0  ;;  %v7739_v17 = vpop.eup %5610  ;;  %v7747_v20 = vpop.xlane.xlu1 %1767  ;;  %v2777_v60 = vsel %vm2776_vm2, 1e+30, %v9668_v30  ;;  %v1809_v37 = vmul.f32 1.442695, %v1792_v59 }
 0x37e   :  { %v5613_v23 = vpop.eup %5612  ;;  %v1002_v32 = vpack.c.bf16 %v986_v29, %v986_v29 }
 0x37f   :  { %v987_v13 = vmul.f32 %v5613_v23, %v7393_v1  ;;  %v7750_v40 = vpop.eup %5614  ;;  %v7758_v1 = vmin.f32 %v7663_v47, %v9667_v48  ;;  %v7762_v23 = vperm.slane %v2777_v60, 0 }
 0x380   :  { %v1050_v61 = vunpack.c.l.b16 %v1002_v32  ;;  %v6043_v32 = vld [vmem:[#allocation7 + $0x8] sm:$0xff] }
 0x381   :  { %2232 = vmax.xlane.f32.xlu0 %v7742_v14  ;;  %1426 = vadd.xlane.f32.xlu2 %v7739_v17  ;;  %v1003_v34 = vpack.c.bf16 %v987_v13, %v987_v13  ;;  %v5144_v6 = vpack.c.bf16 %v987_v13, %v986_v29  ;;  %v7760_v26 = vpop.eup %5616  ;;  %v2236_v13 = vsub.f32 %v7382_v16, %v7706_v38 }
 0x382   :  { %v7752_v25 = vpop.f32.mrf.mxu2  ;;  %v7772_v48 = vpop.eup %5618  ;;  %v7780_v30 = vmin.f32 %v6043_v32, %v7762_v23 }
 0x383   :  { %5444 = vst [vmem:[#allocation11 + $0x20] sm:$0xff] %v5144_v6   ;;  %v1051_v19 = vunpack.c.l.b16 %v1003_v34  ;;  %v2254_v60 = vmul.f32 1.442695, %v2236_v13  ;;  %v1793_v13 = vsub.f32 %v7386_v36, %v7713_v54 }
 0x384   :  { %v951_v44 = vpop.xlane.xlu2 %950  ;;  %v1766_v22 = vpop.xlane.xlu0 %1765  ;;  %9670 = vst [vmem:[#allocation50_spill] sm:$0xff] %v7780_v30  ;;  %v7790_v38 = vmin.f32 %v7708_v4, %v7780_v30  ;;  %v2237_v4 = vsub.f32 %v7400_v49, %v7734_v58 }
 0x385   :  { %1839 = vadd.xlane.f32.xlu1 %v7750_v40  ;;  %5620 = vrcp.f32 %v951_v44  ;;  %v7768_v29 = vpop.xlane.xlu1 %2212  ;;  %v1062_v47 = vpack.c.b16 %v1051_v19, %v1050_v61  ;;  %v6042_v44 = vld [vmem:[#allocation7] sm:$0xff]  ;;  %v1794_v16 = vsub.f32 %v7415_v50, %v1766_v22  ;;  %v1811_v32 = vmul.f32 1.442695, %v1793_v13 }
 0x386   :  { %v7777_v35 = vmin.f32 %v6042_v44, %v7762_v23  ;;  %9672 = vst [vmem:[#allocation48_spill] sm:$0xff] %v7790_v38 }
 0x388   :  { %9669 = vst [vmem:[#allocation49_spill] sm:$0xff] %v7777_v35  ;;  %v7786_v19 = vmin.f32 %v7688_v24, %v7777_v35  ;;  %v6044_v24 = vld [vmem:[#allocation7 + $0x10] sm:$0xff] }
 0x389   :  { %1789 = vmax.xlane.f32.xlu0 %v7758_v1  ;;  %2282 = vadd.xlane.f32.xlu2 %v7760_v26  ;;  %v7800_v22 = vmin.f32 %v6044_v24, %v7762_v23  ;;  %v9682_v35 = vld [vmem:[#allocation56_spill] sm:$0xff] }
 0x38a   :  { %9671 = vst [vmem:[#allocation47_spill] sm:$0xff] %v7786_v19  ;;  %v7792_v61 = vpop.f32.mrf.mxu2 }
 0x38b   :  { %v5621_v6 = vpop.eup %5620  ;;  %9673 = vst [vmem:[#allocation45_spill] sm:$0xff] %v7800_v22 }
 0x38c   :  { %v7774_v46 = vpop.xlane.xlu2 %1769  ;;  %1150 = vmatmul.bf16.gmra.mxu3 %v1062_v47  ;;  %v953_v34 = vpop.xlane.xlu0 %952  ;;  %v988_v59 = vmul.f32 %v5621_v6, %v7417_v55  ;;  %v1813_v47 = vmul.f32 1.442695, %v1794_v16  ;;  %v7806_v55 = vmin.f32 %v7728_v3, %v7800_v22  ;;  %v9675_v6 = vld [vmem:[#allocation41_spill] sm:$0xff] }
 0x38d   :  { %5622 = vrcp.f32 %v953_v34  ;;  %2284 = vadd.xlane.f32.xlu1 %v7772_v48  ;;  %v955_v50 = vpop.xlane.xlu1 %954  ;;  %v9676_v16 = vld [vmem:[#allocation29_spill] sm:$0xff] }
 0x38e   :  { %5624 = vpow2.f32 %v1809_v37  ;;  %9674 = vst [vmem:[#allocation46_spill] sm:$0xff] %v7806_v55  ;;  %v1004_v37 = vpack.c.bf16 %v988_v59, %v988_v59  ;;  %v2238_v3 = vsub.f32 %v9676_v16, %v7732_v2 }
 0x38f   :  { %5626 = vpow2.f32 %v2254_v60  ;;  %v2256_v60 = vmul.f32 1.442695, %v2237_v4 }
 0x390   :  { %5628 = vpow2.f32 %v1813_v47  ;;  %v1052_v62 = vunpack.c.l.b16 %v1004_v37  ;;  %v2258_v4 = vmul.f32 1.442695, %v2238_v3 }
 0x391   :  { %2976 = vmax.xlane.f32.xlu0 %v7790_v38  ;;  %2974 = vmax.xlane.f32.xlu2 %v7786_v19  ;;  %5630 = vrcp.f32 %v955_v50  ;;  %v6048_v19 = vld [vmem:[#allocation7 + $0x30] sm:$0xff] }
 0x392   :  { %5632 = vpow2.f32 %v1811_v32  ;;  %v9677_v32 = vld [vmem:[#allocation32_spill] sm:$0xff] }
 0x393   :  { %v5623_v34 = vpop.eup %5622  ;;  %5634 = vpow2.f32 %v2256_v60  ;;  %v9678_v60 = vld [vmem:[#allocation19_spill] sm:$0xff] }
 0x394   :  { %v7808_v36 = vpop.xlane.xlu2 %2216  ;;  %v7810_v54 = vpop.xlane.xlu0 %2214  ;;  %v989_v44 = vmul.f32 %v5623_v34, %v9675_v6 }
 0x395   :  { %2978 = vmax.xlane.f32.xlu1 %v7806_v55  ;;  %v7814_v58 = vpop.eup %5624  ;;  %v2930_v34 = vpop.f32.mrf.mxu2 }
 0x396   :  { %v1005_v24 = vpack.c.bf16 %v989_v44, %v989_v44  ;;  %v5149_v49 = vpack.c.bf16 %v989_v44, %v988_v59  ;;  %v7818_v31 = vpop.eup %5626  ;;  %v7822_v13 = vpop.xlane.xlu1 %1773 }
 0x397   :  { %v7824_v47 = vpop.eup %5628 }
 0x398   :  { %5445 = vst [vmem:[#allocation11 + $0x28] sm:$0xff] %v5149_v49   ;;  %v1053_v27 = vunpack.c.l.b16 %v1005_v24  ;;  %v5631_v6 = vpop.eup %5630  ;;  %v1795_v24 = vsub.f32 %v9677_v32, %v7747_v20 }
 0x399   :  { %2286 = vadd.xlane.f32.xlu0 %v7818_v31  ;;  %1841 = vadd.xlane.f32.xlu2 %v7814_v58  ;;  %v7827_v44 = vpop.eup %5632 }
 0x39a   :  { %v1063_v59 = vpack.c.b16 %v1053_v27, %v1052_v62  ;;  %v7829_v37 = vpop.eup %5634  ;;  %v990_v27 = vmul.f32 %v5631_v6, %v9678_v60  ;;  %v9679_v62 = vld [vmem:[#allocation39_spill] sm:$0xff]  ;;  %v6045_v6 = vld [vmem:[#allocation7 + $0x18] sm:$0xff]  ;;  %v6046_v60 = vld [vmem:[#allocation7 + $0x20] sm:$0xff] }
 0x39b   :  { %v2239_v49 = vsub.f32 %v9679_v62, %v7768_v29  ;;  %v7846_v29 = vmin.f32 %v6045_v6, %v7762_v23  ;;  %v7849_v62 = vmin.f32 %v6046_v60, %v7762_v23  ;;  %v9685_v6 = vld [vmem:[#allocation37_spill] sm:$0xff] }
 0x39c   :  { %v957_v2 = vpop.xlane.xlu2 %956  ;;  %1155 = vmatmul.bf16.gmra.mxu3 %v1063_v59  ;;  %v1772_v50 = vpop.xlane.xlu0 %1771  ;;  %v1006_v20 = vpack.c.bf16 %v990_v27, %v990_v27  ;;  %v1796_v60 = vsub.f32 %v9685_v6, %v7774_v46 }
 0x39d   :  { %5636 = vrcp.f32 %v957_v2  ;;  %1845 = vadd.xlane.f32.xlu1 %v7824_v47  ;;  %v7840_v59 = vpop.f32.mrf.mxu2  ;;  %9680 = vst [vmem:[#allocation22_spill] sm:$0xff] %v7846_v29  ;;  %v2260_v22 = vmul.f32 1.442695, %v2239_v49  ;;  %v1797_v30 = vsub.f32 %v9682_v35, %v1772_v50  ;;  %v9686_v35 = vld [vmem:[#allocation55_spill] sm:$0xff] }
 0x39e   :  { %5638 = vpow2.f32 %v2258_v4  ;;  %v7838_v16 = vpop.xlane.xlu1 %2218  ;;  %v1815_v4 = vmul.f32 1.442695, %v1795_v24  ;;  %9681 = vst [vmem:[#allocation33_spill] sm:$0xff] %v7849_v62  ;;  %v1054_v49 = vunpack.c.l.b16 %v1006_v20  ;;  %v2240_v50 = vsub.f32 %v9686_v35, %v7810_v54  ;;  %v9689_v35 = vld [vmem:[#allocation58_spill] sm:$0xff] }
 0x3a1   :  { %1843 = vadd.xlane.f32.xlu0 %v7827_v44  ;;  %2288 = vadd.xlane.f32.xlu2 %v7829_v37 }
 0x3a3   :  { %v5637_v3 = vpop.eup %5636 }
 0x3a4   :  { %v1397_v2 = vpop.xlane.xlu2 %1396  ;;  %v959_v55 = vpop.xlane.xlu0 %958  ;;  %v991_v51 = vmul.f32 %v5637_v3, %v7458_v43  ;;  %v7855_v43 = vmin.f32 %v7752_v25, %v7846_v29  ;;  %v7859_v3 = vmin.f32 %v7792_v61, %v7849_v62  ;;  %v6047_v25 = vld [vmem:[#allocation7 + $0x28] sm:$0xff] }
 0x3a5   :  { %v7843_v32 = vpop.eup %5638  ;;  %5640 = vrcp.f32 %v1397_v2  ;;  %v7868_v61 = vmin.f32 %v6047_v25, %v7762_v23  ;;  %v7875_v6 = vpop.f32.mrf.mxu2  ;;  %v9699_v29 = vld [vmem:[#allocation23_spill] sm:$0xff] }
 0x3a6   :  { %2290 = vadd.xlane.f32.xlu1 %v7843_v32  ;;  %v1007_v24 = vpack.c.bf16 %v991_v51, %v991_v51  ;;  %v5154_v38 = vpack.c.bf16 %v991_v51, %v990_v27  ;;  %9683 = vst [vmem:[#allocation24_spill] sm:$0xff] %v7855_v43  ;;  %5642 = vpow2.f32 %v1815_v4  ;;  %v1399_v51 = vpop.xlane.xlu1 %1398  ;;  %v1819_v27 = vmul.f32 1.442695, %v1797_v30 }
 0x3a7   :  { %9684 = vst [vmem:[#allocation28_spill] sm:$0xff] %v7859_v3  ;;  %5644 = vpow2.f32 %v2260_v22  ;;  %v7871_v20 = vmin.f32 %v2930_v34, %v7868_v61  ;;  %v9692_v34 = vld [vmem:[#allocation54_spill] sm:$0xff] }
 0x3a8   :  { %5446 = vst [vmem:[#allocation11 + $0x30] sm:$0xff] %v5154_v38   ;;  %v1055_v2 = vunpack.c.l.b16 %v1007_v24  ;;  %5646 = vrcp.f32 %v1399_v51  ;;  %v1817_v38 = vmul.f32 1.442695, %v1796_v60  ;;  %v2262_v24 = vmul.f32 1.442695, %v2240_v50 }
 0x3a9   :  { %2982 = vmax.xlane.f32.xlu0 %v7859_v3  ;;  %2980 = vmax.xlane.f32.xlu2 %v7855_v43  ;;  %9687 = vst [vmem:[#allocation41_spill] sm:$0xff] %v7868_v61  ;;  %5648 = vrcp.f32 %v959_v55  ;;  %v2241_v60 = vsub.f32 %v9692_v34, %v7808_v36  ;;  %v9698_v61 = vld [vmem:[#allocation61_spill] sm:$0xff] }
 0x3aa   :  { %v1064_v4 = vpack.c.b16 %v1055_v2, %v1054_v49  ;;  %9688 = vst [vmem:[#allocation29_spill] sm:$0xff] %v7871_v20  ;;  %5650 = vpow2.f32 %v1819_v27  ;;  %v9693_v49 = vld [vmem:[#allocation59_spill] sm:$0xff] }
 0x3ab   :  { %v5641_v46 = vpop.eup %5640 }
 0x3ac   :  { %v7873_v22 = vpop.xlane.xlu2 %1775  ;;  %1160 = vmatmul.bf16.gmra.mxu3 %v1064_v4  ;;  %v1413_v54 = vpop.xlane.xlu0 %1412  ;;  %v1444_v3 = vmul.f32 %v5641_v46, %v9689_v35  ;;  %v2264_v4 = vmul.f32 1.442695, %v2241_v60 }
 0x3ad   :  { %v7878_v25 = vpop.eup %5642  ;;  %5652 = vrcp.f32 %v1413_v54 }
 0x3ae   :  { %9690 = vst [vmem:[#allocation32_spill] sm:$0xff] %v7878_v25  ;;  %2984 = vmax.xlane.f32.xlu1 %v7871_v20  ;;  %v7881_v30 = vpop.eup %5644  ;;  %5654 = vpow2.f32 %v1817_v38  ;;  %v1460_v51 = vpack.c.bf16 %v1444_v3, %v1444_v3 }
 0x3af   :  { %9691 = vst [vmem:[#allocation19_spill] sm:$0xff] %v7881_v30  ;;  %v5647_v55 = vpop.eup %5646  ;;  %5656 = vpow2.f32 %v2262_v24  ;;  %v961_v50 = vpop.xlane.xlu1 %960 }
 0x3b0   :  { %v1445_v2 = vmul.f32 %v5647_v55, %v9693_v49  ;;  %v5649_v27 = vpop.eup %5648  ;;  %5658 = vrcp.f32 %v961_v50  ;;  %v1509_v24 = vunpack.c.l.b16 %v1460_v51  ;;  %v9695_v55 = vld [vmem:[#allocation57_spill] sm:$0xff] }
 0x3b1   :  { %2292 = vadd.xlane.f32.xlu0 %v7881_v30  ;;  %1847 = vadd.xlane.f32.xlu2 %v7878_v25  ;;  %v7888_v20 = vpop.eup %5650  ;;  %v992_v49 = vmul.f32 %v5649_v27, %v9695_v55  ;;  %v9700_v27 = vld [vmem:[#allocation18_spill] sm:$0xff]  ;;  %v9701_v55 = vld [vmem:[#allocation53_spill] sm:$0xff] }
 0x3b2   :  { %v5164_v46 = vpack.c.bf16 %v1445_v2, %v1444_v3  ;;  %v1461_v35 = vpack.c.bf16 %v1445_v2, %v1445_v2  ;;  %9694 = vst [vmem:[#allocation39_spill] sm:$0xff] %v7888_v20  ;;  %v2938_v3 = vpop.f32.mrf.mxu2 }
 0x3b3   :  { %v5653_v38 = vpop.eup %5652 }
 0x3b4   :  { %v1415_v36 = vpop.xlane.xlu2 %1414  ;;  %v7890_v54 = vpop.xlane.xlu0 %2220  ;;  %5165 = vst [vmem:[#allocation11 + $0x40] sm:$0xff] %v5164_v46   ;;  %v1510_v34 = vunpack.c.l.b16 %v1461_v35  ;;  %v1452_v62 = vmul.f32 %v5653_v38, %v9698_v61  ;;  %v1798_v46 = vsub.f32 %v9699_v29, %v7822_v13  ;;  %v7907_v61 = vmin.f32 %v6048_v19, %v7762_v23  ;;  %v9703_v38 = vld [vmem:[#allocation62_spill] sm:$0xff] }
 0x3b5   :  { %5660 = vrcp.f32 %v1415_v36  ;;  %v7893_v43 = vpop.eup %5654  ;;  %v1008_v36 = vpack.c.bf16 %v992_v49, %v992_v49 }
 0x3b6   :  { %9696 = vst [vmem:[#allocation56_spill] sm:$0xff] %v7893_v43  ;;  %1851 = vadd.xlane.f32.xlu1 %v7888_v20  ;;  %v7896_v50 = vpop.eup %5656  ;;  %5662 = vpow2.f32 %v2264_v4  ;;  %v1525_v60 = vpack.c.b16 %v1510_v34, %v1509_v24  ;;  %v2242_v20 = vsub.f32 %v9701_v55, %v7838_v16 }
 0x3b7   :  { %9697 = vst [vmem:[#allocation37_spill] sm:$0xff] %v7896_v50  ;;  %v5659_v2 = vpop.eup %5658  ;;  %v1417_v51 = vpop.xlane.xlu1 %1416  ;;  %v1056_v16 = vunpack.c.l.b16 %v1008_v36 }
 0x3b8   :  { %v993_v35 = vmul.f32 %v5659_v2, %v9700_v27  ;;  %1573 = vmatmul.bf16.vlgmr.msrb.gmra.mxu1 %v1525_v60  ;;  %9702 = vst [vmem:[#allocation55_spill] sm:$0xff] %v7907_v61  ;;  %v1821_v2 = vmul.f32 1.442695, %v1798_v46  ;;  %v6049_v27 = vld [vmem:[#allocation7 + $0x38] sm:$0xff] }
 0x3b9   :  { %1849 = vadd.xlane.f32.xlu0 %v7893_v43  ;;  %2294 = vadd.xlane.f32.xlu2 %v7896_v50  ;;  %v1468_v50 = vpack.c.bf16 %v1452_v62, %v1452_v62  ;;  %v7913_v30 = vmin.f32 %v6049_v27, %v7762_v23 }
 0x3ba   :  { %v1009_v24 = vpack.c.bf16 %v993_v35, %v993_v35  ;;  %v5159_v34 = vpack.c.bf16 %v993_v35, %v992_v49  ;;  %v2266_v49 = vmul.f32 1.442695, %v2242_v20  ;;  %5664 = vpow2.f32 %v1821_v2 }
 0x3bb   :  { %v5661_v4 = vpop.eup %5660  ;;  %9704 = vst [vmem:[#allocation58_spill] sm:$0xff] %v7913_v30  ;;  %v7923_v46 = vmin.f32 %v7875_v6, %v7913_v30 }
 0x3bc   :  { %v2223_v13 = vpop.xlane.xlu2 %2222  ;;  %v1778_v29 = vpop.xlane.xlu0 %1777  ;;  %v1453_v43 = vmul.f32 %v5661_v4, %v9703_v38  ;;  %5447 = vst [vmem:[#allocation11 + $0x38] sm:$0xff] %v5159_v34   ;;  %v1057_v60 = vunpack.c.l.b16 %v1009_v24  ;;  %v7919_v4 = vmin.f32 %v7840_v59, %v7907_v61  ;;  %v7925_v34 = vunpack.c.l.b16 %v1468_v50  ;;  %v9708_v50 = vld [vmem:[#allocation63_spill] sm:$0xff] }
 0x3bd   :  { %v7910_v25 = vpop.eup %5662  ;;  %v1800_v35 = vsub.f32 %v7544_v5, %v1778_v29  ;;  %9706 = vst [vmem:[#allocation59_spill] sm:$0xff] %v7923_v46  ;;  %v6050_v5 = vld [vmem:[#allocation7 + $0x40] sm:$0xff]  ;;  %v7934_v59 = vpop.f32.mrf.mxu2  ;;  %5666 = vpow2.f32 %v2266_v49  ;;  %v2243_v24 = vsub.f32 %v9708_v50, %v7890_v54  ;;  %v2244_v54 = vsub.f32 %v7547_v41, %v2223_v13 }
 0x3be   :  { %2296 = vadd.xlane.f32.xlu1 %v7910_v25  ;;  %v1469_v19 = vpack.c.bf16 %v1453_v43, %v1453_v43  ;;  %v5184_v55 = vpack.c.bf16 %v1453_v43, %v1452_v62  ;;  %9705 = vst [vmem:[#allocation54_spill] sm:$0xff] %v7919_v4  ;;  %v1065_v38 = vpack.c.b16 %v1057_v60, %v1056_v16  ;;  %v9707_v62 = vld [vmem:[#allocation60_spill] sm:$0xff]  ;;  %5668 = vrcp.f32 %v1417_v51 }
 0x3bf   :  { %v7930_v20 = vmin.f32 %v6050_v5, %v7762_v23  ;;  %v1799_v43 = vsub.f32 %v9707_v62, %v7873_v22  ;;  %v1780_v6 = vpop.xlane.xlu1 %1779  ;;  %v1825_v29 = vmul.f32 1.442695, %v1800_v35  ;;  %v2270_v5 = vmul.f32 1.442695, %v2244_v54 }
 0x3c0   :  { %5451 = vst [vmem:[#allocation11 + $0x60] sm:$0xff] %v5184_v55   ;;  %v7927_v36 = vunpack.c.l.b16 %v1469_v19  ;;  %1165 = vmatmul.bf16.gmra.mxu3 %v1065_v38  ;;  %v2268_v19 = vmul.f32 1.442695, %v2243_v24  ;;  %v7946_v49 = vpop.eup %5664 }
 0x3c1   :  { %2988 = vmax.xlane.f32.xlu0 %v7923_v46  ;;  %2986 = vmax.xlane.f32.xlu2 %v7919_v4  ;;  %v7943_v27 = vmin.f32 %v2938_v3, %v7930_v20  ;;  %v1823_v60 = vmul.f32 1.442695, %v1799_v43 }
 0x3c3   :  { %v7949_v35 = vpop.eup %5666 }
 0x3c4   :  { %v1403_v22 = vpop.xlane.xlu2 %1402  ;;  %v1401_v16 = vpop.xlane.xlu0 %1400 }
 0x3c5   :  { %5670 = vrcp.f32 %v1403_v22  ;;  %v5669_v51 = vpop.eup %5668  ;;  %v2943_v38 = vpop.f32.mrf.mxu2 }
 0x3c6   :  { %5672 = vpow2.f32 %v1825_v29  ;;  %2990 = vmax.xlane.f32.xlu1 %v7943_v27 }
 0x3c7   :  { %5674 = vrcp.f32 %v1401_v16  ;;  %v2225_v3 = vpop.xlane.xlu1 %2224  ;;  %v1454_v16 = vmul.f32 %v5669_v51, %v7537_v28 }
 0x3c8   :  { %5676 = vpow2.f32 %v1823_v60 }
 0x3c9   :  { %2298 = vadd.xlane.f32.xlu0 %v7949_v35  ;;  %1853 = vadd.xlane.f32.xlu2 %v7946_v49  ;;  %5678 = vpow2.f32 %v2268_v19  ;;  %v1801_v19 = vsub.f32 %v7572_v11, %v1780_v6  ;;  %v1470_v11 = vpack.c.bf16 %v1454_v16, %v1454_v16 }
 0x3cb   :  { %v5671_v55 = vpop.eup %5670 }
 0x3cc   :  { %v7953_v62 = vpop.eup %5672  ;;  %v1782_v43 = vpop.xlane.xlu2 %1781  ;;  %v1447_v41 = vmul.f32 %v5671_v55, %v7586_v18  ;;  %v2245_v18 = vsub.f32 %v7605_v52, %v2225_v3  ;;  %v6052_v3 = vld [vmem:[#allocation7 + $0x50] sm:$0xff] }
 0x3cd   :  { %v1419_v50 = vpop.xlane.xlu0 %1418  ;;  %v5675_v13 = vpop.eup %5674 }
 0x3ce   :  { %5680 = vrcp.f32 %v1419_v50  ;;  %1857 = vadd.xlane.f32.xlu1 %v7953_v62  ;;  %v1446_v24 = vmul.f32 %v5675_v13, %v7579_v7  ;;  %v1463_v29 = vpack.c.bf16 %v1447_v41, %v1447_v41  ;;  %v7958_v22 = vpop.eup %5676 }
 0x3cf   :  { %5682 = vpow2.f32 %v2270_v5  ;;  %v7961_v60 = vpop.eup %5678  ;;  %v1827_v5 = vmul.f32 1.442695, %v1801_v19 }
 0x3d0   :  { %v1462_v54 = vpack.c.bf16 %v1446_v24, %v1446_v24  ;;  %v5169_v2 = vpack.c.bf16 %v1447_v41, %v1446_v24  ;;  %v1512_v46 = vunpack.c.l.b16 %v1463_v29  ;;  %v1405_v7 = vpop.xlane.xlu1 %1404  ;;  %v6051_v41 = vld [vmem:[#allocation7 + $0x48] sm:$0xff]  ;;  %v7974_v24 = vmin.f32 %v6052_v3, %v7762_v23 }
 0x3d1   :  { %1855 = vadd.xlane.f32.xlu0 %v7958_v22  ;;  %2300 = vadd.xlane.f32.xlu2 %v7961_v60  ;;  %v7971_v52 = vmin.f32 %v6051_v41, %v7762_v23  ;;  %v2272_v29 = vmul.f32 1.442695, %v2245_v18 }
 0x3d2   :  { %5448 = vst [vmem:[#allocation11 + $0x48] sm:$0xff] %v5169_v2   ;;  %v1511_v55 = vunpack.c.l.b16 %v1462_v54  ;;  %v7976_v2 = vpop.f32.mrf.mxu2  ;;  %v7984_v54 = vmin.f32 %v2943_v38, %v7974_v24 }
 0x3d3   :  { %9709 = vst [vmem:[#allocation57_spill] sm:$0xff] %v7971_v52  ;;  %v7981_v19 = vmin.f32 %v7934_v59, %v7971_v52 }
 0x3d4   :  { %v5681_v50 = vpop.eup %5680  ;;  %v1421_v13 = vpop.xlane.xlu2 %1420  ;;  %v1526_v28 = vpack.c.b16 %v1512_v46, %v1511_v55  ;;  %9710 = vst [vmem:[#allocation61_spill] sm:$0xff] %v7974_v24  ;;  %v1802_v55 = vsub.f32 %v7615_v15, %v1782_v43 }
 0x3d5   :  { %v2227_v51 = vpop.xlane.xlu0 %2226  ;;  %v1455_v4 = vmul.f32 %v5681_v50, %v7622_v42  ;;  %v7968_v6 = vpop.eup %5682  ;;  %5684 = vrcp.f32 %v1421_v13  ;;  %9711 = vst [vmem:[#allocation23_spill] sm:$0xff] %v7981_v19  ;;  %v7987_v50 = vunpack.c.l.b16 %v1470_v11 }
 0x3d6   :  { %1578 = vmatmul.bf16.gmra.mxu1 %v1526_v28  ;;  %2302 = vadd.xlane.f32.xlu1 %v7968_v6  ;;  %9712 = vst [vmem:[#allocation18_spill] sm:$0xff] %v7984_v54  ;;  %5686 = vpow2.f32 %v1827_v5  ;;  %v1829_v5 = vmul.f32 1.442695, %v1802_v55 }
 0x3d7   :  { %v1471_v46 = vpack.c.bf16 %v1455_v4, %v1455_v4  ;;  %v5189_v42 = vpack.c.bf16 %v1455_v4, %v1454_v16  ;;  %5688 = vpow2.f32 %v2272_v29  ;;  %v2246_v16 = vsub.f32 %v7649_v10, %v2227_v51 }
 0x3d8   :  { %v1423_v4 = vpop.xlane.xlu1 %1422 }
 0x3d9   :  { %5452 = vst [vmem:[#allocation11 + $0x68] sm:$0xff] %v5189_v42   ;;  %v7989_v18 = vunpack.c.l.b16 %v1471_v46  ;;  %2994 = vmax.xlane.f32.xlu0 %v7984_v54  ;;  %2992 = vmax.xlane.f32.xlu2 %v7981_v19  ;;  %5690 = vrcp.f32 %v1423_v4  ;;  %v2274_v29 = vmul.f32 1.442695, %v2246_v16 }
 0x3da   :  { %v8002_v3 = vpop.f32.mrf.mxu2  ;;  %5692 = vpow2.f32 %v1829_v5 }
 0x3db   :  { %v5685_v38 = vpop.eup %5684  ;;  %5694 = vrcp.f32 %v1405_v7 }
 0x3dc   :  { %v2229_v15 = vpop.xlane.xlu2 %2228  ;;  %v1456_v28 = vmul.f32 %v5685_v38, %v7652_v63  ;;  %v7998_v11 = vpop.eup %5686 }
 0x3dd   :  { %v1784_v43 = vpop.xlane.xlu0 %1783  ;;  %v8000_v41 = vpop.eup %5688  ;;  %v2247_v63 = vsub.f32 %v7679_v53, %v2229_v15 }
 0x3de   :  { %v1803_v13 = vsub.f32 %v7676_v12, %v1784_v43  ;;  %v1472_v51 = vpack.c.bf16 %v1456_v28, %v1456_v28 }
 0x3df   :  { %v5691_v42 = vpop.eup %5690  ;;  %v2276_v59 = vmul.f32 1.442695, %v2247_v63  ;;  %v6053_v63 = vld [vmem:[#allocation7 + $0x58] sm:$0xff] }
 0x3e0   :  { %v1831_v46 = vmul.f32 1.442695, %v1803_v13  ;;  %v1786_v10 = vpop.xlane.xlu1 %1785  ;;  %v1457_v12 = vmul.f32 %v5691_v42, %v7669_v56  ;;  %v8009_v7 = vunpack.c.l.b16 %v1472_v51  ;;  %v8013_v13 = vpop.eup %5692 }
 0x3e1   :  { %2304 = vadd.xlane.f32.xlu0 %v8000_v41  ;;  %1859 = vadd.xlane.f32.xlu2 %v7998_v11  ;;  %v1804_v55 = vsub.f32 %v7692_v57, %v1786_v10  ;;  %v5695_v56 = vpop.eup %5694 }
 0x3e2   :  { %5696 = vpow2.f32 %v1831_v46  ;;  %v1473_v4 = vpack.c.bf16 %v1457_v12, %v1457_v12  ;;  %v5194_v38 = vpack.c.bf16 %v1457_v12, %v1456_v28  ;;  %v2950_v28 = vpop.f32.mrf.mxu2  ;;  %v1448_v46 = vmul.f32 %v5695_v56, %v7643_v8 }
 0x3e3   :  { %5698 = vpow2.f32 %v2274_v29  ;;  %v1833_v42 = vmul.f32 1.442695, %v1804_v55  ;;  %v8026_v55 = vmin.f32 %v6053_v63, %v7762_v23 }
 0x3e4   :  { %v1409_v16 = vpop.xlane.xlu2 %1408  ;;  %5453 = vst [vmem:[#allocation11 + $0x70] sm:$0xff] %v5194_v38   ;;  %v8011_v5 = vunpack.c.l.b16 %v1473_v4  ;;  %v1464_v38 = vpack.c.bf16 %v1448_v46, %v1448_v46 }
 0x3e5   :  { %v1407_v43 = vpop.xlane.xlu0 %1406  ;;  %9713 = vst [vmem:[#allocation53_spill] sm:$0xff] %v8026_v55 }
 0x3e6   :  { %5700 = vrcp.f32 %v1407_v43  ;;  %v8031_v43 = vmin.f32 %v7976_v2, %v8026_v55  ;;  %v1513_v2 = vunpack.c.l.b16 %v1464_v38  ;;  %v6055_v55 = vld [vmem:[#allocation7 + $0x70] sm:$0xff] }
 0x3e7   :  { %5702 = vpow2.f32 %v2276_v59  ;;  %v8047_v24 = vmin.f32 %v6055_v55, %v7762_v23 }
 0x3e8   :  { %v8017_v15 = vpop.eup %5696  ;;  %v2231_v29 = vpop.xlane.xlu1 %2230  ;;  %5704 = vpow2.f32 %v1833_v42  ;;  %9714 = vst [vmem:[#allocation62_spill] sm:$0xff] %v8031_v43 }
 0x3e9   :  { %v8019_v57 = vpop.eup %5698  ;;  %1863 = vadd.xlane.f32.xlu1 %v8017_v15  ;;  %1861 = vadd.xlane.f32.xlu0 %v8013_v13  ;;  %9716 = vst [vmem:[#allocation63_spill] sm:$0xff] %v8047_v24 }
 0x3ea   :  { %2306 = vadd.xlane.f32.xlu2 %v8019_v57 }
 0x3ec   :  { %v1788_v10 = vpop.xlane.xlu2 %1787  ;;  %v5701_v51 = vpop.eup %5700 }
 0x3ed   :  { %v1425_v12 = vpop.xlane.xlu0 %1424  ;;  %v1449_v4 = vmul.f32 %v5701_v51, %v7697_v9  ;;  %v8033_v59 = vpop.eup %5702  ;;  %v2248_v9 = vsub.f32 %v7711_v33, %v2231_v29  ;;  %v6056_v29 = vld [vmem:[#allocation7 + $0x68] sm:$0xff] }
 0x3ee   :  { %5706 = vrcp.f32 %v1425_v12  ;;  %v8035_v42 = vpop.eup %5704  ;;  %v2953_v51 = vpop.f32.mrf.mxu2  ;;  %v8050_v38 = vmin.f32 %v6056_v29, %v7762_v23 }
 0x3ef   :  { %5708 = vrcp.f32 %v1409_v16  ;;  %v1465_v8 = vpack.c.bf16 %v1449_v4, %v1449_v4  ;;  %v5174_v56 = vpack.c.bf16 %v1449_v4, %v1448_v46  ;;  %v6054_v4 = vld [vmem:[#allocation7 + $0x60] sm:$0xff] }
 0x3f0   :  { %v1411_v63 = vpop.xlane.xlu1 %1410  ;;  %v8044_v19 = vmin.f32 %v6054_v4, %v7762_v23 }
 0x3f1   :  { %2308 = vadd.xlane.f32.xlu1 %v8033_v59  ;;  %2996 = vmax.xlane.f32.xlu0 %v8031_v43  ;;  %5710 = vrcp.f32 %v1411_v63  ;;  %5449 = vst [vmem:[#allocation11 + $0x50] sm:$0xff] %v5174_v56   ;;  %v1514_v12 = vunpack.c.l.b16 %v1465_v8  ;;  %v2278_v8 = vmul.f32 1.442695, %v2248_v9  ;;  %v8057_v63 = vmin.f32 %v2953_v51, %v8047_v24 }
 0x3f2   :  { %1865 = vadd.xlane.f32.xlu2 %v8035_v42  ;;  %9715 = vst [vmem:[#allocation60_spill] sm:$0xff] %v8044_v19  ;;  %v8054_v56 = vmin.f32 %v8002_v3, %v8044_v19 }
 0x3f3   :  { %v1527_v16 = vpack.c.b16 %v1514_v12, %v1513_v2  ;;  %9718 = vst [vmem:[#allocation65_spill] sm:$0xff] %v8057_v63  ;;  %v8060_v12 = vmin.f32 %v2950_v28, %v8050_v38 }
 0x3f4   :  { %v1427_v53 = vpop.xlane.xlu2 %1426  ;;  %v5707_v46 = vpop.eup %5706  ;;  %9717 = vst [vmem:[#allocation64_spill] sm:$0xff] %v8054_v56 }
 0x3f5   :  { %v8041_v54 = vpop.xlane.xlu0 %2232  ;;  %5712 = vrcp.f32 %v1427_v53  ;;  %v5709_v33 = vpop.eup %5708  ;;  %1583 = vmatmul.bf16.gmra.mxu1 %v1527_v16  ;;  %9719 = vst [vmem:[#allocation66_spill] sm:$0xff] %v8060_v12  ;;  %v1805_v53 = vsub.f32 %v7719_v39, %v1788_v10  ;;  %v1458_v55 = vmul.f32 %v5707_v46, %v7722_v21 }
 0x3f6   :  { %v1450_v16 = vmul.f32 %v5709_v33, %v7699_v45  ;;  %5714 = vpow2.f32 %v2278_v8 }
 0x3f7   :  { %v5711_v2 = vpop.eup %5710  ;;  %v1835_v28 = vmul.f32 1.442695, %v1805_v53  ;;  %v1474_v10 = vpack.c.bf16 %v1458_v55, %v1458_v55 }
 0x3f8   :  { %v1840_v9 = vpop.xlane.xlu1 %1839  ;;  %v1451_v3 = vmul.f32 %v5711_v2, %v7730_v0 }
 0x3f9   :  { %3002 = vmax.xlane.f32.xlu1 %v8057_v63  ;;  %2998 = vmax.xlane.f32.xlu0 %v8054_v56  ;;  %v1466_v63 = vpack.c.bf16 %v1450_v16, %v1450_v16  ;;  %v8073_v53 = vunpack.c.l.b16 %v1474_v10 }
 0x3fa   :  { %3000 = vmax.xlane.f32.xlu2 %v8060_v12  ;;  %v5179_v4 = vpack.c.bf16 %v1451_v3, %v1450_v16  ;;  %v1467_v39 = vpack.c.bf16 %v1451_v3, %v1451_v3  ;;  %v8080_v16 = vpop.f32.mrf.mxu3 }
 0x3fb   :  { %v5713_v51 = vpop.eup %5712 }
 0x3fc   :  { %v2283_v29 = vpop.xlane.xlu2 %2282  ;;  %v1459_v21 = vmul.f32 %v5713_v51, %v7739_v17  ;;  %5450 = vst [vmem:[#allocation11 + $0x58] sm:$0xff] %v5179_v4   ;;  %v8071_v8 = vpop.eup %5714  ;;  %v1516_v2 = vunpack.c.l.b16 %v1467_v39 }
 0x3fd   :  { %v1790_v24 = vpop.xlane.xlu0 %1789  ;;  %5716 = vrcp.f32 %v2283_v29 }
 0x3fe   :  { %v1806_v46 = vsub.f32 %v7758_v1, %v1790_v24  ;;  %v1475_v45 = vpack.c.bf16 %v1459_v21, %v1459_v21  ;;  %v5199_v33 = vpack.c.bf16 %v1459_v21, %v1458_v55  ;;  %5718 = vpow2.f32 %v1835_v28 }
 0x3ff   :  { %v1515_v1 = vunpack.c.l.b16 %v1466_v63 }
 0x400   :  { %v1837_v0 = vmul.f32 1.442695, %v1806_v46  ;;  %5454 = vst [vmem:[#allocation11 + $0x78] sm:$0xff] %v5199_v33   ;;  %v8075_v56 = vunpack.c.l.b16 %v1475_v45  ;;  %v2285_v17 = vpop.xlane.xlu1 %2284 }
 0x401   :  { %2310 = vadd.xlane.f32.xlu0 %v8071_v8  ;;  %v1528_v51 = vpack.c.b16 %v1516_v2, %v1515_v1 }
 0x402   :  { %5720 = vpow2.f32 %v1837_v0 }
 0x403   :  { %5722 = vrcp.f32 %v2285_v17  ;;  %v5717_v55 = vpop.eup %5716  ;;  %v8096_v17 = vpop.f32.mrf.mxu3 }
 0x404   :  { %v8082_v3 = vpop.xlane.xlu2 %2974  ;;  %v2330_v28 = vmul.f32 %v5717_v55, %v7760_v26  ;;  %v8087_v29 = vpop.eup %5718  ;;  %5724 = vrcp.f32 %v1840_v9 }
 0x405   :  { %v8084_v4 = vpop.xlane.xlu0 %2976  ;;  %1588 = vmatmul.bf16.gmra.mxu1 %v1528_v51 }
 0x406   :  { %v2346_v21 = vpack.c.bf16 %v2330_v28, %v2330_v28 }
 0x408   :  { %v8089_v39 = vpop.eup %5720  ;;  %v8094_v46 = vpop.xlane.xlu1 %2978  ;;  %v8098_v1 = vunpack.c.l.b16 %v2346_v21 }
 0x409   :  { %v5723_v63 = vpop.eup %5722  ;;  %1869 = vadd.xlane.f32.xlu1 %v8089_v39  ;;  %1867 = vadd.xlane.f32.xlu0 %v8087_v29 }
 0x40a   :  { %v2331_v10 = vmul.f32 %v5723_v63, %v7772_v48  ;;  %v5725_v2 = vpop.eup %5724 }
 0x40b   :  { %v1887_v55 = vmul.f32 %v5725_v2, %v7750_v40  ;;  %v8108_v12 = vpop.f32.mrf.mxu3  ;;  %v9721_v40 = vpack.c.b16 %v7927_v36, %v7925_v34  ;;  %v9722_v36 = vld [vmem:[#allocation30_spill] sm:$0xff] }
 0x40c   :  { %v2347_v45 = vpack.c.bf16 %v2331_v10, %v2331_v10  ;;  %v5244_v33 = vpack.c.bf16 %v2331_v10, %v2330_v28  ;;  %v1842_v0 = vpop.xlane.xlu2 %1841  ;;  %v9720_v28 = vld [vmem:[#allocation31_spill] sm:$0xff] }
 0x40d   :  { %v2287_v26 = vpop.xlane.xlu0 %2286  ;;  %5726 = vrcp.f32 %v1842_v0  ;;  %v1903_v10 = vpack.c.bf16 %v1887_v55, %v1887_v55 }
 0x40e   :  { %5245 = vst [vmem:[#allocation11 + $0xc0] sm:$0xff] %v5244_v33   ;;  %v8100_v9 = vunpack.c.l.b16 %v2347_v45  ;;  %5728 = vrcp.f32 %v2287_v26 }
 0x40f   :  { %v1952_v2 = vunpack.c.l.b16 %v1903_v10 }
 0x410   :  { %v1846_v51 = vpop.xlane.xlu1 %1845 }
 0x411   :  { %5730 = vrcp.f32 %v1846_v51 }
 0x412   :  { %4198 = vrot.lane.b32.xlu2 %v9720_v28, %s6256_s22 }
 0x413   :  { %v5727_v63 = vpop.eup %5726 }
 0x414   :  { %v1888_v24 = vmul.f32 %v5727_v63, %v7814_v58  ;;  %v2289_v21 = vpop.xlane.xlu2 %2288  ;;  %v5729_v45 = vpop.eup %5728 }
 0x415   :  { %v1844_v33 = vpop.xlane.xlu0 %1843  ;;  %5732 = vrcp.f32 %v2289_v21  ;;  %1593 = vmatmul.bf16.gmra.mxu1 %v9721_v40  ;;  %v2332_v48 = vmul.f32 %v5729_v45, %v7818_v31  ;;  %v8123_v45 = vpop.f32.mrf.mxu3 }
 0x416   :  { %v1904_v0 = vpack.c.bf16 %v1888_v24, %v1888_v24  ;;  %v5204_v26 = vpack.c.bf16 %v1888_v24, %v1887_v55  ;;  %5734 = vrcp.f32 %v1844_v33 }
 0x417   :  { %v5731_v51 = vpop.eup %5730  ;;  %v2348_v34 = vpack.c.bf16 %v2332_v48, %v2332_v48 }
 0x418   :  { %5205 = vst [vmem:[#allocation11 + $0x80] sm:$0xff] %v5204_v26   ;;  %v1953_v28 = vunpack.c.l.b16 %v1904_v0  ;;  %v1890_v31 = vmul.f32 %v5731_v51, %v7824_v47 }
 0x419   :  { %v2291_v58 = vpop.xlane.xlu1 %2290  ;;  %v8125_v26 = vunpack.c.l.b16 %v2348_v34 }
 0x41a   :  { %v1968_v63 = vpack.c.b16 %v1953_v28, %v1952_v2  ;;  %5736 = vrcp.f32 %v2291_v58  ;;  %v9724_v2 = vld [vmem:[#allocation34_spill] sm:$0xff]  ;;  %v9725_v28 = vpack.c.b16 %v7989_v18, %v7987_v50 }
 0x41b   :  { %v5733_v19 = vpop.eup %5732 }
 0x41c   :  { %v5735_v43 = vpop.eup %5734  ;;  %v8114_v52 = vpop.xlane.xlu2 %2980  ;;  %2016 = vmatmul.bf16.vlgmr.msrb.gmra.mxu3 %v1968_v63  ;;  %v2333_v24 = vmul.f32 %v5733_v19, %v7829_v37 }
 0x41d   :  { %v8116_v21 = vpop.xlane.xlu0 %2982  ;;  %3739 = vrot.lane.b32.xlu0 %v9722_v36, %s6254_s4  ;;  %v1889_v55 = vmul.f32 %v5735_v43, %v7827_v44 }
 0x41e   :  { %v2349_v10 = vpack.c.bf16 %v2333_v24, %v2333_v24  ;;  %v5249_v33 = vpack.c.bf16 %v2333_v24, %v2332_v48  ;;  %v1906_v48 = vpack.c.bf16 %v1890_v31, %v1890_v31  ;;  %v8140_v24 = vpop.f32.mrf.mxu3 }
 0x41f   :  { %v5209_v0 = vpack.c.bf16 %v1890_v31, %v1889_v55  ;;  %v1905_v44 = vpack.c.bf16 %v1889_v55, %v1889_v55  ;;  %v2249_v31 = vsub.f32 %v7742_v14, %v8041_v54 }
 0x420   :  { %5462 = vst [vmem:[#allocation11 + $0xc8] sm:$0xff] %v5249_v33   ;;  %v8127_v40 = vunpack.c.l.b16 %v2349_v10  ;;  %v5737_v51 = vpop.eup %5736  ;;  %v1955_v63 = vunpack.c.l.b16 %v1906_v48  ;;  %v9726_v33 = vld [vmem:[#allocation36_spill] sm:$0xff] }
 0x421   :  { %v8131_v37 = vpop.xlane.xlu1 %2984  ;;  %5455 = vst [vmem:[#allocation11 + $0x88] sm:$0xff] %v5209_v0   ;;  %v1954_v58 = vunpack.c.l.b16 %v1905_v44  ;;  %v2334_v55 = vmul.f32 %v5737_v51, %v7843_v32  ;;  %v9727_v44 = vld [vmem:[#allocation19_spill] sm:$0xff]  ;;  %v2280_v48 = vmul.f32 1.442695, %v2249_v31  ;;  %v9728_v32 = vld [vmem:[#allocation32_spill] sm:$0xff] }
 0x422   :  { %4182 = vrot.lane.b32.xlu1 %v9722_v36, %s6256_s22  ;;  %9723 = vst [vmem:[#allocation31_spill] sm:$0xff] %v8131_v37 }
 0x423   :  { %v1969_v36 = vpack.c.b16 %v1955_v63, %v1954_v58 }
 0x424   :  { %v1848_v19 = vpop.xlane.xlu2 %1847 }
 0x425   :  { %v2293_v43 = vpop.xlane.xlu0 %2292  ;;  %3741 = vrot.lane.b32.xlu0 %v9724_v2, %s6254_s4  ;;  %1598 = vmatmul.bf16.gmra.mxu1 %v9725_v28 }
 0x426   :  { %5738 = vrcp.f32 %v2293_v43  ;;  %v2350_v43 = vpack.c.bf16 %v2334_v55, %v2334_v55 }
 0x427   :  { %5740 = vrcp.f32 %v1848_v19 }
 0x428   :  { %v8153_v58 = vunpack.c.l.b16 %v2350_v43 }
 0x429   :  { %v1852_v34 = vpop.xlane.xlu1 %1851 }
 0x42a   :  { %4184 = vrot.lane.b32.xlu1 %v9724_v2, %s6256_s22 }
 0x42c   :  { %v2295_v10 = vpop.xlane.xlu2 %2294  ;;  %2021 = vmatmul.bf16.gmra.mxu3 %v1969_v36  ;;  %v5739_v18 = vpop.eup %5738 }
 0x42d   :  { %v1850_v50 = vpop.xlane.xlu0 %1849  ;;  %5742 = vrcp.f32 %v2295_v10  ;;  %3743 = vrot.lane.b32.xlu0 %v9726_v33, %s6254_s4  ;;  %v5741_v0 = vpop.eup %5740  ;;  %v2335_v19 = vmul.f32 %v5739_v18, %v9727_v44  ;;  %v9731_v18 = vld [vmem:[#allocation38_spill] sm:$0xff] }
 0x42e   :  { %5744 = vrcp.f32 %v1850_v50  ;;  %v1891_v54 = vmul.f32 %v5741_v0, %v9728_v32  ;;  %v8157_v36 = vpop.f32.mrf.mxu3 }
 0x42f   :  { %v2351_v2 = vpack.c.bf16 %v2335_v19, %v2335_v19  ;;  %v5254_v28 = vpack.c.bf16 %v2335_v19, %v2334_v55  ;;  %v9733_v19 = vld [vmem:[#allocation37_spill] sm:$0xff] }
 0x430   :  { %v1907_v44 = vpack.c.bf16 %v1891_v54, %v1891_v54 }
 0x431   :  { %v2297_v14 = vpop.xlane.xlu1 %2296  ;;  %5463 = vst [vmem:[#allocation11 + $0xd0] sm:$0xff] %v5254_v28   ;;  %v8155_v51 = vunpack.c.l.b16 %v2351_v2  ;;  %v9734_v2 = vpack.c.b16 %v8011_v5, %v8009_v7 }
 0x432   :  { %4186 = vrot.lane.b32.xlu1 %v9726_v33, %s6256_s22  ;;  %5746 = vrcp.f32 %v2297_v14  ;;  %v9732_v33 = vld [vmem:[#allocation56_spill] sm:$0xff]  ;;  %v1956_v50 = vunpack.c.l.b16 %v1907_v44 }
 0x433   :  { %v5743_v63 = vpop.eup %5742  ;;  %5748 = vpow2.f32 %v2280_v48 }
 0x434   :  { %v5745_v10 = vpop.eup %5744  ;;  %v8159_v31 = vpop.xlane.xlu2 %2986  ;;  %v2336_v43 = vmul.f32 %v5743_v63, %v9733_v19  ;;  %5750 = vrcp.f32 %v1852_v34  ;;  %v9735_v63 = vld [vmem:[#allocation47_spill] sm:$0xff] }
 0x435   :  { %9729 = vst [vmem:[#allocation30_spill] sm:$0xff] %v8159_v31  ;;  %v8161_v55 = vpop.xlane.xlu0 %2988  ;;  %3745 = vrot.lane.b32.xlu0 %v9731_v18, %s6254_s4  ;;  %v1892_v0 = vmul.f32 %v5745_v10, %v9732_v33  ;;  %1603 = vmatmul.bf16.gmra.mxu1 %v9734_v2  ;;  %v3006_v33 = vsub.f32 %v9735_v63, %v8082_v3 }
 0x436   :  { %9730 = vst [vmem:[#allocation34_spill] sm:$0xff] %v8161_v55  ;;  %v2352_v31 = vpack.c.bf16 %v2336_v43, %v2336_v43  ;;  %v8180_v2 = vpop.f32.mrf.mxu3 }
 0x437   :  { %v1908_v48 = vpack.c.bf16 %v1892_v0, %v1892_v0  ;;  %v5214_v28 = vpack.c.bf16 %v1892_v0, %v1891_v54 }
 0x438   :  { %v5747_v14 = vpop.eup %5746 }
 0x439   :  { %v8172_v32 = vpop.xlane.xlu1 %2990  ;;  %5456 = vst [vmem:[#allocation11 + $0x90] sm:$0xff] %v5214_v28   ;;  %v1957_v47 = vunpack.c.l.b16 %v1908_v48  ;;  %v2337_v55 = vmul.f32 %v5747_v14, %v7910_v25  ;;  %v8175_v10 = vpop.eup %5748  ;;  %v8182_v25 = vunpack.c.l.b16 %v2352_v31  ;;  %v6057_v28 = vld [vmem:[#allocation7 + $0x78] sm:$0xff] }
 0x43a   :  { %v5751_v19 = vpop.eup %5750  ;;  %v2955_v48 = vpop.f32.mrf.mxu2  ;;  %v8187_v3 = vmin.f32 %v6057_v28, %v7762_v23 }
 0x43b   :  { %2312 = vadd.xlane.f32.xlu2 %v8175_v10  ;;  %v1970_v7 = vpack.c.b16 %v1957_v47, %v1956_v50  ;;  %v2353_v5 = vpack.c.bf16 %v2337_v55, %v2337_v55  ;;  %v5259_v34 = vpack.c.bf16 %v2337_v55, %v2336_v43  ;;  %v3022_v47 = vmul.f32 1.442695, %v3006_v33  ;;  %v9737_v50 = vld [vmem:[#allocation39_spill] sm:$0xff] }
 0x43c   :  { %v1854_v54 = vpop.xlane.xlu2 %1853  ;;  %9736 = vst [vmem:[#allocation36_spill] sm:$0xff] %v8187_v3  ;;  %v1893_v43 = vmul.f32 %v5751_v19, %v9737_v50  ;;  %v8193_v14 = vmin.f32 %v2955_v48, %v8187_v3 }
 0x43d   :  { %v2299_v0 = vpop.xlane.xlu0 %2298  ;;  %5752 = vrcp.f32 %v1854_v54  ;;  %2026 = vmatmul.bf16.gmra.mxu3 %v1970_v7  ;;  %5464 = vst [vmem:[#allocation11 + $0xd8] sm:$0xff] %v5259_v34   ;;  %v8184_v44 = vunpack.c.l.b16 %v2353_v5  ;;  %v8195_v7 = vpop.f32.mrf.mxu0 }
 0x43e   :  { %5754 = vrcp.f32 %v2299_v0  ;;  %9738 = vst [vmem:[#allocation19_spill] sm:$0xff] %v8193_v14  ;;  %v1909_v34 = vpack.c.bf16 %v1893_v43, %v1893_v43  ;;  %v9739_v0 = vpack.c.b16 %v8075_v56, %v8073_v53  ;;  %v8202_v28 = vpop.f32.mrf.mxu3  ;;  %v9740_v56 = vld [vmem:[#allocation48_spill] sm:$0xff] }
 0x43f   :  { %5756 = vpow2.f32 %v3022_v47  ;;  %v3007_v53 = vsub.f32 %v9740_v56, %v8084_v4 }
 0x440   :  { %v1958_v47 = vunpack.c.l.b16 %v1909_v34 }
 0x441   :  { %v1858_v63 = vpop.xlane.xlu1 %1857  ;;  %v3024_v4 = vmul.f32 1.442695, %v3007_v53 }
 0x442   :  { %5758 = vrcp.f32 %v1858_v63 }
 0x443   :  { %v5753_v31 = vpop.eup %5752  ;;  %3004 = vmax.xlane.f32.xlu2 %v8193_v14 }
 0x444   :  { %v2301_v23 = vpop.xlane.xlu2 %2300  ;;  %v1894_v33 = vmul.f32 %v5753_v31, %v7946_v49  ;;  %v5755_v54 = vpop.eup %5754 }
 0x445   :  { %v1856_v5 = vpop.xlane.xlu0 %1855  ;;  %5760 = vrcp.f32 %v2301_v23  ;;  %1608 = vmatmul.bf16.gmra.mxu1 %v9739_v0  ;;  %v2338_v63 = vmul.f32 %v5755_v54, %v7949_v35  ;;  %v8205_v55 = vpop.eup %5756 }
 0x446   :  { %5762 = vrcp.f32 %v1856_v5  ;;  %v1910_v19 = vpack.c.bf16 %v1894_v33, %v1894_v33  ;;  %v5219_v48 = vpack.c.bf16 %v1894_v33, %v1893_v43 }
 0x447   :  { %v2354_v34 = vpack.c.bf16 %v2338_v63, %v2338_v63 }
 0x448   :  { %5457 = vst [vmem:[#allocation11 + $0x98] sm:$0xff] %v5219_v48   ;;  %v1959_v50 = vunpack.c.l.b16 %v1910_v19  ;;  %v5759_v49 = vpop.eup %5758  ;;  %v3387_v19 = vpop.f32.mrf.mxu0 }
 0x449   :  { %v2303_v0 = vpop.xlane.xlu1 %2302  ;;  %v1896_v54 = vmul.f32 %v5759_v49, %v7953_v62  ;;  %v8219_v56 = vunpack.c.l.b16 %v2354_v34 }
 0x44a   :  { %v1971_v31 = vpack.c.b16 %v1959_v50, %v1958_v47  ;;  %v8217_v50 = vpop.f32.mrf.mxu1  ;;  %5764 = vrcp.f32 %v2303_v0 }
 0x44b   :  { %v5761_v14 = vpop.eup %5760  ;;  %3054 = vadd.xlane.f32.xlu2 %v8205_v55  ;;  %5766 = vpow2.f32 %v3024_v4 }
 0x44c   :  { %v5763_v23 = vpop.eup %5762  ;;  %v8210_v5 = vpop.xlane.xlu2 %2992  ;;  %v2339_v33 = vmul.f32 %v5761_v14, %v7961_v60  ;;  %v9743_v60 = vld [vmem:[#allocation50_spill] sm:$0xff] }
 0x44d   :  { %9741 = vst [vmem:[#allocation32_spill] sm:$0xff] %v8210_v5  ;;  %v8212_v43 = vpop.xlane.xlu0 %2994  ;;  %2031 = vmatmul.bf16.gmra.mxu3 %v1971_v31  ;;  %v1895_v35 = vmul.f32 %v5763_v23, %v7958_v22  ;;  %v8224_v14 = vmin.f32 %v3387_v19, %v9743_v60  ;;  %v8226_v31 = vpop.f32.mrf.mxu3  ;;  %v1912_v23 = vpack.c.bf16 %v1896_v54, %v1896_v54 }
 0x44e   :  { %9742 = vst [vmem:[#allocation38_spill] sm:$0xff] %v8212_v43  ;;  %v2355_v48 = vpack.c.bf16 %v2339_v33, %v2339_v33  ;;  %v5264_v47 = vpack.c.bf16 %v2339_v33, %v2338_v63  ;;  %v9744_v33 = vpack.c.b16 %v8100_v9, %v8098_v1  ;;  %v9745_v1 = vld [vmem:[#allocation49_spill] sm:$0xff] }
 0x44f   :  { %v5224_v3 = vpack.c.bf16 %v1896_v54, %v1895_v35  ;;  %v1911_v22 = vpack.c.bf16 %v1895_v35, %v1895_v35  ;;  %v8244_v9 = vmin.f32 %v8195_v7, %v9745_v1 }
 0x450   :  { %5465 = vst [vmem:[#allocation11 + $0xe0] sm:$0xff] %v5264_v47   ;;  %v8221_v43 = vunpack.c.l.b16 %v2355_v48  ;;  %v5765_v53 = vpop.eup %5764 }
 0x451   :  { %5458 = vst [vmem:[#allocation11 + $0xa0] sm:$0xff] %v5224_v3   ;;  %v1960_v34 = vunpack.c.l.b16 %v1911_v22  ;;  %v1961_v3 = vunpack.c.l.b16 %v1912_v23  ;;  %v2340_v19 = vmul.f32 %v5765_v53, %v7968_v6  ;;  %v8237_v48 = vpop.eup %5766 }
 0x452   :  { %v8234_v0 = vpop.f32.mrf.mxu1 }
 0x453   :  { %3443 = vmax.xlane.f32.xlu2 %v8224_v14  ;;  %v1972_v54 = vpack.c.b16 %v1961_v3, %v1960_v34 }
 0x454   :  { %v1860_v63 = vpop.xlane.xlu2 %1859 }
 0x455   :  { %v2305_v49 = vpop.xlane.xlu0 %2304  ;;  %2459 = vmatmul.bf16.vlgmr.msra.gmra.mxu1 %v9744_v33  ;;  %v8239_v35 = vpop.f32.mrf.mxu3 }
 0x456   :  { %5768 = vrcp.f32 %v2305_v49  ;;  %v2356_v49 = vpack.c.bf16 %v2340_v19, %v2340_v19 }
 0x457   :  { %5770 = vrcp.f32 %v1860_v63 }
 0x458   :  { %v8248_v34 = vunpack.c.l.b16 %v2356_v49 }
 0x45a   :  { %v1579_v33 = vpop.f32.mrf.mxu1 }
 0x45c   :  { %3056 = vadd.xlane.f32.xlu1 %v8237_v48  ;;  %v5769_v47 = vpop.eup %5768  ;;  %v1864_v4 = vpop.xlane.xlu1 %1863 }
 0x45d   :  { %v1862_v62 = vpop.xlane.xlu0 %1861  ;;  %v2307_v22 = vpop.xlane.xlu2 %2306  ;;  %2036 = vmatmul.bf16.gmra.mxu3 %v1972_v54  ;;  %v2341_v63 = vmul.f32 %v5769_v47, %v8000_v41 }
 0x45e   :  { %5772 = vrcp.f32 %v2307_v22  ;;  %v5771_v6 = vpop.eup %5770 }
 0x45f   :  { %5774 = vrcp.f32 %v1862_v62  ;;  %3441 = vmax.xlane.f32.xlu0 %v8244_v9  ;;  %v2357_v23 = vpack.c.bf16 %v2341_v63, %v2341_v63  ;;  %v5269_v53 = vpack.c.bf16 %v2341_v63, %v2340_v19  ;;  %v1897_v7 = vmul.f32 %v5771_v6, %v7998_v11  ;;  %v8257_v19 = vpop.f32.mrf.mxu3 }
 0x460   :  { %5776 = vrcp.f32 %v1864_v4  ;;  %v9747_v63 = vpack.c.b16 %v8127_v40, %v8125_v26 }
 0x461   :  { %5466 = vst [vmem:[#allocation11 + $0xe8] sm:$0xff] %v5269_v53   ;;  %v8250_v3 = vunpack.c.l.b16 %v2357_v23  ;;  %v1913_v49 = vpack.c.bf16 %v1897_v7, %v1897_v7 }
 0x462   :  { %v1581_v1 = vpop.f32.mrf.mxu1 }
 0x463   :  { %v1962_v54 = vunpack.c.l.b16 %v1913_v49 }
 0x464   :  { %v5773_v41 = vpop.eup %5772  ;;  %v2309_v47 = vpop.xlane.xlu1 %2308 }
 0x465   :  { %v8255_v22 = vpop.xlane.xlu0 %2996  ;;  %v5775_v62 = vpop.eup %5774  ;;  %5778 = vrcp.f32 %v2309_v47  ;;  %2464 = vmatmul.bf16.gmra.mxu1 %v9747_v63  ;;  %v2342_v4 = vmul.f32 %v5773_v41, %v8019_v57 }
 0x466   :  { %9746 = vst [vmem:[#allocation56_spill] sm:$0xff] %v8255_v22  ;;  %v1866_v60 = vpop.xlane.xlu2 %1865  ;;  %v1898_v11 = vmul.f32 %v5775_v62, %v8013_v13  ;;  %v5777_v53 = vpop.eup %5776 }
 0x467   :  { %5780 = vrcp.f32 %v1866_v60  ;;  %v2358_v40 = vpack.c.bf16 %v2342_v4, %v2342_v4  ;;  %v1899_v57 = vmul.f32 %v5777_v53, %v8017_v15  ;;  %v8273_v49 = vpop.f32.mrf.mxu3 }
 0x468   :  { %v1914_v6 = vpack.c.bf16 %v1898_v11, %v1898_v11  ;;  %v5229_v23 = vpack.c.bf16 %v1898_v11, %v1897_v7 }
 0x469   :  { %v1915_v53 = vpack.c.bf16 %v1899_v57, %v1899_v57 }
 0x46a   :  { %5459 = vst [vmem:[#allocation11 + $0xa8] sm:$0xff] %v5229_v23   ;;  %v1963_v5 = vunpack.c.l.b16 %v1914_v6  ;;  %v9751_v23 = vpack.c.b16 %v8155_v51, %v8153_v58 }
 0x46b   :  { %v5779_v47 = vpop.eup %5778  ;;  %2516 = vrot.lane.b32.xlu2 %v8217_v50, %s6256_s22  ;;  %v8275_v50 = vunpack.c.l.b16 %v2358_v40 }
 0x46c   :  { %v1973_v22 = vpack.c.b16 %v1963_v5, %v1962_v54  ;;  %v2343_v13 = vmul.f32 %v5779_v47, %v8033_v59  ;;  %v8281_v54 = vpop.xlane.xlu1 %3002 }
 0x46d   :  { %v5781_v60 = vpop.eup %5780  ;;  %v8266_v26 = vpop.xlane.xlu0 %2998  ;;  %9750 = vst [vmem:[#allocation39_spill] sm:$0xff] %v8281_v54 }
 0x46e   :  { %9748 = vst [vmem:[#allocation37_spill] sm:$0xff] %v8266_v26  ;;  %v8269_v62 = vpop.xlane.xlu2 %3000  ;;  %v1900_v7 = vmul.f32 %v5781_v60, %v8035_v42  ;;  %2041 = vmatmul.bf16.gmra.mxu3 %v1973_v22  ;;  %v2359_v41 = vpack.c.bf16 %v2343_v13, %v2343_v13  ;;  %v5274_v63 = vpack.c.bf16 %v2343_v13, %v2342_v4 }
 0x46f   :  { %9749 = vst [vmem:[#allocation47_spill] sm:$0xff] %v8269_v62  ;;  %v8296_v60 = vpop.f32.mrf.mxu3 }
 0x470   :  { %v5234_v11 = vpack.c.bf16 %v1900_v7, %v1899_v57  ;;  %5467 = vst [vmem:[#allocation11 + $0xf0] sm:$0xff] %v5274_v63   ;;  %v8277_v5 = vunpack.c.l.b16 %v2359_v41  ;;  %v1916_v22 = vpack.c.bf16 %v1900_v7, %v1900_v7 }
 0x472   :  { %5460 = vst [vmem:[#allocation11 + $0xb0] sm:$0xff] %v5234_v11   ;;  %v2417_v59 = vpack.c.b16 %v8277_v5, %v8275_v50  ;;  %v8283_v15 = vpop.f32.mrf.mxu1  ;;  %v1965_v47 = vunpack.c.l.b16 %v1916_v22 }
 0x473   :  { %4188 = vrot.lane.b32.xlu2 %v9731_v18, %s6256_s22  ;;  %2518 = vrot.lane.b32.xlu0 %v8234_v0, %s6256_s22  ;;  %v1964_v18 = vunpack.c.l.b16 %v1915_v53  ;;  %v9752_v0 = vld [vmem:[#allocation40_spill] sm:$0xff] }
 0x475   :  { %2520 = vrot.lane.b32.xlu1 %v1579_v33, %s6256_s22  ;;  %v8290_v42 = vpop.xlane.xlu0 %2310  ;;  %2469 = vmatmul.bf16.gmra.mxu1 %v9751_v23  ;;  %v1974_v40 = vpack.c.b16 %v1965_v47, %v1964_v18 }
 0x476   :  { %v4199_v6 = vpop.permute.xlu2 %4198 }
 0x477   :  { %v4239_v4 = vsel %vm736_vm0, %v4199_v6, 0  ;;  %v8306_v11 = vpop.f32.mrf.mxu3  ;;  %v9753_v6 = vpack.c.b16 %v8184_v44, %v8182_v25  ;;  %v3390_v25 = vpop.f32.mrf.mxu0  ;;  %v9755_v44 = vpack.c.b16 %v8221_v43, %v8219_v56 }
 0x478   :  { %4269 = vmatpush.bf16.xpose.msra.mxu0 %v4239_v4 }
 0x47a   :  { %v1586_v13 = vpop.f32.mrf.mxu1 }
 0x47b   :  { %4190 = vrot.lane.b32.xlu2 %v9752_v0, %s6256_s22 }
 0x47c   :  { %v1870_v33 = vpop.xlane.xlu1 %1869 }
 0x47d   :  { %5782 = vrcp.f32 %v1870_v33  ;;  %3747 = vrot.lane.b32.xlu1 %v9752_v0, %s6254_s4  ;;  %v1868_v58 = vpop.xlane.xlu0 %1867 }
 0x47e   :  { %5784 = vrcp.f32 %v1868_v58  ;;  %2046 = vmatmul.bf16.gmra.mxu3 %v1974_v40  ;;  %v9756_v40 = vld [vmem:[#allocation45_spill] sm:$0xff] }
 0x47f   :  { %v8325_v58 = vmin.f32 %v3390_v25, %v9756_v40  ;;  %5786 = vrcp.f32 %v8290_v42 }
 0x482   :  { %v1589_v7 = vpop.f32.mrf.mxu1 }
 0x483   :  { %v5783_v51 = vpop.eup %5782  ;;  %2522 = vrot.lane.b32.xlu2 %v1581_v1, %s6256_s22 }
 0x484   :  { %v5785_v57 = vpop.eup %5784  ;;  %v1902_v41 = vmul.f32 %v5783_v51, %v8089_v39  ;;  %v8314_v39 = vpop.f32.mrf.mxu3 }
 0x485   :  { %2526 = vrot.lane.b32.xlu1 %v1586_v13, %s6256_s22  ;;  %v1901_v63 = vmul.f32 %v5785_v57, %v8087_v29  ;;  %2474 = vmatmul.bf16.gmra.mxu1 %v9753_v6  ;;  %9754 = vst [vmem:[#allocation48_spill] sm:$0xff] %v8314_v39  ;;  %v9758_v6 = vpack.c.b16 %v8250_v3, %v8248_v34  ;;  %v6058_v39 = vld [vmem:[#allocation2 + $0x8] sm:$0xff] }
 0x486   :  { %v1918_v22 = vpack.c.bf16 %v1902_v41, %v1902_v41 }
 0x487   :  { %v1917_v23 = vpack.c.bf16 %v1901_v63, %v1901_v63  ;;  %v5239_v4 = vpack.c.bf16 %v1902_v41, %v1901_v63  ;;  %v3392_v41 = vpop.f32.mrf.mxu0  ;;  %v9757_v63 = vld [vmem:[#allocation22_spill] sm:$0xff] }
 0x488   :  { %v1967_v53 = vunpack.c.l.b16 %v1918_v22  ;;  %v8331_v22 = vmin.f32 %v3392_v41, %v9757_v63 }
 0x489   :  { %5461 = vst [vmem:[#allocation11 + $0xb8] sm:$0xff] %v5239_v4   ;;  %v1966_v47 = vunpack.c.l.b16 %v1917_v23 }
 0x48a   :  { %v8311_v1 = vpop.f32.mrf.mxu1 }
 0x48b   :  { %v1975_v18 = vpack.c.b16 %v1967_v53, %v1966_v47  ;;  %2528 = vrot.lane.b32.xlu2 %v1589_v7, %s6256_s22 }
 0x48c   :  { %v8322_v33 = vpop.f32.mrf.mxu3 }
 0x48e   :  { %2051 = vmatmul.bf16.gmra.mxu3 %v1975_v18 }
 0x48f   :  { %v3740_v29 = vpop.permute.xlu0 %3739  ;;  %v3395_v50 = vpop.f32.mrf.mxu0 }
 0x490   :  { %5081 = vmatmul.msk.bf16.vlgmr.msra.gmra.mxu2 %vm736_vm0, %v3740_v29  ;;  %v5787_v29 = vpop.eup %5786 }
 0x491   :  { %v2344_v42 = vmul.f32 %v5787_v29, %v8071_v8  ;;  %v9760_v8 = vld [vmem:[#allocation43_spill] sm:$0xff] }
 0x492   :  { %v1594_v13 = vpop.f32.mrf.mxu1 }
 0x493   :  { %2532 = vrot.lane.b32.xlu1 %v1594_v13, %s6256_s22 }
 0x494   :  { %v4183_v0 = vpop.permute.xlu1 %4182 }
 0x495   :  { %5089 = vmatmul.msk.bf16.vlgmr.msra.gmra.mxu0 %vm736_vm0, %v4183_v0  ;;  %2479 = vmatmul.bf16.gmra.mxu1 %v9755_v44 }
 0x497   :  { %v3742_v57 = vpop.permute.xlu0 %3741 }
 0x49a   :  { %v1596_v51 = vpop.f32.mrf.mxu1 }
 0x49b   :  { %2534 = vrot.lane.b32.xlu2 %v1596_v51, %s6256_s22 }
 0x49c   :  { %v4185_v43 = vpop.permute.xlu1 %4184 }
 0x49d   :  { %3445 = vmax.xlane.f32.xlu0 %v8325_v58 }
 0x49f   :  { %v2017_v7 = vpop.f32.mrf.mxu3  ;;  %v3744_v47 = vpop.permute.xlu0 %3743 }
 0x4a0   :  { %5082 = vmatmul.msk.bf16.gmra.mxu2 %vm736_vm0, %v3742_v57 }
 0x4a2   :  { %v8333_v56 = vpop.f32.mrf.mxu1 }
 0x4a4   :  { %v4187_v18 = vpop.permute.xlu1 %4186 }
 0x4a5   :  { %5090 = vmatmul.msk.bf16.gmra.mxu0 %vm736_vm0, %v4185_v43  ;;  %3447 = vmax.xlane.f32.xlu0 %v8331_v22 }
 0x4a6   :  { %2484 = vmatmul.bf16.gmra.mxu1 %v9758_v6  ;;  %v2360_v6 = vpack.c.bf16 %v2344_v42, %v2344_v42 }
 0x4a7   :  { %v2019_v23 = vpop.f32.mrf.mxu3 }
 0x4a8   :  { %2582 = vrot.lane.b32.xlu1 %v2019_v23, %s6254_s4  ;;  %v3746_v23 = vpop.permute.xlu0 %3745 }
 0x4aa   :  { %v1601_v4 = vpop.f32.mrf.mxu1 }
 0x4ae   :  { %v2313_v53 = vpop.xlane.xlu2 %2312 }
 0x4af   :  { %5788 = vrcp.f32 %v2313_v53  ;;  %v2022_v13 = vpop.f32.mrf.mxu3 }
 0x4b0   :  { %2538 = vrot.lane.b32.xlu1 %v1601_v4, %s6256_s22  ;;  %5083 = vmatmul.msk.bf16.gmra.mxu2 %vm736_vm0, %v3744_v47 }
 0x4b2   :  { %v1604_v0 = vpop.f32.mrf.mxu1 }
 0x4b5   :  { %5091 = vmatmul.msk.bf16.gmra.mxu0 %vm736_vm0, %v4187_v18  ;;  %v5789_v34 = vpop.eup %5788 }
 0x4b6   :  { %2489 = vmatmul.bf16.gmra.mxu1 %v2417_v59  ;;  %v8348_v3 = vpop.xlane.xlu2 %3004  ;;  %v2345_v25 = vmul.f32 %v5789_v34, %v8175_v10  ;;  %v2409_v10 = vunpack.c.l.b16 %v2360_v6  ;;  %v9761_v59 = vld [vmem:[#allocation33_spill] sm:$0xff] }
 0x4b7   :  { %9759 = vst [vmem:[#allocation40_spill] sm:$0xff] %v8348_v3  ;;  %v2024_v41 = vpop.f32.mrf.mxu3  ;;  %v8360_v4 = vmin.f32 %v3395_v50, %v9761_v59  ;;  %v3397_v50 = vpop.f32.mrf.mxu0 }
 0x4b8   :  { %v5279_v44 = vpack.c.bf16 %v2345_v25, %v2344_v42  ;;  %v2361_v57 = vpack.c.bf16 %v2345_v25, %v2345_v25 }
 0x4b9   :  { %2524 = vrot.lane.b32.xlu0 %v8283_v15, %s6256_s22  ;;  %9762 = vst [vmem:[#allocation43_spill] sm:$0xff] %v8360_v4 }
 0x4ba   :  { %5468 = vst [vmem:[#allocation11 + $0xf8] sm:$0xff] %v5279_v44   ;;  %v8354_v51 = vpop.f32.mrf.mxu1  ;;  %v2410_v5 = vunpack.c.l.b16 %v2361_v57 }
 0x4bc   :  { %v2418_v53 = vpack.c.b16 %v2410_v5, %v2409_v10 }
 0x4be   :  { %v3055_v43 = vpop.xlane.xlu2 %3054 }
 0x4bf   :  { %5790 = vrcp.f32 %v3055_v43 }
 0x4c0   :  { %5084 = vmatmul.msk.bf16.gmra.mxu2 %vm736_vm0, %v3746_v23  ;;  %v2027_v18 = vpop.f32.mrf.mxu3 }
 0x4c1   :  { %3749 = vrot.lane.b32.xlu0 %v9760_v8, %s6254_s4 }
 0x4c2   :  { %v1609_v15 = vpop.f32.mrf.mxu1 }
 0x4c4   :  { %3449 = vmax.xlane.f32.xlu2 %v8360_v4 }
 0x4c5   :  { %v5791_v25 = vpop.eup %5790 }
 0x4c6   :  { %2494 = vmatmul.bf16.gmra.mxu1 %v2418_v53  ;;  %v8363_v47 = vpop.xlane.xlu2 %3443  ;;  %v3102_v57 = vmul.f32 %v5791_v25, %v8205_v55 }
 0x4c8   :  { %v2029_v44 = vpop.f32.mrf.mxu3  ;;  %v3118_v5 = vpack.c.bf16 %v3102_v57, %v3102_v57 }
 0x4c9   :  { %2530 = vrot.lane.b32.xlu0 %v8311_v1, %s6256_s22  ;;  %v9763_v1 = vld [vmem:[#allocation41_spill] sm:$0xff] }
 0x4ca   :  { %v1611_v29 = vpop.f32.mrf.mxu1  ;;  %v8374_v53 = vmin.f32 %v3397_v50, %v9763_v1 }
 0x4cc   :  { %9764 = vst [vmem:[#allocation67_spill] sm:$0xff] %v8374_v53 }
 0x4ce   :  { %v8367_v34 = vpop.permute.xlu2 %2516 }
 0x4cf   :  { %v3057_v42 = vpop.xlane.xlu1 %3056 }
 0x4d0   :  { %5792 = vrcp.f32 %v3057_v42  ;;  %v2032_v42 = vpop.f32.mrf.mxu3 }
 0x4d1   :  { %2580 = vrot.lane.b32.xlu0 %v2017_v7, %s6254_s4  ;;  %v3167_v7 = vunpack.c.l.b16 %v3118_v5 }
 0x4d2   :  { %v2460_v6 = vpop.f32.mrf.mxu1 }
 0x4d6   :  { %v5793_v23 = vpop.eup %5792  ;;  %v4189_v10 = vpop.permute.xlu2 %4188 }
 0x4d7   :  { %v3103_v43 = vmul.f32 %v5793_v23, %v8237_v48  ;;  %5092 = vmatmul.msk.bf16.gmra.mxu0 %vm736_vm0, %v4189_v10 }
 0x4d8   :  { %v2034_v23 = vpop.f32.mrf.mxu3 }
 0x4d9   :  { %v3119_v59 = vpack.c.bf16 %v3103_v43, %v3103_v43  ;;  %v5284_v3 = vpack.c.bf16 %v3103_v43, %v3102_v57  ;;  %2536 = vrot.lane.b32.xlu0 %v8333_v56, %s6256_s22 }
 0x4da   :  { %3451 = vmax.xlane.f32.xlu1 %v8374_v53  ;;  %v2462_v25 = vpop.f32.mrf.mxu1 }
 0x4db   :  { %5285 = vst [vmem:[#allocation11 + $0x100] sm:$0xff] %v5284_v3   ;;  %v3168_v55 = vunpack.c.l.b16 %v3119_v59  ;;  %v9765_v3 = vld [vmem:[#allocation35_spill] sm:$0xff] }
 0x4dc   :  { %2584 = vrot.lane.b32.xlu2 %v2022_v13, %s6254_s4 }
 0x4dd   :  { %v3183_v54 = vpack.c.b16 %v3168_v55, %v3167_v7 }
 0x4de   :  { %v4191_v57 = vpop.permute.xlu2 %4190 }
 0x4df   :  { %3255 = vmatmul.bf16.vlgmr.msra.gmra.mxu3 %v3183_v54 }
 0x4e0   :  { %v2037_v54 = vpop.f32.mrf.mxu3 }
 0x4e1   :  { %4192 = vrot.lane.b32.xlu0 %v9760_v8, %s6256_s22  ;;  %v9766_v8 = vld [vmem:[#allocation42_spill] sm:$0xff] }
 0x4e2   :  { %v2465_v48 = vpop.f32.mrf.mxu1 }
 0x4e4   :  { %2540 = vrot.lane.b32.xlu2 %v1604_v0, %s6256_s22 }
 0x4e6   :  { %v8415_v7 = vpop.permute.xlu2 %2522 }
 0x4e7   :  { %v8383_v56 = vpop.permute.xlu1 %2520  ;;  %5093 = vmatmul.msk.bf16.gmra.mxu0 %vm736_vm0, %v4191_v57 }
 0x4e8   :  { %v2039_v0 = vpop.f32.mrf.mxu3 }
 0x4e9   :  { %3680 = vrot.lane.b32.xlu0 %v9765_v3, %s6255_s21 }
 0x4ea   :  { %v2467_v59 = vpop.f32.mrf.mxu1 }
 0x4ec   :  { %2590 = vrot.lane.b32.xlu2 %v2029_v44, %s6254_s4 }
 0x4ee   :  { %v8426_v57 = vpop.permute.xlu2 %2528 }
 0x4ef   :  { %v3748_v13 = vpop.permute.xlu1 %3747 }
 0x4f0   :  { %5085 = vmatmul.msk.bf16.gmra.mxu2 %vm736_vm0, %v3748_v13 }
 0x4f1   :  { %3751 = vrot.lane.b32.xlu0 %v9766_v8, %s6254_s4  ;;  %v2042_v43 = vpop.f32.mrf.mxu3 }
 0x4f2   :  { %v2470_v50 = vpop.f32.mrf.mxu1 }
 0x4f3   :  { %2588 = vrot.lane.b32.xlu1 %v2027_v18, %s6254_s4  ;;  %v8404_v18 = vpop.xlane.xlu0 %3441 }
 0x4f4   :  { %2546 = vrot.lane.b32.xlu2 %v1611_v29, %s6256_s22 }
 0x4f9   :  { %2586 = vrot.lane.b32.xlu0 %v2024_v41, %s6254_s4 }
 0x4fa   :  { %v2472_v5 = vpop.f32.mrf.mxu1 }
 0x4fb   :  { %2544 = vrot.lane.b32.xlu1 %v1609_v15, %s6256_s22  ;;  %v2044_v15 = vpop.f32.mrf.mxu3 }
 0x4fc   :  { %2646 = vrot.lane.b32.xlu2 %v2462_v25, %s6255_s21  ;;  %v9768_v25 = vld [vmem:[#allocation25_spill] sm:$0xff] }
 0x501   :  { %2542 = vrot.lane.b32.xlu0 %v8354_v51, %s6256_s22  ;;  %v2519_v51 = vpop.permute.xlu0 %2518 }
 0x502   :  { %v8399_v44 = vpop.f32.mrf.mxu1 }
 0x503   :  { %2644 = vrot.lane.b32.xlu1 %v2460_v6, %s6255_s21  ;;  %v2047_v6 = vpop.f32.mrf.mxu3 }
 0x504   :  { %2596 = vrot.lane.b32.xlu2 %v2037_v54, %s6254_s4 }
 0x509   :  { %2592 = vrot.lane.b32.xlu0 %v2032_v42, %s6254_s4  ;;  %v9767_v42 = vld [vmem:[#allocation21_spill] sm:$0xff] }
 0x50a   :  { %v2477_v41 = vpop.f32.mrf.mxu1 }
 0x50b   :  { %2594 = vrot.lane.b32.xlu1 %v2034_v23, %s6254_s4 }
 0x50c   :  { %2652 = vrot.lane.b32.xlu2 %v2470_v50, %s6255_s21  ;;  %v8430_v50 = vpop.permute.xlu2 %2534 }
 0x510   :  { %v8412_v10 = vpop.xlane.xlu0 %3445 }
 0x511   :  { %2648 = vrot.lane.b32.xlu0 %v2465_v48, %s6255_s21  ;;  %v2049_v48 = vpop.f32.mrf.mxu3 }
 0x512   :  { %v2480_v29 = vpop.f32.mrf.mxu1 }
 0x513   :  { %2650 = vrot.lane.b32.xlu1 %v2467_v59, %s6255_s21 }
 0x514   :  { %2602 = vrot.lane.b32.xlu2 %v2044_v15, %s6254_s4  ;;  %v8443_v15 = vpop.permute.xlu1 %2526 }
 0x518   :  { %v8423_v23 = vpop.xlane.xlu0 %3447 }
 0x519   :  { %2598 = vrot.lane.b32.xlu0 %v2039_v0, %s6254_s4  ;;  %v2052_v13 = vpop.f32.mrf.mxu3 }
 0x51a   :  { %v8417_v55 = vpop.f32.mrf.mxu1 }
 0x51b   :  { %2600 = vrot.lane.b32.xlu1 %v2042_v43, %s6254_s4 }
 0x51c   :  { %3678 = vrot.lane.b32.xlu2 %v9767_v42, %s6255_s21 }
 0x521   :  { %3676 = vrot.lane.b32.xlu0 %v9768_v25, %s6255_s21  ;;  %v3400_v25 = vpop.f32.mrf.mxu0 }
 0x523   :  { %v2485_v59 = vpop.f32.mrf.mxu1 }
 0x524   :  { %2658 = vrot.lane.b32.xlu2 %v2477_v41, %s6255_s21 }
 0x529   :  { %2654 = vrot.lane.b32.xlu0 %v2472_v5, %s6255_s21 }
 0x52b   :  { %v2525_v54 = vpop.permute.xlu0 %2524  ;;  %v8432_v0 = vpop.f32.mrf.mxu1 }
 0x52c   :  { %2608 = vrot.lane.b32.xlu2 %v2052_v13, %s6254_s4 }
 0x531   :  { %2604 = vrot.lane.b32.xlu0 %v2047_v6, %s6254_s4  ;;  %v2054_v6 = vpop.f32.mrf.mxu3 }
 0x533   :  { %v3750_v43 = vpop.permute.xlu0 %3749  ;;  %v8441_v5 = vpop.f32.mrf.mxu1 }
 0x534   :  { %4194 = vrot.lane.b32.xlu2 %v9766_v8, %s6256_s22  ;;  %5086 = vmatmul.msk.bf16.gmra.mxu2 %vm736_vm0, %v3750_v43  ;;  %v8452_v8 = vmin.f32 %v3400_v25, %v7907_v61  ;;  %v8454_v43 = vpop.permute.xlu1 %2532 }
 0x536   :  { %9770 = vst [vmem:[#allocation68_spill] sm:$0xff] %v8452_v8 }
 0x537   :  { %v8438_v41 = vpop.xlane.xlu2 %3449 }
 0x538   :  { %9769 = vst [vmem:[#allocation42_spill] sm:$0xff] %v8438_v41 }
 0x539   :  { %2660 = vrot.lane.b32.xlu0 %v2480_v29, %s6255_s21 }
 0x53b   :  { %v8445_v13 = vpop.permute.xlu0 %2530  ;;  %v2492_v29 = vpop.f32.mrf.mxu1 }
 0x53c   :  { %2664 = vrot.lane.b32.xlu2 %v2485_v59, %s6255_s21  ;;  %v2583_v59 = vpop.permute.xlu1 %2582 }
 0x53f   :  { %v8448_v42 = vpop.permute.xlu2 %2584 }
 0x541   :  { %2610 = vrot.lane.b32.xlu0 %v2054_v6, %s6254_s4 }
 0x543   :  { %v2581_v3 = vpop.permute.xlu0 %2580 }
 0x544   :  { %2670 = vrot.lane.b32.xlu2 %v2492_v29, %s6255_s21  ;;  %v8464_v6 = vpop.permute.xlu1 %2538  ;;  %v3473_v29 = vsub.f32 %v8244_v9, %v8404_v18 }
 0x545   :  { %3453 = vmax.xlane.f32.xlu1 %v8452_v8  ;;  %v2693_v8 = vsel %vm736_vm0, %v8096_v17, %v2519_v51 }
 0x546   :  { %v2710_v53 = vsel %vm2708_vm3, %v2693_v8, %v2583_v59  ;;  %v3489_v41 = vmul.f32 1.442695, %v3473_v29  ;;  %v6059_v8 = vld [vmem:[#allocation2 + $0x20] sm:$0xff]  ;;  %v2692_v29 = vsel %vm736_vm0, %v8080_v16, %v8367_v34 }
 0x547   :  { %v8458_v1 = vpop.permute.xlu2 %2540 }
 0x548   :  { %5794 = vpow2.f32 %v3489_v41 }
 0x54b   :  { %v8460_v63 = vpop.permute.xlu0 %2536 }
 0x54d   :  { %v8469_v62 = vpop.xlane.xlu1 %3451 }
 0x54e   :  { %9771 = vst [vmem:[#allocation69_spill] sm:$0xff] %v8469_v62  ;;  %v8487_v18 = vpop.eup %5794 }
 0x54f   :  { %v8462_v26 = vpop.permute.xlu2 %2590 }
 0x553   :  { %v4193_v40 = vpop.permute.xlu0 %4192 }
 0x554   :  { %5094 = vmatmul.msk.bf16.gmra.mxu0 %vm736_vm0, %v4193_v40 }
 0x557   :  { %v8467_v25 = vpop.permute.xlu2 %2546 }
 0x55b   :  { %v3681_v61 = vpop.permute.xlu0 %3680 }
 0x55c   :  { %3690 = vmatpush.bf16.msrb.mxu1 %v3681_v61 }
 0x55e   :  { %2656 = vrot.lane.b32.xlu1 %v8399_v44, %s6255_s21  ;;  %v3402_v44 = vpop.f32.mrf.mxu0 }
 0x55f   :  { %v2647_v40 = vpop.permute.xlu2 %2646  ;;  %v8484_v17 = vmin.f32 %v3402_v44, %v7913_v30 }
 0x560   :  { %v2727_v37 = vsel %vm2725_vm4, %v2710_v53, %v2647_v40 }
 0x561   :  { %v2743_v4 = vadd.f32 %v6058_v39, %v2727_v37  ;;  %v9772_v39 = vld [vmem:[#allocation27_spill] sm:$0xff] }
 0x563   :  { %2759 = vst [vmem:[#allocation10 + $0x8] sm:$0xff] %v2743_v4  ;;  %v3752_v61 = vpop.permute.xlu0 %3751  ;;  %v2696_v4 = vsel %vm736_vm0, %v8140_v24, %v2525_v54  ;;  %v6060_v24 = vld [vmem:[#allocation2] sm:$0xff] }
 0x564   :  { %5087 = vmatmul.msk.bf16.gmra.mxu2 %vm736_vm0, %v3752_v61  ;;  %v2709_v61 = vsel %vm2708_vm3, %v2692_v29, %v2581_v3  ;;  %v2694_v3 = vsel %vm736_vm0, %v8108_v12, %v8383_v56  ;;  %v6062_v56 = vld [vmem:[#allocation2 + $0x18] sm:$0xff] }
 0x565   :  { %v2589_v62 = vpop.permute.xlu1 %2588 }
 0x566   :  { %2606 = vrot.lane.b32.xlu1 %v2049_v48, %s6254_s4  ;;  %v2713_v51 = vsel %vm2708_vm3, %v2696_v4, %v2589_v62  ;;  %v2495_v4 = vpop.f32.mrf.mxu1 }
 0x567   :  { %v8481_v9 = vpop.permute.xlu2 %2596 }
 0x56b   :  { %3455 = vmax.xlane.f32.xlu0 %v8484_v17  ;;  %v2587_v53 = vpop.permute.xlu0 %2586 }
 0x56d   :  { %v8489_v37 = vpop.permute.xlu1 %2544  ;;  %3521 = vadd.xlane.f32.xlu2 %v8487_v18 }
 0x56e   :  { %3674 = vrot.lane.b32.xlu1 %v9772_v39, %s6255_s21 }
 0x56f   :  { %v2653_v48 = vpop.permute.xlu2 %2652 }
 0x570   :  { %v2730_v41 = vsel %vm2725_vm4, %v2713_v51, %v2653_v48 }
 0x571   :  { %v2746_v59 = vadd.f32 %v6059_v8, %v2730_v41  ;;  %v2497_v41 = vpop.f32.mrf.mxu1 }
 0x573   :  { %2762 = vst [vmem:[#allocation10 + $0x20] sm:$0xff] %v2746_v59  ;;  %v8501_v40 = vpop.permute.xlu0 %2542  ;;  %v6061_v59 = vld [vmem:[#allocation2 + $0x10] sm:$0xff] }
 0x575   :  { %v2645_v44 = vpop.permute.xlu1 %2644 }
 0x576   :  { %v2726_v30 = vsel %vm2725_vm4, %v2709_v61, %v2645_v44  ;;  %2662 = vrot.lane.b32.xlu1 %v8417_v55, %s6255_s21  ;;  %v2711_v55 = vsel %vm2708_vm3, %v2694_v3, %v8448_v42  ;;  %v9773_v61 = vld [vmem:[#allocation52_spill] sm:$0xff] }
 0x577   :  { %v2742_v62 = vadd.f32 %v6060_v24, %v2726_v30  ;;  %v8507_v54 = vpop.permute.xlu2 %2602  ;;  %v2695_v30 = vsel %vm736_vm0, %v8123_v45, %v8415_v7  ;;  %v2699_v45 = vsel %vm736_vm0, %v8202_v28, %v8445_v13  ;;  %v6063_v24 = vld [vmem:[#allocation2 + $0x38] sm:$0xff] }
 0x578   :  { %v9774_v3 = vld [vmem:[#allocation20_spill] sm:$0xff] }
 0x579   :  { %2758 = vst [vmem:[#allocation10] sm:$0xff] %v2742_v62 }
 0x57b   :  { %v8509_v51 = vpop.permute.xlu0 %2592 }
 0x57d   :  { %v2595_v16 = vpop.permute.xlu1 %2594 }
 0x57e   :  { %2668 = vrot.lane.b32.xlu1 %v8441_v5, %s6255_s21  ;;  %v2712_v5 = vsel %vm2708_vm3, %v2695_v30, %v2587_v53  ;;  %v2716_v42 = vsel %vm2708_vm3, %v2699_v45, %v2595_v16  ;;  %v2697_v30 = vsel %vm736_vm0, %v8157_v36, %v8443_v15  ;;  %v3474_v36 = vsub.f32 %v8224_v14, %v8363_v47 }
 0x57f   :  { %2666 = vrot.lane.b32.xlu0 %v8432_v0, %s6255_s21  ;;  %v3679_v34 = vpop.permute.xlu2 %3678 }
 0x580   :  { %3691 = vmatpush.bf16.msrb.mxu1 %v3679_v34 }
 0x583   :  { %v2649_v48 = vpop.permute.xlu0 %2648 }
 0x584   :  { %v2728_v8 = vsel %vm2725_vm4, %v2711_v55, %v2649_v48  ;;  %v2714_v55 = vsel %vm2708_vm3, %v2697_v30, %v8462_v26  ;;  %v6065_v26 = vld [vmem:[#allocation2 + $0x50] sm:$0xff] }
 0x585   :  { %v2651_v0 = vpop.permute.xlu1 %2650  ;;  %v2744_v29 = vadd.f32 %v6061_v59, %v2728_v8  ;;  %3670 = vrot.lane.b32.xlu2 %v9773_v61, %s6255_s21  ;;  %v6064_v8 = vld [vmem:[#allocation2 + $0x28] sm:$0xff]  ;;  %v2702_v59 = vsel %vm736_vm0, %v8257_v19, %v8460_v63  ;;  %v3405_v19 = vpop.f32.mrf.mxu0  ;;  %v2700_v63 = vsel %vm736_vm0, %v8226_v31, %v8454_v43 }
 0x586   :  { %v2729_v12 = vsel %vm2725_vm4, %v2712_v5, %v2651_v0  ;;  %2674 = vrot.lane.b32.xlu1 %v2497_v41, %s6255_s21  ;;  %v2717_v14 = vsel %vm2708_vm3, %v2700_v63, %v8481_v9 }
 0x587   :  { %v2745_v7 = vadd.f32 %v6062_v56, %v2729_v12  ;;  %2672 = vrot.lane.b32.xlu0 %v2495_v4, %s6255_s21  ;;  %2760 = vst [vmem:[#allocation10 + $0x10] sm:$0xff] %v2744_v29  ;;  %v2659_v53 = vpop.permute.xlu2 %2658  ;;  %v9775_v4 = vld [vmem:[#allocation44_spill] sm:$0xff] }
 0x588   :  { %v2733_v44 = vsel %vm2725_vm4, %v2716_v42, %v2659_v53  ;;  %v9776_v42 = vld [vmem:[#allocation24_spill] sm:$0xff] }
 0x589   :  { %2761 = vst [vmem:[#allocation10 + $0x18] sm:$0xff] %v2745_v7  ;;  %v2749_v62 = vadd.f32 %v6063_v24, %v2733_v44  ;;  %v3491_v7 = vmul.f32 1.442695, %v3474_v36  ;;  %v3009_v53 = vsub.f32 %v9776_v42, %v8114_v52  ;;  %v8567_v44 = vmin.f32 %v3405_v19, %v7930_v20  ;;  %v9777_v52 = vld [vmem:[#allocation46_spill] sm:$0xff]  ;;  %v9780_v19 = vld [vmem:[#allocation28_spill] sm:$0xff] }
 0x58a   :  { %v3008_v31 = vsub.f32 %v9777_v52, %v8094_v46  ;;  %v2698_v46 = vsel %vm736_vm0, %v8180_v2, %v8426_v57  ;;  %v2705_v2 = vsel %vm736_vm0, %v8306_v11, %v8501_v40  ;;  %v3010_v63 = vsub.f32 %v9780_v19, %v8116_v21  ;;  %v6069_v52 = vld [vmem:[#allocation2 + $0x48] sm:$0xff] }
 0x58b   :  { %2765 = vst [vmem:[#allocation10 + $0x38] sm:$0xff] %v2749_v62  ;;  %v8535_v34 = vpop.permute.xlu0 %2598  ;;  %5796 = vpow2.f32 %v3491_v7  ;;  %v3028_v24 = vmul.f32 1.442695, %v3009_v53  ;;  %v6068_v7 = vld [vmem:[#allocation2 + $0x68] sm:$0xff]  ;;  %v2701_v40 = vsel %vm736_vm0, %v8239_v35, %v8430_v50  ;;  %v2704_v35 = vsel %vm736_vm0, %v8296_v60, %v8458_v1  ;;  %v6070_v60 = vld [vmem:[#allocation2 + $0x60] sm:$0xff] }
 0x58c   :  { %v3026_v43 = vmul.f32 1.442695, %v3008_v31  ;;  %v3030_v11 = vmul.f32 1.442695, %v3010_v63  ;;  %v2703_v50 = vsel %vm736_vm0, %v8273_v49, %v8464_v6  ;;  %v6071_v6 = vld [vmem:[#allocation2 + $0x58] sm:$0xff] }
 0x58d   :  { %v2601_v41 = vpop.permute.xlu1 %2600  ;;  %5798 = vpow2.f32 %v3028_v24  ;;  %v2718_v24 = vsel %vm2708_vm3, %v2701_v40, %v8535_v34 }
 0x58e   :  { %v2719_v29 = vsel %vm2708_vm3, %v2702_v59, %v2601_v41  ;;  %5800 = vpow2.f32 %v3026_v43 }
 0x58f   :  { %3672 = vrot.lane.b32.xlu0 %v9774_v3, %s6255_s21  ;;  %v8539_v28 = vpop.permute.xlu2 %2608  ;;  %5802 = vpow2.f32 %v3030_v11  ;;  %v6072_v11 = vld [vmem:[#allocation2 + $0x78] sm:$0xff] }
 0x591   :  { %v8570_v30 = vpop.eup %5796 }
 0x593   :  { %v3677_v13 = vpop.permute.xlu0 %3676  ;;  %v8576_v9 = vpop.eup %5798 }
 0x594   :  { %3692 = vmatpush.bf16.msrb.mxu1 %v3677_v13  ;;  %v6066_v13 = vld [vmem:[#allocation2 + $0x40] sm:$0xff] }
 0x597   :  { %3753 = vrot.lane.b32.xlu0 %v9775_v4, %s6254_s4  ;;  %v4195_v16 = vpop.permute.xlu2 %4194 }
 0x598   :  { %5095 = vmatmul.msk.bf16.gmra.mxu0 %vm736_vm0, %v4195_v16 }
 0x59b   :  { %v2655_v48 = vpop.permute.xlu0 %2654 }
 0x59c   :  { %v2731_v5 = vsel %vm2725_vm4, %v2714_v55, %v2655_v48  ;;  %v8579_v55 = vpop.eup %5800  ;;  %v8582_v48 = vpop.f32.mrf.mxu0 }
 0x59d   :  { %v2747_v0 = vadd.f32 %v6064_v8, %v2731_v5  ;;  %v2715_v5 = vsel %vm2708_vm3, %v2698_v46, %v8509_v51  ;;  %v8619_v31 = vpop.eup %5802  ;;  %v3475_v46 = vsub.f32 %v8325_v58, %v8412_v10  ;;  %v2720_v58 = vsel %vm2708_vm3, %v2703_v50, %v8507_v54  ;;  %v9788_v50 = vld [vmem:[#allocation54_spill] sm:$0xff] }
 0x59f   :  { %2763 = vst [vmem:[#allocation10 + $0x28] sm:$0xff] %v2747_v0  ;;  %v2665_v12 = vpop.permute.xlu2 %2664  ;;  %v3493_v49 = vmul.f32 1.442695, %v3475_v46 }
 0x5a0   :  { %v2736_v15 = vsel %vm2725_vm4, %v2719_v29, %v2665_v12  ;;  %v9778_v29 = vld [vmem:[#allocation51_spill] sm:$0xff] }
 0x5a1   :  { %v2752_v45 = vadd.f32 %v6065_v26, %v2736_v15  ;;  %v6067_v12 = vld [vmem:[#allocation2 + $0x30] sm:$0xff]  ;;  %5804 = vpow2.f32 %v3493_v49 }
 0x5a2   :  { %v9790_v49 = vld [vmem:[#allocation56_spill] sm:$0xff] }
 0x5a3   :  { %2768 = vst [vmem:[#allocation10 + $0x50] sm:$0xff] %v2752_v45  ;;  %v8557_v56 = vpop.permute.xlu0 %2604 }
 0x5a4   :  { %v8593_v0 = vpop.f32.mrf.mxu0  ;;  %v2721_v34 = vsel %vm2708_vm3, %v2704_v35, %v8557_v56  ;;  %v3476_v56 = vsub.f32 %v8331_v22, %v8423_v23  ;;  %v9787_v35 = vld [vmem:[#allocation30_spill] sm:$0xff] }
 0x5a6   :  { %v3495_v54 = vmul.f32 1.442695, %v3476_v56 }
 0x5a7   :  { %v2671_v51 = vpop.permute.xlu2 %2670 }
 0x5ab   :  { %v2661_v47 = vpop.permute.xlu0 %2660 }
 0x5ac   :  { %v2734_v62 = vsel %vm2725_vm4, %v2717_v14, %v2661_v47  ;;  %v8605_v45 = vpop.f32.mrf.mxu0 }
 0x5ad   :  { %v2750_v16 = vadd.f32 %v6066_v13, %v2734_v62 }
 0x5ae   :  { %3457 = vmax.xlane.f32.xlu2 %v8567_v44 }
 0x5af   :  { %2766 = vst [vmem:[#allocation10 + $0x40] sm:$0xff] %v2750_v16 }
 0x5b0   :  { %3523 = vadd.xlane.f32.xlu1 %v8570_v30 }
 0x5b3   :  { %v2611_v14 = vpop.permute.xlu0 %2610 }
 0x5b4   :  { %v8609_v47 = vpop.f32.mrf.mxu0 }
 0x5b8   :  { %3060 = vadd.xlane.f32.xlu1 %v8576_v9  ;;  %v8586_v41 = vpop.xlane.xlu1 %3453 }
 0x5bc   :  { %v3417_v43 = vpop.f32.mrf.mxu0 }
 0x5c1   :  { %3058 = vadd.xlane.f32.xlu0 %v8579_v55 }
 0x5c4   :  { %v8657_v19 = vpop.f32.mrf.mxu0 }
 0x5c6   :  { %4196 = vrot.lane.b32.xlu2 %v9775_v4, %s6256_s22  ;;  %v9779_v4 = vld [vmem:[#allocation26_spill] sm:$0xff] }
 0x5d0   :  { %v2657_v8 = vpop.permute.xlu1 %2656 }
 0x5d1   :  { %v2732_v59 = vsel %vm2725_vm4, %v2715_v5, %v2657_v8  ;;  %3668 = vrot.lane.b32.xlu1 %v9778_v29, %s6255_s21  ;;  %v3014_v8 = vsub.f32 %v7943_v27, %v8172_v32  ;;  %v8641_v27 = vmin.f32 %v3417_v43, %v8050_v38  ;;  %v2707_v32 = vsel %vm736_vm0, %v8322_v33, %v8467_v25  ;;  %v8666_v43 = vpop.eup %5804 }
 0x5d2   :  { %v2748_v36 = vadd.f32 %v6067_v12, %v2732_v59  ;;  %v2724_v22 = vsel %vm2708_vm3, %v2707_v32, %v2611_v14  ;;  %v3828_v32 = vpop.f32.mrf.mxu2 }
 0x5d4   :  { %2764 = vst [vmem:[#allocation10 + $0x30] sm:$0xff] %v2748_v36 }
 0x5d5   :  { %3666 = vrot.lane.b32.xlu0 %v9779_v4, %s6255_s21 }
 0x5d8   :  { %v2607_v57 = vpop.permute.xlu1 %2606 }
 0x5d9   :  { %v2722_v15 = vsel %vm2708_vm3, %v2705_v2, %v2607_v57  ;;  %v3038_v2 = vmul.f32 1.442695, %v3014_v8  ;;  %v9781_v57 = vld [vmem:[#allocation42_spill] sm:$0xff] }
 0x5da   :  { %v2739_v26 = vsel %vm2725_vm4, %v2722_v15, %v2671_v51  ;;  %v9782_v51 = vld [vmem:[#allocation43_spill] sm:$0xff] }
 0x5db   :  { %v2755_v42 = vadd.f32 %v6068_v7, %v2739_v26  ;;  %v3477_v15 = vsub.f32 %v9782_v51, %v9781_v57  ;;  %v9783_v26 = vld [vmem:[#allocation48_spill] sm:$0xff]  ;;  %5806 = vpow2.f32 %v3038_v2  ;;  %v9792_v51 = vld [vmem:[#allocation49_spill] sm:$0xff] }
 0x5dc   :  { %v2706_v7 = vsel %vm736_vm0, %v9783_v26, %v8489_v37  ;;  %5808 = vpow2.f32 %v3495_v54 }
 0x5dd   :  { %2771 = vst [vmem:[#allocation10 + $0x68] sm:$0xff] %v2755_v42  ;;  %v9784_v42 = vld [vmem:[#allocation57_spill] sm:$0xff]  ;;  %v2723_v33 = vsel %vm2708_vm3, %v2706_v7, %v8539_v28 }
 0x5de   :  { %v8616_v13 = vpop.xlane.xlu0 %3455  ;;  %v9793_v7 = vld [vmem:[#allocation61_spill] sm:$0xff] }
 0x5df   :  { %v3480_v26 = vsub.f32 %v8484_v17, %v8616_v13 }
 0x5e0   :  { %v3675_v53 = vpop.permute.xlu1 %3674  ;;  %v3522_v40 = vpop.xlane.xlu2 %3521 }
 0x5e1   :  { %3693 = vmatpush.bf16.msrb.mxu1 %v3675_v53  ;;  %v8655_v53 = vmin.f32 %v8582_v48, %v9784_v42  ;;  %v9785_v48 = vld [vmem:[#allocation31_spill] sm:$0xff]  ;;  %v8668_v28 = vpop.eup %5806 }
 0x5e2   :  { %v8674_v8 = vpop.eup %5808 }
 0x5e8   :  { %v2663_v62 = vpop.permute.xlu1 %2662 }
 0x5e9   :  { %v2735_v16 = vsel %vm2725_vm4, %v2718_v24, %v2663_v62  ;;  %v6073_v24 = vld [vmem:[#allocation2 + $0x70] sm:$0xff] }
 0x5ea   :  { %v2751_v21 = vadd.f32 %v6069_v52, %v2735_v16  ;;  %v9786_v16 = vld [vmem:[#allocation29_spill] sm:$0xff] }
 0x5eb   :  { %v3011_v52 = vsub.f32 %v9786_v16, %v9785_v48 }
 0x5ec   :  { %2767 = vst [vmem:[#allocation10 + $0x48] sm:$0xff] %v2751_v21  ;;  %v3497_v21 = vmul.f32 1.442695, %v3477_v15  ;;  %v8693_v15 = vmin.f32 %v3828_v32, %v9792_v51 }
 0x5ed   :  { %v3032_v46 = vmul.f32 1.442695, %v3011_v52 }
 0x5ee   :  { %5810 = vpow2.f32 %v3497_v21 }
 0x5ef   :  { %3062 = vadd.xlane.f32.xlu2 %v8619_v31  ;;  %5812 = vpow2.f32 %v3032_v46 }
 0x5f0   :  { %v2669_v5 = vpop.permute.xlu1 %2668 }
 0x5f1   :  { %v2738_v10 = vsel %vm2725_vm4, %v2721_v34, %v2669_v5  ;;  %v2667_v59 = vpop.permute.xlu0 %2666  ;;  %v3012_v34 = vsub.f32 %v9788_v50, %v9787_v35  ;;  %v9801_v50 = vld [vmem:[#allocation63_spill] sm:$0xff] }
 0x5f2   :  { %v2754_v1 = vadd.f32 %v6070_v60, %v2738_v10  ;;  %v2737_v12 = vsel %vm2725_vm4, %v2720_v58, %v2667_v59  ;;  %v3422_v58 = vpop.f32.mrf.mxu0  ;;  %v3671_v59 = vpop.permute.xlu2 %3670 }
 0x5f3   :  { %v2753_v36 = vadd.f32 %v6071_v6, %v2737_v12  ;;  %v3034_v10 = vmul.f32 1.442695, %v3012_v34  ;;  %v9791_v6 = vld [vmem:[#allocation62_spill] sm:$0xff]  ;;  %v8731_v34 = vmin.f32 %v8657_v19, %v9801_v50 }
 0x5f4   :  { %2770 = vst [vmem:[#allocation10 + $0x60] sm:$0xff] %v2754_v1  ;;  %v8677_v60 = vpop.eup %5810  ;;  %v9789_v1 = vld [vmem:[#allocation36_spill] sm:$0xff] }
 0x5f5   :  { %2769 = vst [vmem:[#allocation10 + $0x58] sm:$0xff] %v2753_v36  ;;  %v8680_v12 = vmin.f32 %v3422_v58, %v9789_v1  ;;  %5814 = vpow2.f32 %v3034_v10  ;;  %v3017_v36 = vsub.f32 %v9791_v6, %v9790_v49  ;;  %v8686_v2 = vpop.eup %5812 }
 0x5f7   :  { %3467 = vmax.xlane.f32.xlu2 %v8641_v27  ;;  %v3044_v54 = vmul.f32 1.442695, %v3017_v36  ;;  %v9803_v36 = vld [vmem:[#allocation23_spill] sm:$0xff] }
 0x5f8   :  { %v2675_v23 = vpop.permute.xlu1 %2674 }
 0x5f9   :  { %v2741_v25 = vsel %vm2725_vm4, %v2724_v22, %v2675_v23  ;;  %v2673_v63 = vpop.permute.xlu0 %2672  ;;  %v8701_v22 = vmin.f32 %v8593_v0, %v9793_v7  ;;  %5816 = vpow2.f32 %v3044_v54  ;;  %v9794_v23 = vld [vmem:[#allocation69_spill] sm:$0xff] }
 0x5fa   :  { %v2757_v37 = vadd.f32 %v6072_v11, %v2741_v25  ;;  %v2740_v14 = vsel %vm2725_vm4, %v2723_v33, %v2673_v63  ;;  %v9795_v33 = vld [vmem:[#allocation67_spill] sm:$0xff]  ;;  %v3503_v63 = vmul.f32 1.442695, %v3480_v26  ;;  %v9796_v11 = vld [vmem:[#allocation60_spill] sm:$0xff]  ;;  %v9797_v0 = vld [vmem:[#allocation53_spill] sm:$0xff] }
 0x5fb   :  { %v2756_v62 = vadd.f32 %v6073_v24, %v2740_v14  ;;  %3459 = vmax.xlane.f32.xlu1 %v8655_v53  ;;  %v8690_v57 = vpop.eup %5814  ;;  %v3478_v25 = vsub.f32 %v9795_v33, %v9794_v23  ;;  %v8716_v13 = vmin.f32 %v8605_v45, %v9797_v0  ;;  %v9798_v24 = vld [vmem:[#allocation34_spill] sm:$0xff]  ;;  %v9800_v45 = vld [vmem:[#allocation68_spill] sm:$0xff] }
 0x5fc   :  { %2773 = vst [vmem:[#allocation10 + $0x78] sm:$0xff] %v2757_v37  ;;  %v8708_v37 = vmin.f32 %v8609_v47, %v9796_v11  ;;  %5818 = vpow2.f32 %v3503_v63  ;;  %v3479_v35 = vsub.f32 %v9800_v45, %v8586_v41  ;;  %v9802_v41 = vld [vmem:[#allocation32_spill] sm:$0xff] }
 0x5fd   :  { %2772 = vst [vmem:[#allocation10 + $0x70] sm:$0xff] %v2756_v62  ;;  %v3499_v17 = vmul.f32 1.442695, %v3478_v25  ;;  %v9799_v62 = vld [vmem:[#allocation59_spill] sm:$0xff]  ;;  %v3015_v19 = vsub.f32 %v9803_v36, %v9802_v41  ;;  %v9804_v41 = vld [vmem:[#allocation50_spill] sm:$0xff] }
 0x5fe   :  { %v3013_v48 = vsub.f32 %v9799_v62, %v9798_v24  ;;  %v3501_v58 = vmul.f32 1.442695, %v3479_v35 }
 0x5ff   :  { %3525 = vadd.xlane.f32.xlu0 %v8666_v43  ;;  %3070 = vadd.xlane.f32.xlu2 %v8668_v28  ;;  %v8710_v14 = vpop.eup %5816  ;;  %5820 = vpow2.f32 %v3499_v17  ;;  %v3040_v54 = vmul.f32 1.442695, %v3015_v19 }
 0x600   :  { %v3036_v16 = vmul.f32 1.442695, %v3013_v48  ;;  %5822 = vrcp.f32 %v3522_v40 }
 0x601   :  { %v3673_v5 = vpop.permute.xlu0 %3672 }
 0x602   :  { %3694 = vmatpush.bf16.msrb.mxu1 %v3673_v5  ;;  %v8721_v47 = vpop.eup %5818  ;;  %5824 = vpow2.f32 %v3036_v16 }
 0x603   :  { %3527 = vadd.xlane.f32.xlu1 %v8674_v8 }
 0x605   :  { %v8724_v52 = vpop.eup %5820 }
 0x606   :  { %3695 = vmatpush.bf16.msrb.mxu1 %v3671_v59  ;;  %v5823_v5 = vpop.eup %5822 }
 0x607   :  { %3529 = vadd.xlane.f32.xlu0 %v8677_v60  ;;  %3471 = vmax.xlane.f32.xlu2 %v8680_v12  ;;  %v3569_v49 = vmul.f32 %v5823_v5, %v8487_v18 }
 0x608   :  { %v8734_v10 = vpop.eup %5824 }
 0x609   :  { %v3754_v56 = vpop.permute.xlu0 %3753  ;;  %v3585_v5 = vpack.c.bf16 %v3569_v49, %v3569_v49 }
 0x60a   :  { %5088 = vmatmul.msk.bf16.gmra.mxu2 %vm736_vm0, %v3754_v56 }
 0x60b   :  { %3064 = vadd.xlane.f32.xlu1 %v8686_v2 }
 0x60f   :  { %3066 = vadd.xlane.f32.xlu0 %v8690_v57  ;;  %3884 = vmax.xlane.f32.xlu2 %v8693_v15 }
 0x613   :  { %3461 = vmax.xlane.f32.xlu1 %v8701_v22 }
 0x617   :  { %3465 = vmax.xlane.f32.xlu0 %v8708_v37  ;;  %3076 = vadd.xlane.f32.xlu2 %v8710_v14 }
 0x61b   :  { %3463 = vmax.xlane.f32.xlu1 %v8716_v13 }
 0x61f   :  { %3535 = vadd.xlane.f32.xlu0 %v8721_v47 }
 0x621   :  { %v3458_v21 = vpop.xlane.xlu2 %3457 }
 0x622   :  { %v3481_v18 = vsub.f32 %v8567_v44, %v3458_v21 }
 0x623   :  { %v3524_v46 = vpop.xlane.xlu1 %3523  ;;  %3531 = vadd.xlane.f32.xlu1 %v8724_v52 }
 0x624   :  { %5826 = vrcp.f32 %v3524_v46  ;;  %v3505_v33 = vmul.f32 1.442695, %v3481_v18 }
 0x625   :  { %5828 = vpow2.f32 %v3501_v58 }
 0x627   :  { %3469 = vmax.xlane.f32.xlu0 %v8731_v34 }
 0x629   :  { %v4197_v59 = vpop.permute.xlu2 %4196 }
 0x62a   :  { %v5827_v40 = vpop.eup %5826  ;;  %5096 = vmatmul.msk.bf16.gmra.mxu0 %vm736_vm0, %v4197_v59  ;;  %v3634_v59 = vunpack.c.l.b16 %v3585_v5 }
 0x62b   :  { %v3570_v6 = vmul.f32 %v5827_v40, %v8570_v30  ;;  %3068 = vadd.xlane.f32.xlu1 %v8734_v10  ;;  %v3061_v56 = vpop.xlane.xlu1 %3060  ;;  %v8742_v26 = vpop.eup %5828 }
 0x62c   :  { %5830 = vrcp.f32 %v3061_v56  ;;  %v3830_v40 = vpop.f32.mrf.mxu2 }
 0x62d   :  { %v5324_v32 = vpack.c.bf16 %v3570_v6, %v3569_v49  ;;  %5832 = vpow2.f32 %v3040_v54  ;;  %v3586_v21 = vpack.c.bf16 %v3570_v6, %v3570_v6  ;;  %v8755_v36 = vmin.f32 %v3830_v40, %v9804_v41  ;;  %v4271_v6 = vpop.f32.mrf.mxu0 }
 0x62e   :  { %v8759_v49 = vmin.f32 %v4271_v6, %v9792_v51 }
 0x62f   :  { %5325 = vst [vmem:[#allocation11 + $0x140] sm:$0xff] %v5324_v32   ;;  %v3635_v58 = vunpack.c.l.b16 %v3586_v21 }
 0x631   :  { %v3650_v19 = vpack.c.b16 %v3635_v58, %v3634_v59 }
 0x632   :  { %v5831_v23 = vpop.eup %5830 }
 0x633   :  { %3533 = vadd.xlane.f32.xlu1 %v8742_v26  ;;  %v3105_v25 = vmul.f32 %v5831_v23, %v8576_v9  ;;  %v8747_v63 = vpop.eup %5832  ;;  %v9806_v23 = vld [vmem:[#allocation18_spill] sm:$0xff] }
 0x634   :  { %v3059_v30 = vpop.xlane.xlu0 %3058 }
 0x635   :  { %5834 = vrcp.f32 %v3059_v30  ;;  %v3121_v62 = vpack.c.bf16 %v3105_v25, %v3105_v25  ;;  %v9805_v30 = vld [vmem:[#allocation38_spill] sm:$0xff]  ;;  %v4273_v6 = vpop.f32.mrf.mxu0 }
 0x636   :  { %5836 = vpow2.f32 %v3505_v33  ;;  %v3016_v33 = vsub.f32 %v9806_v23, %v9805_v30  ;;  %v8777_v23 = vmin.f32 %v4273_v6, %v9804_v41  ;;  %v9809_v41 = vld [vmem:[#allocation45_spill] sm:$0xff] }
 0x637   :  { %v3170_v44 = vunpack.c.l.b16 %v3121_v62 }
 0x63b   :  { %v5835_v17 = vpop.eup %5834  ;;  %3072 = vadd.xlane.f32.xlu1 %v8747_v63 }
 0x63c   :  { %v3104_v24 = vmul.f32 %v5835_v17, %v8579_v55  ;;  %v8751_v45 = vpop.eup %5836 }
 0x63e   :  { %v3120_v48 = vpack.c.bf16 %v3104_v24, %v3104_v24  ;;  %v5289_v16 = vpack.c.bf16 %v3105_v25, %v3104_v24  ;;  %v3042_v24 = vmul.f32 1.442695, %v3016_v33 }
 0x640   :  { %5469 = vst [vmem:[#allocation11 + $0x108] sm:$0xff] %v5289_v16   ;;  %v3169_v46 = vunpack.c.l.b16 %v3120_v48 }
 0x642   :  { %v3184_v35 = vpack.c.b16 %v3170_v44, %v3169_v46 }
 0x643   :  { %v3669_v9 = vpop.permute.xlu1 %3668  ;;  %3537 = vadd.xlane.f32.xlu1 %v8751_v45 }
 0x644   :  { %3260 = vmatmul.bf16.gmra.mxu3 %v3184_v35  ;;  %3696 = vmatpush.bf16.msrb.mxu1 %v3669_v9 }
 0x647   :  { %v3667_v55 = vpop.permute.xlu0 %3666 }
 0x648   :  { %3697 = vmatpush.bf16.msrb.mxu1 %v3667_v55 }
 0x64b   :  { %3886 = vmax.xlane.f32.xlu1 %v8755_v36  ;;  %3698 = vmatmul.bf16.vlgmr.msrb.gmra.mxu1 %v3650_v19 }
 0x653   :  { %4327 = vmax.xlane.f32.xlu1 %v8759_v49 }
 0x662   :  { %v3063_v25 = vpop.xlane.xlu2 %3062 }
 0x66e   :  { %v3460_v56 = vpop.xlane.xlu1 %3459 }
 0x66f   :  { %v3482_v32 = vsub.f32 %v8655_v53, %v3460_v56 }
 0x671   :  { %v3507_v54 = vmul.f32 1.442695, %v3482_v32 }
 0x672   :  { %v3526_v18 = vpop.xlane.xlu0 %3525 }
 0x673   :  { %5838 = vpow2.f32 %v3507_v54  ;;  %v3833_v54 = vpop.f32.mrf.mxu2 }
 0x674   :  { %5840 = vrcp.f32 %v3526_v18 }
 0x676   :  { %v3528_v17 = vpop.xlane.xlu1 %3527 }
 0x677   :  { %5842 = vrcp.f32 %v3528_v17 }
 0x678   :  { %5844 = vrcp.f32 %v3063_v25 }
 0x679   :  { %v8765_v62 = vpop.eup %5838  ;;  %5846 = vpow2.f32 %v3042_v24 }
 0x67a   :  { %3539 = vadd.xlane.f32.xlu0 %v8765_v62  ;;  %v5841_v51 = vpop.eup %5840  ;;  %v3530_v16 = vpop.xlane.xlu0 %3529 }
 0x67b   :  { %v3571_v53 = vmul.f32 %v5841_v51, %v8666_v43  ;;  %v9807_v51 = vld [vmem:[#allocation47_spill] sm:$0xff] }
 0x67d   :  { %v5843_v48 = vpop.eup %5842  ;;  %v3587_v21 = vpack.c.bf16 %v3571_v53, %v3571_v53 }
 0x67e   :  { %v3065_v46 = vpop.xlane.xlu1 %3064  ;;  %v3572_v44 = vmul.f32 %v5843_v48, %v8674_v8  ;;  %v5845_v35 = vpop.eup %5844 }
 0x67f   :  { %5848 = vrcp.f32 %v3065_v46  ;;  %v8770_v58 = vpop.eup %5846  ;;  %v3106_v40 = vmul.f32 %v5845_v35, %v8619_v31  ;;  %v3636_v59 = vunpack.c.l.b16 %v3587_v21  ;;  %v8784_v21 = vmin.f32 %v3833_v54, %v9809_v41 }
 0x680   :  { %v3588_v5 = vpack.c.bf16 %v3572_v44, %v3572_v44  ;;  %v5329_v9 = vpack.c.bf16 %v3572_v44, %v3571_v53  ;;  %v9808_v53 = vld [vmem:[#allocation66_spill] sm:$0xff] }
 0x681   :  { %v3122_v32 = vpack.c.bf16 %v3106_v40, %v3106_v40 }
 0x682   :  { %3074 = vadd.xlane.f32.xlu0 %v8770_v58  ;;  %5476 = vst [vmem:[#allocation11 + $0x148] sm:$0xff] %v5329_v9   ;;  %v3637_v55 = vunpack.c.l.b16 %v3588_v5  ;;  %v3067_v18 = vpop.xlane.xlu0 %3066  ;;  %v3835_v5 = vpop.f32.mrf.mxu2 }
 0x683   :  { %v3171_v17 = vunpack.c.l.b16 %v3122_v32 }
 0x684   :  { %v3651_v43 = vpack.c.b16 %v3637_v55, %v3636_v59  ;;  %v9810_v59 = vld [vmem:[#allocation37_spill] sm:$0xff]  ;;  %v9811_v55 = vld [vmem:[#allocation64_spill] sm:$0xff] }
 0x685   :  { %v5849_v19 = vpop.eup %5848 }
 0x686   :  { %v3462_v56 = vpop.xlane.xlu1 %3461  ;;  %3703 = vmatmul.bf16.gmra.mxu1 %v3651_v43  ;;  %v3107_v8 = vmul.f32 %v5849_v19, %v8686_v2  ;;  %v3019_v2 = vsub.f32 %v9808_v53, %v9807_v51  ;;  %v3018_v43 = vsub.f32 %v9811_v55, %v9810_v59  ;;  %v9814_v59 = vld [vmem:[#allocation65_spill] sm:$0xff] }
 0x687   :  { %v3483_v30 = vsub.f32 %v8701_v22, %v3462_v56 }
 0x688   :  { %v3123_v31 = vpack.c.bf16 %v3107_v8, %v3107_v8  ;;  %v5294_v33 = vpack.c.bf16 %v3107_v8, %v3106_v40  ;;  %v3048_v44 = vmul.f32 1.442695, %v3019_v2  ;;  %v3046_v56 = vmul.f32 1.442695, %v3018_v43  ;;  %v9812_v8 = vld [vmem:[#allocation22_spill] sm:$0xff] }
 0x689   :  { %v3509_v25 = vmul.f32 1.442695, %v3483_v30  ;;  %v8794_v32 = vmin.f32 %v3835_v5, %v9812_v8 }
 0x68a   :  { %4329 = vmax.xlane.f32.xlu0 %v8777_v23  ;;  %5470 = vst [vmem:[#allocation11 + $0x110] sm:$0xff] %v5294_v33   ;;  %v3172_v24 = vunpack.c.l.b16 %v3123_v31  ;;  %v3466_v9 = vpop.xlane.xlu0 %3465  ;;  %v4276_v33 = vpop.f32.mrf.mxu0 }
 0x68b   :  { %5850 = vpow2.f32 %v3509_v25  ;;  %v8803_v25 = vpop.f32.mrf.mxu2 }
 0x68c   :  { %v3185_v48 = vpack.c.b16 %v3172_v24, %v3171_v17  ;;  %5852 = vrcp.f32 %v3530_v16  ;;  %v3468_v16 = vpop.xlane.xlu2 %3467 }
 0x68d   :  { %v3486_v17 = vsub.f32 %v8641_v27, %v3468_v16 }
 0x68e   :  { %v3464_v46 = vpop.xlane.xlu1 %3463  ;;  %3265 = vmatmul.bf16.gmra.mxu3 %v3185_v48 }
 0x68f   :  { %v3484_v22 = vsub.f32 %v8716_v13, %v3464_v46  ;;  %v3485_v13 = vsub.f32 %v8708_v37, %v3466_v9  ;;  %v3515_v48 = vmul.f32 1.442695, %v3486_v17 }
 0x691   :  { %v8786_v35 = vpop.eup %5850  ;;  %v3511_v40 = vmul.f32 1.442695, %v3484_v22  ;;  %v3513_v54 = vmul.f32 1.442695, %v3485_v13  ;;  %v8809_v22 = vmin.f32 %v4276_v33, %v9809_v41 }
 0x692   :  { %3541 = vadd.xlane.f32.xlu2 %v8786_v35  ;;  %3888 = vmax.xlane.f32.xlu0 %v8784_v21  ;;  %v5853_v6 = vpop.eup %5852  ;;  %v3536_v51 = vpop.xlane.xlu0 %3535 }
 0x693   :  { %5854 = vpow2.f32 %v3511_v40  ;;  %v3573_v37 = vmul.f32 %v5853_v6, %v8677_v60  ;;  %v9813_v40 = vld [vmem:[#allocation39_spill] sm:$0xff]  ;;  %v4278_v13 = vpop.f32.mrf.mxu0 }
 0x694   :  { %5856 = vpow2.f32 %v3048_v44  ;;  %v3020_v55 = vsub.f32 %v9814_v59, %v9813_v40 }
 0x695   :  { %v3589_v2 = vpack.c.bf16 %v3573_v37, %v3573_v37 }
 0x696   :  { %v3532_v19 = vpop.xlane.xlu1 %3531 }
 0x697   :  { %5858 = vrcp.f32 %v3532_v19  ;;  %v3840_v19 = vpop.f32.mrf.mxu2 }
 0x698   :  { %5860 = vrcp.f32 %v3067_v18 }
 0x699   :  { %v8796_v30 = vpop.eup %5854  ;;  %5862 = vpow2.f32 %v3046_v56  ;;  %v3071_v56 = vpop.xlane.xlu2 %3070 }
 0x69a   :  { %v8798_v31 = vpop.eup %5856  ;;  %3890 = vmax.xlane.f32.xlu2 %v8794_v32  ;;  %3543 = vadd.xlane.f32.xlu1 %v8796_v30  ;;  %5864 = vpow2.f32 %v3513_v54 }
 0x69b   :  { %3080 = vadd.xlane.f32.xlu0 %v8798_v31 }
 0x69d   :  { %v5859_v24 = vpop.eup %5858 }
 0x69e   :  { %v3069_v53 = vpop.xlane.xlu1 %3068  ;;  %v3574_v18 = vmul.f32 %v5859_v24, %v8724_v52  ;;  %v5861_v46 = vpop.eup %5860  ;;  %v3638_v52 = vunpack.c.l.b16 %v3589_v2  ;;  %v8823_v24 = vmin.f32 %v4278_v13, %v9812_v8 }
 0x69f   :  { %5866 = vrcp.f32 %v3069_v53  ;;  %v8811_v5 = vpop.eup %5862  ;;  %v3108_v41 = vmul.f32 %v5861_v46, %v8690_v57  ;;  %v9815_v53 = vld [vmem:[#allocation41_spill] sm:$0xff]  ;;  %v9817_v46 = vld [vmem:[#allocation19_spill] sm:$0xff] }
 0x6a0   :  { %v3590_v60 = vpack.c.bf16 %v3574_v18, %v3574_v18  ;;  %v5334_v44 = vpack.c.bf16 %v3574_v18, %v3573_v37  ;;  %5868 = vrcp.f32 %v3536_v51  ;;  %v8813_v27 = vpop.eup %5864  ;;  %v3050_v37 = vmul.f32 1.442695, %v3020_v55 }
 0x6a1   :  { %5870 = vpow2.f32 %v3515_v48  ;;  %v3124_v17 = vpack.c.bf16 %v3108_v41, %v3108_v41  ;;  %v8828_v57 = vmin.f32 %v3840_v19, %v9815_v53 }
 0x6a2   :  { %4331 = vmax.xlane.f32.xlu2 %v8809_v22  ;;  %3078 = vadd.xlane.f32.xlu1 %v8811_v5  ;;  %5477 = vst [vmem:[#allocation11 + $0x150] sm:$0xff] %v5334_v44   ;;  %v3639_v9 = vunpack.c.l.b16 %v3590_v60 }
 0x6a3   :  { %3545 = vadd.xlane.f32.xlu0 %v8813_v27  ;;  %v3173_v8 = vunpack.c.l.b16 %v3124_v17 }
 0x6a4   :  { %v3652_v43 = vpack.c.b16 %v3639_v9, %v3638_v52 }
 0x6a5   :  { %v5867_v6 = vpop.eup %5866 }
 0x6a6   :  { %v3534_v16 = vpop.xlane.xlu1 %3533  ;;  %3708 = vmatmul.bf16.gmra.mxu1 %v3652_v43  ;;  %v5869_v54 = vpop.eup %5868  ;;  %v3109_v33 = vmul.f32 %v5867_v6, %v8734_v10  ;;  %v9816_v10 = vld [vmem:[#allocation40_spill] sm:$0xff]  ;;  %v9818_v43 = vld [vmem:[#allocation33_spill] sm:$0xff] }
 0x6a7   :  { %5872 = vrcp.f32 %v3534_v16  ;;  %v8825_v51 = vpop.eup %5870  ;;  %v3576_v48 = vmul.f32 %v5869_v54, %v8721_v47  ;;  %v3021_v60 = vsub.f32 %v9817_v46, %v9816_v10  ;;  %v8839_v13 = vmin.f32 %v8803_v25, %v9818_v43 }
 0x6a8   :  { %5874 = vrcp.f32 %v3071_v56  ;;  %v3125_v18 = vpack.c.bf16 %v3109_v33, %v3109_v33  ;;  %v5299_v2 = vpack.c.bf16 %v3109_v33, %v3108_v41 }
 0x6a9   :  { %5876 = vpow2.f32 %v3050_v37  ;;  %v3592_v55 = vpack.c.bf16 %v3576_v48, %v3576_v48  ;;  %v3052_v41 = vmul.f32 1.442695, %v3021_v60  ;;  %v4281_v37 = vpop.f32.mrf.mxu0 }
 0x6aa   :  { %3547 = vadd.xlane.f32.xlu2 %v8825_v51  ;;  %4333 = vmax.xlane.f32.xlu1 %v8823_v24  ;;  %5471 = vst [vmem:[#allocation11 + $0x118] sm:$0xff] %v5299_v2   ;;  %v3174_v44 = vunpack.c.l.b16 %v3125_v18  ;;  %v8848_v2 = vmin.f32 %v4281_v37, %v9818_v43  ;;  %v9821_v43 = vld [vmem:[#allocation25_spill] sm:$0xff] }
 0x6ab   :  { %3894 = vmax.xlane.f32.xlu0 %v8828_v57  ;;  %v3641_v54 = vunpack.c.l.b16 %v3592_v55 }
 0x6ac   :  { %v3186_v9 = vpack.c.b16 %v3174_v44, %v3173_v8 }
 0x6ad   :  { %v5873_v52 = vpop.eup %5872 }
 0x6ae   :  { %v3073_v40 = vpop.xlane.xlu1 %3072  ;;  %v3575_v59 = vmul.f32 %v5873_v52, %v8742_v26  ;;  %v5875_v47 = vpop.eup %5874  ;;  %3270 = vmatmul.bf16.gmra.mxu3 %v3186_v9 }
 0x6af   :  { %5878 = vrcp.f32 %v3073_v40  ;;  %v8841_v56 = vpop.eup %5876  ;;  %v3110_v16 = vmul.f32 %v5875_v47, %v8668_v28  ;;  %v9819_v40 = vld [vmem:[#allocation35_spill] sm:$0xff]  ;;  %v9820_v47 = vld [vmem:[#allocation21_spill] sm:$0xff] }
 0x6b0   :  { %v3591_v19 = vpack.c.bf16 %v3575_v59, %v3575_v59  ;;  %v5339_v6 = vpack.c.bf16 %v3576_v48, %v3575_v59  ;;  %5880 = vpow2.f32 %v3052_v41  ;;  %v3470_v48 = vpop.xlane.xlu0 %3469 }
 0x6b1   :  { %v3126_v18 = vpack.c.bf16 %v3110_v16, %v3110_v16  ;;  %v3487_v44 = vsub.f32 %v8731_v34, %v3470_v48  ;;  %v3472_v34 = vpop.xlane.xlu2 %3471 }
 0x6b2   :  { %3082 = vadd.xlane.f32.xlu2 %v8841_v56  ;;  %3892 = vmax.xlane.f32.xlu1 %v8839_v13  ;;  %5478 = vst [vmem:[#allocation11 + $0x158] sm:$0xff] %v5339_v6   ;;  %v3640_v26 = vunpack.c.l.b16 %v3591_v19  ;;  %v3488_v41 = vsub.f32 %v8680_v12, %v3472_v34 }
 0x6b3   :  { %v3175_v60 = vunpack.c.l.b16 %v3126_v18  ;;  %v3517_v9 = vmul.f32 1.442695, %v3487_v44 }
 0x6b4   :  { %v3653_v33 = vpack.c.b16 %v3641_v54, %v3640_v26  ;;  %v3519_v19 = vmul.f32 1.442695, %v3488_v41 }
 0x6b5   :  { %v5879_v17 = vpop.eup %5878  ;;  %5882 = vpow2.f32 %v3517_v9 }
 0x6b6   :  { %3713 = vmatmul.bf16.gmra.mxu1 %v3653_v33  ;;  %v3111_v25 = vmul.f32 %v5879_v17, %v8747_v63  ;;  %v8850_v46 = vpop.eup %5880  ;;  %v4283_v63 = vpop.f32.mrf.mxu0  ;;  %5884 = vpow2.f32 %v3519_v19 }
 0x6b7   :  { %v8858_v59 = vmin.f32 %v4283_v63, %v9815_v53  ;;  %v3538_v6 = vpop.xlane.xlu1 %3537 }
 0x6b8   :  { %v3127_v28 = vpack.c.bf16 %v3111_v25, %v3111_v25  ;;  %v5304_v10 = vpack.c.bf16 %v3111_v25, %v3110_v16  ;;  %5886 = vrcp.f32 %v3538_v6 }
 0x6b9   :  { %v8871_v53 = vpop.xlane.xlu2 %3884 }
 0x6ba   :  { %4335 = vmax.xlane.f32.xlu2 %v8848_v2  ;;  %3084 = vadd.xlane.f32.xlu1 %v8850_v46  ;;  %5472 = vst [vmem:[#allocation11 + $0x120] sm:$0xff] %v5304_v10   ;;  %v3176_v8 = vunpack.c.l.b16 %v3127_v28 }
 0x6bb   :  { %v8861_v55 = vpop.eup %5882 }
 0x6bc   :  { %v3187_v52 = vpack.c.b16 %v3176_v8, %v3175_v60  ;;  %v8875_v16 = vpop.eup %5884 }
 0x6be   :  { %3275 = vmatmul.bf16.gmra.mxu3 %v3187_v52  ;;  %v5887_v54 = vpop.eup %5886 }
 0x6bf   :  { %4123 = vrot.lane.b32.xlu0 %v9819_v40, %s6254_s4  ;;  %v3577_v37 = vmul.f32 %v5887_v54, %v8751_v45  ;;  %v3887_v52 = vpop.xlane.xlu1 %3886 }
 0x6c1   :  { %v3077_v12 = vpop.xlane.xlu2 %3076  ;;  %v3593_v18 = vpack.c.bf16 %v3577_v37, %v3577_v37 }
 0x6c2   :  { %4337 = vmax.xlane.f32.xlu1 %v8858_v59 }
 0x6c3   :  { %v3642_v8 = vunpack.c.l.b16 %v3593_v18  ;;  %v9823_v18 = vld [vmem:[#allocation55_spill] sm:$0xff] }
 0x6ca   :  { %3549 = vadd.xlane.f32.xlu1 %v8861_v55 }
 0x6d2   :  { %4121 = vrot.lane.b32.xlu2 %v9820_v47, %s6254_s4 }
 0x6da   :  { %4119 = vrot.lane.b32.xlu2 %v9821_v43, %s6254_s4 }
 0x6e2   :  { %4564 = vrot.lane.b32.xlu2 %v9820_v47, %s6256_s22 }
 0x6e3   :  { %4566 = vrot.lane.b32.xlu1 %v9819_v40, %s6256_s22  ;;  %v3843_v40 = vpop.f32.mrf.mxu2 }
 0x6e9   :  { %3551 = vadd.xlane.f32.xlu0 %v8875_v16 }
 0x6ed   :  { %v3540_v26 = vpop.xlane.xlu0 %3539 }
 0x6ee   :  { %5888 = vrcp.f32 %v3540_v26  ;;  %v3917_v26 = vsub.f32 %v8755_v36, %v3887_v52 }
 0x6ef   :  { %5890 = vrcp.f32 %v3077_v12  ;;  %v8886_v12 = vpop.xlane.xlu1 %4327 }
 0x6f4   :  { %v5889_v33 = vpop.eup %5888 }
 0x6f5   :  { %v3578_v17 = vmul.f32 %v5889_v33, %v8765_v62  ;;  %v3075_v25 = vpop.xlane.xlu0 %3074  ;;  %v5891_v48 = vpop.eup %5890  ;;  %v9822_v33 = vld [vmem:[#allocation58_spill] sm:$0xff] }
 0x6f6   :  { %5892 = vrcp.f32 %v3075_v25  ;;  %v3113_v60 = vmul.f32 %v5891_v48, %v8710_v14  ;;  %v3934_v25 = vmul.f32 1.442695, %v3917_v26  ;;  %v8895_v48 = vmin.f32 %v3843_v40, %v9823_v18 }
 0x6f7   :  { %v3594_v28 = vpack.c.bf16 %v3578_v17, %v3578_v17  ;;  %v5344_v10 = vpack.c.bf16 %v3578_v17, %v3577_v37  ;;  %v3845_v37 = vpop.f32.mrf.mxu2 }
 0x6f8   :  { %v3129_v47 = vpack.c.bf16 %v3113_v60, %v3113_v60  ;;  %v8892_v17 = vmin.f32 %v3845_v37, %v9822_v33 }
 0x6f9   :  { %5479 = vst [vmem:[#allocation11 + $0x160] sm:$0xff] %v5344_v10   ;;  %v3643_v44 = vunpack.c.l.b16 %v3594_v28 }
 0x6fa   :  { %v3178_v19 = vunpack.c.l.b16 %v3129_v47 }
 0x6fb   :  { %v3654_v63 = vpack.c.b16 %v3643_v44, %v3642_v8 }
 0x6fc   :  { %v5893_v9 = vpop.eup %5892 }
 0x6fd   :  { %v3112_v45 = vmul.f32 %v5893_v9, %v8770_v58  ;;  %4117 = vrot.lane.b32.xlu0 %v9772_v39, %s6254_s4  ;;  %3718 = vmatmul.bf16.gmra.mxu1 %v3654_v63  ;;  %v8884_v62 = vpop.xlane.xlu0 %4329 }
 0x6ff   :  { %v5309_v34 = vpack.c.bf16 %v3113_v60, %v3112_v45  ;;  %v3128_v41 = vpack.c.bf16 %v3112_v45, %v3112_v45 }
 0x701   :  { %5473 = vst [vmem:[#allocation11 + $0x128] sm:$0xff] %v5309_v34   ;;  %v3177_v14 = vunpack.c.l.b16 %v3128_v41 }
 0x703   :  { %v3188_v6 = vpack.c.b16 %v3178_v19, %v3177_v14  ;;  %v3916_v19 = vsub.f32 %v8693_v15, %v8871_v53 }
 0x705   :  { %v3542_v54 = vpop.xlane.xlu2 %3541  ;;  %3280 = vmatmul.bf16.gmra.mxu3 %v3188_v6  ;;  %v8889_v58 = vpop.xlane.xlu0 %3888  ;;  %v3932_v37 = vmul.f32 1.442695, %v3916_v19 }
 0x706   :  { %5894 = vrcp.f32 %v3542_v54 }
 0x707   :  { %5896 = vpow2.f32 %v3934_v25 }
 0x70b   :  { %3898 = vmax.xlane.f32.xlu2 %v8892_v17 }
 0x70c   :  { %v5895_v36 = vpop.eup %5894 }
 0x70d   :  { %v8898_v28 = vpop.xlane.xlu2 %3890  ;;  %v3544_v10 = vpop.xlane.xlu1 %3543  ;;  %3896 = vmax.xlane.f32.xlu1 %v8895_v48  ;;  %v3579_v8 = vmul.f32 %v5895_v36, %v8786_v35 }
 0x70e   :  { %5898 = vrcp.f32 %v3544_v10  ;;  %v3081_v60 = vpop.xlane.xlu0 %3080  ;;  %v8902_v44 = vpop.eup %5896 }
 0x70f   :  { %5900 = vrcp.f32 %v3081_v60  ;;  %v3595_v45 = vpack.c.bf16 %v3579_v8, %v3579_v8 }
 0x711   :  { %v3644_v6 = vunpack.c.l.b16 %v3595_v45 }
 0x714   :  { %v5899_v52 = vpop.eup %5898 }
 0x715   :  { %v3580_v63 = vmul.f32 %v5899_v52, %v8796_v30  ;;  %v8905_v9 = vpop.xlane.xlu2 %4331  ;;  %v3079_v40 = vpop.xlane.xlu1 %3078  ;;  %3966 = vadd.xlane.f32.xlu1 %v8902_v44 }
 0x716   :  { %v5901_v47 = vpop.eup %5900  ;;  %5902 = vrcp.f32 %v3079_v40  ;;  %v3546_v34 = vpop.xlane.xlu0 %3545 }
 0x717   :  { %v5349_v41 = vpack.c.bf16 %v3580_v63, %v3579_v8  ;;  %v3596_v14 = vpack.c.bf16 %v3580_v63, %v3580_v63  ;;  %5904 = vrcp.f32 %v3546_v34  ;;  %v3115_v35 = vmul.f32 %v5901_v47, %v8798_v31 }
 0x719   :  { %5480 = vst [vmem:[#allocation11 + $0x168] sm:$0xff] %v5349_v41   ;;  %v3645_v30 = vunpack.c.l.b16 %v3596_v14  ;;  %v3131_v60 = vpack.c.bf16 %v3115_v35, %v3115_v35 }
 0x71b   :  { %v3655_v26 = vpack.c.b16 %v3645_v30, %v3644_v6  ;;  %v3180_v63 = vunpack.c.l.b16 %v3131_v60 }
 0x71c   :  { %v5903_v54 = vpop.eup %5902 }
 0x71d   :  { %v3114_v25 = vmul.f32 %v5903_v54, %v8811_v5  ;;  %v3548_v10 = vpop.xlane.xlu2 %3547  ;;  %v8912_v36 = vpop.xlane.xlu1 %4333  ;;  %3723 = vmatmul.bf16.gmra.mxu1 %v3655_v26 }
 0x71e   :  { %v5905_v8 = vpop.eup %5904  ;;  %5906 = vrcp.f32 %v3548_v10 }
 0x71f   :  { %v5314_v52 = vpack.c.bf16 %v3115_v35, %v3114_v25  ;;  %v3130_v15 = vpack.c.bf16 %v3114_v25, %v3114_v25  ;;  %5908 = vpow2.f32 %v3932_v37  ;;  %v3581_v31 = vmul.f32 %v5905_v8, %v8813_v27  ;;  %v8923_v35 = vpop.xlane.xlu0 %3894 }
 0x721   :  { %5474 = vst [vmem:[#allocation11 + $0x130] sm:$0xff] %v5314_v52   ;;  %v3179_v53 = vunpack.c.l.b16 %v3130_v15  ;;  %v3597_v41 = vpack.c.bf16 %v3581_v31, %v3581_v31 }
 0x723   :  { %4562 = vrot.lane.b32.xlu2 %v9821_v43, %s6256_s22  ;;  %v3189_v40 = vpack.c.b16 %v3180_v63, %v3179_v53  ;;  %v3646_v43 = vunpack.c.l.b16 %v3597_v41 }
 0x724   :  { %v5907_v5 = vpop.eup %5906 }
 0x725   :  { %v3582_v45 = vmul.f32 %v5907_v5, %v8825_v51  ;;  %v3083_v47 = vpop.xlane.xlu2 %3082  ;;  %v8918_v34 = vpop.xlane.xlu1 %3892  ;;  %3285 = vmatmul.bf16.gmra.mxu3 %v3189_v40 }
 0x726   :  { %v8920_v14 = vpop.eup %5908  ;;  %5910 = vrcp.f32 %v3083_v47 }
 0x727   :  { %v5354_v19 = vpack.c.bf16 %v3582_v45, %v3581_v31  ;;  %3964 = vadd.xlane.f32.xlu0 %v8920_v14  ;;  %v3598_v27 = vpack.c.bf16 %v3582_v45, %v3582_v45  ;;  %v4286_v45 = vpop.f32.mrf.mxu0 }
 0x728   :  { %v8940_v41 = vmin.f32 %v4286_v45, %v9823_v18 }
 0x729   :  { %5481 = vst [vmem:[#allocation11 + $0x170] sm:$0xff] %v5354_v19   ;;  %v3647_v6 = vunpack.c.l.b16 %v3598_v27 }
 0x72b   :  { %v3656_v30 = vpack.c.b16 %v3647_v6, %v3646_v43 }
 0x72c   :  { %v5911_v54 = vpop.eup %5910 }
 0x72d   :  { %v8925_v26 = vpop.xlane.xlu2 %4335  ;;  %v3085_v51 = vpop.xlane.xlu1 %3084  ;;  %3728 = vmatmul.bf16.gmra.mxu1 %v3656_v30  ;;  %v3116_v37 = vmul.f32 %v5911_v54, %v8841_v56  ;;  %v4359_v30 = vsub.f32 %v8759_v49, %v8886_v12  ;;  %v3918_v49 = vsub.f32 %v8784_v21, %v8889_v58 }
 0x72e   :  { %5912 = vrcp.f32 %v3085_v51  ;;  %4115 = vrot.lane.b32.xlu1 %v9774_v3, %s6254_s4 }
 0x72f   :  { %v3132_v52 = vpack.c.bf16 %v3116_v37, %v3116_v37  ;;  %v4288_v27 = vpop.f32.mrf.mxu0  ;;  %v4375_v54 = vmul.f32 1.442695, %v4359_v30  ;;  %v3936_v12 = vmul.f32 1.442695, %v3918_v49 }
 0x730   :  { %v8947_v6 = vmin.f32 %v4288_v27, %v9822_v33 }
 0x731   :  { %v4124_v25 = vpop.permute.xlu0 %4123  ;;  %v3181_v53 = vunpack.c.l.b16 %v3132_v52 }
 0x732   :  { %4133 = vmatpush.bf16.msrb.mxu3 %v4124_v25 }
 0x734   :  { %v5913_v10 = vpop.eup %5912 }
 0x735   :  { %v3117_v60 = vmul.f32 %v5913_v10, %v8850_v46  ;;  %v4122_v8 = vpop.permute.xlu2 %4121  ;;  %v8933_v56 = vpop.xlane.xlu1 %4337  ;;  %v4360_v46 = vsub.f32 %v8777_v23, %v8884_v62 }
 0x736   :  { %4134 = vmatpush.bf16.msrb.mxu3 %v4122_v8  ;;  %v3848_v10 = vpop.f32.mrf.mxu2 }
 0x737   :  { %v5319_v15 = vpack.c.bf16 %v3117_v60, %v3116_v37  ;;  %v3133_v31 = vpack.c.bf16 %v3117_v60, %v3117_v60  ;;  %v4377_v47 = vmul.f32 1.442695, %v4360_v46 }
 0x739   :  { %5475 = vst [vmem:[#allocation11 + $0x138] sm:$0xff] %v5319_v15   ;;  %v3182_v63 = vunpack.c.l.b16 %v3133_v31  ;;  %5914 = vpow2.f32 %v4377_v47 }
 0x73b   :  { %4560 = vrot.lane.b32.xlu0 %v9772_v39, %s6256_s22  ;;  %v3190_v40 = vpack.c.b16 %v3182_v63, %v3181_v53 }
 0x73d   :  { %v4120_v5 = vpop.permute.xlu2 %4119  ;;  %3290 = vmatmul.bf16.gmra.mxu3 %v3190_v40  ;;  %v3550_v39 = vpop.xlane.xlu1 %3549 }
 0x73e   :  { %4135 = vmatpush.bf16.msrb.mxu3 %v4120_v5  ;;  %5916 = vrcp.f32 %v3550_v39  ;;  %v4291_v5 = vpop.f32.mrf.mxu0 }
 0x73f   :  { %v8943_v19 = vpop.eup %5914 }
 0x743   :  { %4113 = vrot.lane.b32.xlu0 %v9773_v61, %s6254_s4 }
 0x744   :  { %v5917_v18 = vpop.eup %5916 }
 0x745   :  { %v4565_v23 = vpop.permute.xlu2 %4564  ;;  %v3583_v51 = vmul.f32 %v5917_v18, %v8861_v55 }
 0x746   :  { %v4293_v45 = vpop.f32.mrf.mxu0 }
 0x747   :  { %v3599_v33 = vpack.c.bf16 %v3583_v51, %v3583_v51  ;;  %v8985_v27 = vmin.f32 %v4293_v45, %v9784_v42  ;;  %v4363_v45 = vsub.f32 %v8848_v2, %v8925_v26 }
 0x749   :  { %v3648_v52 = vunpack.c.l.b16 %v3599_v33 }
 0x74c   :  { %4339 = vmax.xlane.f32.xlu2 %v8940_v41 }
 0x754   :  { %4409 = vadd.xlane.f32.xlu2 %v8943_v19 }
 0x755   :  { %v4567_v43 = vpop.permute.xlu1 %4566 }
 0x756   :  { %4576 = vmatpush.bf16.msra.mxu1 %v4567_v43  ;;  %v3919_v43 = vsub.f32 %v8794_v32, %v8898_v28 }
 0x758   :  { %4341 = vmax.xlane.f32.xlu1 %v8947_v6 }
 0x75a   :  { %4577 = vmatpush.bf16.msra.mxu1 %v4565_v23  ;;  %v3938_v23 = vmul.f32 1.442695, %v3919_v43 }
 0x75c   :  { %v3552_v62 = vpop.xlane.xlu0 %3551 }
 0x75d   :  { %5918 = vrcp.f32 %v3552_v62 }
 0x75e   :  { %5920 = vpow2.f32 %v4375_v54 }
 0x75f   :  { %5922 = vpow2.f32 %v3936_v12 }
 0x763   :  { %v5919_v37 = vpop.eup %5918 }
 0x764   :  { %v3584_v25 = vmul.f32 %v5919_v37, %v8875_v16  ;;  %v8954_v53 = vpop.eup %5920  ;;  %v3850_v16 = vpop.f32.mrf.mxu2 }
 0x765   :  { %v8964_v63 = vmin.f32 %v3850_v16, %v9784_v42  ;;  %v8969_v40 = vpop.eup %5922  ;;  %v4361_v42 = vsub.f32 %v8809_v22, %v8905_v9  ;;  %v4364_v16 = vsub.f32 %v8858_v59, %v8933_v56 }
 0x766   :  { %v5359_v60 = vpack.c.bf16 %v3584_v25, %v3583_v51  ;;  %v3600_v8 = vpack.c.bf16 %v3584_v25, %v3584_v25 }
 0x767   :  { %v4379_v28 = vmul.f32 1.442695, %v4361_v42 }
 0x768   :  { %5482 = vst [vmem:[#allocation11 + $0x178] sm:$0xff] %v5359_v60   ;;  %v3649_v15 = vunpack.c.l.b16 %v3600_v8  ;;  %v3921_v60 = vsub.f32 %v8828_v57, %v8923_v35  ;;  %v3920_v57 = vsub.f32 %v8839_v13, %v8918_v34 }
 0x76a   :  { %v3657_v31 = vpack.c.b16 %v3649_v15, %v3648_v52  ;;  %v3942_v52 = vmul.f32 1.442695, %v3921_v60  ;;  %v9013_v15 = vmin.f32 %v4291_v5, %v7930_v20  ;;  %v3940_v49 = vmul.f32 1.442695, %v3920_v57 }
 0x76b   :  { %v4385_v5 = vmul.f32 1.442695, %v4364_v16 }
 0x76c   :  { %3733 = vmatmul.bf16.gmra.mxu1 %v3657_v31  ;;  %4111 = vrot.lane.b32.xlu2 %v9778_v29, %s6254_s4  ;;  %v4296_v31 = vpop.f32.mrf.mxu0 }
 0x76d   :  { %4407 = vadd.xlane.f32.xlu0 %v8954_v53  ;;  %v9040_v59 = vmin.f32 %v4296_v31, %v9793_v7 }
 0x76f   :  { %v4118_v55 = vpop.permute.xlu0 %4117 }
 0x770   :  { %4136 = vmatpush.bf16.msrb.mxu3 %v4118_v55 }
 0x771   :  { %4558 = vrot.lane.b32.xlu1 %v9774_v3, %s6256_s22 }
 0x774   :  { %v4298_v12 = vpop.f32.mrf.mxu0 }
 0x775   :  { %3902 = vmax.xlane.f32.xlu0 %v8964_v63  ;;  %v9031_v13 = vmin.f32 %v4298_v12, %v9797_v0 }
 0x779   :  { %4556 = vrot.lane.b32.xlu1 %v9773_v61, %s6256_s22  ;;  %v8981_v61 = vmin.f32 %v3848_v10, %v7930_v20 }
 0x77d   :  { %3968 = vadd.xlane.f32.xlu0 %v8969_v40 }
 0x77e   :  { %v8972_v21 = vpop.xlane.xlu2 %3898 }
 0x77f   :  { %v3923_v43 = vsub.f32 %v8892_v17, %v8972_v21 }
 0x780   :  { %v8976_v58 = vpop.xlane.xlu1 %3896 }
 0x781   :  { %4109 = vrot.lane.b32.xlu1 %v9779_v4, %s6254_s4 }
 0x786   :  { %v4563_v3 = vpop.permute.xlu2 %4562 }
 0x787   :  { %4578 = vmatpush.bf16.msra.mxu1 %v4563_v3 }
 0x788   :  { %v3967_v46 = vpop.xlane.xlu1 %3966 }
 0x789   :  { %5924 = vrcp.f32 %v3967_v46 }
 0x78f   :  { %v5925_v39 = vpop.eup %5924 }
 0x791   :  { %4554 = vrot.lane.b32.xlu0 %v9778_v29, %s6256_s22  ;;  %v4013_v29 = vmul.f32 %v5925_v39, %v8902_v44  ;;  %v4383_v39 = vmul.f32 1.442695, %v4363_v45 }
 0x793   :  { %v4029_v30 = vpack.c.bf16 %v4013_v29, %v4013_v29 }
 0x795   :  { %3900 = vmax.xlane.f32.xlu2 %v8981_v61  ;;  %v8994_v25 = vunpack.c.l.b16 %v4029_v30 }
 0x79a   :  { %v3965_v47 = vpop.xlane.xlu0 %3964 }
 0x79b   :  { %5926 = vrcp.f32 %v3965_v47 }
 0x79c   :  { %5928 = vpow2.f32 %v3938_v23  ;;  %v3946_v23 = vmul.f32 1.442695, %v3923_v43 }
 0x79d   :  { %4345 = vmax.xlane.f32.xlu2 %v8985_v27  ;;  %5930 = vpow2.f32 %v4379_v28 }
 0x7a0   :  { %v4116_v62 = vpop.permute.xlu1 %4115 }
 0x7a1   :  { %v5927_v18 = vpop.eup %5926  ;;  %4137 = vmatpush.bf16.msrb.mxu3 %v4116_v62 }
 0x7a2   :  { %v4012_v51 = vmul.f32 %v5927_v18, %v8920_v14  ;;  %v9000_v33 = vpop.eup %5928  ;;  %v4362_v14 = vsub.f32 %v8823_v24, %v8912_v36  ;;  %v3853_v36 = vpop.f32.mrf.mxu2 }
 0x7a3   :  { %v9005_v10 = vpop.eup %5930 }
 0x7a4   :  { %v4028_v54 = vpack.c.bf16 %v4012_v51, %v4012_v51  ;;  %v5364_v37 = vpack.c.bf16 %v4013_v29, %v4012_v51  ;;  %v4381_v9 = vmul.f32 1.442695, %v4362_v14 }
 0x7a6   :  { %5365 = vst [vmem:[#allocation11 + $0x180] sm:$0xff] %v5364_v37   ;;  %v8996_v32 = vunpack.c.l.b16 %v4028_v54  ;;  %5932 = vpow2.f32 %v4381_v9 }
 0x7a7   :  { %5934 = vpow2.f32 %v3942_v52 }
 0x7a8   :  { %v4093_v44 = vpack.c.b16 %v8994_v25, %v8996_v32  ;;  %5936 = vpow2.f32 %v3940_v49 }
 0x7a9   :  { %5938 = vpow2.f32 %v4385_v5 }
 0x7aa   :  { %v3855_v20 = vpop.f32.mrf.mxu2  ;;  %5940 = vpow2.f32 %v4383_v39 }
 0x7ab   :  { %3970 = vadd.xlane.f32.xlu1 %v9000_v33  ;;  %v9058_v18 = vmin.f32 %v3855_v20, %v9797_v0  ;;  %5942 = vpow2.f32 %v3946_v23 }
 0x7ac   :  { %v9015_v24 = vpop.eup %5932 }
 0x7ad   :  { %v4561_v22 = vpop.permute.xlu0 %4560  ;;  %v9024_v55 = vpop.eup %5934 }
 0x7ae   :  { %4579 = vmatpush.bf16.msra.mxu1 %v4561_v22  ;;  %v9033_v34 = vpop.eup %5936 }
 0x7af   :  { %v9042_v56 = vpop.eup %5938 }
 0x7b0   :  { %v9051_v26 = vpop.eup %5940 }
 0x7b1   :  { %v9066_v54 = vpop.eup %5942 }
 0x7b2   :  { %v3858_v46 = vpop.f32.mrf.mxu2 }
 0x7b3   :  { %4411 = vadd.xlane.f32.xlu1 %v9005_v10 }
 0x7b5   :  { %v4114_v8 = vpop.permute.xlu0 %4113  ;;  %4552 = vrot.lane.b32.xlu2 %v9779_v4, %s6256_s22  ;;  %v9022_v4 = vmin.f32 %v3853_v36, %v9793_v7  ;;  %v3922_v7 = vsub.f32 %v8895_v48, %v8976_v58  ;;  %v9064_v48 = vmin.f32 %v3858_v46, %v9796_v11  ;;  %v4301_v58 = vpop.f32.mrf.mxu0 }
 0x7b6   :  { %4138 = vmatpush.bf16.msrb.mxu3 %v4114_v8  ;;  %v9071_v37 = vmin.f32 %v4301_v58, %v9796_v11 }
 0x7b7   :  { %v3944_v21 = vmul.f32 1.442695, %v3922_v7 }
 0x7ba   :  { %v3860_v29 = vpop.f32.mrf.mxu2 }
 0x7bb   :  { %4343 = vmax.xlane.f32.xlu0 %v9013_v15  ;;  %4413 = vadd.xlane.f32.xlu1 %v9015_v24  ;;  %v9049_v2 = vmin.f32 %v3860_v29, %v8050_v38  ;;  %v9113_v29 = vpop.f32.mrf.mxu3 }
 0x7bd   :  { %v4303_v31 = vpop.f32.mrf.mxu0 }
 0x7bf   :  { %v4340_v35 = vpop.xlane.xlu2 %4339 }
 0x7c0   :  { %v4365_v17 = vsub.f32 %v8940_v41, %v4340_v35 }
 0x7c2   :  { %v4387_v51 = vmul.f32 1.442695, %v4365_v17 }
 0x7c3   :  { %3974 = vadd.xlane.f32.xlu0 %v9024_v55  ;;  %3904 = vmax.xlane.f32.xlu1 %v9022_v4  ;;  %v9122_v58 = vpop.f32.mrf.mxu3 }
 0x7c5   :  { %v4306_v16 = vpop.f32.mrf.mxu0 }
 0x7c7   :  { %v4410_v3 = vpop.xlane.xlu2 %4409 }
 0x7c8   :  { %5944 = vrcp.f32 %v4410_v3  ;;  %v9101_v3 = vmin.f32 %v4306_v16, %v9801_v50 }
 0x7cb   :  { %4349 = vmax.xlane.f32.xlu0 %v9031_v13  ;;  %3972 = vadd.xlane.f32.xlu1 %v9033_v34  ;;  %v4342_v62 = vpop.xlane.xlu1 %4341 }
 0x7cc   :  { %v4366_v30 = vsub.f32 %v8947_v6, %v4342_v62  ;;  %v3863_v6 = vpop.f32.mrf.mxu2 }
 0x7cd   :  { %v4308_v7 = vpop.f32.mrf.mxu0 }
 0x7ce   :  { %v4389_v0 = vmul.f32 1.442695, %v4366_v30  ;;  %v5945_v28 = vpop.eup %5944 }
 0x7cf   :  { %v4112_v47 = vpop.permute.xlu2 %4111  ;;  %v4456_v22 = vmul.f32 %v5945_v28, %v8943_v19  ;;  %v9086_v19 = vmin.f32 %v4303_v31, %v8050_v38  ;;  %v9098_v38 = vmin.f32 %v3863_v6, %v9801_v50  ;;  %v9125_v6 = vpop.f32.mrf.mxu1 }
 0x7d0   :  { %4139 = vmatpush.bf16.msrb.mxu3 %v4112_v47 }
 0x7d1   :  { %v4472_v23 = vpack.c.bf16 %v4456_v22, %v4456_v22 }
 0x7d3   :  { %4417 = vadd.xlane.f32.xlu0 %v9042_v56  ;;  %4347 = vmax.xlane.f32.xlu1 %v9040_v59 }
 0x7d4   :  { %v3865_v57 = vpop.f32.mrf.mxu2 }
 0x7db   :  { %3910 = vmax.xlane.f32.xlu0 %v9049_v2  ;;  %4415 = vadd.xlane.f32.xlu1 %v9051_v26 }
 0x7de   :  { %3906 = vmax.xlane.f32.xlu2 %v9058_v18 }
 0x7e0   :  { %v4408_v42 = vpop.xlane.xlu0 %4407 }
 0x7e1   :  { %5946 = vrcp.f32 %v4408_v42 }
 0x7e2   :  { %5948 = vpow2.f32 %v3944_v21  ;;  %v4521_v21 = vunpack.c.l.b16 %v4472_v23 }
 0x7e3   :  { %3978 = vadd.xlane.f32.xlu0 %v9066_v54  ;;  %3908 = vmax.xlane.f32.xlu1 %v9064_v48  ;;  %v4559_v41 = vpop.permute.xlu1 %4558  ;;  %5950 = vpow2.f32 %v4387_v51 }
 0x7e4   :  { %4580 = vmatpush.bf16.msra.mxu1 %v4559_v41  ;;  %5952 = vpow2.f32 %v4389_v0 }
 0x7e6   :  { %4351 = vmax.xlane.f32.xlu2 %v9071_v37 }
 0x7e7   :  { %v5947_v14 = vpop.eup %5946 }
 0x7e8   :  { %v4455_v9 = vmul.f32 %v5947_v14, %v8954_v53  ;;  %v9076_v60 = vpop.eup %5948  ;;  %v9089_v53 = vmin.f32 %v3865_v57, %v9789_v1  ;;  %v3903_v35 = vpop.xlane.xlu0 %3902 }
 0x7e9   :  { %v9078_v8 = vpop.eup %5950  ;;  %v3925_v20 = vsub.f32 %v8964_v63, %v3903_v35 }
 0x7ea   :  { %v5404_v52 = vpack.c.bf16 %v4456_v22, %v4455_v9  ;;  %v9082_v36 = vpop.eup %5952  ;;  %v4471_v39 = vpack.c.bf16 %v4455_v9, %v4455_v9  ;;  %v9128_v22 = vpop.f32.mrf.mxu3 }
 0x7eb   :  { %4419 = vadd.xlane.f32.xlu0 %v9078_v8  ;;  %3976 = vadd.xlane.f32.xlu1 %v9076_v60  ;;  %v4557_v11 = vpop.permute.xlu1 %4556  ;;  %v3950_v12 = vmul.f32 1.442695, %v3925_v20  ;;  %v9130_v20 = vpop.f32.mrf.mxu1 }
 0x7ec   :  { %5405 = vst [vmem:[#allocation11 + $0x1c0] sm:$0xff] %v5404_v52   ;;  %4581 = vmatpush.bf16.msra.mxu1 %v4557_v11  ;;  %v4520_v62 = vunpack.c.l.b16 %v4471_v39 }
 0x7ed   :  { %5954 = vpow2.f32 %v3950_v12 }
 0x7ee   :  { %4421 = vadd.xlane.f32.xlu2 %v9082_v36  ;;  %v4536_v30 = vpack.c.b16 %v4521_v21, %v4520_v62 }
 0x7f0   :  { %v3969_v5 = vpop.xlane.xlu0 %3968 }
 0x7f3   :  { %3914 = vmax.xlane.f32.xlu0 %v9089_v53  ;;  %4353 = vmax.xlane.f32.xlu1 %v9086_v19  ;;  %v4110_v49 = vpop.permute.xlu1 %4109  ;;  %v9105_v63 = vpop.eup %5954 }
 0x7f4   :  { %4140 = vmatpush.bf16.msrb.mxu3 %v4110_v49 }
 0x7f7   :  { %4141 = vmatmul.bf16.vlgmr.msrb.gmra.mxu3 %v4093_v44 }
 0x7fb   :  { %4355 = vmax.xlane.f32.xlu0 %v9101_v3  ;;  %3912 = vmax.xlane.f32.xlu1 %v9098_v38 }
 0x803   :  { %v4555_v46 = vpop.permute.xlu0 %4554  ;;  %3982 = vadd.xlane.f32.xlu1 %v9105_v63 }
 0x804   :  { %4582 = vmatpush.bf16.msra.mxu1 %v4555_v46 }
 0x808   :  { %v3901_v25 = vpop.xlane.xlu2 %3900 }
 0x809   :  { %v3924_v32 = vsub.f32 %v8981_v61, %v3901_v25  ;;  %v9116_v61 = vmin.f32 %v4308_v7, %v9789_v1 }
 0x80b   :  { %v3948_v44 = vmul.f32 1.442695, %v3924_v32 }
 0x80d   :  { %5956 = vpow2.f32 %v3948_v44 }
 0x810   :  { %v4346_v45 = vpop.xlane.xlu2 %4345 }
 0x811   :  { %v4368_v50 = vsub.f32 %v8985_v27, %v4346_v45 }
 0x813   :  { %v9110_v47 = vpop.eup %5956  ;;  %v4393_v43 = vmul.f32 1.442695, %v4368_v50  ;;  %v9137_v50 = vpop.f32.mrf.mxu1 }
 0x814   :  { %3980 = vadd.xlane.f32.xlu2 %v9110_v47 }
 0x815   :  { %5958 = vpow2.f32 %v4393_v43 }
 0x816   :  { %5960 = vrcp.f32 %v3969_v5 }
 0x818   :  { %v4553_v17 = vpop.permute.xlu2 %4552 }
 0x819   :  { %4583 = vmatpush.bf16.msra.mxu1 %v4553_v17 }
 0x81b   :  { %v9118_v27 = vpop.eup %5958 }
 0x81c   :  { %4357 = vmax.xlane.f32.xlu2 %v9116_v61  ;;  %4425 = vadd.xlane.f32.xlu0 %v9118_v27  ;;  %v5961_v42 = vpop.eup %5960 }
 0x81d   :  { %4584 = vmatmul.bf16.vlgmr.msra.gmra.mxu1 %v4536_v30  ;;  %v4014_v0 = vmul.f32 %v5961_v42, %v8969_v40 }
 0x81e   :  { %v3971_v51 = vpop.xlane.xlu1 %3970 }
 0x81f   :  { %5962 = vrcp.f32 %v3971_v51  ;;  %v4030_v14 = vpack.c.bf16 %v4014_v0, %v4014_v0 }
 0x821   :  { %v4079_v11 = vunpack.c.l.b16 %v4030_v14 }
 0x825   :  { %v5963_v41 = vpop.eup %5962 }
 0x826   :  { %v4015_v1 = vmul.f32 %v5963_v41, %v9000_v33  ;;  %v4412_v28 = vpop.xlane.xlu1 %4411  ;;  %v9133_v33 = vpop.f32.mrf.mxu3 }
 0x827   :  { %5964 = vrcp.f32 %v4412_v28 }
 0x828   :  { %v5369_v9 = vpack.c.bf16 %v4015_v1, %v4014_v0  ;;  %v4031_v52 = vpack.c.bf16 %v4015_v1, %v4015_v1  ;;  %v9148_v0 = vpop.f32.mrf.mxu1 }
 0x82a   :  { %5483 = vst [vmem:[#allocation11 + $0x188] sm:$0xff] %v5369_v9   ;;  %v4080_v31 = vunpack.c.l.b16 %v4031_v52 }
 0x82c   :  { %v4094_v57 = vpack.c.b16 %v4080_v31, %v4079_v11 }
 0x82d   :  { %v5965_v40 = vpop.eup %5964 }
 0x82e   :  { %v4344_v35 = vpop.xlane.xlu0 %4343  ;;  %v4414_v49 = vpop.xlane.xlu1 %4413  ;;  %4146 = vmatmul.bf16.gmra.mxu3 %v4094_v57  ;;  %v4457_v5 = vmul.f32 %v5965_v40, %v9005_v10 }
 0x82f   :  { %v4367_v16 = vsub.f32 %v9013_v15, %v4344_v35  ;;  %5966 = vrcp.f32 %v4414_v49  ;;  %v9142_v7 = vpop.f32.mrf.mxu3 }
 0x830   :  { %v4473_v45 = vpack.c.bf16 %v4457_v5, %v4457_v5  ;;  %v9158_v40 = vpop.f32.mrf.mxu1 }
 0x831   :  { %v4391_v12 = vmul.f32 1.442695, %v4367_v16 }
 0x832   :  { %v4522_v10 = vunpack.c.l.b16 %v4473_v45 }
 0x833   :  { %5968 = vpow2.f32 %v4391_v12 }
 0x835   :  { %v5967_v46 = vpop.eup %5966 }
 0x836   :  { %v4458_v25 = vmul.f32 %v5967_v46, %v9015_v24  ;;  %v3975_v32 = vpop.xlane.xlu0 %3974  ;;  %v3905_v44 = vpop.xlane.xlu1 %3904 }
 0x837   :  { %v3926_v39 = vsub.f32 %v9022_v4, %v3905_v44  ;;  %5970 = vrcp.f32 %v3975_v32  ;;  %v9152_v28 = vpop.f32.mrf.mxu3 }
 0x838   :  { %v5409_v43 = vpack.c.bf16 %v4458_v25, %v4457_v5  ;;  %v4474_v23 = vpack.c.bf16 %v4458_v25, %v4458_v25 }
 0x839   :  { %v9140_v15 = vpop.eup %5968  ;;  %v3952_v62 = vmul.f32 1.442695, %v3926_v39 }
 0x83a   :  { %5490 = vst [vmem:[#allocation11 + $0x1c8] sm:$0xff] %v5409_v43   ;;  %4423 = vadd.xlane.f32.xlu1 %v9140_v15  ;;  %v4523_v24 = vunpack.c.l.b16 %v4474_v23 }
 0x83b   :  { %5972 = vpow2.f32 %v3952_v62  ;;  %v9169_v62 = vpop.f32.mrf.mxu1 }
 0x83c   :  { %v4537_v17 = vpack.c.b16 %v4523_v24, %v4522_v10 }
 0x83d   :  { %v5971_v51 = vpop.eup %5970 }
 0x83e   :  { %v4350_v21 = vpop.xlane.xlu0 %4349  ;;  %v3973_v30 = vpop.xlane.xlu1 %3972  ;;  %4589 = vmatmul.bf16.gmra.mxu1 %v4537_v17  ;;  %v4017_v1 = vmul.f32 %v5971_v51, %v9024_v55 }
 0x83f   :  { %v4370_v4 = vsub.f32 %v9031_v13, %v4350_v21  ;;  %5974 = vrcp.f32 %v3973_v30  ;;  %v9161_v5 = vpop.f32.mrf.mxu3 }
 0x840   :  { %v4033_v31 = vpack.c.bf16 %v4017_v1, %v4017_v1 }
 0x841   :  { %v9146_v42 = vpop.eup %5972  ;;  %v4397_v41 = vmul.f32 1.442695, %v4370_v4 }
 0x842   :  { %3984 = vadd.xlane.f32.xlu2 %v9146_v42  ;;  %v4082_v12 = vunpack.c.l.b16 %v4033_v31 }
 0x843   :  { %5976 = vpow2.f32 %v4397_v41 }
 0x845   :  { %v5975_v14 = vpop.eup %5974 }
 0x846   :  { %v4016_v9 = vmul.f32 %v5975_v14, %v9033_v34  ;;  %v4418_v52 = vpop.xlane.xlu0 %4417  ;;  %v4348_v11 = vpop.xlane.xlu1 %4347 }
 0x847   :  { %v4369_v13 = vsub.f32 %v9040_v59, %v4348_v11  ;;  %5978 = vrcp.f32 %v4418_v52  ;;  %v9171_v17 = vpop.f32.mrf.mxu3 }
 0x848   :  { %v5374_v57 = vpack.c.bf16 %v4017_v1, %v4016_v9  ;;  %v4032_v35 = vpack.c.bf16 %v4016_v9, %v4016_v9 }
 0x849   :  { %v9156_v49 = vpop.eup %5976  ;;  %v4395_v55 = vmul.f32 1.442695, %v4369_v13 }
 0x84a   :  { %5484 = vst [vmem:[#allocation11 + $0x190] sm:$0xff] %v5374_v57   ;;  %4429 = vadd.xlane.f32.xlu2 %v9156_v49  ;;  %v4081_v16 = vunpack.c.l.b16 %v4032_v35  ;;  %v9181_v57 = vpop.f32.mrf.mxu1 }
 0x84b   :  { %5980 = vpow2.f32 %v4395_v55 }
 0x84c   :  { %v4095_v34 = vpack.c.b16 %v4082_v12, %v4081_v16 }
 0x84d   :  { %v5979_v59 = vpop.eup %5978 }
 0x84e   :  { %v3911_v46 = vpop.xlane.xlu0 %3910  ;;  %v4416_v25 = vpop.xlane.xlu1 %4415  ;;  %4151 = vmatmul.bf16.gmra.mxu3 %v4095_v34  ;;  %v4460_v43 = vmul.f32 %v5979_v59, %v9042_v56 }
 0x84f   :  { %v3929_v32 = vsub.f32 %v9049_v2, %v3911_v46  ;;  %5982 = vrcp.f32 %v4416_v25  ;;  %v9184_v55 = vpop.f32.mrf.mxu3 }
 0x850   :  { %v4476_v51 = vpack.c.bf16 %v4460_v43, %v4460_v43 }
 0x851   :  { %v9164_v44 = vpop.eup %5980  ;;  %v3958_v45 = vmul.f32 1.442695, %v3929_v32  ;;  %v3907_v39 = vpop.xlane.xlu2 %3906 }
 0x852   :  { %v3927_v23 = vsub.f32 %v9058_v18, %v3907_v39  ;;  %4427 = vadd.xlane.f32.xlu0 %v9164_v44  ;;  %v4525_v11 = vunpack.c.l.b16 %v4476_v51 }
 0x853   :  { %5984 = vpow2.f32 %v3958_v45 }
 0x854   :  { %v3954_v10 = vmul.f32 1.442695, %v3927_v23 }
 0x855   :  { %v5983_v24 = vpop.eup %5982 }
 0x856   :  { %v4459_v2 = vmul.f32 %v5983_v24, %v9051_v26  ;;  %5986 = vpow2.f32 %v3954_v10  ;;  %v3979_v21 = vpop.xlane.xlu0 %3978  ;;  %v3909_v30 = vpop.xlane.xlu1 %3908 }
 0x857   :  { %v3928_v4 = vsub.f32 %v9064_v48, %v3909_v30  ;;  %5988 = vrcp.f32 %v3979_v21  ;;  %v9199_v30 = vpop.f32.mrf.mxu3 }
 0x858   :  { %v5414_v56 = vpack.c.bf16 %v4460_v43, %v4459_v2  ;;  %v4475_v41 = vpack.c.bf16 %v4459_v2, %v4459_v2  ;;  %v9194_v43 = vpop.f32.mrf.mxu1 }
 0x859   :  { %v9175_v18 = vpop.eup %5984  ;;  %v3956_v1 = vmul.f32 1.442695, %v3928_v4  ;;  %v4352_v14 = vpop.xlane.xlu2 %4351 }
 0x85a   :  { %5491 = vst [vmem:[#allocation11 + $0x1d0] sm:$0xff] %v5414_v56   ;;  %v4371_v9 = vsub.f32 %v9071_v37, %v4352_v14  ;;  %3990 = vadd.xlane.f32.xlu0 %v9175_v18  ;;  %v4524_v52 = vunpack.c.l.b16 %v4475_v41 }
 0x85b   :  { %5990 = vpow2.f32 %v3956_v1 }
 0x85c   :  { %v9179_v26 = vpop.eup %5986  ;;  %v4399_v31 = vmul.f32 1.442695, %v4371_v9  ;;  %v4538_v13 = vpack.c.b16 %v4525_v11, %v4524_v52 }
 0x85d   :  { %3986 = vadd.xlane.f32.xlu1 %v9179_v26  ;;  %v5989_v37 = vpop.eup %5988 }
 0x85e   :  { %5992 = vpow2.f32 %v4399_v31  ;;  %v4420_v48 = vpop.xlane.xlu0 %4419  ;;  %v3977_v35 = vpop.xlane.xlu1 %3976  ;;  %4594 = vmatmul.bf16.gmra.mxu1 %v4538_v13  ;;  %v4019_v46 = vmul.f32 %v5989_v37, %v9066_v54 }
 0x85f   :  { %5994 = vrcp.f32 %v4420_v48 }
 0x860   :  { %5996 = vrcp.f32 %v3977_v35  ;;  %v4035_v54 = vpack.c.bf16 %v4019_v46, %v4019_v46  ;;  %v3719_v13 = vpop.f32.mrf.mxu1 }
 0x861   :  { %v4422_v16 = vpop.xlane.xlu2 %4421  ;;  %v9186_v12 = vpop.eup %5990 }
 0x862   :  { %5998 = vrcp.f32 %v4422_v16  ;;  %v9206_v16 = vpop.f32.mrf.mxu3 }
 0x864   :  { %v9188_v34 = vpop.eup %5992 }
 0x865   :  { %v5995_v25 = vpop.eup %5994  ;;  %3988 = vadd.xlane.f32.xlu1 %v9186_v12  ;;  %4431 = vadd.xlane.f32.xlu2 %v9188_v34 }
 0x866   :  { %v5997_v59 = vpop.eup %5996  ;;  %v4461_v32 = vmul.f32 %v5995_v25, %v9078_v8  ;;  %v3915_v45 = vpop.xlane.xlu0 %3914 }
 0x867   :  { %v4354_v39 = vpop.xlane.xlu1 %4353  ;;  %v4018_v23 = vmul.f32 %v5997_v59, %v9076_v60  ;;  %v3931_v10 = vsub.f32 %v9089_v53, %v3915_v45  ;;  %v4084_v53 = vunpack.c.l.b16 %v4035_v54 }
 0x868   :  { %v4372_v24 = vsub.f32 %v9086_v19, %v4354_v39  ;;  %v5999_v2 = vpop.eup %5998  ;;  %v4477_v21 = vpack.c.bf16 %v4461_v32, %v4461_v32 }
 0x869   :  { %v5379_v51 = vpack.c.bf16 %v4019_v46, %v4018_v23  ;;  %v4462_v4 = vmul.f32 %v5999_v2, %v9082_v36  ;;  %v3962_v56 = vmul.f32 1.442695, %v3931_v10  ;;  %v4034_v41 = vpack.c.bf16 %v4018_v23, %v4018_v23 }
 0x86a   :  { %v4401_v8 = vmul.f32 1.442695, %v4372_v24  ;;  %v4526_v19 = vunpack.c.l.b16 %v4477_v21  ;;  %v9216_v45 = vpop.f32.mrf.mxu3 }
 0x86b   :  { %5485 = vst [vmem:[#allocation11 + $0x198] sm:$0xff] %v5379_v51   ;;  %v5419_v1 = vpack.c.bf16 %v4462_v4, %v4461_v32  ;;  %6000 = vpow2.f32 %v3962_v56  ;;  %v4478_v14 = vpack.c.bf16 %v4462_v4, %v4462_v4  ;;  %v4083_v60 = vunpack.c.l.b16 %v4034_v41 }
 0x86c   :  { %6002 = vpow2.f32 %v4401_v8 }
 0x86d   :  { %5492 = vst [vmem:[#allocation11 + $0x1d8] sm:$0xff] %v5419_v1   ;;  %v4527_v9 = vunpack.c.l.b16 %v4478_v14  ;;  %v4096_v31 = vpack.c.b16 %v4084_v53, %v4083_v60 }
 0x86e   :  { %v4356_v52 = vpop.xlane.xlu0 %4355 }
 0x86f   :  { %v3913_v11 = vpop.xlane.xlu1 %3912  ;;  %v4373_v48 = vsub.f32 %v9101_v3, %v4356_v52  ;;  %v4539_v35 = vpack.c.b16 %v4527_v9, %v4526_v19  ;;  %4156 = vmatmul.bf16.gmra.mxu3 %v4096_v31 }
 0x870   :  { %v3930_v36 = vsub.f32 %v9098_v38, %v3913_v11  ;;  %v3721_v38 = vpop.f32.mrf.mxu1 }
 0x871   :  { %v9204_v37 = vpop.eup %6000  ;;  %v4403_v46 = vmul.f32 1.442695, %v4373_v48  ;;  %4599 = vmatmul.bf16.gmra.mxu1 %v4539_v35 }
 0x872   :  { %v3960_v25 = vmul.f32 1.442695, %v3930_v36  ;;  %v9208_v59 = vpop.eup %6002  ;;  %3994 = vadd.xlane.f32.xlu2 %v9204_v37  ;;  %v9222_v10 = vpop.f32.mrf.mxu3 }
 0x873   :  { %6004 = vpow2.f32 %v4403_v46  ;;  %4433 = vadd.xlane.f32.xlu1 %v9208_v59 }
 0x874   :  { %6006 = vpow2.f32 %v3960_v25 }
 0x877   :  { %v3983_v39 = vpop.xlane.xlu1 %3982 }
 0x878   :  { %v9220_v23 = vpop.f32.mrf.mxu1  ;;  %6008 = vrcp.f32 %v3983_v39 }
 0x879   :  { %v9212_v3 = vpop.eup %6004 }
 0x87a   :  { %v9214_v32 = vpop.eup %6006  ;;  %v9227_v51 = vpop.f32.mrf.mxu3 }
 0x87b   :  { %3992 = vadd.xlane.f32.xlu0 %v9214_v32  ;;  %4435 = vadd.xlane.f32.xlu1 %v9212_v3 }
 0x87e   :  { %v6009_v2 = vpop.eup %6008 }
 0x87f   :  { %v4021_v21 = vmul.f32 %v6009_v2, %v9105_v63 }
 0x880   :  { %v3726_v54 = vpop.f32.mrf.mxu1 }
 0x881   :  { %v4037_v41 = vpack.c.bf16 %v4021_v21, %v4021_v21 }
 0x882   :  { %v9235_v9 = vpop.f32.mrf.mxu3 }
 0x883   :  { %v4086_v19 = vunpack.c.l.b16 %v4037_v41 }
 0x887   :  { %v3981_v24 = vpop.xlane.xlu2 %3980 }
 0x888   :  { %6010 = vrcp.f32 %v3981_v24  ;;  %v3729_v63 = vpop.f32.mrf.mxu1 }
 0x88a   :  { %4641 = vrot.lane.b32.xlu2 %v9125_v6, %s6256_s22 }
 0x88e   :  { %v6011_v4 = vpop.eup %6010 }
 0x88f   :  { %v4020_v56 = vmul.f32 %v6011_v4, %v9110_v47  ;;  %v4358_v8 = vpop.xlane.xlu2 %4357 }
 0x890   :  { %v4374_v1 = vsub.f32 %v9116_v61, %v4358_v8  ;;  %v3731_v61 = vpop.f32.mrf.mxu1 }
 0x891   :  { %v5384_v14 = vpack.c.bf16 %v4021_v21, %v4020_v56  ;;  %v4036_v60 = vpack.c.bf16 %v4020_v56, %v4020_v56 }
 0x892   :  { %v4405_v53 = vmul.f32 1.442695, %v4374_v1  ;;  %4647 = vrot.lane.b32.xlu2 %v9148_v0, %s6256_s22  ;;  %v9244_v0 = vpop.f32.mrf.mxu3 }
 0x893   :  { %5486 = vst [vmem:[#allocation11 + $0x1a0] sm:$0xff] %v5384_v14   ;;  %v4085_v6 = vunpack.c.l.b16 %v4036_v60 }
 0x894   :  { %6012 = vpow2.f32 %v4405_v53  ;;  %4643 = vrot.lane.b32.xlu1 %v9130_v20, %s6256_s22  ;;  %v4426_v20 = vpop.xlane.xlu0 %4425 }
 0x895   :  { %v4097_v47 = vpack.c.b16 %v4086_v19, %v4085_v6  ;;  %6014 = vrcp.f32 %v4426_v20 }
 0x897   :  { %4161 = vmatmul.bf16.gmra.mxu3 %v4097_v47 }
 0x898   :  { %v3734_v11 = vpop.f32.mrf.mxu1 }
 0x89a   :  { %v9237_v52 = vpop.eup %6012  ;;  %4653 = vrot.lane.b32.xlu2 %v9181_v57, %s6256_s22  ;;  %v4142_v31 = vpop.f32.mrf.mxu3 }
 0x89b   :  { %4437 = vadd.xlane.f32.xlu0 %v9237_v52  ;;  %v6015_v48 = vpop.eup %6014 }
 0x89c   :  { %4651 = vrot.lane.b32.xlu1 %v9169_v62, %s6256_s22  ;;  %v4464_v35 = vmul.f32 %v6015_v48, %v9118_v27 }
 0x8a0   :  { %v3736_v62 = vpop.f32.mrf.mxu1 }
 0x8a2   :  { %4659 = vrot.lane.b32.xlu2 %v3721_v38, %s6256_s22  ;;  %v4144_v36 = vpop.f32.mrf.mxu3  ;;  %v4480_v38 = vpack.c.bf16 %v4464_v35, %v4464_v35 }
 0x8a4   :  { %4657 = vrot.lane.b32.xlu1 %v3719_v13, %s6256_s22 }
 0x8aa   :  { %4665 = vrot.lane.b32.xlu2 %v3729_v63, %s6256_s22 }
 0x8ac   :  { %4663 = vrot.lane.b32.xlu1 %v3726_v54, %s6256_s22  ;;  %v4529_v54 = vunpack.c.l.b16 %v4480_v38 }
 0x8ad   :  { %v4424_v57 = vpop.xlane.xlu1 %4423 }
 0x8ae   :  { %6016 = vrcp.f32 %v4424_v57 }
 0x8af   :  { %4645 = vrot.lane.b32.xlu0 %v9137_v50, %s6256_s22 }
 0x8b1   :  { %v4147_v50 = vpop.f32.mrf.mxu3 }
 0x8b2   :  { %4671 = vrot.lane.b32.xlu2 %v3736_v62, %s6256_s22 }
 0x8b4   :  { %v6017_v13 = vpop.eup %6016  ;;  %4669 = vrot.lane.b32.xlu1 %v3734_v11, %s6256_s22 }
 0x8b5   :  { %v4463_v46 = vmul.f32 %v6017_v13, %v9140_v15  ;;  %v3985_v25 = vpop.xlane.xlu2 %3984 }
 0x8b7   :  { %v5424_v39 = vpack.c.bf16 %v4464_v35, %v4463_v46  ;;  %4649 = vrot.lane.b32.xlu0 %v9158_v40, %s6256_s22  ;;  %v4479_v24 = vpack.c.bf16 %v4463_v46, %v4463_v46 }
 0x8b9   :  { %5493 = vst [vmem:[#allocation11 + $0x1e0] sm:$0xff] %v5424_v39   ;;  %v4528_v2 = vunpack.c.l.b16 %v4479_v24  ;;  %v4149_v40 = vpop.f32.mrf.mxu3 }
 0x8ba   :  { %4709 = vrot.lane.b32.xlu2 %v4147_v50, %s6254_s4 }
 0x8bb   :  { %v4540_v27 = vpack.c.b16 %v4529_v54, %v4528_v2 }
 0x8bc   :  { %4707 = vrot.lane.b32.xlu1 %v4144_v36, %s6254_s4 }
 0x8bd   :  { %4604 = vmatmul.bf16.gmra.mxu1 %v4540_v27  ;;  %v4430_v21 = vpop.xlane.xlu2 %4429 }
 0x8be   :  { %6018 = vrcp.f32 %v4430_v21 }
 0x8bf   :  { %4655 = vrot.lane.b32.xlu0 %v9194_v43, %s6256_s22 }
 0x8c4   :  { %v6019_v4 = vpop.eup %6018 }
 0x8c5   :  { %v4428_v15 = vpop.xlane.xlu0 %4427  ;;  %v4466_v56 = vmul.f32 %v6019_v4, %v9156_v49 }
 0x8c6   :  { %6020 = vrcp.f32 %v4428_v15 }
 0x8c7   :  { %4661 = vrot.lane.b32.xlu0 %v9220_v23, %s6256_s22  ;;  %6022 = vrcp.f32 %v3985_v25  ;;  %v4482_v1 = vpack.c.bf16 %v4466_v56, %v4466_v56 }
 0x8c9   :  { %v4531_v63 = vunpack.c.l.b16 %v4482_v1 }
 0x8cc   :  { %v6021_v8 = vpop.eup %6020 }
 0x8cd   :  { %v4465_v41 = vmul.f32 %v6021_v8, %v9164_v44  ;;  %v6023_v53 = vpop.eup %6022  ;;  %v3991_v47 = vpop.xlane.xlu0 %3990 }
 0x8ce   :  { %v4022_v49 = vmul.f32 %v6023_v53, %v9146_v42 }
 0x8cf   :  { %v5429_v14 = vpack.c.bf16 %v4466_v56, %v4465_v41  ;;  %4667 = vrot.lane.b32.xlu0 %v3731_v61, %s6256_s22  ;;  %v4481_v60 = vpack.c.bf16 %v4465_v41, %v4465_v41 }
 0x8d0   :  { %v3987_v43 = vpop.xlane.xlu1 %3986  ;;  %v4038_v11 = vpack.c.bf16 %v4022_v49, %v4022_v49 }
 0x8d1   :  { %5494 = vst [vmem:[#allocation11 + $0x1e8] sm:$0xff] %v5429_v14   ;;  %6024 = vrcp.f32 %v3987_v43  ;;  %v4152_v6 = vpop.f32.mrf.mxu3  ;;  %v4530_v19 = vunpack.c.l.b16 %v4481_v60 }
 0x8d2   :  { %4713 = vrot.lane.b32.xlu1 %v4152_v6, %s6254_s4  ;;  %6026 = vrcp.f32 %v3991_v47  ;;  %v4087_v36 = vunpack.c.l.b16 %v4038_v11 }
 0x8d3   :  { %v4541_v23 = vpack.c.b16 %v4531_v63, %v4530_v19 }
 0x8d5   :  { %4609 = vmatmul.bf16.gmra.mxu1 %v4541_v23 }
 0x8d7   :  { %v6025_v44 = vpop.eup %6024  ;;  %4705 = vrot.lane.b32.xlu0 %v4142_v31, %s6254_s4 }
 0x8d8   :  { %v4023_v61 = vmul.f32 %v6025_v44, %v9179_v26  ;;  %v3989_v20 = vpop.xlane.xlu1 %3988  ;;  %v6027_v42 = vpop.eup %6026 }
 0x8d9   :  { %6028 = vrcp.f32 %v3989_v20  ;;  %v4154_v57 = vpop.f32.mrf.mxu3  ;;  %v4432_v13 = vpop.xlane.xlu2 %4431  ;;  %v4025_v31 = vmul.f32 %v6027_v42, %v9175_v18 }
 0x8da   :  { %v5389_v48 = vpack.c.bf16 %v4023_v61, %v4022_v49  ;;  %4715 = vrot.lane.b32.xlu2 %v4154_v57, %s6254_s4  ;;  %v4039_v62 = vpack.c.bf16 %v4023_v61, %v4023_v61  ;;  %6030 = vrcp.f32 %v4432_v13 }
 0x8db   :  { %v4041_v54 = vpack.c.bf16 %v4025_v31, %v4025_v31 }
 0x8dc   :  { %5487 = vst [vmem:[#allocation11 + $0x1a8] sm:$0xff] %v5389_v48   ;;  %v4088_v35 = vunpack.c.l.b16 %v4039_v62 }
 0x8dd   :  { %v4090_v15 = vunpack.c.l.b16 %v4041_v54 }
 0x8de   :  { %v4098_v46 = vpack.c.b16 %v4088_v35, %v4087_v36 }
 0x8df   :  { %v6029_v25 = vpop.eup %6028  ;;  %4711 = vrot.lane.b32.xlu0 %v4149_v40, %s6254_s4 }
 0x8e0   :  { %v4024_v26 = vmul.f32 %v6029_v25, %v9186_v12  ;;  %4166 = vmatmul.bf16.gmra.mxu3 %v4098_v46  ;;  %v6031_v2 = vpop.eup %6030 }
 0x8e1   :  { %v4467_v27 = vmul.f32 %v6031_v2, %v9188_v34 }
 0x8e2   :  { %v5394_v38 = vpack.c.bf16 %v4025_v31, %v4024_v26  ;;  %v4040_v50 = vpack.c.bf16 %v4024_v26, %v4024_v26 }
 0x8e3   :  { %v4483_v8 = vpack.c.bf16 %v4467_v27, %v4467_v27 }
 0x8e4   :  { %5488 = vst [vmem:[#allocation11 + $0x1b0] sm:$0xff] %v5394_v38   ;;  %v4089_v21 = vunpack.c.l.b16 %v4040_v50 }
 0x8e5   :  { %v3995_v39 = vpop.xlane.xlu2 %3994  ;;  %v4532_v60 = vunpack.c.l.b16 %v4483_v8 }
 0x8e6   :  { %v4434_v24 = vpop.xlane.xlu1 %4433  ;;  %v4099_v56 = vpack.c.b16 %v4090_v15, %v4089_v21 }
 0x8e7   :  { %6032 = vrcp.f32 %v4434_v24 }
 0x8e8   :  { %6034 = vrcp.f32 %v3995_v39 }
 0x8ed   :  { %v6033_v4 = vpop.eup %6032  ;;  %v9276_v40 = vpop.permute.xlu2 %4641 }
 0x8ee   :  { %v4468_v18 = vmul.f32 %v6033_v4, %v9208_v59  ;;  %v3993_v12 = vpop.xlane.xlu0 %3992  ;;  %v6035_v14 = vpop.eup %6034 }
 0x8ef   :  { %6036 = vrcp.f32 %v3993_v12  ;;  %v4027_v53 = vmul.f32 %v6035_v14, %v9204_v37  ;;  %v4436_v48 = vpop.xlane.xlu1 %4435 }
 0x8f0   :  { %v5434_v41 = vpack.c.bf16 %v4468_v18, %v4467_v27  ;;  %4171 = vmatmul.bf16.gmra.mxu3 %v4099_v56  ;;  %v4484_v1 = vpack.c.bf16 %v4468_v18, %v4468_v18  ;;  %6038 = vrcp.f32 %v4436_v48 }
 0x8f1   :  { %v4043_v23 = vpack.c.bf16 %v4027_v53, %v4027_v53 }
 0x8f2   :  { %5495 = vst [vmem:[#allocation11 + $0x1f0] sm:$0xff] %v5434_v41   ;;  %v4533_v43 = vunpack.c.l.b16 %v4484_v1  ;;  %v4157_v34 = vpop.f32.mrf.mxu3 }
 0x8f3   :  { %4717 = vrot.lane.b32.xlu0 %v4157_v34, %s6254_s4  ;;  %v4092_v20 = vunpack.c.l.b16 %v4043_v23 }
 0x8f4   :  { %v4542_v6 = vpack.c.b16 %v4533_v43, %v4532_v60 }
 0x8f5   :  { %v9281_v19 = vpop.permute.xlu2 %4647  ;;  %v6037_v59 = vpop.eup %6036 }
 0x8f6   :  { %4614 = vmatmul.bf16.gmra.mxu1 %v4542_v6  ;;  %v4026_v63 = vmul.f32 %v6037_v59, %v9214_v32  ;;  %v6039_v36 = vpop.eup %6038 }
 0x8f7   :  { %v4469_v35 = vmul.f32 %v6039_v36, %v9212_v3 }
 0x8f8   :  { %v5399_v49 = vpack.c.bf16 %v4027_v53, %v4026_v63  ;;  %v4042_v47 = vpack.c.bf16 %v4026_v63, %v4026_v63 }
 0x8f9   :  { %v4485_v46 = vpack.c.bf16 %v4469_v35, %v4469_v35 }
 0x8fa   :  { %5489 = vst [vmem:[#allocation11 + $0x1b8] sm:$0xff] %v5399_v49   ;;  %v4159_v44 = vpop.f32.mrf.mxu3  ;;  %v4091_v61 = vunpack.c.l.b16 %v4042_v47 }
 0x8fb   :  { %4719 = vrot.lane.b32.xlu1 %v4159_v44, %s6254_s4  ;;  %v4534_v39 = vunpack.c.l.b16 %v4485_v46 }
 0x8fc   :  { %v4100_v37 = vpack.c.b16 %v4092_v20, %v4091_v61 }
 0x8fd   :  { %v9285_v11 = vpop.permute.xlu2 %4653 }
 0x900   :  { %4176 = vmatmul.bf16.gmra.mxu3 %v4100_v37 }
 0x905   :  { %v9287_v57 = vpop.permute.xlu2 %4659 }
 0x906   :  { %v9302_v15 = vpop.permute.xlu1 %4643 }
 0x90d   :  { %v9289_v62 = vpop.permute.xlu2 %4665 }
 0x90e   :  { %v4438_v32 = vpop.xlane.xlu0 %4437  ;;  %v4652_v18 = vpop.permute.xlu1 %4651 }
 0x90f   :  { %6040 = vrcp.f32 %v4438_v32  ;;  %v4822_v12 = vsel %vm736_vm0, %v9152_v28, %v4652_v18 }
 0x915   :  { %v6041_v42 = vpop.eup %6040  ;;  %v9293_v31 = vpop.permute.xlu2 %4671 }
 0x916   :  { %v4470_v13 = vmul.f32 %v6041_v42, %v9237_v52  ;;  %v4585_v52 = vpop.f32.mrf.mxu1  ;;  %v9333_v36 = vpop.permute.xlu1 %4657 }
 0x918   :  { %v5439_v25 = vpack.c.bf16 %v4470_v13, %v4469_v35  ;;  %v4486_v26 = vpack.c.bf16 %v4470_v13, %v4470_v13 }
 0x91a   :  { %5496 = vst [vmem:[#allocation11 + $0x1f8] sm:$0xff] %v5439_v25   ;;  %v4162_v38 = vpop.f32.mrf.mxu3  ;;  %v4535_v24 = vunpack.c.l.b16 %v4486_v26 }
 0x91b   :  { %4721 = vrot.lane.b32.xlu2 %v4162_v38, %s6254_s4 }
 0x91c   :  { %v4543_v50 = vpack.c.b16 %v4535_v24, %v4534_v39  ;;  %4923 = dma.vmem_to_hbm [thread:$0]  %s4916_s24, 8192, %s4918_s27, [#allocation12], %s6254_s4, %s6254_s4, %s6259_s28  }
 0x91d   :  { %v4710_v54 = vpop.permute.xlu2 %4709 }
 0x91e   :  { %4619 = vmatmul.bf16.gmra.mxu1 %v4543_v50  ;;  %v4587_v4 = vpop.f32.mrf.mxu1  ;;  %v4664_v42 = vpop.permute.xlu1 %4663 }
 0x91f   :  { %v4828_v26 = vsel %vm736_vm0, %v9216_v45, %v4664_v42  ;;  %v4818_v45 = vsel %vm736_vm0, %v9122_v58, %v9302_v15  ;;  %v6075_v15 = vld [vmem:[#allocation2 + $0xa0] sm:$0xff] }
 0x921   :  { %v4646_v2 = vpop.permute.xlu0 %4645 }
 0x922   :  { %v4819_v3 = vsel %vm736_vm0, %v9128_v22, %v4646_v2  ;;  %v4164_v27 = vpop.f32.mrf.mxu3 }
 0x923   :  { %4723 = vrot.lane.b32.xlu0 %v4164_v27, %s6254_s4  ;;  %v9300_v21 = vsel %vm2708_vm3, %v4819_v3, %v4710_v54 }
 0x926   :  { %v4590_v8 = vpop.f32.mrf.mxu1  ;;  %v4670_v25 = vpop.permute.xlu1 %4669 }
 0x927   :  { %v4831_v3 = vsel %vm736_vm0, %v9235_v9, %v4670_v25 }
 0x929   :  { %v4650_v32 = vpop.permute.xlu0 %4649 }
 0x92a   :  { %v4821_v9 = vsel %vm736_vm0, %v9142_v7, %v4650_v32  ;;  %v6077_v32 = vld [vmem:[#allocation2 + $0xb8] sm:$0xff] }
 0x92e   :  { %v4592_v22 = vpop.f32.mrf.mxu1  ;;  %v4708_v50 = vpop.permute.xlu1 %4707 }
 0x931   :  { %v4656_v35 = vpop.permute.xlu0 %4655 }
 0x934   :  { %v4716_v56 = vpop.permute.xlu2 %4715 }
 0x935   :  { %v9307_v41 = vsel %vm2708_vm3, %v4822_v12, %v4716_v56  ;;  %v4834_v12 = vsel %vm2708_vm3, %v4818_v45, %v4708_v50 }
 0x936   :  { %v4595_v1 = vpop.f32.mrf.mxu1 }
 0x939   :  { %v4662_v46 = vpop.permute.xlu0 %4661 }
 0x93e   :  { %v4597_v14 = vpop.f32.mrf.mxu1 }
 0x941   :  { %v4668_v24 = vpop.permute.xlu0 %4667 }
 0x944   :  { %v4714_v54 = vpop.permute.xlu1 %4713 }
 0x946   :  { %v4600_v60 = vpop.f32.mrf.mxu1 }
 0x949   :  { %v4706_v2 = vpop.permute.xlu0 %4705 }
 0x94e   :  { %v4602_v43 = vpop.f32.mrf.mxu1 }
 0x956   :  { %v4605_v53 = vpop.f32.mrf.mxu1 }
 0x95e   :  { %v4607_v28 = vpop.f32.mrf.mxu1 }
 0x963   :  { %v4167_v34 = vpop.f32.mrf.mxu3 }
 0x964   :  { %4725 = vrot.lane.b32.xlu1 %v4167_v34, %s6254_s4 }
 0x966   :  { %v4610_v23 = vpop.f32.mrf.mxu1 }
 0x96b   :  { %v4169_v6 = vpop.f32.mrf.mxu3 }
 0x96c   :  { %4727 = vrot.lane.b32.xlu2 %v4169_v6, %s6254_s4 }
 0x96d   :  { %v4720_v27 = vpop.permute.xlu1 %4719 }
 0x96e   :  { %v4612_v47 = vpop.f32.mrf.mxu1 }
 0x973   :  { %v4172_v59 = vpop.f32.mrf.mxu3 }
 0x974   :  { %4729 = vrot.lane.b32.xlu0 %v4172_v59, %s6254_s4 }
 0x975   :  { %v9338_v13 = vpop.permute.xlu2 %4721 }
 0x976   :  { %v4615_v61 = vpop.f32.mrf.mxu1 }
 0x97b   :  { %v4174_v63 = vpop.f32.mrf.mxu3 }
 0x97c   :  { %4731 = vrot.lane.b32.xlu1 %v4174_v63, %s6254_s4  ;;  %v4824_v63 = vsel %vm736_vm0, %v9171_v17, %v4656_v35  ;;  %v4827_v17 = vsel %vm736_vm0, %v9206_v16, %v4662_v46  ;;  %v4830_v16 = vsel %vm736_vm0, %v9227_v51, %v4668_v24  ;;  %v4826_v24 = vsel %vm736_vm0, %v9199_v30, %v9287_v57 }
 0x97d   :  { %v4840_v7 = vsel %vm2708_vm3, %v4824_v63, %v4720_v27  ;;  %v6079_v27 = vld [vmem:[#allocation2 + $0xd0] sm:$0xff]  ;;  %v4829_v63 = vsel %vm736_vm0, %v9222_v10, %v9289_v62  ;;  %v4825_v30 = vsel %vm736_vm0, %v9184_v55, %v9333_v36  ;;  %v4832_v55 = vsel %vm736_vm0, %v9244_v0, %v9293_v31 }
 0x97e   :  { %v4617_v20 = vpop.f32.mrf.mxu1 }
 0x983   :  { %v4177_v49 = vpop.f32.mrf.mxu3 }
 0x984   :  { %4769 = vrot.lane.b32.xlu1 %v4585_v52, %s6255_s21  ;;  %4733 = vrot.lane.b32.xlu2 %v4177_v49, %s6254_s4 }
 0x98b   :  { %v4179_v44 = vpop.f32.mrf.mxu3 }
 0x98c   :  { %4775 = vrot.lane.b32.xlu1 %v4592_v22, %s6255_s21  ;;  %4771 = vrot.lane.b32.xlu2 %v4587_v4, %s6255_s21  ;;  %v4712_v4 = vpop.permute.xlu0 %4711 }
 0x98d   :  { %4735 = vrot.lane.b32.xlu0 %v4179_v44, %s6254_s4 }
 0x994   :  { %4781 = vrot.lane.b32.xlu1 %v4600_v60, %s6255_s21  ;;  %4777 = vrot.lane.b32.xlu2 %v4595_v1, %s6255_s21  ;;  %v4718_v22 = vpop.permute.xlu0 %4717 }
 0x995   :  { %4773 = vrot.lane.b32.xlu0 %v4590_v8, %s6255_s21 }
 0x99b   :  { %v4620_v37 = vpop.f32.mrf.mxu1 }
 0x99c   :  { %4787 = vrot.lane.b32.xlu1 %v4607_v28, %s6255_s21  ;;  %4783 = vrot.lane.b32.xlu2 %v4602_v43, %s6255_s21  ;;  %v4837_v43 = vsel %vm2708_vm3, %v4821_v9, %v4714_v54  ;;  %v4724_v6 = vpop.permute.xlu0 %4723  ;;  %v4817_v28 = vsel %vm736_vm0, %v9113_v29, %v9276_v40  ;;  %v4820_v29 = vsel %vm736_vm0, %v9133_v33, %v9281_v19  ;;  %v6078_v54 = vld [vmem:[#allocation2 + $0x98] sm:$0xff] }
 0x99d   :  { %4779 = vrot.lane.b32.xlu0 %v4597_v14, %s6255_s21  ;;  %v6074_v14 = vld [vmem:[#allocation2 + $0x88] sm:$0xff]  ;;  %v4836_v40 = vsel %vm2708_vm3, %v4820_v29, %v4712_v4  ;;  %v4823_v33 = vsel %vm736_vm0, %v9161_v5, %v9285_v11  ;;  %v6082_v11 = vld [vmem:[#allocation2 + $0x90] sm:$0xff] }
 0x99e   :  { %v4839_v19 = vsel %vm2708_vm3, %v4823_v33, %v4718_v22  ;;  %v4842_v22 = vsel %vm2708_vm3, %v4826_v24, %v4724_v6 }
 0x9a3   :  { %v4622_v48 = vpop.f32.mrf.mxu1 }
 0x9a4   :  { %4793 = vrot.lane.b32.xlu1 %v4615_v61, %s6255_s21  ;;  %4789 = vrot.lane.b32.xlu2 %v4610_v23, %s6255_s21  ;;  %v4833_v23 = vsel %vm2708_vm3, %v4817_v28, %v4706_v2 }
 0x9a5   :  { %4785 = vrot.lane.b32.xlu0 %v4605_v53, %s6255_s21 }
 0x9ac   :  { %4795 = vrot.lane.b32.xlu2 %v4617_v20, %s6255_s21  ;;  %4799 = vrot.lane.b32.xlu1 %v4622_v48, %s6255_s21 }
 0x9ad   :  { %4791 = vrot.lane.b32.xlu0 %v4612_v47, %s6255_s21 }
 0x9b5   :  { %4797 = vrot.lane.b32.xlu0 %v4620_v37, %s6255_s21  ;;  %v6076_v37 = vld [vmem:[#allocation2 + $0x80] sm:$0xff] }
 0x9c6   :  { %v4728_v38 = vpop.permute.xlu2 %4727 }
 0x9c7   :  { %v9343_v39 = vsel %vm2708_vm3, %v4828_v26, %v4728_v38 }
 0x9d6   :  { %v4726_v56 = vpop.permute.xlu1 %4725 }
 0x9d7   :  { %v4843_v35 = vsel %vm2708_vm3, %v4827_v17, %v4726_v56  ;;  %v6089_v17 = vld [vmem:[#allocation2 + $0xf0] sm:$0xff] }
 0x9de   :  { %v4734_v52 = vpop.permute.xlu2 %4733 }
 0x9df   :  { %v9348_v18 = vsel %vm2708_vm3, %v4831_v3, %v4734_v52 }
 0x9e6   :  { %v4772_v8 = vpop.permute.xlu2 %4771  ;;  %v4730_v44 = vpop.permute.xlu0 %4729 }
 0x9e7   :  { %v4850_v1 = vsel %vm2725_vm4, %v4834_v12, %v4772_v8  ;;  %v4845_v57 = vsel %vm2708_vm3, %v4829_v63, %v4730_v44  ;;  %v6087_v44 = vld [vmem:[#allocation2 + $0xf8] sm:$0xff] }
 0x9e8   :  { %v4866_v60 = vadd.f32 %v6074_v14, %v4850_v1  ;;  %v6080_v1 = vld [vmem:[#allocation2 + $0xb0] sm:$0xff] }
 0x9ea   :  { %4883 = vst [vmem:[#allocation10 + $0x88] sm:$0xff] %v4866_v60  ;;  %v6081_v60 = vld [vmem:[#allocation2 + $0xe8] sm:$0xff] }
 0x9ee   :  { %v4732_v34 = vpop.permute.xlu1 %4731  ;;  %v4778_v53 = vpop.permute.xlu2 %4777 }
 0x9ef   :  { %v4853_v58 = vsel %vm2725_vm4, %v4837_v43, %v4778_v53  ;;  %v4846_v46 = vsel %vm2708_vm3, %v4830_v16, %v4732_v34 }
 0x9f0   :  { %v4869_v59 = vadd.f32 %v6075_v15, %v4853_v58  ;;  %v6083_v58 = vld [vmem:[#allocation2 + $0xc8] sm:$0xff] }
 0x9f2   :  { %4886 = vst [vmem:[#allocation10 + $0xa0] sm:$0xff] %v4869_v59  ;;  %v6084_v59 = vld [vmem:[#allocation2 + $0xa8] sm:$0xff] }
 0x9f6   :  { %v4770_v49 = vpop.permute.xlu1 %4769  ;;  %v4784_v47 = vpop.permute.xlu2 %4783 }
 0x9f7   :  { %v4849_v61 = vsel %vm2725_vm4, %v4833_v23, %v4770_v49  ;;  %v4856_v20 = vsel %vm2725_vm4, %v4840_v7, %v4784_v47  ;;  %v4841_v23 = vsel %vm2708_vm3, %v4825_v30, %v9338_v13  ;;  %v6085_v49 = vld [vmem:[#allocation2 + $0xe0] sm:$0xff] }
 0x9f8   :  { %v4865_v48 = vadd.f32 %v6076_v37, %v4849_v61  ;;  %v4872_v42 = vadd.f32 %v6077_v32, %v4856_v20  ;;  %v6086_v20 = vld [vmem:[#allocation2 + $0xc0] sm:$0xff] }
 0x9fa   :  { %4882 = vst [vmem:[#allocation10 + $0x80] sm:$0xff] %v4865_v48 }
 0x9fb   :  { %4889 = vst [vmem:[#allocation10 + $0xb8] sm:$0xff] %v4872_v42  ;;  %v6088_v42 = vld [vmem:[#allocation2 + $0xd8] sm:$0xff] }
 0x9fe   :  { %v4776_v25 = vpop.permute.xlu1 %4775  ;;  %v4790_v26 = vpop.permute.xlu2 %4789 }
 0x9ff   :  { %v4852_v38 = vsel %vm2725_vm4, %v4836_v40, %v4776_v25  ;;  %v4859_v50 = vsel %vm2725_vm4, %v4843_v35, %v4790_v26  ;;  %v4736_v2 = vpop.permute.xlu0 %4735 }
 0xa00   :  { %v4868_v3 = vadd.f32 %v6078_v54, %v4852_v38  ;;  %v4875_v52 = vadd.f32 %v6079_v27, %v4859_v50  ;;  %v4848_v10 = vsel %vm2708_vm3, %v4832_v55, %v4736_v2 }
 0xa02   :  { %4885 = vst [vmem:[#allocation10 + $0x98] sm:$0xff] %v4868_v3 }
 0xa03   :  { %4892 = vst [vmem:[#allocation10 + $0xd0] sm:$0xff] %v4875_v52 }
 0xa06   :  { %v4782_v4 = vpop.permute.xlu1 %4781  ;;  %v4796_v45 = vpop.permute.xlu2 %4795 }
 0xa07   :  { %v4855_v12 = vsel %vm2725_vm4, %v4839_v19, %v4782_v4  ;;  %v4862_v56 = vsel %vm2725_vm4, %v4846_v46, %v4796_v45  ;;  %v4774_v8 = vpop.permute.xlu0 %4773 }
 0xa08   :  { %v4871_v14 = vadd.f32 %v6080_v1, %v4855_v12  ;;  %v4878_v9 = vadd.f32 %v6081_v60, %v4862_v56  ;;  %v4851_v5 = vsel %vm2725_vm4, %v9300_v21, %v4774_v8 }
 0xa09   :  { %v4867_v51 = vadd.f32 %v6082_v11, %v4851_v5 }
 0xa0a   :  { %4888 = vst [vmem:[#allocation10 + $0xb0] sm:$0xff] %v4871_v14 }
 0xa0b   :  { %4895 = vst [vmem:[#allocation10 + $0xe8] sm:$0xff] %v4878_v9 }
 0xa0c   :  { %4884 = vst [vmem:[#allocation10 + $0x90] sm:$0xff] %v4867_v51 }
 0xa0e   :  { %v4788_v43 = vpop.permute.xlu1 %4787 }
 0xa0f   :  { %v4858_v34 = vsel %vm2725_vm4, %v4842_v22, %v4788_v43  ;;  %v4780_v53 = vpop.permute.xlu0 %4779 }
 0xa10   :  { %v4874_v15 = vadd.f32 %v6083_v58, %v4858_v34  ;;  %v4854_v21 = vsel %vm2725_vm4, %v9307_v41, %v4780_v53 }
 0xa11   :  { %v4870_v28 = vadd.f32 %v6084_v59, %v4854_v21 }
 0xa12   :  { %4891 = vst [vmem:[#allocation10 + $0xc8] sm:$0xff] %v4874_v15 }
 0xa13   :  { %4887 = vst [vmem:[#allocation10 + $0xa8] sm:$0xff] %v4870_v28 }
 0xa16   :  { %v4794_v6 = vpop.permute.xlu1 %4793 }
 0xa17   :  { %v4861_v41 = vsel %vm2725_vm4, %v4845_v57, %v4794_v6  ;;  %v4786_v7 = vpop.permute.xlu0 %4785 }
 0xa18   :  { %v4877_v47 = vadd.f32 %v6085_v49, %v4861_v41  ;;  %v4857_v61 = vsel %vm2725_vm4, %v4841_v23, %v4786_v7 }
 0xa19   :  { %v4873_v37 = vadd.f32 %v6086_v20, %v4857_v61 }
 0xa1a   :  { %4894 = vst [vmem:[#allocation10 + $0xe0] sm:$0xff] %v4877_v47 }
 0xa1b   :  { %4890 = vst [vmem:[#allocation10 + $0xc0] sm:$0xff] %v4873_v37 }
 0xa1e   :  { %v4800_v62 = vpop.permute.xlu1 %4799 }
 0xa1f   :  { %v4864_v36 = vsel %vm2725_vm4, %v4848_v10, %v4800_v62  ;;  %v4792_v13 = vpop.permute.xlu0 %4791 }
 0xa20   :  { %v4880_v48 = vadd.f32 %v6087_v44, %v4864_v36  ;;  %v4860_v32 = vsel %vm2725_vm4, %v9343_v39, %v4792_v13 }
 0xa21   :  { %v4876_v29 = vadd.f32 %v6088_v42, %v4860_v32 }
 0xa22   :  { %4897 = vst [vmem:[#allocation10 + $0xf8] sm:$0xff] %v4880_v48 }
 0xa23   :  { %4893 = vst [vmem:[#allocation10 + $0xd8] sm:$0xff] %v4876_v29 }
 0xa27   :  { %v4798_v0 = vpop.permute.xlu0 %4797 }
 0xa28   :  { %v4863_v31 = vsel %vm2725_vm4, %v9348_v18, %v4798_v0 }
 0xa29   :  { %v4879_v40 = vadd.f32 %v6089_v17, %v4863_v31 }
 0xa2b   :  { %4896 = vst [vmem:[#allocation10 + $0xf0] sm:$0xff] %v4879_v40 }
 0xa2c   :  { %4910 = dma.vmem_to_hbm [thread:$0]  %s4903_s29, 4096, %s4905_s8, [#allocation4], %s6248_s9, %s6248_s9, %s6249_s10  }
 0xa2d   :  { %6240 = dma.done.wait [#allocation4], 4096  }
 0xa2e   :  { %6241 = vsyncadd [#allocation4], 4294963200 }
 0xa2f   :  { %6242 = dma.done.wait [#allocation12], 8192  }
 0xa30   :  { %6243 = vsyncadd [#allocation12], 4294959104 }
 0xa31   :  { %4932 = vsyncpa [#allocation3], 1 }
 0xa32   :  { %4933 = vsyncpa [#allocation6], 1 }
 0xa33   :  { %4934 = vsyncpa [#allocation9], 1 }
 0xa34   :  { %4935 = vsyncpa [#allocation4], 1 }
 0xa35   :  { %4936 = vsyncpa [#allocation12], 1 }

</bundles_post_ra>
